<compile_context>
chip_gen: v7x
topology: tpu7x:2x2x1
jax: 0.10.0
libtpu: 0.0.40
codegen_flags: <defaults>
</compile_context>

<pallas_src>
import functools
import numpy as np
import jax
import jax.numpy as jnp
from jax import lax
from jax.experimental import pallas as pl
from jax.experimental.pallas import tpu as pltpu

# ---------------- scaled-down SwinV2-tiny config ----------------
IMG_SIZE = 32
IN_CHANS = 3
PATCH_SIZE = 4
EMBED_DIM = 32
DEPTHS = (2, 2)
NUM_HEADS = (2, 4)
WINDOW_SIZE = 4
MLP_RATIO = 2.0
CPB_HIDDEN = 128
LN_EPS = 1e-5

IMAGENET_MEAN = np.array([0.485, 0.456, 0.406], np.float32)
IMAGENET_STD = np.array([0.229, 0.224, 0.225], np.float32)


# ---------------- small helpers ----------------
def _full_spec(shape):
    nd = len(shape)
    return pl.BlockSpec(shape, lambda *_: (0,) * nd)


def _row_tile(M):
    # Largest convenient row tile; at this model scale it is always the full M.
    if M <= 256:
        return M
    for t in (256, 128, 64, 32, 16, 8):
        if M % t == 0:
            return t
    return M


def _erf(x):
    # Abramowitz & Stegun 7.1.26 (max abs err ~1.5e-7); only exp/mul/add -> lowers cleanly.
    a1, a2, a3, a4, a5 = 0.254829592, -0.284496736, 1.421413741, -1.453152027, 1.061405429
    pp = 0.3275911
    sgn = jnp.where(x < 0.0, -1.0, 1.0)
    ax = jnp.abs(x)
    t = 1.0 / (1.0 + pp * ax)
    y = 1.0 - (((((a5 * t + a4) * t) + a3) * t + a2) * t + a1) * t * jnp.exp(-ax * ax)
    return sgn * y


def _gelu_exact(x):
    return 0.5 * x * (1.0 + _erf(x * np.float32(1.0 / np.sqrt(2.0))))


def _ln(x, g, b):
    mean = jnp.mean(x, axis=-1, keepdims=True)
    var = jnp.mean(jnp.square(x - mean), axis=-1, keepdims=True)
    return (x - mean) * lax.rsqrt(var + LN_EPS) * g + b


# ---------------- Pallas kernels ----------------
def _matmul_ln_kernel(x_ref, w_ref, b_ref, g_ref, bt_ref, o_ref):
    y = jnp.dot(x_ref[...].astype(jnp.float32), w_ref[...].astype(jnp.float32),
                preferred_element_type=jnp.float32) + b_ref[...]
    o_ref[...] = _ln(y, g_ref[...], bt_ref[...]).astype(o_ref.dtype)


def matmul_ln(x, w, b, g, beta):
    """Fused (x @ w + b) followed by LayerNorm; single grid step at this scale."""
    M, K = x.shape
    N = w.shape[1]
    tm = _row_tile(M)
    return pl.pallas_call(
        _matmul_ln_kernel,
        out_shape=jax.ShapeDtypeStruct((M, N), x.dtype),
        grid=(M // tm,),
        in_specs=[pl.BlockSpec((tm, K), lambda i: (i, 0)),
                  pl.BlockSpec((K, N), lambda i: (0, 0)),
                  pl.BlockSpec((1, N), lambda i: (0, 0)),
                  pl.BlockSpec((1, N), lambda i: (0, 0)),
                  pl.BlockSpec((1, N), lambda i: (0, 0))],
        out_specs=pl.BlockSpec((tm, N), lambda i: (i, 0)),
        compiler_params=pltpu.CompilerParams(dimension_semantics=("parallel",)),
    )(x, w, b.reshape(1, N), g.reshape(1, N), beta.reshape(1, N))


def _ln_kernel(x_ref, g_ref, b_ref, o_ref):
    x = x_ref[...].astype(jnp.float32)
    o_ref[...] = _ln(x, g_ref[...], b_ref[...]).astype(o_ref.dtype)


def layernorm(x, g, b):
    M, C = x.shape
    tm = _row_tile(M)
    return pl.pallas_call(
        _ln_kernel,
        out_shape=jax.ShapeDtypeStruct((M, C), x.dtype),
        grid=(M // tm,),
        in_specs=[pl.BlockSpec((tm, C), lambda i: (i, 0)),
                  pl.BlockSpec((1, C), lambda i: (0, 0)),
                  pl.BlockSpec((1, C), lambda i: (0, 0))],
        out_specs=pl.BlockSpec((tm, C), lambda i: (i, 0)),
        compiler_params=pltpu.CompilerParams(dimension_semantics=("parallel",)),
    )(x, g.reshape(1, C), b.reshape(1, C))


def _swin_block_kernel(x_ref, wqkv_ref, bqkv_ref, wo_ref, bo_ref,
                       ln1g_ref, ln1b_ref, w1_ref, b1_ref, w2_ref, b2_ref,
                       ln2g_ref, ln2b_ref, bias_ref, mask_ref, scale_ref,
                       o_ref, *, heads, head_dim, num_win, win_n):
    """One full SwinV2 block over ALL windows of the image, fully resident in VMEM.

    x_ref: (L, C) tokens in window-partitioned order, L = num_win * win_n.
    """
    x = x_ref[...].astype(jnp.float32)                      # (L, C)
    C = heads * head_dim

    # --- fused QKV projection: one lane-dense [L, 3C] MXU pass over all tokens ---
    qkv = jnp.dot(x, wqkv_ref[...], preferred_element_type=jnp.float32) + bqkv_ref[...]
    mask = mask_ref[...]                                    # (nWm, N, N), nWm in {1, num_win}

    # --- SwinV2 cosine attention: heads unrolled (static, tiny), windows batched ---
    head_outs = []
    for h in range(heads):
        q = qkv[:, h * head_dim:(h + 1) * head_dim]
        k = qkv[:, C + h * head_dim: C + (h + 1) * head_dim]
        v = qkv[:, 2 * C + h * head_dim: 2 * C + (h + 1) * head_dim]
        qh = q.reshape(num_win, win_n, head_dim)
        kh = k.reshape(num_win, win_n, head_dim)
        vh = v.reshape(num_win, win_n, head_dim)
        # F.normalize(q/k, eps=1e-12) via rsqrt (EUP) instead of sqrt+divide.
        qn = qh * lax.rsqrt(jnp.maximum(jnp.sum(qh * qh, axis=-1, keepdims=True), 1e-24))
        kn = kh * lax.rsqrt(jnp.maximum(jnp.sum(kh * kh, axis=-1, keepdims=True), 1e-24))
        attn = jnp.einsum('bnd,bmd->bnm', qn, kn,
                          preferred_element_type=jnp.float32)     # (num_win, N, N)
        attn = attn * scale_ref[h] + bias_ref[h] + mask
        attn = attn - jnp.max(attn, axis=-1, keepdims=True)
        p = jnp.exp(attn)
        p = p * pl.reciprocal(jnp.sum(p, axis=-1, keepdims=True), approx=True)
        oh = jnp.einsum('bnm,bmd->bnd', p, vh,
                        preferred_element_type=jnp.float32)       # (num_win, N, hd)
        head_outs.append(oh.reshape(num_win * win_n, head_dim))
    attn_out = jnp.concatenate(head_outs, axis=-1)          # (L, C)

    # --- output projection + post-norm residual 1 ---
    attn_out = jnp.dot(attn_out, wo_ref[...], preferred_element_type=jnp.float32) + bo_ref[...]
    h1 = x + _ln(attn_out, ln1g_ref[...], ln1b_ref[...])

    # --- MLP (fc1 + exact erf GELU + fc2) + post-norm residual 2 ---
    y = jnp.dot(h1, w1_ref[...], preferred_element_type=jnp.float32) + b1_ref[...]
    y = _gelu_exact(y)
    y = jnp.dot(y, w2_ref[...], preferred_element_type=jnp.float32) + b2_ref[...]
    y = _ln(y, ln2g_ref[...], ln2b_ref[...])

    o_ref[...] = (h1 + y).astype(o_ref.dtype)


# ---------------- static (numpy) helpers ----------------
def _rel_pos_static(ws):
    # SwinV2 log-spaced continuous-position-bias coordinate table + gather index.
    rel = np.arange(-(ws - 1), ws, dtype=np.float32)
    table = np.stack(np.meshgrid(rel, rel, indexing="ij"), axis=-1)
    table = table / max(ws - 1, 1)
    table = table * 8.0
    table = np.sign(table) * np.log2(np.abs(table) + 1.0) / np.log2(8.0)
    table = table.reshape(-1, 2).astype(np.float32)

    coords = np.stack(np.meshgrid(np.arange(ws), np.arange(ws), indexing="ij"))
    coords = coords.reshape(2, -1)
    rel_coords = coords[:, :, None] - coords[:, None, :]
    rel_coords = rel_coords.transpose(1, 2, 0).astype(np.int64)
    rel_coords[:, :, 0] += ws - 1
    rel_coords[:, :, 1] += ws - 1
    rel_coords[:, :, 0] *= 2 * ws - 1
    index = rel_coords.sum(-1).astype(np.int32)            # (ws*ws, ws*ws)
    return table, index


def _shift_mask(H, W, ws, shift):
    img_mask = np.zeros((1, H, W, 1), np.float32)
    cnt = 0
    for h in (slice(0, -ws), slice(-ws, -shift), slice(-shift, None)):
        for w in (slice(0, -ws), slice(-ws, -shift), slice(-shift, None)):
            img_mask[:, h, w, :] = cnt
            cnt += 1
    mw = img_mask.reshape(1, H // ws, ws, W // ws, ws, 1)
    mw = mw.transpose(0, 1, 3, 2, 4, 5).reshape(-1, ws * ws)
    attn_mask = mw[:, None, :] - mw[:, :, None]
    return np.where(attn_mask != 0, -100.0, 0.0).astype(np.float32)  # (nW, N, N)


def cpb_bias(blk, ws, heads):
    # Parameter-only work (two tiny matmuls + gather + sigmoid), done once in prepare.
    table, index = _rel_pos_static(ws)
    h = jax.nn.relu(jnp.asarray(table) @ blk["cpb_w1"] + blk["cpb_b1"])
    bias_table = h @ blk["cpb_w2"]                          # ((2ws-1)^2, heads)
    bias = bias_table[index.reshape(-1)].reshape(ws * ws, ws * ws, heads)
    bias = jnp.transpose(bias, (2, 0, 1))
    return 16.0 * jax.nn.sigmoid(bias)                      # (heads, N, N)


# ---------------- model glue (reshapes / partitioning) ----------------
def window_partition(x, ws):
    B, H, W, C = x.shape
    x = x.reshape(B, H // ws, ws, W // ws, ws, C)
    return x.transpose(0, 1, 3, 2, 4, 5).reshape(-1, ws * ws, C)


def window_reverse(wins, ws, B, H, W):
    x = wins.reshape(B, H // ws, W // ws, ws, ws, -1)
    return x.transpose(0, 1, 3, 2, 4, 5).reshape(B, H, W, -1)


def patch_embed(image, p):
    # Conv2d(kernel=4, stride=4) expressed as patch-flatten + fused matmul+LN kernel.
    # ImageNet mean/std normalization is pre-folded into proj_w / proj_b (prepare_params).
    B, Cin, H, W = image.shape
    ph, pw = H // PATCH_SIZE, W // PATCH_SIZE
    x = image.reshape(B, Cin, ph, PATCH_SIZE, pw, PATCH_SIZE)
    x = x.transpose(0, 2, 4, 1, 3, 5).reshape(B * ph * pw, Cin * PATCH_SIZE * PATCH_SIZE)
    y = matmul_ln(x, p["proj_w"], p["proj_b"], p["norm_g"], p["norm_b"])
    return y.reshape(B, ph * pw, EMBED_DIM), ph, pw


def swin_block(x, blk, H, W, heads, ws, shift):
    """One fused pallas_call per block; all windows processed in a single kernel step."""
    B, L, C = x.shape
    N = ws * ws
    head_dim = C // heads
    hidden = blk["fc1_w"].shape[1]

    xg = x.reshape(B, H, W, C)
    if shift > 0:
        xg = jnp.roll(xg, shift=(-shift, -shift), axis=(1, 2))
    # NOTE: per-token ops (LN / MLP / residual) commute with the window permutation,
    # so the whole block runs in shifted-window layout and is un-permuted once at the end.
    wins = window_partition(xg, ws)                        # (B*nW, N, C)
    BW = wins.shape[0]
    tokens = wins.reshape(BW * N, C)                       # (L_total, C) window-ordered

    mask = blk["mask"]                                     # (nW, N, N) or (1, N, N)
    if mask.shape[0] not in (1, BW):                       # B > 1 with shifted windows
        mask = jnp.tile(mask, (BW // mask.shape[0], 1, 1))
    nW_mask = mask.shape[0]

    kernel = functools.partial(_swin_block_kernel, heads=heads, head_dim=head_dim,
                               num_win=BW, win_n=N)
    out = pl.pallas_call(
        kernel,
        out_shape=jax.ShapeDtypeStruct((BW * N, C), x.dtype),
        grid=(1,),
        in_specs=[
            pl.BlockSpec((BW * N, C), lambda i: (0, 0)),     # all window tokens
            _full_spec((C, 3 * C)), _full_spec((1, 3 * C)),  # fused QKV
            _full_spec((C, C)), _full_spec((1, C)),          # output proj
            _full_spec((1, C)), _full_spec((1, C)),          # ln1
            _full_spec((C, hidden)), _full_spec((1, hidden)),  # fc1
            _full_spec((hidden, C)), _full_spec((1, C)),       # fc2
            _full_spec((1, C)), _full_spec((1, C)),            # ln2
            _full_spec((heads, N, N)),                         # cpb bias
            _full_spec((nW_mask, N, N)),                       # shift mask
            _full_spec((heads, 1, 1)),                         # logit scale
        ],
        out_specs=pl.BlockSpec((BW * N, C), lambda i: (0, 0)),
    )(tokens, blk["wqkv"], blk["bqkv"], blk["proj_w"], blk["proj_b"],
      blk["ln1_g"], blk["ln1_b"], blk["fc1_w"], blk["fc1_b"],
      blk["fc2_w"], blk["fc2_b"], blk["ln2_g"], blk["ln2_b"],
      blk["bias"], mask, blk["scale"])

    xg = window_reverse(out.reshape(BW, N, C), ws, B, H, W)
    if shift > 0:
        xg = jnp.roll(xg, shift=(shift, shift), axis=(1, 2))
    return xg.reshape(B, L, C)


def patch_merging(x, p, H, W):
    B, L, C = x.shape
    xg = x.reshape(B, H, W, C)
    x0 = xg[:, 0::2, 0::2, :]
    x1 = xg[:, 1::2, 0::2, :]
    x2 = xg[:, 0::2, 1::2, :]
    x3 = xg[:, 1::2, 1::2, :]
    xc = jnp.concatenate([x0, x1, x2, x3], axis=-1).reshape(B * (H // 2) * (W // 2), 4 * C)
    y = matmul_ln(xc, p["red_w"], p["red_b"], p["norm_g"], p["norm_b"])
    return y.reshape(B, (H // 2) * (W // 2), 2 * C)


def swinv2_forward(image, prep):
    # image: NCHW float32 in [0, 1]; normalization is folded into the patch-embed weights.
    # TODO(synk): the HF AutoImageProcessor's bilinear resize to 256x256 has no clean
    # Pallas equivalent here; the image is assumed pre-sized to IMG_SIZE.
    x, H, W = patch_embed(image, prep["patch_embed"])
    for si, stage in enumerate(prep["stages"]):
        heads = NUM_HEADS[si]
        ws = min(WINDOW_SIZE, H, W)
        for bi, blk in enumerate(stage["blocks"]):
            shift = 0 if (bi % 2 == 0 or ws >= min(H, W)) else ws // 2
            x = swin_block(x, blk, H, W, heads, ws, shift)
        if stage["downsample"] is not None:
            x = patch_merging(x, stage["downsample"], H, W)
            H, W = H // 2, W // 2
    B, L, C = x.shape
    last_hidden = layernorm(x.reshape(B * L, C), prep["final_norm_g"], prep["final_norm_b"])
    last_hidden_state = last_hidden.reshape(B, L, C)        # outputs.last_hidden_state
    return last_hidden_state.reshape(1, -1)                 # embedding.reshape(1, -1)


# ---------------- parameter preparation (done once, outside jit) ----------------
def prepare_params(params):
    """Fold parameter-only work (normalization folding, QKV fusion, cpb bias, logit-scale
    clamp, shift masks, bias reshapes) so the jitted forward only runs the kernels."""
    P = PATCH_SIZE
    scale_vec = np.repeat(1.0 / IMAGENET_STD, P * P).astype(np.float32)    # (Cin*P*P,)
    shift_vec = np.repeat(IMAGENET_MEAN / IMAGENET_STD, P * P).astype(np.float32)
    pe = params["patch_embed"]
    prep = {
        "patch_embed": {
            "proj_w": pe["proj_w"] * scale_vec[:, None],
            "proj_b": pe["proj_b"] - shift_vec @ pe["proj_w"],
            "norm_g": pe["norm_g"], "norm_b": pe["norm_b"],
        },
        "stages": [],
        "final_norm_g": params["final_norm_g"],
        "final_norm_b": params["final_norm_b"],
    }
    H = W = IMG_SIZE // PATCH_SIZE
    num_stages = len(DEPTHS)
    for si, stage in enumerate(params["stages"]):
        heads = NUM_HEADS[si]
        ws = min(WINDOW_SIZE, H, W)
        N = ws * ws
        blocks = []
        for bi, blk in enumerate(stage["blocks"]):
            shift = 0 if (bi % 2 == 0 or ws >= min(H, W)) else ws // 2
            dim = blk["q_w"].shape[0]
            hidden = blk["fc1_w"].shape[1]
            if shift > 0:
                mask = jnp.asarray(_shift_mask(H, W, ws, shift))   # (nW, N, N)
            else:
                mask = jnp.zeros((1, N, N), jnp.float32)
            blocks.append({
                "wqkv": jnp.concatenate([blk["q_w"], blk["k_w"], blk["v_w"]], axis=1),
                "bqkv": jnp.concatenate([blk["q_b"], blk["k_b"], blk["v_b"]]).reshape(1, 3 * dim),
                "proj_w": blk["proj_w"], "proj_b": blk["proj_b"].reshape(1, dim),
                "ln1_g": blk["ln1_g"].reshape(1, dim), "ln1_b": blk["ln1_b"].reshape(1, dim),
                "fc1_w": blk["fc1_w"], "fc1_b": blk["fc1_b"].reshape(1, hidden),
                "fc2_w": blk["fc2_w"], "fc2_b": blk["fc2_b"].reshape(1, dim),
                "ln2_g": blk["ln2_g"].reshape(1, dim), "ln2_b": blk["ln2_b"].reshape(1, dim),
                "bias": cpb_bias(blk, ws, heads),                  # (heads, N, N)
                "mask": mask,
                "scale": jnp.exp(jnp.minimum(blk["logit_scale"],
                                             np.float32(np.log(100.0)))).reshape(heads, 1, 1),
            })
        ds = None
        if stage["downsample"] is not None:
            dsp = stage["downsample"]
            ds = {
                "red_w": dsp["red_w"],
                "red_b": jnp.zeros((dsp["red_w"].shape[1],), jnp.float32),  # bias=False
                "norm_g": dsp["norm_g"], "norm_b": dsp["norm_b"],
            }
        prep["stages"].append({"blocks": blocks, "downsample": ds})
        if si < num_stages - 1:
            H, W = H // 2, W // 2
    return prep


# ---------------- deterministic synthetic parameters ----------------
def init_params(key):
    keys = iter(jax.random.split(key, 512))

    def dense(fi, fo):
        return jax.random.normal(next(keys), (fi, fo), jnp.float32) * 0.02

    def zeros(*s):
        return jnp.zeros(s, jnp.float32)

    def ones(*s):
        return jnp.ones(s, jnp.float32)

    params = {
        "patch_embed": {
            "proj_w": dense(IN_CHANS * PATCH_SIZE * PATCH_SIZE, EMBED_DIM),
            "proj_b": zeros(EMBED_DIM),
            "norm_g": ones(EMBED_DIM),
            "norm_b": zeros(EMBED_DIM),
        },
        "stages": [],
    }
    num_stages = len(DEPTHS)
    for si in range(num_stages):
        dim = EMBED_DIM * (2 ** si)
        heads = NUM_HEADS[si]
        hidden = int(dim * MLP_RATIO)
        blocks = []
        for _ in range(DEPTHS[si]):
            blocks.append({
                "q_w": dense(dim, dim), "q_b": zeros(dim),
                "k_w": dense(dim, dim), "k_b": zeros(dim),
                "v_w": dense(dim, dim), "v_b": zeros(dim),
                "proj_w": dense(dim, dim), "proj_b": zeros(dim),
                "logit_scale": jnp.full((heads,), np.log(10.0), jnp.float32),
                "cpb_w1": dense(2, CPB_HIDDEN), "cpb_b1": zeros(CPB_HIDDEN),
                "cpb_w2": dense(CPB_HIDDEN, heads),
                "ln1_g": ones(dim), "ln1_b": zeros(dim),
                "fc1_w": dense(dim, hidden), "fc1_b": zeros(hidden),
                "fc2_w": dense(hidden, dim), "fc2_b": zeros(dim),
                "ln2_g": ones(dim), "ln2_b": zeros(dim),
            })
        downsample = None
        if si < num_stages - 1:
            downsample = {
                "red_w": dense(4 * dim, 2 * dim),
                "norm_g": ones(2 * dim),
                "norm_b": zeros(2 * dim),
            }
        params["stages"].append({"blocks": blocks, "downsample": downsample})
    final_dim = EMBED_DIM * (2 ** (num_stages - 1))
    params["final_norm_g"] = ones(final_dim)
    params["final_norm_b"] = zeros(final_dim)
    return params


if __name__ == "__main__":
    key = jax.random.PRNGKey(0)
    k_img, k_par = jax.random.split(key)
    image = jax.random.uniform(k_img, (1, IN_CHANS, IMG_SIZE, IMG_SIZE), jnp.float32)

    params = init_params(k_par)
    prep = prepare_params(params)          # parameter-only preprocessing, outside jit

    forward = jax.jit(swinv2_forward)
    emb = forward(image, prep)
    emb = jax.block_until_ready(emb)

    final_tokens = (IMG_SIZE // PATCH_SIZE // 2) ** 2
    final_dim = EMBED_DIM * (2 ** (len(DEPTHS) - 1))
    assert emb.shape == (1, final_tokens * final_dim), emb.shape
    assert bool(jnp.all(jnp.isfinite(emb)))
    print("KERNEL_OK")
</pallas_src>

<mosaic_0001>
module attributes {stable_mosaic.version = 11 : i64} {
  func.func @_matmul_ln_kernel(%arg0: i32, %arg1: memref<64x48xf32, #tpu.memory_space<vmem>>, %arg2: memref<48x32xf32, #tpu.memory_space<vmem>>, %arg3: memref<1x32xf32, #tpu.memory_space<vmem>>, %arg4: memref<1x32xf32, #tpu.memory_space<vmem>>, %arg5: memref<1x32xf32, #tpu.memory_space<vmem>>, %arg6: memref<64x32xf32, #tpu.memory_space<vmem>>) attributes {dimension_semantics = [#tpu.dimension_semantics<parallel>], iteration_bounds = array<i64: 1>, scalar_prefetch = 0 : i64, scratch_operands = 0 : i64, tpu.core_type = #tpu.core_type<tc>, window_params = [{transform_indices = @transform_0, window_bounds = array<i64: 64, 48>}, {pipeline_mode = #tpu.pipeline_mode<synchronous>, transform_indices = @transform_1, window_bounds = array<i64: 48, 32>}, {pipeline_mode = #tpu.pipeline_mode<synchronous>, transform_indices = @transform_2, window_bounds = array<i64: 1, 32>}, {pipeline_mode = #tpu.pipeline_mode<synchronous>, transform_indices = @transform_3, window_bounds = array<i64: 1, 32>}, {pipeline_mode = #tpu.pipeline_mode<synchronous>, transform_indices = @transform_4, window_bounds = array<i64: 1, 32>}, {transform_indices = @transform_5, window_bounds = array<i64: 64, 32>}]} {
    %c0 = arith.constant 0 : index
    %c0_0 = arith.constant 0 : index
    %0 = vector.load %arg1[%c0, %c0_0] : memref<64x48xf32, #tpu.memory_space<vmem>>, vector<64x48xf32>
    %c0_1 = arith.constant 0 : index
    %c0_2 = arith.constant 0 : index
    %1 = vector.load %arg2[%c0_1, %c0_2] : memref<48x32xf32, #tpu.memory_space<vmem>>, vector<48x32xf32>
    %cst = arith.constant dense<0.000000e+00> : vector<64x32xf32>
    %2 = tpu.matmul %0, %1, %cst {dimension_numbers = #tpu.dot_dimension_numbers<[1], [0], [0], [1], [0, 0, 1, 1], [], []>} : vector<64x48xf32>, vector<48x32xf32>, vector<64x32xf32> -> vector<64x32xf32>
    %c0_3 = arith.constant 0 : index
    %c0_4 = arith.constant 0 : index
    %3 = vector.load %arg3[%c0_3, %c0_4] : memref<1x32xf32, #tpu.memory_space<vmem>>, vector<1x32xf32>
    %4 = vector.broadcast %3 : vector<1x32xf32> to vector<64x32xf32>
    %5 = arith.addf %2, %4 : vector<64x32xf32>
    %c0_5 = arith.constant 0 : index
    %c0_6 = arith.constant 0 : index
    %6 = vector.load %arg4[%c0_5, %c0_6] : memref<1x32xf32, #tpu.memory_space<vmem>>, vector<1x32xf32>
    %c0_7 = arith.constant 0 : index
    %c0_8 = arith.constant 0 : index
    %7 = vector.load %arg5[%c0_7, %c0_8] : memref<1x32xf32, #tpu.memory_space<vmem>>, vector<1x32xf32>
    %cst_9 = arith.constant dense<0.000000e+00> : vector<64xf32>
    %8 = vector.multi_reduction <add>, %5, %cst_9 [1] : vector<64x32xf32> to vector<64xf32>
    %9 = vector.shape_cast %8 : vector<64xf32> to vector<64x1xf32>
    %cst_10 = arith.constant 3.200000e+01 : f32
    %10 = vector.broadcast %cst_10 : f32 to vector<64x1xf32>
    %11 = arith.divf %9, %10 : vector<64x1xf32>
    %12 = vector.broadcast %11 : vector<64x1xf32> to vector<64x32xf32>
    %13 = arith.subf %5, %12 : vector<64x32xf32>
    %14 = arith.mulf %13, %13 : vector<64x32xf32>
    %cst_11 = arith.constant dense<0.000000e+00> : vector<64xf32>
    %15 = vector.multi_reduction <add>, %14, %cst_11 [1] : vector<64x32xf32> to vector<64xf32>
    %16 = vector.shape_cast %15 : vector<64xf32> to vector<64x1xf32>
    %cst_12 = arith.constant 3.200000e+01 : f32
    %17 = vector.broadcast %cst_12 : f32 to vector<64x1xf32>
    %18 = arith.divf %16, %17 : vector<64x1xf32>
    %19 = vector.broadcast %11 : vector<64x1xf32> to vector<64x32xf32>
    %20 = arith.subf %5, %19 : vector<64x32xf32>
    %cst_13 = arith.constant 9.99999974E-6 : f32
    %21 = vector.broadcast %cst_13 : f32 to vector<64x1xf32>
    %22 = arith.addf %18, %21 : vector<64x1xf32>
    %23 = math.rsqrt %22 : vector<64x1xf32>
    %24 = vector.broadcast %23 : vector<64x1xf32> to vector<64x32xf32>
    %25 = arith.mulf %20, %24 : vector<64x32xf32>
    %26 = vector.broadcast %6 : vector<1x32xf32> to vector<64x32xf32>
    %27 = arith.mulf %25, %26 : vector<64x32xf32>
    %28 = vector.broadcast %7 : vector<1x32xf32> to vector<64x32xf32>
    %29 = arith.addf %27, %28 : vector<64x32xf32>
    %c0_14 = arith.constant 0 : index
    %c0_15 = arith.constant 0 : index
    %30 = vector.load %arg6[%c0_14, %c0_15] : memref<64x32xf32, #tpu.memory_space<vmem>>, vector<64x32xf32>
    tpu.vector_store %arg6[%c0_14, %c0_15], %29 {strides = array<i32>} : memref<64x32xf32, #tpu.memory_space<vmem>>, vector<64x32xf32>,
    return
  }
  func.func @transform_0(%arg0: i32) -> (i32, i32) {
    %c0_i32 = arith.constant 0 : i32
    %c0_i32_0 = arith.constant 0 : i32
    return %arg0, %c0_i32 : i32, i32
  }
  func.func @transform_1(%arg0: i32) -> (i32, i32) {
    %c0_i32 = arith.constant 0 : i32
    %c0_i32_0 = arith.constant 0 : i32
    %c0_i32_1 = arith.constant 0 : i32
    return %c0_i32, %c0_i32_0 : i32, i32
  }
  func.func @transform_2(%arg0: i32) -> (i32, i32) {
    %c0_i32 = arith.constant 0 : i32
    %c0_i32_0 = arith.constant 0 : i32
    %c0_i32_1 = arith.constant 0 : i32
    return %c0_i32, %c0_i32_0 : i32, i32
  }
  func.func @transform_3(%arg0: i32) -> (i32, i32) {
    %c0_i32 = arith.constant 0 : i32
    %c0_i32_0 = arith.constant 0 : i32
    %c0_i32_1 = arith.constant 0 : i32
    return %c0_i32, %c0_i32_0 : i32, i32
  }
  func.func @transform_4(%arg0: i32) -> (i32, i32) {
    %c0_i32 = arith.constant 0 : i32
    %c0_i32_0 = arith.constant 0 : i32
    %c0_i32_1 = arith.constant 0 : i32
    return %c0_i32, %c0_i32_0 : i32, i32
  }
  func.func @transform_5(%arg0: i32) -> (i32, i32) {
    %c0_i32 = arith.constant 0 : i32
    %c0_i32_0 = arith.constant 0 : i32
    return %arg0, %c0_i32 : i32, i32
  }
}

module attributes {stable_mosaic.version = 11 : i64} {
  func.func @_swin_block_kernel(%arg0: i32, %arg1: memref<64x32xf32, #tpu.memory_space<vmem>>, %arg2: memref<32x96xf32, #tpu.memory_space<vmem>>, %arg3: memref<1x96xf32, #tpu.memory_space<vmem>>, %arg4: memref<32x32xf32, #tpu.memory_space<vmem>>, %arg5: memref<1x32xf32, #tpu.memory_space<vmem>>, %arg6: memref<1x32xf32, #tpu.memory_space<vmem>>, %arg7: memref<1x32xf32, #tpu.memory_space<vmem>>, %arg8: memref<32x64xf32, #tpu.memory_space<vmem>>, %arg9: memref<1x64xf32, #tpu.memory_space<vmem>>, %arg10: memref<64x32xf32, #tpu.memory_space<vmem>>, %arg11: memref<1x32xf32, #tpu.memory_space<vmem>>, %arg12: memref<1x32xf32, #tpu.memory_space<vmem>>, %arg13: memref<1x32xf32, #tpu.memory_space<vmem>>, %arg14: memref<2x16x16xf32, #tpu.memory_space<vmem>>, %arg15: memref<1x16x16xf32, #tpu.memory_space<vmem>>, %arg16: memref<2x1x1xf32, #tpu.memory_space<vmem>>, %arg17: memref<64x32xf32, #tpu.memory_space<vmem>>) attributes {dimension_semantics = [#tpu.dimension_semantics<arbitrary>], iteration_bounds = array<i64: 1>, scalar_prefetch = 0 : i64, scratch_operands = 0 : i64, tpu.core_type = #tpu.core_type<tc>, window_params = [{pipeline_mode = #tpu.pipeline_mode<synchronous>, transform_indices = @transform_0, window_bounds = array<i64: 64, 32>}, {pipeline_mode = #tpu.pipeline_mode<synchronous>, transform_indices = @transform_1, window_bounds = array<i64: 32, 96>}, {pipeline_mode = #tpu.pipeline_mode<synchronous>, transform_indices = @transform_2, window_bounds = array<i64: 1, 96>}, {pipeline_mode = #tpu.pipeline_mode<synchronous>, transform_indices = @transform_3, window_bounds = array<i64: 32, 32>}, {pipeline_mode = #tpu.pipeline_mode<synchronous>, transform_indices = @transform_4, window_bounds = array<i64: 1, 32>}, {pipeline_mode = #tpu.pipeline_mode<synchronous>, transform_indices = @transform_5, window_bounds = array<i64: 1, 32>}, {pipeline_mode = #tpu.pipeline_mode<synchronous>, transform_indices = @transform_6, window_bounds = array<i64: 1, 32>}, {pipeline_mode = #tpu.pipeline_mode<synchronous>, transform_indices = @transform_7, window_bounds = array<i64: 32, 64>}, {pipeline_mode = #tpu.pipeline_mode<synchronous>, transform_indices = @transform_8, window_bounds = array<i64: 1, 64>}, {pipeline_mode = #tpu.pipeline_mode<synchronous>, transform_indices = @transform_9, window_bounds = array<i64: 64, 32>}, {pipeline_mode = #tpu.pipeline_mode<synchronous>, transform_indices = @transform_10, window_bounds = array<i64: 1, 32>}, {pipeline_mode = #tpu.pipeline_mode<synchronous>, transform_indices = @transform_11, window_bounds = array<i64: 1, 32>}, {pipeline_mode = #tpu.pipeline_mode<synchronous>, transform_indices = @transform_12, window_bounds = array<i64: 1, 32>}, {pipeline_mode = #tpu.pipeline_mode<synchronous>, transform_indices = @transform_13, window_bounds = array<i64: 2, 16, 16>}, {pipeline_mode = #tpu.pipeline_mode<synchronous>, transform_indices = @transform_14, window_bounds = array<i64: 1, 16, 16>}, {pipeline_mode = #tpu.pipeline_mode<synchronous>, transform_indices = @transform_15, window_bounds = array<i64: 2, 1, 1>}, {pipeline_mode = #tpu.pipeline_mode<synchronous>, transform_indices = @transform_16, window_bounds = array<i64: 64, 32>}]} {
    %c0 = arith.constant 0 : index
    %c0_0 = arith.constant 0 : index
    %0 = vector.load %arg1[%c0, %c0_0] : memref<64x32xf32, #tpu.memory_space<vmem>>, vector<64x32xf32>
    %c0_1 = arith.constant 0 : index
    %c0_2 = arith.constant 0 : index
    %1 = vector.load %arg2[%c0_1, %c0_2] : memref<32x96xf32, #tpu.memory_space<vmem>>, vector<32x96xf32>
    %cst = arith.constant dense<0.000000e+00> : vector<64x96xf32>
    %2 = tpu.matmul %0, %1, %cst {dimension_numbers = #tpu.dot_dimension_numbers<[1], [0], [0], [1], [0, 0, 1, 1], [], []>} : vector<64x32xf32>, vector<32x96xf32>, vector<64x96xf32> -> vector<64x96xf32>
    %c0_3 = arith.constant 0 : index
    %c0_4 = arith.constant 0 : index
    %3 = vector.load %arg3[%c0_3, %c0_4] : memref<1x96xf32, #tpu.memory_space<vmem>>, vector<1x96xf32>
    %4 = vector.broadcast %3 : vector<1x96xf32> to vector<64x96xf32>
    %5 = arith.addf %2, %4 : vector<64x96xf32>
    %c0_5 = arith.constant 0 : index
    %c0_6 = arith.constant 0 : index
    %c0_7 = arith.constant 0 : index
    %6 = vector.load %arg15[%c0_5, %c0_6, %c0_7] : memref<1x16x16xf32, #tpu.memory_space<vmem>>, vector<1x16x16xf32>
    %7 = vector.extract_strided_slice %5 {offsets = [0, 0], sizes = [64, 16], strides = [1, 1]} : vector<64x96xf32> to vector<64x16xf32>
    %8 = vector.extract_strided_slice %5 {offsets = [0, 32], sizes = [64, 16], strides = [1, 1]} : vector<64x96xf32> to vector<64x16xf32>
    %9 = vector.extract_strided_slice %5 {offsets = [0, 64], sizes = [64, 16], strides = [1, 1]} : vector<64x96xf32> to vector<64x16xf32>
    %10 = vector.shape_cast %7 : vector<64x16xf32> to vector<4x16x16xf32>
    %11 = vector.shape_cast %8 : vector<64x16xf32> to vector<4x16x16xf32>
    %12 = vector.shape_cast %9 : vector<64x16xf32> to vector<4x16x16xf32>
    %13 = arith.mulf %10, %10 : vector<4x16x16xf32>
    %cst_8 = arith.constant dense<0.000000e+00> : vector<4x16xf32>
    %14 = vector.multi_reduction <add>, %13, %cst_8 [2] : vector<4x16x16xf32> to vector<4x16xf32>
    %15 = vector.shape_cast %14 : vector<4x16xf32> to vector<4x16x1xf32>
    %cst_9 = arith.constant 1.000000e-24 : f32
    %16 = vector.broadcast %cst_9 : f32 to vector<4x16x1xf32>
    %17 = arith.maximumf %15, %16 : vector<4x16x1xf32>
    %18 = math.rsqrt %17 : vector<4x16x1xf32>
    %19 = vector.broadcast %18 : vector<4x16x1xf32> to vector<4x16x16xf32>
    %20 = arith.mulf %10, %19 : vector<4x16x16xf32>
    %21 = arith.mulf %11, %11 : vector<4x16x16xf32>
    %cst_10 = arith.constant dense<0.000000e+00> : vector<4x16xf32>
    %22 = vector.multi_reduction <add>, %21, %cst_10 [2] : vector<4x16x16xf32> to vector<4x16xf32>
    %23 = vector.shape_cast %22 : vector<4x16xf32> to vector<4x16x1xf32>
    %cst_11 = arith.constant 1.000000e-24 : f32
    %24 = vector.broadcast %cst_11 : f32 to vector<4x16x1xf32>
    %25 = arith.maximumf %23, %24 : vector<4x16x1xf32>
    %26 = math.rsqrt %25 : vector<4x16x1xf32>
    %27 = vector.broadcast %26 : vector<4x16x1xf32> to vector<4x16x16xf32>
    %28 = arith.mulf %11, %27 : vector<4x16x16xf32>
    "tpu.trace_start"() <{level = 10 : i32, message = "bnd,bmd->bnm"}> : () -> ()
    %cst_12 = arith.constant dense<0.000000e+00> : vector<4x16x16xf32>
    %29 = tpu.matmul %20, %28, %cst_12 {dimension_numbers = #tpu.dot_dimension_numbers<[2], [2], [1], [1], [0, 0, 0, 1, 1, 1], [0], [0]>} : vector<4x16x16xf32>, vector<4x16x16xf32>, vector<4x16x16xf32> -> vector<4x16x16xf32>
    "tpu.trace_stop"() : () -> ()
    %c0_13 = arith.constant 0 : index
    %c0_14 = arith.constant 0 : index
    %c0_15 = arith.constant 0 : index
    %30 = vector.load %arg16[%c0_13, %c0_14, %c0_15] : memref<2x1x1xf32, #tpu.memory_space<vmem>>, vector<1x1x1xf32>
    %31 = vector.shape_cast %30 : vector<1x1x1xf32> to vector<1x1xf32>
    %32 = vector.shape_cast %31 : vector<1x1xf32> to vector<1x1x1xf32>
    %33 = vector.broadcast %32 : vector<1x1x1xf32> to vector<4x16x16xf32>
    %34 = arith.mulf %29, %33 : vector<4x16x16xf32>
    %c0_16 = arith.constant 0 : index
    %c0_17 = arith.constant 0 : index
    %c0_18 = arith.constant 0 : index
    %35 = vector.load %arg14[%c0_16, %c0_17, %c0_18] : memref<2x16x16xf32, #tpu.memory_space<vmem>>, vector<1x16x16xf32>
    %36 = vector.shape_cast %35 : vector<1x16x16xf32> to vector<16x16xf32>
    %37 = vector.shape_cast %36 : vector<16x16xf32> to vector<1x16x16xf32>
    %38 = vector.broadcast %37 : vector<1x16x16xf32> to vector<4x16x16xf32>
    %39 = arith.addf %34, %38 : vector<4x16x16xf32>
    %40 = vector.broadcast %6 : vector<1x16x16xf32> to vector<4x16x16xf32>
    %41 = arith.addf %39, %40 : vector<4x16x16xf32>
    %cst_19 = arith.constant dense<0xFF800000> : vector<4x16xf32>
    %42 = vector.multi_reduction <maximumf>, %41, %cst_19 [2] : vector<4x16x16xf32> to vector<4x16xf32>
    %43 = vector.shape_cast %42 : vector<4x16xf32> to vector<4x16x1xf32>
    %44 = vector.broadcast %43 : vector<4x16x1xf32> to vector<4x16x16xf32>
    %45 = arith.subf %41, %44 : vector<4x16x16xf32>
    %46 = math.exp %45 : vector<4x16x16xf32>
    %cst_20 = arith.constant dense<0.000000e+00> : vector<4x16xf32>
    %47 = vector.multi_reduction <add>, %46, %cst_20 [2] : vector<4x16x16xf32> to vector<4x16xf32>
    %48 = vector.shape_cast %47 : vector<4x16xf32> to vector<4x16x1xf32>
    %49 = tpu.reciprocal %48 {approx = true} : vector<4x16x1xf32> -> vector<4x16x1xf32>
    %50 = vector.broadcast %49 : vector<4x16x1xf32> to vector<4x16x16xf32>
    %51 = arith.mulf %46, %50 : vector<4x16x16xf32>
    "tpu.trace_start"() <{level = 10 : i32, message = "bnm,bmd->bnd"}> : () -> ()
    %cst_21 = arith.constant dense<0.000000e+00> : vector<4x16x16xf32>
    %52 = tpu.matmul %51, %12, %cst_21 {dimension_numbers = #tpu.dot_dimension_numbers<[2], [1], [1], [2], [0, 0, 0, 1, 1, 2], [0], [0]>} : vector<4x16x16xf32>, vector<4x16x16xf32>, vector<4x16x16xf32> -> vector<4x16x16xf32>
    "tpu.trace_stop"() : () -> ()
    %53 = vector.shape_cast %52 : vector<4x16x16xf32> to vector<64x16xf32>
    %54 = vector.extract_strided_slice %5 {offsets = [0, 16], sizes = [64, 16], strides = [1, 1]} : vector<64x96xf32> to vector<64x16xf32>
    %55 = vector.extract_strided_slice %5 {offsets = [0, 48], sizes = [64, 16], strides = [1, 1]} : vector<64x96xf32> to vector<64x16xf32>
    %56 = vector.extract_strided_slice %5 {offsets = [0, 80], sizes = [64, 16], strides = [1, 1]} : vector<64x96xf32> to vector<64x16xf32>
    %57 = vector.shape_cast %54 : vector<64x16xf32> to vector<4x16x16xf32>
    %58 = vector.shape_cast %55 : vector<64x16xf32> to vector<4x16x16xf32>
    %59 = vector.shape_cast %56 : vector<64x16xf32> to vector<4x16x16xf32>
    %60 = arith.mulf %57, %57 : vector<4x16x16xf32>
    %cst_22 = arith.constant dense<0.000000e+00> : vector<4x16xf32>
    %61 = vector.multi_reduction <add>, %60, %cst_22 [2] : vector<4x16x16xf32> to vector<4x16xf32>
    %62 = vector.shape_cast %61 : vector<4x16xf32> to vector<4x16x1xf32>
    %cst_23 = arith.constant 1.000000e-24 : f32
    %63 = vector.broadcast %cst_23 : f32 to vector<4x16x1xf32>
    %64 = arith.maximumf %62, %63 : vector<4x16x1xf32>
    %65 = math.rsqrt %64 : vector<4x16x1xf32>
    %66 = vector.broadcast %65 : vector<4x16x1xf32> to vector<4x16x16xf32>
    %67 = arith.mulf %57, %66 : vector<4x16x16xf32>
    %68 = arith.mulf %58, %58 : vector<4x16x16xf32>
    %cst_24 = arith.constant dense<0.000000e+00> : vector<4x16xf32>
    %69 = vector.multi_reduction <add>, %68, %cst_24 [2] : vector<4x16x16xf32> to vector<4x16xf32>
    %70 = vector.shape_cast %69 : vector<4x16xf32> to vector<4x16x1xf32>
    %cst_25 = arith.constant 1.000000e-24 : f32
    %71 = vector.broadcast %cst_25 : f32 to vector<4x16x1xf32>
    %72 = arith.maximumf %70, %71 : vector<4x16x1xf32>
    %73 = math.rsqrt %72 : vector<4x16x1xf32>
    %74 = vector.broadcast %73 : vector<4x16x1xf32> to vector<4x16x16xf32>
    %75 = arith.mulf %58, %74 : vector<4x16x16xf32>
    "tpu.trace_start"() <{level = 10 : i32, message = "bnd,bmd->bnm"}> : () -> ()
    %cst_26 = arith.constant dense<0.000000e+00> : vector<4x16x16xf32>
    %76 = tpu.matmul %67, %75, %cst_26 {dimension_numbers = #tpu.dot_dimension_numbers<[2], [2], [1], [1], [0, 0, 0, 1, 1, 1], [0], [0]>} : vector<4x16x16xf32>, vector<4x16x16xf32>, vector<4x16x16xf32> -> vector<4x16x16xf32>
    "tpu.trace_stop"() : () -> ()
    %c1 = arith.constant 1 : index
    %c0_27 = arith.constant 0 : index
    %c0_28 = arith.constant 0 : index
    %77 = vector.load %arg16[%c1, %c0_27, %c0_28] : memref<2x1x1xf32, #tpu.memory_space<vmem>>, vector<1x1x1xf32>
    %78 = vector.shape_cast %77 : vector<1x1x1xf32> to vector<1x1xf32>
    %79 = vector.shape_cast %78 : vector<1x1xf32> to vector<1x1x1xf32>
    %80 = vector.broadcast %79 : vector<1x1x1xf32> to vector<4x16x16xf32>
    %81 = arith.mulf %76, %80 : vector<4x16x16xf32>
    %c1_29 = arith.constant 1 : index
    %c0_30 = arith.constant 0 : index
    %c0_31 = arith.constant 0 : index
    %82 = vector.load %arg14[%c1_29, %c0_30, %c0_31] : memref<2x16x16xf32, #tpu.memory_space<vmem>>, vector<1x16x16xf32>
    %83 = vector.shape_cast %82 : vector<1x16x16xf32> to vector<16x16xf32>
    %84 = vector.shape_cast %83 : vector<16x16xf32> to vector<1x16x16xf32>
    %85 = vector.broadcast %84 : vector<1x16x16xf32> to vector<4x16x16xf32>
    %86 = arith.addf %81, %85 : vector<4x16x16xf32>
    %87 = vector.broadcast %6 : vector<1x16x16xf32> to vector<4x16x16xf32>
    %88 = arith.addf %86, %87 : vector<4x16x16xf32>
    %cst_32 = arith.constant dense<0xFF800000> : vector<4x16xf32>
    %89 = vector.multi_reduction <maximumf>, %88, %cst_32 [2] : vector<4x16x16xf32> to vector<4x16xf32>
    %90 = vector.shape_cast %89 : vector<4x16xf32> to vector<4x16x1xf32>
    %91 = vector.broadcast %90 : vector<4x16x1xf32> to vector<4x16x16xf32>
    %92 = arith.subf %88, %91 : vector<4x16x16xf32>
    %93 = math.exp %92 : vector<4x16x16xf32>
    %cst_33 = arith.constant dense<0.000000e+00> : vector<4x16xf32>
    %94 = vector.multi_reduction <add>, %93, %cst_33 [2] : vector<4x16x16xf32> to vector<4x16xf32>
    %95 = vector.shape_cast %94 : vector<4x16xf32> to vector<4x16x1xf32>
    %96 = tpu.reciprocal %95 {approx = true} : vector<4x16x1xf32> -> vector<4x16x1xf32>
    %97 = vector.broadcast %96 : vector<4x16x1xf32> to vector<4x16x16xf32>
    %98 = arith.mulf %93, %97 : vector<4x16x16xf32>
    "tpu.trace_start"() <{level = 10 : i32, message = "bnm,bmd->bnd"}> : () -> ()
    %cst_34 = arith.constant dense<0.000000e+00> : vector<4x16x16xf32>
    %99 = tpu.matmul %98, %59, %cst_34 {dimension_numbers = #tpu.dot_dimension_numbers<[2], [1], [1], [2], [0, 0, 0, 1, 1, 2], [0], [0]>} : vector<4x16x16xf32>, vector<4x16x16xf32>, vector<4x16x16xf32> -> vector<4x16x16xf32>
    "tpu.trace_stop"() : () -> ()
    %100 = vector.shape_cast %99 : vector<4x16x16xf32> to vector<64x16xf32>
    %101 = tpu.concatenate %53, %100 in 1 : vector<64x16xf32>, vector<64x16xf32> -> vector<64x32xf32>
    %c0_35 = arith.constant 0 : index
    %c0_36 = arith.constant 0 : index
    %102 = vector.load %arg4[%c0_35, %c0_36] : memref<32x32xf32, #tpu.memory_space<vmem>>, vector<32x32xf32>
    %cst_37 = arith.constant dense<0.000000e+00> : vector<64x32xf32>
    %103 = tpu.matmul %101, %102, %cst_37 {dimension_numbers = #tpu.dot_dimension_numbers<[1], [0], [0], [1], [0, 0, 1, 1], [], []>} : vector<64x32xf32>, vector<32x32xf32>, vector<64x32xf32> -> vector<64x32xf32>
    %c0_38 = arith.constant 0 : index
    %c0_39 = arith.constant 0 : index
    %104 = vector.load %arg5[%c0_38, %c0_39] : memref<1x32xf32, #tpu.memory_space<vmem>>, vector<1x32xf32>
    %105 = vector.broadcast %104 : vector<1x32xf32> to vector<64x32xf32>
    %106 = arith.addf %103, %105 : vector<64x32xf32>
    %c0_40 = arith.constant 0 : index
    %c0_41 = arith.constant 0 : index
    %107 = vector.load %arg6[%c0_40, %c0_41] : memref<1x32xf32, #tpu.memory_space<vmem>>, vector<1x32xf32>
    %c0_42 = arith.constant 0 : index
    %c0_43 = arith.constant 0 : index
    %108 = vector.load %arg7[%c0_42, %c0_43] : memref<1x32xf32, #tpu.memory_space<vmem>>, vector<1x32xf32>
    %cst_44 = arith.constant dense<0.000000e+00> : vector<64xf32>
    %109 = vector.multi_reduction <add>, %106, %cst_44 [1] : vector<64x32xf32> to vector<64xf32>
    %110 = vector.shape_cast %109 : vector<64xf32> to vector<64x1xf32>
    %cst_45 = arith.constant 3.200000e+01 : f32
    %111 = vector.broadcast %cst_45 : f32 to vector<64x1xf32>
    %112 = arith.divf %110, %111 : vector<64x1xf32>
    %113 = vector.broadcast %112 : vector<64x1xf32> to vector<64x32xf32>
    %114 = arith.subf %106, %113 : vector<64x32xf32>
    %115 = arith.mulf %114, %114 : vector<64x32xf32>
    %cst_46 = arith.constant dense<0.000000e+00> : vector<64xf32>
    %116 = vector.multi_reduction <add>, %115, %cst_46 [1] : vector<64x32xf32> to vector<64xf32>
    %117 = vector.shape_cast %116 : vector<64xf32> to vector<64x1xf32>
    %cst_47 = arith.constant 3.200000e+01 : f32
    %118 = vector.broadcast %cst_47 : f32 to vector<64x1xf32>
    %119 = arith.divf %117, %118 : vector<64x1xf32>
    %120 = vector.broadcast %112 : vector<64x1xf32> to vector<64x32xf32>
    %121 = arith.subf %106, %120 : vector<64x32xf32>
    %cst_48 = arith.constant 9.99999974E-6 : f32
    %122 = vector.broadcast %cst_48 : f32 to vector<64x1xf32>
    %123 = arith.addf %119, %122 : vector<64x1xf32>
    %124 = math.rsqrt %123 : vector<64x1xf32>
    %125 = vector.broadcast %124 : vector<64x1xf32> to vector<64x32xf32>
    %126 = arith.mulf %121, %125 : vector<64x32xf32>
    %127 = vector.broadcast %107 : vector<1x32xf32> to vector<64x32xf32>
    %128 = arith.mulf %126, %127 : vector<64x32xf32>
    %129 = vector.broadcast %108 : vector<1x32xf32> to vector<64x32xf32>
    %130 = arith.addf %128, %129 : vector<64x32xf32>
    %131 = arith.addf %0, %130 : vector<64x32xf32>
    %c0_49 = arith.constant 0 : index
    %c0_50 = arith.constant 0 : index
    %132 = vector.load %arg8[%c0_49, %c0_50] : memref<32x64xf32, #tpu.memory_space<vmem>>, vector<32x64xf32>
    %cst_51 = arith.constant dense<0.000000e+00> : vector<64x64xf32>
    %133 = tpu.matmul %131, %132, %cst_51 {dimension_numbers = #tpu.dot_dimension_numbers<[1], [0], [0], [1], [0, 0, 1, 1], [], []>} : vector<64x32xf32>, vector<32x64xf32>, vector<64x64xf32> -> vector<64x64xf32>
    %c0_52 = arith.constant 0 : index
    %c0_53 = arith.constant 0 : index
    %134 = vector.load %arg9[%c0_52, %c0_53] : memref<1x64xf32, #tpu.memory_space<vmem>>, vector<1x64xf32>
    %135 = vector.broadcast %134 : vector<1x64xf32> to vector<64x64xf32>
    %136 = arith.addf %133, %135 : vector<64x64xf32>
    %cst_54 = arith.constant 5.000000e-01 : f32
    %137 = vector.broadcast %cst_54 : f32 to vector<64x64xf32>
    %138 = arith.mulf %137, %136 : vector<64x64xf32>
    %cst_55 = arith.constant 0.707106769 : f32
    %139 = vector.broadcast %cst_55 : f32 to vector<64x64xf32>
    %140 = arith.mulf %136, %139 : vector<64x64xf32>
    %cst_56 = arith.constant 0.000000e+00 : f32
    %141 = vector.broadcast %cst_56 : f32 to vector<64x64xf32>
    %142 = arith.cmpf olt, %140, %141 : vector<64x64xf32>
    %cst_57 = arith.constant -1.000000e+00 : f32
    %cst_58 = arith.constant 1.000000e+00 : f32
    %143 = vector.broadcast %cst_57 : f32 to vector<64x64xf32>
    %144 = vector.broadcast %cst_58 : f32 to vector<64x64xf32>
    %145 = arith.select %142, %143, %144 : vector<64x64xi1>, vector<64x64xf32>
    %146 = math.absf %140 : vector<64x64xf32>
    %cst_59 = arith.constant 0.327591091 : f32
    %147 = vector.broadcast %cst_59 : f32 to vector<64x64xf32>
    %148 = arith.mulf %147, %146 : vector<64x64xf32>
    %cst_60 = arith.constant 1.000000e+00 : f32
    %149 = vector.broadcast %cst_60 : f32 to vector<64x64xf32>
    %150 = arith.addf %149, %148 : vector<64x64xf32>
    %cst_61 = arith.constant 1.000000e+00 : f32
    %151 = vector.broadcast %cst_61 : f32 to vector<64x64xf32>
    %152 = arith.divf %151, %150 : vector<64x64xf32>
    %cst_62 = arith.constant 1.06140542 : f32
    %153 = vector.broadcast %cst_62 : f32 to vector<64x64xf32>
    %154 = arith.mulf %153, %152 : vector<64x64xf32>
    %cst_63 = arith.constant -1.45315206 : f32
    %155 = vector.broadcast %cst_63 : f32 to vector<64x64xf32>
    %156 = arith.addf %154, %155 : vector<64x64xf32>
    %157 = arith.mulf %156, %152 : vector<64x64xf32>
    %cst_64 = arith.constant 1.42141378 : f32
    %158 = vector.broadcast %cst_64 : f32 to vector<64x64xf32>
    %159 = arith.addf %157, %158 : vector<64x64xf32>
    %160 = arith.mulf %159, %152 : vector<64x64xf32>
    %cst_65 = arith.constant -0.284496725 : f32
    %161 = vector.broadcast %cst_65 : f32 to vector<64x64xf32>
    %162 = arith.addf %160, %161 : vector<64x64xf32>
    %163 = arith.mulf %162, %152 : vector<64x64xf32>
    %cst_66 = arith.constant 0.254829586 : f32
    %164 = vector.broadcast %cst_66 : f32 to vector<64x64xf32>
    %165 = arith.addf %163, %164 : vector<64x64xf32>
    %166 = arith.mulf %165, %152 : vector<64x64xf32>
    %cst_67 = arith.constant 0.000000e+00 : f32
    %167 = vector.broadcast %cst_67 : f32 to vector<64x64xf32>
    %168 = arith.subf %167, %146 : vector<64x64xf32>
    %169 = arith.mulf %168, %146 : vector<64x64xf32>
    %170 = math.exp %169 : vector<64x64xf32>
    %171 = arith.mulf %166, %170 : vector<64x64xf32>
    %cst_68 = arith.constant 1.000000e+00 : f32
    %172 = vector.broadcast %cst_68 : f32 to vector<64x64xf32>
    %173 = arith.subf %172, %171 : vector<64x64xf32>
    %174 = arith.mulf %145, %173 : vector<64x64xf32>
    %cst_69 = arith.constant 1.000000e+00 : f32
    %175 = vector.broadcast %cst_69 : f32 to vector<64x64xf32>
    %176 = arith.addf %175, %174 : vector<64x64xf32>
    %177 = arith.mulf %138, %176 : vector<64x64xf32>
    %c0_70 = arith.constant 0 : index
    %c0_71 = arith.constant 0 : index
    %178 = vector.load %arg10[%c0_70, %c0_71] : memref<64x32xf32, #tpu.memory_space<vmem>>, vector<64x32xf32>
    %cst_72 = arith.constant dense<0.000000e+00> : vector<64x32xf32>
    %179 = tpu.matmul %177, %178, %cst_72 {dimension_numbers = #tpu.dot_dimension_numbers<[1], [0], [0], [1], [0, 0, 1, 1], [], []>} : vector<64x64xf32>, vector<64x32xf32>, vector<64x32xf32> -> vector<64x32xf32>
    %c0_73 = arith.constant 0 : index
    %c0_74 = arith.constant 0 : index
    %180 = vector.load %arg11[%c0_73, %c0_74] : memref<1x32xf32, #tpu.memory_space<vmem>>, vector<1x32xf32>
    %181 = vector.broadcast %180 : vector<1x32xf32> to vector<64x32xf32>
    %182 = arith.addf %179, %181 : vector<64x32xf32>
    %c0_75 = arith.constant 0 : index
    %c0_76 = arith.constant 0 : index
    %183 = vector.load %arg12[%c0_75, %c0_76] : memref<1x32xf32, #tpu.memory_space<vmem>>, vector<1x32xf32>
    %c0_77 = arith.constant 0 : index
    %c0_78 = arith.constant 0 : index
    %184 = vector.load %arg13[%c0_77, %c0_78] : memref<1x32xf32, #tpu.memory_space<vmem>>, vector<1x32xf32>
    %cst_79 = arith.constant dense<0.000000e+00> : vector<64xf32>
    %185 = vector.multi_reduction <add>, %182, %cst_79 [1] : vector<64x32xf32> to vector<64xf32>
    %186 = vector.shape_cast %185 : vector<64xf32> to vector<64x1xf32>
    %cst_80 = arith.constant 3.200000e+01 : f32
    %187 = vector.broadcast %cst_80 : f32 to vector<64x1xf32>
    %188 = arith.divf %186, %187 : vector<64x1xf32>
    %189 = vector.broadcast %188 : vector<64x1xf32> to vector<64x32xf32>
    %190 = arith.subf %182, %189 : vector<64x32xf32>
    %191 = arith.mulf %190, %190 : vector<64x32xf32>
    %cst_81 = arith.constant dense<0.000000e+00> : vector<64xf32>
    %192 = vector.multi_reduction <add>, %191, %cst_81 [1] : vector<64x32xf32> to vector<64xf32>
    %193 = vector.shape_cast %192 : vector<64xf32> to vector<64x1xf32>
    %cst_82 = arith.constant 3.200000e+01 : f32
    %194 = vector.broadcast %cst_82 : f32 to vector<64x1xf32>
    %195 = arith.divf %193, %194 : vector<64x1xf32>
    %196 = vector.broadcast %188 : vector<64x1xf32> to vector<64x32xf32>
    %197 = arith.subf %182, %196 : vector<64x32xf32>
    %cst_83 = arith.constant 9.99999974E-6 : f32
    %198 = vector.broadcast %cst_83 : f32 to vector<64x1xf32>
    %199 = arith.addf %195, %198 : vector<64x1xf32>
    %200 = math.rsqrt %199 : vector<64x1xf32>
    %201 = vector.broadcast %200 : vector<64x1xf32> to vector<64x32xf32>
    %202 = arith.mulf %197, %201 : vector<64x32xf32>
    %203 = vector.broadcast %183 : vector<1x32xf32> to vector<64x32xf32>
    %204 = arith.mulf %202, %203 : vector<64x32xf32>
    %205 = vector.broadcast %184 : vector<1x32xf32> to vector<64x32xf32>
    %206 = arith.addf %204, %205 : vector<64x32xf32>
    %207 = arith.addf %131, %206 : vector<64x32xf32>
    %c0_84 = arith.constant 0 : index
    %c0_85 = arith.constant 0 : index
    %208 = vector.load %arg17[%c0_84, %c0_85] : memref<64x32xf32, #tpu.memory_space<vmem>>, vector<64x32xf32>
    tpu.vector_store %arg17[%c0_84, %c0_85], %207 {strides = array<i32>} : memref<64x32xf32, #tpu.memory_space<vmem>>, vector<64x32xf32>,
    return
  }
  func.func @transform_0(%arg0: i32) -> (i32, i32) {
    %c0_i32 = arith.constant 0 : i32
    %c0_i32_0 = arith.constant 0 : i32
    %c0_i32_1 = arith.constant 0 : i32
    return %c0_i32, %c0_i32_0 : i32, i32
  }
  func.func @transform_1(%arg0: i32) -> (i32, i32) {
    %c0_i32 = arith.constant 0 : i32
    %c0_i32_0 = arith.constant 0 : i32
    %c0_i32_1 = arith.constant 0 : i32
    return %c0_i32, %c0_i32_0 : i32, i32
  }
  func.func @transform_2(%arg0: i32) -> (i32, i32) {
    %c0_i32 = arith.constant 0 : i32
    %c0_i32_0 = arith.constant 0 : i32
    %c0_i32_1 = arith.constant 0 : i32
    return %c0_i32, %c0_i32_0 : i32, i32
  }
  func.func @transform_3(%arg0: i32) -> (i32, i32) {
    %c0_i32 = arith.constant 0 : i32
    %c0_i32_0 = arith.constant 0 : i32
    %c0_i32_1 = arith.constant 0 : i32
    return %c0_i32, %c0_i32_0 : i32, i32
  }
  func.func @transform_4(%arg0: i32) -> (i32, i32) {
    %c0_i32 = arith.constant 0 : i32
    %c0_i32_0 = arith.constant 0 : i32
    %c0_i32_1 = arith.constant 0 : i32
    return %c0_i32, %c0_i32_0 : i32, i32
  }
  func.func @transform_5(%arg0: i32) -> (i32, i32) {
    %c0_i32 = arith.constant 0 : i32
    %c0_i32_0 = arith.constant 0 : i32
    %c0_i32_1 = arith.constant 0 : i32
    return %c0_i32, %c0_i32_0 : i32, i32
  }
  func.func @transform_6(%arg0: i32) -> (i32, i32) {
    %c0_i32 = arith.constant 0 : i32
    %c0_i32_0 = arith.constant 0 : i32
    %c0_i32_1 = arith.constant 0 : i32
    return %c0_i32, %c0_i32_0 : i32, i32
  }
  func.func @transform_7(%arg0: i32) -> (i32, i32) {
    %c0_i32 = arith.constant 0 : i32
    %c0_i32_0 = arith.constant 0 : i32
    %c0_i32_1 = arith.constant 0 : i32
    return %c0_i32, %c0_i32_0 : i32, i32
  }
  func.func @transform_8(%arg0: i32) -> (i32, i32) {
    %c0_i32 = arith.constant 0 : i32
    %c0_i32_0 = arith.constant 0 : i32
    %c0_i32_1 = arith.constant 0 : i32
    return %c0_i32, %c0_i32_0 : i32, i32
  }
  func.func @transform_9(%arg0: i32) -> (i32, i32) {
    %c0_i32 = arith.constant 0 : i32
    %c0_i32_0 = arith.constant 0 : i32
    %c0_i32_1 = arith.constant 0 : i32
    return %c0_i32, %c0_i32_0 : i32, i32
  }
  func.func @transform_10(%arg0: i32) -> (i32, i32) {
    %c0_i32 = arith.constant 0 : i32
    %c0_i32_0 = arith.constant 0 : i32
    %c0_i32_1 = arith.constant 0 : i32
    return %c0_i32, %c0_i32_0 : i32, i32
  }
  func.func @transform_11(%arg0: i32) -> (i32, i32) {
    %c0_i32 = arith.constant 0 : i32
    %c0_i32_0 = arith.constant 0 : i32
    %c0_i32_1 = arith.constant 0 : i32
    return %c0_i32, %c0_i32_0 : i32, i32
  }
  func.func @transform_12(%arg0: i32) -> (i32, i32) {
    %c0_i32 = arith.constant 0 : i32
    %c0_i32_0 = arith.constant 0 : i32
    %c0_i32_1 = arith.constant 0 : i32
    return %c0_i32, %c0_i32_0 : i32, i32
  }
  func.func @transform_13(%arg0: i32) -> (i32, i32, i32) {
    %c0_i32 = arith.constant 0 : i32
    %c0_i32_0 = arith.constant 0 : i32
    %c0_i32_1 = arith.constant 0 : i32
    %c0_i32_2 = arith.constant 0 : i32
    return %c0_i32, %c0_i32_0, %c0_i32_1 : i32, i32, i32
  }
  func.func @transform_14(%arg0: i32) -> (i32, i32, i32) {
    %c0_i32 = arith.constant 0 : i32
    %c0_i32_0 = arith.constant 0 : i32
    %c0_i32_1 = arith.constant 0 : i32
    %c0_i32_2 = arith.constant 0 : i32
    return %c0_i32, %c0_i32_0, %c0_i32_1 : i32, i32, i32
  }
  func.func @transform_15(%arg0: i32) -> (i32, i32, i32) {
    %c0_i32 = arith.constant 0 : i32
    %c0_i32_0 = arith.constant 0 : i32
    %c0_i32_1 = arith.constant 0 : i32
    %c0_i32_2 = arith.constant 0 : i32
    return %c0_i32, %c0_i32_0, %c0_i32_1 : i32, i32, i32
  }
  func.func @transform_16(%arg0: i32) -> (i32, i32) {
    %c0_i32 = arith.constant 0 : i32
    %c0_i32_0 = arith.constant 0 : i32
    %c0_i32_1 = arith.constant 0 : i32
    return %c0_i32, %c0_i32_0 : i32, i32
  }
}

module attributes {stable_mosaic.version = 11 : i64} {
  func.func @_swin_block_kernel(%arg0: i32, %arg1: memref<64x32xf32, #tpu.memory_space<vmem>>, %arg2: memref<32x96xf32, #tpu.memory_space<vmem>>, %arg3: memref<1x96xf32, #tpu.memory_space<vmem>>, %arg4: memref<32x32xf32, #tpu.memory_space<vmem>>, %arg5: memref<1x32xf32, #tpu.memory_space<vmem>>, %arg6: memref<1x32xf32, #tpu.memory_space<vmem>>, %arg7: memref<1x32xf32, #tpu.memory_space<vmem>>, %arg8: memref<32x64xf32, #tpu.memory_space<vmem>>, %arg9: memref<1x64xf32, #tpu.memory_space<vmem>>, %arg10: memref<64x32xf32, #tpu.memory_space<vmem>>, %arg11: memref<1x32xf32, #tpu.memory_space<vmem>>, %arg12: memref<1x32xf32, #tpu.memory_space<vmem>>, %arg13: memref<1x32xf32, #tpu.memory_space<vmem>>, %arg14: memref<2x16x16xf32, #tpu.memory_space<vmem>>, %arg15: memref<4x16x16xf32, #tpu.memory_space<vmem>>, %arg16: memref<2x1x1xf32, #tpu.memory_space<vmem>>, %arg17: memref<64x32xf32, #tpu.memory_space<vmem>>) attributes {dimension_semantics = [#tpu.dimension_semantics<arbitrary>], iteration_bounds = array<i64: 1>, scalar_prefetch = 0 : i64, scratch_operands = 0 : i64, tpu.core_type = #tpu.core_type<tc>, window_params = [{pipeline_mode = #tpu.pipeline_mode<synchronous>, transform_indices = @transform_0, window_bounds = array<i64: 64, 32>}, {pipeline_mode = #tpu.pipeline_mode<synchronous>, transform_indices = @transform_1, window_bounds = array<i64: 32, 96>}, {pipeline_mode = #tpu.pipeline_mode<synchronous>, transform_indices = @transform_2, window_bounds = array<i64: 1, 96>}, {pipeline_mode = #tpu.pipeline_mode<synchronous>, transform_indices = @transform_3, window_bounds = array<i64: 32, 32>}, {pipeline_mode = #tpu.pipeline_mode<synchronous>, transform_indices = @transform_4, window_bounds = array<i64: 1, 32>}, {pipeline_mode = #tpu.pipeline_mode<synchronous>, transform_indices = @transform_5, window_bounds = array<i64: 1, 32>}, {pipeline_mode = #tpu.pipeline_mode<synchronous>, transform_indices = @transform_6, window_bounds = array<i64: 1, 32>}, {pipeline_mode = #tpu.pipeline_mode<synchronous>, transform_indices = @transform_7, window_bounds = array<i64: 32, 64>}, {pipeline_mode = #tpu.pipeline_mode<synchronous>, transform_indices = @transform_8, window_bounds = array<i64: 1, 64>}, {pipeline_mode = #tpu.pipeline_mode<synchronous>, transform_indices = @transform_9, window_bounds = array<i64: 64, 32>}, {pipeline_mode = #tpu.pipeline_mode<synchronous>, transform_indices = @transform_10, window_bounds = array<i64: 1, 32>}, {pipeline_mode = #tpu.pipeline_mode<synchronous>, transform_indices = @transform_11, window_bounds = array<i64: 1, 32>}, {pipeline_mode = #tpu.pipeline_mode<synchronous>, transform_indices = @transform_12, window_bounds = array<i64: 1, 32>}, {pipeline_mode = #tpu.pipeline_mode<synchronous>, transform_indices = @transform_13, window_bounds = array<i64: 2, 16, 16>}, {pipeline_mode = #tpu.pipeline_mode<synchronous>, transform_indices = @transform_14, window_bounds = array<i64: 4, 16, 16>}, {pipeline_mode = #tpu.pipeline_mode<synchronous>, transform_indices = @transform_15, window_bounds = array<i64: 2, 1, 1>}, {pipeline_mode = #tpu.pipeline_mode<synchronous>, transform_indices = @transform_16, window_bounds = array<i64: 64, 32>}]} {
    %c0 = arith.constant 0 : index
    %c0_0 = arith.constant 0 : index
    %0 = vector.load %arg1[%c0, %c0_0] : memref<64x32xf32, #tpu.memory_space<vmem>>, vector<64x32xf32>
    %c0_1 = arith.constant 0 : index
    %c0_2 = arith.constant 0 : index
    %1 = vector.load %arg2[%c0_1, %c0_2] : memref<32x96xf32, #tpu.memory_space<vmem>>, vector<32x96xf32>
    %cst = arith.constant dense<0.000000e+00> : vector<64x96xf32>
    %2 = tpu.matmul %0, %1, %cst {dimension_numbers = #tpu.dot_dimension_numbers<[1], [0], [0], [1], [0, 0, 1, 1], [], []>} : vector<64x32xf32>, vector<32x96xf32>, vector<64x96xf32> -> vector<64x96xf32>
    %c0_3 = arith.constant 0 : index
    %c0_4 = arith.constant 0 : index
    %3 = vector.load %arg3[%c0_3, %c0_4] : memref<1x96xf32, #tpu.memory_space<vmem>>, vector<1x96xf32>
    %4 = vector.broadcast %3 : vector<1x96xf32> to vector<64x96xf32>
    %5 = arith.addf %2, %4 : vector<64x96xf32>
    %c0_5 = arith.constant 0 : index
    %c0_6 = arith.constant 0 : index
    %c0_7 = arith.constant 0 : index
    %6 = vector.load %arg15[%c0_5, %c0_6, %c0_7] : memref<4x16x16xf32, #tpu.memory_space<vmem>>, vector<4x16x16xf32>
    %7 = vector.extract_strided_slice %5 {offsets = [0, 0], sizes = [64, 16], strides = [1, 1]} : vector<64x96xf32> to vector<64x16xf32>
    %8 = vector.extract_strided_slice %5 {offsets = [0, 32], sizes = [64, 16], strides = [1, 1]} : vector<64x96xf32> to vector<64x16xf32>
    %9 = vector.extract_strided_slice %5 {offsets = [0, 64], sizes = [64, 16], strides = [1, 1]} : vector<64x96xf32> to vector<64x16xf32>
    %10 = vector.shape_cast %7 : vector<64x16xf32> to vector<4x16x16xf32>
    %11 = vector.shape_cast %8 : vector<64x16xf32> to vector<4x16x16xf32>
    %12 = vector.shape_cast %9 : vector<64x16xf32> to vector<4x16x16xf32>
    %13 = arith.mulf %10, %10 : vector<4x16x16xf32>
    %cst_8 = arith.constant dense<0.000000e+00> : vector<4x16xf32>
    %14 = vector.multi_reduction <add>, %13, %cst_8 [2] : vector<4x16x16xf32> to vector<4x16xf32>
    %15 = vector.shape_cast %14 : vector<4x16xf32> to vector<4x16x1xf32>
    %cst_9 = arith.constant 1.000000e-24 : f32
    %16 = vector.broadcast %cst_9 : f32 to vector<4x16x1xf32>
    %17 = arith.maximumf %15, %16 : vector<4x16x1xf32>
    %18 = math.rsqrt %17 : vector<4x16x1xf32>
    %19 = vector.broadcast %18 : vector<4x16x1xf32> to vector<4x16x16xf32>
    %20 = arith.mulf %10, %19 : vector<4x16x16xf32>
    %21 = arith.mulf %11, %11 : vector<4x16x16xf32>
    %cst_10 = arith.constant dense<0.000000e+00> : vector<4x16xf32>
    %22 = vector.multi_reduction <add>, %21, %cst_10 [2] : vector<4x16x16xf32> to vector<4x16xf32>
    %23 = vector.shape_cast %22 : vector<4x16xf32> to vector<4x16x1xf32>
    %cst_11 = arith.constant 1.000000e-24 : f32
    %24 = vector.broadcast %cst_11 : f32 to vector<4x16x1xf32>
    %25 = arith.maximumf %23, %24 : vector<4x16x1xf32>
    %26 = math.rsqrt %25 : vector<4x16x1xf32>
    %27 = vector.broadcast %26 : vector<4x16x1xf32> to vector<4x16x16xf32>
    %28 = arith.mulf %11, %27 : vector<4x16x16xf32>
    "tpu.trace_start"() <{level = 10 : i32, message = "bnd,bmd->bnm"}> : () -> ()
    %cst_12 = arith.constant dense<0.000000e+00> : vector<4x16x16xf32>
    %29 = tpu.matmul %20, %28, %cst_12 {dimension_numbers = #tpu.dot_dimension_numbers<[2], [2], [1], [1], [0, 0, 0, 1, 1, 1], [0], [0]>} : vector<4x16x16xf32>, vector<4x16x16xf32>, vector<4x16x16xf32> -> vector<4x16x16xf32>
    "tpu.trace_stop"() : () -> ()
    %c0_13 = arith.constant 0 : index
    %c0_14 = arith.constant 0 : index
    %c0_15 = arith.constant 0 : index
    %30 = vector.load %arg16[%c0_13, %c0_14, %c0_15] : memref<2x1x1xf32, #tpu.memory_space<vmem>>, vector<1x1x1xf32>
    %31 = vector.shape_cast %30 : vector<1x1x1xf32> to vector<1x1xf32>
    %32 = vector.shape_cast %31 : vector<1x1xf32> to vector<1x1x1xf32>
    %33 = vector.broadcast %32 : vector<1x1x1xf32> to vector<4x16x16xf32>
    %34 = arith.mulf %29, %33 : vector<4x16x16xf32>
    %c0_16 = arith.constant 0 : index
    %c0_17 = arith.constant 0 : index
    %c0_18 = arith.constant 0 : index
    %35 = vector.load %arg14[%c0_16, %c0_17, %c0_18] : memref<2x16x16xf32, #tpu.memory_space<vmem>>, vector<1x16x16xf32>
    %36 = vector.shape_cast %35 : vector<1x16x16xf32> to vector<16x16xf32>
    %37 = vector.shape_cast %36 : vector<16x16xf32> to vector<1x16x16xf32>
    %38 = vector.broadcast %37 : vector<1x16x16xf32> to vector<4x16x16xf32>
    %39 = arith.addf %34, %38 : vector<4x16x16xf32>
    %40 = arith.addf %39, %6 : vector<4x16x16xf32>
    %cst_19 = arith.constant dense<0xFF800000> : vector<4x16xf32>
    %41 = vector.multi_reduction <maximumf>, %40, %cst_19 [2] : vector<4x16x16xf32> to vector<4x16xf32>
    %42 = vector.shape_cast %41 : vector<4x16xf32> to vector<4x16x1xf32>
    %43 = vector.broadcast %42 : vector<4x16x1xf32> to vector<4x16x16xf32>
    %44 = arith.subf %40, %43 : vector<4x16x16xf32>
    %45 = math.exp %44 : vector<4x16x16xf32>
    %cst_20 = arith.constant dense<0.000000e+00> : vector<4x16xf32>
    %46 = vector.multi_reduction <add>, %45, %cst_20 [2] : vector<4x16x16xf32> to vector<4x16xf32>
    %47 = vector.shape_cast %46 : vector<4x16xf32> to vector<4x16x1xf32>
    %48 = tpu.reciprocal %47 {approx = true} : vector<4x16x1xf32> -> vector<4x16x1xf32>
    %49 = vector.broadcast %48 : vector<4x16x1xf32> to vector<4x16x16xf32>
    %50 = arith.mulf %45, %49 : vector<4x16x16xf32>
    "tpu.trace_start"() <{level = 10 : i32, message = "bnm,bmd->bnd"}> : () -> ()
    %cst_21 = arith.constant dense<0.000000e+00> : vector<4x16x16xf32>
    %51 = tpu.matmul %50, %12, %cst_21 {dimension_numbers = #tpu.dot_dimension_numbers<[2], [1], [1], [2], [0, 0, 0, 1, 1, 2], [0], [0]>} : vector<4x16x16xf32>, vector<4x16x16xf32>, vector<4x16x16xf32> -> vector<4x16x16xf32>
    "tpu.trace_stop"() : () -> ()
    %52 = vector.shape_cast %51 : vector<4x16x16xf32> to vector<64x16xf32>
    %53 = vector.extract_strided_slice %5 {offsets = [0, 16], sizes = [64, 16], strides = [1, 1]} : vector<64x96xf32> to vector<64x16xf32>
    %54 = vector.extract_strided_slice %5 {offsets = [0, 48], sizes = [64, 16], strides = [1, 1]} : vector<64x96xf32> to vector<64x16xf32>
    %55 = vector.extract_strided_slice %5 {offsets = [0, 80], sizes = [64, 16], strides = [1, 1]} : vector<64x96xf32> to vector<64x16xf32>
    %56 = vector.shape_cast %53 : vector<64x16xf32> to vector<4x16x16xf32>
    %57 = vector.shape_cast %54 : vector<64x16xf32> to vector<4x16x16xf32>
    %58 = vector.shape_cast %55 : vector<64x16xf32> to vector<4x16x16xf32>
    %59 = arith.mulf %56, %56 : vector<4x16x16xf32>
    %cst_22 = arith.constant dense<0.000000e+00> : vector<4x16xf32>
    %60 = vector.multi_reduction <add>, %59, %cst_22 [2] : vector<4x16x16xf32> to vector<4x16xf32>
    %61 = vector.shape_cast %60 : vector<4x16xf32> to vector<4x16x1xf32>
    %cst_23 = arith.constant 1.000000e-24 : f32
    %62 = vector.broadcast %cst_23 : f32 to vector<4x16x1xf32>
    %63 = arith.maximumf %61, %62 : vector<4x16x1xf32>
    %64 = math.rsqrt %63 : vector<4x16x1xf32>
    %65 = vector.broadcast %64 : vector<4x16x1xf32> to vector<4x16x16xf32>
    %66 = arith.mulf %56, %65 : vector<4x16x16xf32>
    %67 = arith.mulf %57, %57 : vector<4x16x16xf32>
    %cst_24 = arith.constant dense<0.000000e+00> : vector<4x16xf32>
    %68 = vector.multi_reduction <add>, %67, %cst_24 [2] : vector<4x16x16xf32> to vector<4x16xf32>
    %69 = vector.shape_cast %68 : vector<4x16xf32> to vector<4x16x1xf32>
    %cst_25 = arith.constant 1.000000e-24 : f32
    %70 = vector.broadcast %cst_25 : f32 to vector<4x16x1xf32>
    %71 = arith.maximumf %69, %70 : vector<4x16x1xf32>
    %72 = math.rsqrt %71 : vector<4x16x1xf32>
    %73 = vector.broadcast %72 : vector<4x16x1xf32> to vector<4x16x16xf32>
    %74 = arith.mulf %57, %73 : vector<4x16x16xf32>
    "tpu.trace_start"() <{level = 10 : i32, message = "bnd,bmd->bnm"}> : () -> ()
    %cst_26 = arith.constant dense<0.000000e+00> : vector<4x16x16xf32>
    %75 = tpu.matmul %66, %74, %cst_26 {dimension_numbers = #tpu.dot_dimension_numbers<[2], [2], [1], [1], [0, 0, 0, 1, 1, 1], [0], [0]>} : vector<4x16x16xf32>, vector<4x16x16xf32>, vector<4x16x16xf32> -> vector<4x16x16xf32>
    "tpu.trace_stop"() : () -> ()
    %c1 = arith.constant 1 : index
    %c0_27 = arith.constant 0 : index
    %c0_28 = arith.constant 0 : index
    %76 = vector.load %arg16[%c1, %c0_27, %c0_28] : memref<2x1x1xf32, #tpu.memory_space<vmem>>, vector<1x1x1xf32>
    %77 = vector.shape_cast %76 : vector<1x1x1xf32> to vector<1x1xf32>
    %78 = vector.shape_cast %77 : vector<1x1xf32> to vector<1x1x1xf32>
    %79 = vector.broadcast %78 : vector<1x1x1xf32> to vector<4x16x16xf32>
    %80 = arith.mulf %75, %79 : vector<4x16x16xf32>
    %c1_29 = arith.constant 1 : index
    %c0_30 = arith.constant 0 : index
    %c0_31 = arith.constant 0 : index
    %81 = vector.load %arg14[%c1_29, %c0_30, %c0_31] : memref<2x16x16xf32, #tpu.memory_space<vmem>>, vector<1x16x16xf32>
    %82 = vector.shape_cast %81 : vector<1x16x16xf32> to vector<16x16xf32>
    %83 = vector.shape_cast %82 : vector<16x16xf32> to vector<1x16x16xf32>
    %84 = vector.broadcast %83 : vector<1x16x16xf32> to vector<4x16x16xf32>
    %85 = arith.addf %80, %84 : vector<4x16x16xf32>
    %86 = arith.addf %85, %6 : vector<4x16x16xf32>
    %cst_32 = arith.constant dense<0xFF800000> : vector<4x16xf32>
    %87 = vector.multi_reduction <maximumf>, %86, %cst_32 [2] : vector<4x16x16xf32> to vector<4x16xf32>
    %88 = vector.shape_cast %87 : vector<4x16xf32> to vector<4x16x1xf32>
    %89 = vector.broadcast %88 : vector<4x16x1xf32> to vector<4x16x16xf32>
    %90 = arith.subf %86, %89 : vector<4x16x16xf32>
    %91 = math.exp %90 : vector<4x16x16xf32>
    %cst_33 = arith.constant dense<0.000000e+00> : vector<4x16xf32>
    %92 = vector.multi_reduction <add>, %91, %cst_33 [2] : vector<4x16x16xf32> to vector<4x16xf32>
    %93 = vector.shape_cast %92 : vector<4x16xf32> to vector<4x16x1xf32>
    %94 = tpu.reciprocal %93 {approx = true} : vector<4x16x1xf32> -> vector<4x16x1xf32>
    %95 = vector.broadcast %94 : vector<4x16x1xf32> to vector<4x16x16xf32>
    %96 = arith.mulf %91, %95 : vector<4x16x16xf32>
    "tpu.trace_start"() <{level = 10 : i32, message = "bnm,bmd->bnd"}> : () -> ()
    %cst_34 = arith.constant dense<0.000000e+00> : vector<4x16x16xf32>
    %97 = tpu.matmul %96, %58, %cst_34 {dimension_numbers = #tpu.dot_dimension_numbers<[2], [1], [1], [2], [0, 0, 0, 1, 1, 2], [0], [0]>} : vector<4x16x16xf32>, vector<4x16x16xf32>, vector<4x16x16xf32> -> vector<4x16x16xf32>
    "tpu.trace_stop"() : () -> ()
    %98 = vector.shape_cast %97 : vector<4x16x16xf32> to vector<64x16xf32>
    %99 = tpu.concatenate %52, %98 in 1 : vector<64x16xf32>, vector<64x16xf32> -> vector<64x32xf32>
    %c0_35 = arith.constant 0 : index
    %c0_36 = arith.constant 0 : index
    %100 = vector.load %arg4[%c0_35, %c0_36] : memref<32x32xf32, #tpu.memory_space<vmem>>, vector<32x32xf32>
    %cst_37 = arith.constant dense<0.000000e+00> : vector<64x32xf32>
    %101 = tpu.matmul %99, %100, %cst_37 {dimension_numbers = #tpu.dot_dimension_numbers<[1], [0], [0], [1], [0, 0, 1, 1], [], []>} : vector<64x32xf32>, vector<32x32xf32>, vector<64x32xf32> -> vector<64x32xf32>
    %c0_38 = arith.constant 0 : index
    %c0_39 = arith.constant 0 : index
    %102 = vector.load %arg5[%c0_38, %c0_39] : memref<1x32xf32, #tpu.memory_space<vmem>>, vector<1x32xf32>
    %103 = vector.broadcast %102 : vector<1x32xf32> to vector<64x32xf32>
    %104 = arith.addf %101, %103 : vector<64x32xf32>
    %c0_40 = arith.constant 0 : index
    %c0_41 = arith.constant 0 : index
    %105 = vector.load %arg6[%c0_40, %c0_41] : memref<1x32xf32, #tpu.memory_space<vmem>>, vector<1x32xf32>
    %c0_42 = arith.constant 0 : index
    %c0_43 = arith.constant 0 : index
    %106 = vector.load %arg7[%c0_42, %c0_43] : memref<1x32xf32, #tpu.memory_space<vmem>>, vector<1x32xf32>
    %cst_44 = arith.constant dense<0.000000e+00> : vector<64xf32>
    %107 = vector.multi_reduction <add>, %104, %cst_44 [1] : vector<64x32xf32> to vector<64xf32>
    %108 = vector.shape_cast %107 : vector<64xf32> to vector<64x1xf32>
    %cst_45 = arith.constant 3.200000e+01 : f32
    %109 = vector.broadcast %cst_45 : f32 to vector<64x1xf32>
    %110 = arith.divf %108, %109 : vector<64x1xf32>
    %111 = vector.broadcast %110 : vector<64x1xf32> to vector<64x32xf32>
    %112 = arith.subf %104, %111 : vector<64x32xf32>
    %113 = arith.mulf %112, %112 : vector<64x32xf32>
    %cst_46 = arith.constant dense<0.000000e+00> : vector<64xf32>
    %114 = vector.multi_reduction <add>, %113, %cst_46 [1] : vector<64x32xf32> to vector<64xf32>
    %115 = vector.shape_cast %114 : vector<64xf32> to vector<64x1xf32>
    %cst_47 = arith.constant 3.200000e+01 : f32
    %116 = vector.broadcast %cst_47 : f32 to vector<64x1xf32>
    %117 = arith.divf %115, %116 : vector<64x1xf32>
    %118 = vector.broadcast %110 : vector<64x1xf32> to vector<64x32xf32>
    %119 = arith.subf %104, %118 : vector<64x32xf32>
    %cst_48 = arith.constant 9.99999974E-6 : f32
    %120 = vector.broadcast %cst_48 : f32 to vector<64x1xf32>
    %121 = arith.addf %117, %120 : vector<64x1xf32>
    %122 = math.rsqrt %121 : vector<64x1xf32>
    %123 = vector.broadcast %122 : vector<64x1xf32> to vector<64x32xf32>
    %124 = arith.mulf %119, %123 : vector<64x32xf32>
    %125 = vector.broadcast %105 : vector<1x32xf32> to vector<64x32xf32>
    %126 = arith.mulf %124, %125 : vector<64x32xf32>
    %127 = vector.broadcast %106 : vector<1x32xf32> to vector<64x32xf32>
    %128 = arith.addf %126, %127 : vector<64x32xf32>
    %129 = arith.addf %0, %128 : vector<64x32xf32>
    %c0_49 = arith.constant 0 : index
    %c0_50 = arith.constant 0 : index
    %130 = vector.load %arg8[%c0_49, %c0_50] : memref<32x64xf32, #tpu.memory_space<vmem>>, vector<32x64xf32>
    %cst_51 = arith.constant dense<0.000000e+00> : vector<64x64xf32>
    %131 = tpu.matmul %129, %130, %cst_51 {dimension_numbers = #tpu.dot_dimension_numbers<[1], [0], [0], [1], [0, 0, 1, 1], [], []>} : vector<64x32xf32>, vector<32x64xf32>, vector<64x64xf32> -> vector<64x64xf32>
    %c0_52 = arith.constant 0 : index
    %c0_53 = arith.constant 0 : index
    %132 = vector.load %arg9[%c0_52, %c0_53] : memref<1x64xf32, #tpu.memory_space<vmem>>, vector<1x64xf32>
    %133 = vector.broadcast %132 : vector<1x64xf32> to vector<64x64xf32>
    %134 = arith.addf %131, %133 : vector<64x64xf32>
    %cst_54 = arith.constant 5.000000e-01 : f32
    %135 = vector.broadcast %cst_54 : f32 to vector<64x64xf32>
    %136 = arith.mulf %135, %134 : vector<64x64xf32>
    %cst_55 = arith.constant 0.707106769 : f32
    %137 = vector.broadcast %cst_55 : f32 to vector<64x64xf32>
    %138 = arith.mulf %134, %137 : vector<64x64xf32>
    %cst_56 = arith.constant 0.000000e+00 : f32
    %139 = vector.broadcast %cst_56 : f32 to vector<64x64xf32>
    %140 = arith.cmpf olt, %138, %139 : vector<64x64xf32>
    %cst_57 = arith.constant -1.000000e+00 : f32
    %cst_58 = arith.constant 1.000000e+00 : f32
    %141 = vector.broadcast %cst_57 : f32 to vector<64x64xf32>
    %142 = vector.broadcast %cst_58 : f32 to vector<64x64xf32>
    %143 = arith.select %140, %141, %142 : vector<64x64xi1>, vector<64x64xf32>
    %144 = math.absf %138 : vector<64x64xf32>
    %cst_59 = arith.constant 0.327591091 : f32
    %145 = vector.broadcast %cst_59 : f32 to vector<64x64xf32>
    %146 = arith.mulf %145, %144 : vector<64x64xf32>
    %cst_60 = arith.constant 1.000000e+00 : f32
    %147 = vector.broadcast %cst_60 : f32 to vector<64x64xf32>
    %148 = arith.addf %147, %146 : vector<64x64xf32>
    %cst_61 = arith.constant 1.000000e+00 : f32
    %149 = vector.broadcast %cst_61 : f32 to vector<64x64xf32>
    %150 = arith.divf %149, %148 : vector<64x64xf32>
    %cst_62 = arith.constant 1.06140542 : f32
    %151 = vector.broadcast %cst_62 : f32 to vector<64x64xf32>
    %152 = arith.mulf %151, %150 : vector<64x64xf32>
    %cst_63 = arith.constant -1.45315206 : f32
    %153 = vector.broadcast %cst_63 : f32 to vector<64x64xf32>
    %154 = arith.addf %152, %153 : vector<64x64xf32>
    %155 = arith.mulf %154, %150 : vector<64x64xf32>
    %cst_64 = arith.constant 1.42141378 : f32
    %156 = vector.broadcast %cst_64 : f32 to vector<64x64xf32>
    %157 = arith.addf %155, %156 : vector<64x64xf32>
    %158 = arith.mulf %157, %150 : vector<64x64xf32>
    %cst_65 = arith.constant -0.284496725 : f32
    %159 = vector.broadcast %cst_65 : f32 to vector<64x64xf32>
    %160 = arith.addf %158, %159 : vector<64x64xf32>
    %161 = arith.mulf %160, %150 : vector<64x64xf32>
    %cst_66 = arith.constant 0.254829586 : f32
    %162 = vector.broadcast %cst_66 : f32 to vector<64x64xf32>
    %163 = arith.addf %161, %162 : vector<64x64xf32>
    %164 = arith.mulf %163, %150 : vector<64x64xf32>
    %cst_67 = arith.constant 0.000000e+00 : f32
    %165 = vector.broadcast %cst_67 : f32 to vector<64x64xf32>
    %166 = arith.subf %165, %144 : vector<64x64xf32>
    %167 = arith.mulf %166, %144 : vector<64x64xf32>
    %168 = math.exp %167 : vector<64x64xf32>
    %169 = arith.mulf %164, %168 : vector<64x64xf32>
    %cst_68 = arith.constant 1.000000e+00 : f32
    %170 = vector.broadcast %cst_68 : f32 to vector<64x64xf32>
    %171 = arith.subf %170, %169 : vector<64x64xf32>
    %172 = arith.mulf %143, %171 : vector<64x64xf32>
    %cst_69 = arith.constant 1.000000e+00 : f32
    %173 = vector.broadcast %cst_69 : f32 to vector<64x64xf32>
    %174 = arith.addf %173, %172 : vector<64x64xf32>
    %175 = arith.mulf %136, %174 : vector<64x64xf32>
    %c0_70 = arith.constant 0 : index
    %c0_71 = arith.constant 0 : index
    %176 = vector.load %arg10[%c0_70, %c0_71] : memref<64x32xf32, #tpu.memory_space<vmem>>, vector<64x32xf32>
    %cst_72 = arith.constant dense<0.000000e+00> : vector<64x32xf32>
    %177 = tpu.matmul %175, %176, %cst_72 {dimension_numbers = #tpu.dot_dimension_numbers<[1], [0], [0], [1], [0, 0, 1, 1], [], []>} : vector<64x64xf32>, vector<64x32xf32>, vector<64x32xf32> -> vector<64x32xf32>
    %c0_73 = arith.constant 0 : index
    %c0_74 = arith.constant 0 : index
    %178 = vector.load %arg11[%c0_73, %c0_74] : memref<1x32xf32, #tpu.memory_space<vmem>>, vector<1x32xf32>
    %179 = vector.broadcast %178 : vector<1x32xf32> to vector<64x32xf32>
    %180 = arith.addf %177, %179 : vector<64x32xf32>
    %c0_75 = arith.constant 0 : index
    %c0_76 = arith.constant 0 : index
    %181 = vector.load %arg12[%c0_75, %c0_76] : memref<1x32xf32, #tpu.memory_space<vmem>>, vector<1x32xf32>
    %c0_77 = arith.constant 0 : index
    %c0_78 = arith.constant 0 : index
    %182 = vector.load %arg13[%c0_77, %c0_78] : memref<1x32xf32, #tpu.memory_space<vmem>>, vector<1x32xf32>
    %cst_79 = arith.constant dense<0.000000e+00> : vector<64xf32>
    %183 = vector.multi_reduction <add>, %180, %cst_79 [1] : vector<64x32xf32> to vector<64xf32>
    %184 = vector.shape_cast %183 : vector<64xf32> to vector<64x1xf32>
    %cst_80 = arith.constant 3.200000e+01 : f32
    %185 = vector.broadcast %cst_80 : f32 to vector<64x1xf32>
    %186 = arith.divf %184, %185 : vector<64x1xf32>
    %187 = vector.broadcast %186 : vector<64x1xf32> to vector<64x32xf32>
    %188 = arith.subf %180, %187 : vector<64x32xf32>
    %189 = arith.mulf %188, %188 : vector<64x32xf32>
    %cst_81 = arith.constant dense<0.000000e+00> : vector<64xf32>
    %190 = vector.multi_reduction <add>, %189, %cst_81 [1] : vector<64x32xf32> to vector<64xf32>
    %191 = vector.shape_cast %190 : vector<64xf32> to vector<64x1xf32>
    %cst_82 = arith.constant 3.200000e+01 : f32
    %192 = vector.broadcast %cst_82 : f32 to vector<64x1xf32>
    %193 = arith.divf %191, %192 : vector<64x1xf32>
    %194 = vector.broadcast %186 : vector<64x1xf32> to vector<64x32xf32>
    %195 = arith.subf %180, %194 : vector<64x32xf32>
    %cst_83 = arith.constant 9.99999974E-6 : f32
    %196 = vector.broadcast %cst_83 : f32 to vector<64x1xf32>
    %197 = arith.addf %193, %196 : vector<64x1xf32>
    %198 = math.rsqrt %197 : vector<64x1xf32>
    %199 = vector.broadcast %198 : vector<64x1xf32> to vector<64x32xf32>
    %200 = arith.mulf %195, %199 : vector<64x32xf32>
    %201 = vector.broadcast %181 : vector<1x32xf32> to vector<64x32xf32>
    %202 = arith.mulf %200, %201 : vector<64x32xf32>
    %203 = vector.broadcast %182 : vector<1x32xf32> to vector<64x32xf32>
    %204 = arith.addf %202, %203 : vector<64x32xf32>
    %205 = arith.addf %129, %204 : vector<64x32xf32>
    %c0_84 = arith.constant 0 : index
    %c0_85 = arith.constant 0 : index
    %206 = vector.load %arg17[%c0_84, %c0_85] : memref<64x32xf32, #tpu.memory_space<vmem>>, vector<64x32xf32>
    tpu.vector_store %arg17[%c0_84, %c0_85], %205 {strides = array<i32>} : memref<64x32xf32, #tpu.memory_space<vmem>>, vector<64x32xf32>,
    return
  }
  func.func @transform_0(%arg0: i32) -> (i32, i32) {
    %c0_i32 = arith.constant 0 : i32
    %c0_i32_0 = arith.constant 0 : i32
    %c0_i32_1 = arith.constant 0 : i32
    return %c0_i32, %c0_i32_0 : i32, i32
  }
  func.func @transform_1(%arg0: i32) -> (i32, i32) {
    %c0_i32 = arith.constant 0 : i32
    %c0_i32_0 = arith.constant 0 : i32
    %c0_i32_1 = arith.constant 0 : i32
    return %c0_i32, %c0_i32_0 : i32, i32
  }
  func.func @transform_2(%arg0: i32) -> (i32, i32) {
    %c0_i32 = arith.constant 0 : i32
    %c0_i32_0 = arith.constant 0 : i32
    %c0_i32_1 = arith.constant 0 : i32
    return %c0_i32, %c0_i32_0 : i32, i32
  }
  func.func @transform_3(%arg0: i32) -> (i32, i32) {
    %c0_i32 = arith.constant 0 : i32
    %c0_i32_0 = arith.constant 0 : i32
    %c0_i32_1 = arith.constant 0 : i32
    return %c0_i32, %c0_i32_0 : i32, i32
  }
  func.func @transform_4(%arg0: i32) -> (i32, i32) {
    %c0_i32 = arith.constant 0 : i32
    %c0_i32_0 = arith.constant 0 : i32
    %c0_i32_1 = arith.constant 0 : i32
    return %c0_i32, %c0_i32_0 : i32, i32
  }
  func.func @transform_5(%arg0: i32) -> (i32, i32) {
    %c0_i32 = arith.constant 0 : i32
    %c0_i32_0 = arith.constant 0 : i32
    %c0_i32_1 = arith.constant 0 : i32
    return %c0_i32, %c0_i32_0 : i32, i32
  }
  func.func @transform_6(%arg0: i32) -> (i32, i32) {
    %c0_i32 = arith.constant 0 : i32
    %c0_i32_0 = arith.constant 0 : i32
    %c0_i32_1 = arith.constant 0 : i32
    return %c0_i32, %c0_i32_0 : i32, i32
  }
  func.func @transform_7(%arg0: i32) -> (i32, i32) {
    %c0_i32 = arith.constant 0 : i32
    %c0_i32_0 = arith.constant 0 : i32
    %c0_i32_1 = arith.constant 0 : i32
    return %c0_i32, %c0_i32_0 : i32, i32
  }
  func.func @transform_8(%arg0: i32) -> (i32, i32) {
    %c0_i32 = arith.constant 0 : i32
    %c0_i32_0 = arith.constant 0 : i32
    %c0_i32_1 = arith.constant 0 : i32
    return %c0_i32, %c0_i32_0 : i32, i32
  }
  func.func @transform_9(%arg0: i32) -> (i32, i32) {
    %c0_i32 = arith.constant 0 : i32
    %c0_i32_0 = arith.constant 0 : i32
    %c0_i32_1 = arith.constant 0 : i32
    return %c0_i32, %c0_i32_0 : i32, i32
  }
  func.func @transform_10(%arg0: i32) -> (i32, i32) {
    %c0_i32 = arith.constant 0 : i32
    %c0_i32_0 = arith.constant 0 : i32
    %c0_i32_1 = arith.constant 0 : i32
    return %c0_i32, %c0_i32_0 : i32, i32
  }
  func.func @transform_11(%arg0: i32) -> (i32, i32) {
    %c0_i32 = arith.constant 0 : i32
    %c0_i32_0 = arith.constant 0 : i32
    %c0_i32_1 = arith.constant 0 : i32
    return %c0_i32, %c0_i32_0 : i32, i32
  }
  func.func @transform_12(%arg0: i32) -> (i32, i32) {
    %c0_i32 = arith.constant 0 : i32
    %c0_i32_0 = arith.constant 0 : i32
    %c0_i32_1 = arith.constant 0 : i32
    return %c0_i32, %c0_i32_0 : i32, i32
  }
  func.func @transform_13(%arg0: i32) -> (i32, i32, i32) {
    %c0_i32 = arith.constant 0 : i32
    %c0_i32_0 = arith.constant 0 : i32
    %c0_i32_1 = arith.constant 0 : i32
    %c0_i32_2 = arith.constant 0 : i32
    return %c0_i32, %c0_i32_0, %c0_i32_1 : i32, i32, i32
  }
  func.func @transform_14(%arg0: i32) -> (i32, i32, i32) {
    %c0_i32 = arith.constant 0 : i32
    %c0_i32_0 = arith.constant 0 : i32
    %c0_i32_1 = arith.constant 0 : i32
    %c0_i32_2 = arith.constant 0 : i32
    return %c0_i32, %c0_i32_0, %c0_i32_1 : i32, i32, i32
  }
  func.func @transform_15(%arg0: i32) -> (i32, i32, i32) {
    %c0_i32 = arith.constant 0 : i32
    %c0_i32_0 = arith.constant 0 : i32
    %c0_i32_1 = arith.constant 0 : i32
    %c0_i32_2 = arith.constant 0 : i32
    return %c0_i32, %c0_i32_0, %c0_i32_1 : i32, i32, i32
  }
  func.func @transform_16(%arg0: i32) -> (i32, i32) {
    %c0_i32 = arith.constant 0 : i32
    %c0_i32_0 = arith.constant 0 : i32
    %c0_i32_1 = arith.constant 0 : i32
    return %c0_i32, %c0_i32_0 : i32, i32
  }
}

module attributes {stable_mosaic.version = 11 : i64} {
  func.func @_matmul_ln_kernel(%arg0: i32, %arg1: memref<16x128xf32, #tpu.memory_space<vmem>>, %arg2: memref<128x64xf32, #tpu.memory_space<vmem>>, %arg3: memref<1x64xf32, #tpu.memory_space<vmem>>, %arg4: memref<1x64xf32, #tpu.memory_space<vmem>>, %arg5: memref<1x64xf32, #tpu.memory_space<vmem>>, %arg6: memref<16x64xf32, #tpu.memory_space<vmem>>) attributes {dimension_semantics = [#tpu.dimension_semantics<parallel>], iteration_bounds = array<i64: 1>, scalar_prefetch = 0 : i64, scratch_operands = 0 : i64, tpu.core_type = #tpu.core_type<tc>, window_params = [{transform_indices = @transform_0, window_bounds = array<i64: 16, 128>}, {pipeline_mode = #tpu.pipeline_mode<synchronous>, transform_indices = @transform_1, window_bounds = array<i64: 128, 64>}, {pipeline_mode = #tpu.pipeline_mode<synchronous>, transform_indices = @transform_2, window_bounds = array<i64: 1, 64>}, {pipeline_mode = #tpu.pipeline_mode<synchronous>, transform_indices = @transform_3, window_bounds = array<i64: 1, 64>}, {pipeline_mode = #tpu.pipeline_mode<synchronous>, transform_indices = @transform_4, window_bounds = array<i64: 1, 64>}, {transform_indices = @transform_5, window_bounds = array<i64: 16, 64>}]} {
    %c0 = arith.constant 0 : index
    %c0_0 = arith.constant 0 : index
    %0 = vector.load %arg1[%c0, %c0_0] : memref<16x128xf32, #tpu.memory_space<vmem>>, vector<16x128xf32>
    %c0_1 = arith.constant 0 : index
    %c0_2 = arith.constant 0 : index
    %1 = vector.load %arg2[%c0_1, %c0_2] : memref<128x64xf32, #tpu.memory_space<vmem>>, vector<128x64xf32>
    %cst = arith.constant dense<0.000000e+00> : vector<16x64xf32>
    %2 = tpu.matmul %0, %1, %cst {dimension_numbers = #tpu.dot_dimension_numbers<[1], [0], [0], [1], [0, 0, 1, 1], [], []>} : vector<16x128xf32>, vector<128x64xf32>, vector<16x64xf32> -> vector<16x64xf32>
    %c0_3 = arith.constant 0 : index
    %c0_4 = arith.constant 0 : index
    %3 = vector.load %arg3[%c0_3, %c0_4] : memref<1x64xf32, #tpu.memory_space<vmem>>, vector<1x64xf32>
    %4 = vector.broadcast %3 : vector<1x64xf32> to vector<16x64xf32>
    %5 = arith.addf %2, %4 : vector<16x64xf32>
    %c0_5 = arith.constant 0 : index
    %c0_6 = arith.constant 0 : index
    %6 = vector.load %arg4[%c0_5, %c0_6] : memref<1x64xf32, #tpu.memory_space<vmem>>, vector<1x64xf32>
    %c0_7 = arith.constant 0 : index
    %c0_8 = arith.constant 0 : index
    %7 = vector.load %arg5[%c0_7, %c0_8] : memref<1x64xf32, #tpu.memory_space<vmem>>, vector<1x64xf32>
    %cst_9 = arith.constant dense<0.000000e+00> : vector<16xf32>
    %8 = vector.multi_reduction <add>, %5, %cst_9 [1] : vector<16x64xf32> to vector<16xf32>
    %9 = vector.shape_cast %8 : vector<16xf32> to vector<16x1xf32>
    %cst_10 = arith.constant 6.400000e+01 : f32
    %10 = vector.broadcast %cst_10 : f32 to vector<16x1xf32>
    %11 = arith.divf %9, %10 : vector<16x1xf32>
    %12 = vector.broadcast %11 : vector<16x1xf32> to vector<16x64xf32>
    %13 = arith.subf %5, %12 : vector<16x64xf32>
    %14 = arith.mulf %13, %13 : vector<16x64xf32>
    %cst_11 = arith.constant dense<0.000000e+00> : vector<16xf32>
    %15 = vector.multi_reduction <add>, %14, %cst_11 [1] : vector<16x64xf32> to vector<16xf32>
    %16 = vector.shape_cast %15 : vector<16xf32> to vector<16x1xf32>
    %cst_12 = arith.constant 6.400000e+01 : f32
    %17 = vector.broadcast %cst_12 : f32 to vector<16x1xf32>
    %18 = arith.divf %16, %17 : vector<16x1xf32>
    %19 = vector.broadcast %11 : vector<16x1xf32> to vector<16x64xf32>
    %20 = arith.subf %5, %19 : vector<16x64xf32>
    %cst_13 = arith.constant 9.99999974E-6 : f32
    %21 = vector.broadcast %cst_13 : f32 to vector<16x1xf32>
    %22 = arith.addf %18, %21 : vector<16x1xf32>
    %23 = math.rsqrt %22 : vector<16x1xf32>
    %24 = vector.broadcast %23 : vector<16x1xf32> to vector<16x64xf32>
    %25 = arith.mulf %20, %24 : vector<16x64xf32>
    %26 = vector.broadcast %6 : vector<1x64xf32> to vector<16x64xf32>
    %27 = arith.mulf %25, %26 : vector<16x64xf32>
    %28 = vector.broadcast %7 : vector<1x64xf32> to vector<16x64xf32>
    %29 = arith.addf %27, %28 : vector<16x64xf32>
    %c0_14 = arith.constant 0 : index
    %c0_15 = arith.constant 0 : index
    %30 = vector.load %arg6[%c0_14, %c0_15] : memref<16x64xf32, #tpu.memory_space<vmem>>, vector<16x64xf32>
    tpu.vector_store %arg6[%c0_14, %c0_15], %29 {strides = array<i32>} : memref<16x64xf32, #tpu.memory_space<vmem>>, vector<16x64xf32>,
    return
  }
  func.func @transform_0(%arg0: i32) -> (i32, i32) {
    %c0_i32 = arith.constant 0 : i32
    %c0_i32_0 = arith.constant 0 : i32
    return %arg0, %c0_i32 : i32, i32
  }
  func.func @transform_1(%arg0: i32) -> (i32, i32) {
    %c0_i32 = arith.constant 0 : i32
    %c0_i32_0 = arith.constant 0 : i32
    %c0_i32_1 = arith.constant 0 : i32
    return %c0_i32, %c0_i32_0 : i32, i32
  }
  func.func @transform_2(%arg0: i32) -> (i32, i32) {
    %c0_i32 = arith.constant 0 : i32
    %c0_i32_0 = arith.constant 0 : i32
    %c0_i32_1 = arith.constant 0 : i32
    return %c0_i32, %c0_i32_0 : i32, i32
  }
  func.func @transform_3(%arg0: i32) -> (i32, i32) {
    %c0_i32 = arith.constant 0 : i32
    %c0_i32_0 = arith.constant 0 : i32
    %c0_i32_1 = arith.constant 0 : i32
    return %c0_i32, %c0_i32_0 : i32, i32
  }
  func.func @transform_4(%arg0: i32) -> (i32, i32) {
    %c0_i32 = arith.constant 0 : i32
    %c0_i32_0 = arith.constant 0 : i32
    %c0_i32_1 = arith.constant 0 : i32
    return %c0_i32, %c0_i32_0 : i32, i32
  }
  func.func @transform_5(%arg0: i32) -> (i32, i32) {
    %c0_i32 = arith.constant 0 : i32
    %c0_i32_0 = arith.constant 0 : i32
    return %arg0, %c0_i32 : i32, i32
  }
}

module attributes {stable_mosaic.version = 11 : i64} {
  func.func @_swin_block_kernel(%arg0: i32, %arg1: memref<16x64xf32, #tpu.memory_space<vmem>>, %arg2: memref<64x192xf32, #tpu.memory_space<vmem>>, %arg3: memref<1x192xf32, #tpu.memory_space<vmem>>, %arg4: memref<64x64xf32, #tpu.memory_space<vmem>>, %arg5: memref<1x64xf32, #tpu.memory_space<vmem>>, %arg6: memref<1x64xf32, #tpu.memory_space<vmem>>, %arg7: memref<1x64xf32, #tpu.memory_space<vmem>>, %arg8: memref<64x128xf32, #tpu.memory_space<vmem>>, %arg9: memref<1x128xf32, #tpu.memory_space<vmem>>, %arg10: memref<128x64xf32, #tpu.memory_space<vmem>>, %arg11: memref<1x64xf32, #tpu.memory_space<vmem>>, %arg12: memref<1x64xf32, #tpu.memory_space<vmem>>, %arg13: memref<1x64xf32, #tpu.memory_space<vmem>>, %arg14: memref<4x16x16xf32, #tpu.memory_space<vmem>>, %arg15: memref<1x16x16xf32, #tpu.memory_space<vmem>>, %arg16: memref<4x1x1xf32, #tpu.memory_space<vmem>>, %arg17: memref<16x64xf32, #tpu.memory_space<vmem>>) attributes {dimension_semantics = [#tpu.dimension_semantics<arbitrary>], iteration_bounds = array<i64: 1>, scalar_prefetch = 0 : i64, scratch_operands = 0 : i64, tpu.core_type = #tpu.core_type<tc>, window_params = [{pipeline_mode = #tpu.pipeline_mode<synchronous>, transform_indices = @transform_0, window_bounds = array<i64: 16, 64>}, {pipeline_mode = #tpu.pipeline_mode<synchronous>, transform_indices = @transform_1, window_bounds = array<i64: 64, 192>}, {pipeline_mode = #tpu.pipeline_mode<synchronous>, transform_indices = @transform_2, window_bounds = array<i64: 1, 192>}, {pipeline_mode = #tpu.pipeline_mode<synchronous>, transform_indices = @transform_3, window_bounds = array<i64: 64, 64>}, {pipeline_mode = #tpu.pipeline_mode<synchronous>, transform_indices = @transform_4, window_bounds = array<i64: 1, 64>}, {pipeline_mode = #tpu.pipeline_mode<synchronous>, transform_indices = @transform_5, window_bounds = array<i64: 1, 64>}, {pipeline_mode = #tpu.pipeline_mode<synchronous>, transform_indices = @transform_6, window_bounds = array<i64: 1, 64>}, {pipeline_mode = #tpu.pipeline_mode<synchronous>, transform_indices = @transform_7, window_bounds = array<i64: 64, 128>}, {pipeline_mode = #tpu.pipeline_mode<synchronous>, transform_indices = @transform_8, window_bounds = array<i64: 1, 128>}, {pipeline_mode = #tpu.pipeline_mode<synchronous>, transform_indices = @transform_9, window_bounds = array<i64: 128, 64>}, {pipeline_mode = #tpu.pipeline_mode<synchronous>, transform_indices = @transform_10, window_bounds = array<i64: 1, 64>}, {pipeline_mode = #tpu.pipeline_mode<synchronous>, transform_indices = @transform_11, window_bounds = array<i64: 1, 64>}, {pipeline_mode = #tpu.pipeline_mode<synchronous>, transform_indices = @transform_12, window_bounds = array<i64: 1, 64>}, {pipeline_mode = #tpu.pipeline_mode<synchronous>, transform_indices = @transform_13, window_bounds = array<i64: 4, 16, 16>}, {pipeline_mode = #tpu.pipeline_mode<synchronous>, transform_indices = @transform_14, window_bounds = array<i64: 1, 16, 16>}, {pipeline_mode = #tpu.pipeline_mode<synchronous>, transform_indices = @transform_15, window_bounds = array<i64: 4, 1, 1>}, {pipeline_mode = #tpu.pipeline_mode<synchronous>, transform_indices = @transform_16, window_bounds = array<i64: 16, 64>}]} {
    %c0 = arith.constant 0 : index
    %c0_0 = arith.constant 0 : index
    %0 = vector.load %arg1[%c0, %c0_0] : memref<16x64xf32, #tpu.memory_space<vmem>>, vector<16x64xf32>
    %c0_1 = arith.constant 0 : index
    %c0_2 = arith.constant 0 : index
    %1 = vector.load %arg2[%c0_1, %c0_2] : memref<64x192xf32, #tpu.memory_space<vmem>>, vector<64x192xf32>
    %cst = arith.constant dense<0.000000e+00> : vector<16x192xf32>
    %2 = tpu.matmul %0, %1, %cst {dimension_numbers = #tpu.dot_dimension_numbers<[1], [0], [0], [1], [0, 0, 1, 1], [], []>} : vector<16x64xf32>, vector<64x192xf32>, vector<16x192xf32> -> vector<16x192xf32>
    %c0_3 = arith.constant 0 : index
    %c0_4 = arith.constant 0 : index
    %3 = vector.load %arg3[%c0_3, %c0_4] : memref<1x192xf32, #tpu.memory_space<vmem>>, vector<1x192xf32>
    %4 = vector.broadcast %3 : vector<1x192xf32> to vector<16x192xf32>
    %5 = arith.addf %2, %4 : vector<16x192xf32>
    %c0_5 = arith.constant 0 : index
    %c0_6 = arith.constant 0 : index
    %c0_7 = arith.constant 0 : index
    %6 = vector.load %arg15[%c0_5, %c0_6, %c0_7] : memref<1x16x16xf32, #tpu.memory_space<vmem>>, vector<1x16x16xf32>
    %7 = vector.extract_strided_slice %5 {offsets = [0, 0], sizes = [16, 16], strides = [1, 1]} : vector<16x192xf32> to vector<16x16xf32>
    %8 = vector.extract_strided_slice %5 {offsets = [0, 64], sizes = [16, 16], strides = [1, 1]} : vector<16x192xf32> to vector<16x16xf32>
    %9 = vector.extract_strided_slice %5 {offsets = [0, 128], sizes = [16, 16], strides = [1, 1]} : vector<16x192xf32> to vector<16x16xf32>
    %10 = vector.shape_cast %7 : vector<16x16xf32> to vector<1x16x16xf32>
    %11 = vector.shape_cast %8 : vector<16x16xf32> to vector<1x16x16xf32>
    %12 = vector.shape_cast %9 : vector<16x16xf32> to vector<1x16x16xf32>
    %13 = arith.mulf %10, %10 : vector<1x16x16xf32>
    %cst_8 = arith.constant dense<0.000000e+00> : vector<1x16xf32>
    %14 = vector.multi_reduction <add>, %13, %cst_8 [2] : vector<1x16x16xf32> to vector<1x16xf32>
    %15 = vector.shape_cast %14 : vector<1x16xf32> to vector<1x16x1xf32>
    %cst_9 = arith.constant 1.000000e-24 : f32
    %16 = vector.broadcast %cst_9 : f32 to vector<1x16x1xf32>
    %17 = arith.maximumf %15, %16 : vector<1x16x1xf32>
    %18 = math.rsqrt %17 : vector<1x16x1xf32>
    %19 = vector.broadcast %18 : vector<1x16x1xf32> to vector<1x16x16xf32>
    %20 = arith.mulf %10, %19 : vector<1x16x16xf32>
    %21 = arith.mulf %11, %11 : vector<1x16x16xf32>
    %cst_10 = arith.constant dense<0.000000e+00> : vector<1x16xf32>
    %22 = vector.multi_reduction <add>, %21, %cst_10 [2] : vector<1x16x16xf32> to vector<1x16xf32>
    %23 = vector.shape_cast %22 : vector<1x16xf32> to vector<1x16x1xf32>
    %cst_11 = arith.constant 1.000000e-24 : f32
    %24 = vector.broadcast %cst_11 : f32 to vector<1x16x1xf32>
    %25 = arith.maximumf %23, %24 : vector<1x16x1xf32>
    %26 = math.rsqrt %25 : vector<1x16x1xf32>
    %27 = vector.broadcast %26 : vector<1x16x1xf32> to vector<1x16x16xf32>
    %28 = arith.mulf %11, %27 : vector<1x16x16xf32>
    "tpu.trace_start"() <{level = 10 : i32, message = "bnd,bmd->bnm"}> : () -> ()
    %cst_12 = arith.constant dense<0.000000e+00> : vector<1x16x16xf32>
    %29 = tpu.matmul %20, %28, %cst_12 {dimension_numbers = #tpu.dot_dimension_numbers<[2], [2], [1], [1], [0, 0, 0, 1, 1, 1], [0], [0]>} : vector<1x16x16xf32>, vector<1x16x16xf32>, vector<1x16x16xf32> -> vector<1x16x16xf32>
    "tpu.trace_stop"() : () -> ()
    %c0_13 = arith.constant 0 : index
    %c0_14 = arith.constant 0 : index
    %c0_15 = arith.constant 0 : index
    %30 = vector.load %arg16[%c0_13, %c0_14, %c0_15] : memref<4x1x1xf32, #tpu.memory_space<vmem>>, vector<1x1x1xf32>
    %31 = vector.shape_cast %30 : vector<1x1x1xf32> to vector<1x1xf32>
    %32 = vector.shape_cast %31 : vector<1x1xf32> to vector<1x1x1xf32>
    %33 = vector.broadcast %32 : vector<1x1x1xf32> to vector<1x16x16xf32>
    %34 = arith.mulf %29, %33 : vector<1x16x16xf32>
    %c0_16 = arith.constant 0 : index
    %c0_17 = arith.constant 0 : index
    %c0_18 = arith.constant 0 : index
    %35 = vector.load %arg14[%c0_16, %c0_17, %c0_18] : memref<4x16x16xf32, #tpu.memory_space<vmem>>, vector<1x16x16xf32>
    %36 = vector.shape_cast %35 : vector<1x16x16xf32> to vector<16x16xf32>
    %37 = vector.shape_cast %36 : vector<16x16xf32> to vector<1x16x16xf32>
    %38 = arith.addf %34, %37 : vector<1x16x16xf32>
    %39 = arith.addf %38, %6 : vector<1x16x16xf32>
    %cst_19 = arith.constant dense<0xFF800000> : vector<1x16xf32>
    %40 = vector.multi_reduction <maximumf>, %39, %cst_19 [2] : vector<1x16x16xf32> to vector<1x16xf32>
    %41 = vector.shape_cast %40 : vector<1x16xf32> to vector<1x16x1xf32>
    %42 = vector.broadcast %41 : vector<1x16x1xf32> to vector<1x16x16xf32>
    %43 = arith.subf %39, %42 : vector<1x16x16xf32>
    %44 = math.exp %43 : vector<1x16x16xf32>
    %cst_20 = arith.constant dense<0.000000e+00> : vector<1x16xf32>
    %45 = vector.multi_reduction <add>, %44, %cst_20 [2] : vector<1x16x16xf32> to vector<1x16xf32>
    %46 = vector.shape_cast %45 : vector<1x16xf32> to vector<1x16x1xf32>
    %47 = tpu.reciprocal %46 {approx = true} : vector<1x16x1xf32> -> vector<1x16x1xf32>
    %48 = vector.broadcast %47 : vector<1x16x1xf32> to vector<1x16x16xf32>
    %49 = arith.mulf %44, %48 : vector<1x16x16xf32>
    "tpu.trace_start"() <{level = 10 : i32, message = "bnm,bmd->bnd"}> : () -> ()
    %cst_21 = arith.constant dense<0.000000e+00> : vector<1x16x16xf32>
    %50 = tpu.matmul %49, %12, %cst_21 {dimension_numbers = #tpu.dot_dimension_numbers<[2], [1], [1], [2], [0, 0, 0, 1, 1, 2], [0], [0]>} : vector<1x16x16xf32>, vector<1x16x16xf32>, vector<1x16x16xf32> -> vector<1x16x16xf32>
    "tpu.trace_stop"() : () -> ()
    %51 = vector.shape_cast %50 : vector<1x16x16xf32> to vector<16x16xf32>
    %52 = vector.extract_strided_slice %5 {offsets = [0, 16], sizes = [16, 16], strides = [1, 1]} : vector<16x192xf32> to vector<16x16xf32>
    %53 = vector.extract_strided_slice %5 {offsets = [0, 80], sizes = [16, 16], strides = [1, 1]} : vector<16x192xf32> to vector<16x16xf32>
    %54 = vector.extract_strided_slice %5 {offsets = [0, 144], sizes = [16, 16], strides = [1, 1]} : vector<16x192xf32> to vector<16x16xf32>
    %55 = vector.shape_cast %52 : vector<16x16xf32> to vector<1x16x16xf32>
    %56 = vector.shape_cast %53 : vector<16x16xf32> to vector<1x16x16xf32>
    %57 = vector.shape_cast %54 : vector<16x16xf32> to vector<1x16x16xf32>
    %58 = arith.mulf %55, %55 : vector<1x16x16xf32>
    %cst_22 = arith.constant dense<0.000000e+00> : vector<1x16xf32>
    %59 = vector.multi_reduction <add>, %58, %cst_22 [2] : vector<1x16x16xf32> to vector<1x16xf32>
    %60 = vector.shape_cast %59 : vector<1x16xf32> to vector<1x16x1xf32>
    %cst_23 = arith.constant 1.000000e-24 : f32
    %61 = vector.broadcast %cst_23 : f32 to vector<1x16x1xf32>
    %62 = arith.maximumf %60, %61 : vector<1x16x1xf32>
    %63 = math.rsqrt %62 : vector<1x16x1xf32>
    %64 = vector.broadcast %63 : vector<1x16x1xf32> to vector<1x16x16xf32>
    %65 = arith.mulf %55, %64 : vector<1x16x16xf32>
    %66 = arith.mulf %56, %56 : vector<1x16x16xf32>
    %cst_24 = arith.constant dense<0.000000e+00> : vector<1x16xf32>
    %67 = vector.multi_reduction <add>, %66, %cst_24 [2] : vector<1x16x16xf32> to vector<1x16xf32>
    %68 = vector.shape_cast %67 : vector<1x16xf32> to vector<1x16x1xf32>
    %cst_25 = arith.constant 1.000000e-24 : f32
    %69 = vector.broadcast %cst_25 : f32 to vector<1x16x1xf32>
    %70 = arith.maximumf %68, %69 : vector<1x16x1xf32>
    %71 = math.rsqrt %70 : vector<1x16x1xf32>
    %72 = vector.broadcast %71 : vector<1x16x1xf32> to vector<1x16x16xf32>
    %73 = arith.mulf %56, %72 : vector<1x16x16xf32>
    "tpu.trace_start"() <{level = 10 : i32, message = "bnd,bmd->bnm"}> : () -> ()
    %cst_26 = arith.constant dense<0.000000e+00> : vector<1x16x16xf32>
    %74 = tpu.matmul %65, %73, %cst_26 {dimension_numbers = #tpu.dot_dimension_numbers<[2], [2], [1], [1], [0, 0, 0, 1, 1, 1], [0], [0]>} : vector<1x16x16xf32>, vector<1x16x16xf32>, vector<1x16x16xf32> -> vector<1x16x16xf32>
    "tpu.trace_stop"() : () -> ()
    %c1 = arith.constant 1 : index
    %c0_27 = arith.constant 0 : index
    %c0_28 = arith.constant 0 : index
    %75 = vector.load %arg16[%c1, %c0_27, %c0_28] : memref<4x1x1xf32, #tpu.memory_space<vmem>>, vector<1x1x1xf32>
    %76 = vector.shape_cast %75 : vector<1x1x1xf32> to vector<1x1xf32>
    %77 = vector.shape_cast %76 : vector<1x1xf32> to vector<1x1x1xf32>
    %78 = vector.broadcast %77 : vector<1x1x1xf32> to vector<1x16x16xf32>
    %79 = arith.mulf %74, %78 : vector<1x16x16xf32>
    %c1_29 = arith.constant 1 : index
    %c0_30 = arith.constant 0 : index
    %c0_31 = arith.constant 0 : index
    %80 = vector.load %arg14[%c1_29, %c0_30, %c0_31] : memref<4x16x16xf32, #tpu.memory_space<vmem>>, vector<1x16x16xf32>
    %81 = vector.shape_cast %80 : vector<1x16x16xf32> to vector<16x16xf32>
    %82 = vector.shape_cast %81 : vector<16x16xf32> to vector<1x16x16xf32>
    %83 = arith.addf %79, %82 : vector<1x16x16xf32>
    %84 = arith.addf %83, %6 : vector<1x16x16xf32>
    %cst_32 = arith.constant dense<0xFF800000> : vector<1x16xf32>
    %85 = vector.multi_reduction <maximumf>, %84, %cst_32 [2] : vector<1x16x16xf32> to vector<1x16xf32>
    %86 = vector.shape_cast %85 : vector<1x16xf32> to vector<1x16x1xf32>
    %87 = vector.broadcast %86 : vector<1x16x1xf32> to vector<1x16x16xf32>
    %88 = arith.subf %84, %87 : vector<1x16x16xf32>
    %89 = math.exp %88 : vector<1x16x16xf32>
    %cst_33 = arith.constant dense<0.000000e+00> : vector<1x16xf32>
    %90 = vector.multi_reduction <add>, %89, %cst_33 [2] : vector<1x16x16xf32> to vector<1x16xf32>
    %91 = vector.shape_cast %90 : vector<1x16xf32> to vector<1x16x1xf32>
    %92 = tpu.reciprocal %91 {approx = true} : vector<1x16x1xf32> -> vector<1x16x1xf32>
    %93 = vector.broadcast %92 : vector<1x16x1xf32> to vector<1x16x16xf32>
    %94 = arith.mulf %89, %93 : vector<1x16x16xf32>
    "tpu.trace_start"() <{level = 10 : i32, message = "bnm,bmd->bnd"}> : () -> ()
    %cst_34 = arith.constant dense<0.000000e+00> : vector<1x16x16xf32>
    %95 = tpu.matmul %94, %57, %cst_34 {dimension_numbers = #tpu.dot_dimension_numbers<[2], [1], [1], [2], [0, 0, 0, 1, 1, 2], [0], [0]>} : vector<1x16x16xf32>, vector<1x16x16xf32>, vector<1x16x16xf32> -> vector<1x16x16xf32>
    "tpu.trace_stop"() : () -> ()
    %96 = vector.shape_cast %95 : vector<1x16x16xf32> to vector<16x16xf32>
    %97 = vector.extract_strided_slice %5 {offsets = [0, 32], sizes = [16, 16], strides = [1, 1]} : vector<16x192xf32> to vector<16x16xf32>
    %98 = vector.extract_strided_slice %5 {offsets = [0, 96], sizes = [16, 16], strides = [1, 1]} : vector<16x192xf32> to vector<16x16xf32>
    %99 = vector.extract_strided_slice %5 {offsets = [0, 160], sizes = [16, 16], strides = [1, 1]} : vector<16x192xf32> to vector<16x16xf32>
    %100 = vector.shape_cast %97 : vector<16x16xf32> to vector<1x16x16xf32>
    %101 = vector.shape_cast %98 : vector<16x16xf32> to vector<1x16x16xf32>
    %102 = vector.shape_cast %99 : vector<16x16xf32> to vector<1x16x16xf32>
    %103 = arith.mulf %100, %100 : vector<1x16x16xf32>
    %cst_35 = arith.constant dense<0.000000e+00> : vector<1x16xf32>
    %104 = vector.multi_reduction <add>, %103, %cst_35 [2] : vector<1x16x16xf32> to vector<1x16xf32>
    %105 = vector.shape_cast %104 : vector<1x16xf32> to vector<1x16x1xf32>
    %cst_36 = arith.constant 1.000000e-24 : f32
    %106 = vector.broadcast %cst_36 : f32 to vector<1x16x1xf32>
    %107 = arith.maximumf %105, %106 : vector<1x16x1xf32>
    %108 = math.rsqrt %107 : vector<1x16x1xf32>
    %109 = vector.broadcast %108 : vector<1x16x1xf32> to vector<1x16x16xf32>
    %110 = arith.mulf %100, %109 : vector<1x16x16xf32>
    %111 = arith.mulf %101, %101 : vector<1x16x16xf32>
    %cst_37 = arith.constant dense<0.000000e+00> : vector<1x16xf32>
    %112 = vector.multi_reduction <add>, %111, %cst_37 [2] : vector<1x16x16xf32> to vector<1x16xf32>
    %113 = vector.shape_cast %112 : vector<1x16xf32> to vector<1x16x1xf32>
    %cst_38 = arith.constant 1.000000e-24 : f32
    %114 = vector.broadcast %cst_38 : f32 to vector<1x16x1xf32>
    %115 = arith.maximumf %113, %114 : vector<1x16x1xf32>
    %116 = math.rsqrt %115 : vector<1x16x1xf32>
    %117 = vector.broadcast %116 : vector<1x16x1xf32> to vector<1x16x16xf32>
    %118 = arith.mulf %101, %117 : vector<1x16x16xf32>
    "tpu.trace_start"() <{level = 10 : i32, message = "bnd,bmd->bnm"}> : () -> ()
    %cst_39 = arith.constant dense<0.000000e+00> : vector<1x16x16xf32>
    %119 = tpu.matmul %110, %118, %cst_39 {dimension_numbers = #tpu.dot_dimension_numbers<[2], [2], [1], [1], [0, 0, 0, 1, 1, 1], [0], [0]>} : vector<1x16x16xf32>, vector<1x16x16xf32>, vector<1x16x16xf32> -> vector<1x16x16xf32>
    "tpu.trace_stop"() : () -> ()
    %c2 = arith.constant 2 : index
    %c0_40 = arith.constant 0 : index
    %c0_41 = arith.constant 0 : index
    %120 = vector.load %arg16[%c2, %c0_40, %c0_41] : memref<4x1x1xf32, #tpu.memory_space<vmem>>, vector<1x1x1xf32>
    %121 = vector.shape_cast %120 : vector<1x1x1xf32> to vector<1x1xf32>
    %122 = vector.shape_cast %121 : vector<1x1xf32> to vector<1x1x1xf32>
    %123 = vector.broadcast %122 : vector<1x1x1xf32> to vector<1x16x16xf32>
    %124 = arith.mulf %119, %123 : vector<1x16x16xf32>
    %c2_42 = arith.constant 2 : index
    %c0_43 = arith.constant 0 : index
    %c0_44 = arith.constant 0 : index
    %125 = vector.load %arg14[%c2_42, %c0_43, %c0_44] : memref<4x16x16xf32, #tpu.memory_space<vmem>>, vector<1x16x16xf32>
    %126 = vector.shape_cast %125 : vector<1x16x16xf32> to vector<16x16xf32>
    %127 = vector.shape_cast %126 : vector<16x16xf32> to vector<1x16x16xf32>
    %128 = arith.addf %124, %127 : vector<1x16x16xf32>
    %129 = arith.addf %128, %6 : vector<1x16x16xf32>
    %cst_45 = arith.constant dense<0xFF800000> : vector<1x16xf32>
    %130 = vector.multi_reduction <maximumf>, %129, %cst_45 [2] : vector<1x16x16xf32> to vector<1x16xf32>
    %131 = vector.shape_cast %130 : vector<1x16xf32> to vector<1x16x1xf32>
    %132 = vector.broadcast %131 : vector<1x16x1xf32> to vector<1x16x16xf32>
    %133 = arith.subf %129, %132 : vector<1x16x16xf32>
    %134 = math.exp %133 : vector<1x16x16xf32>
    %cst_46 = arith.constant dense<0.000000e+00> : vector<1x16xf32>
    %135 = vector.multi_reduction <add>, %134, %cst_46 [2] : vector<1x16x16xf32> to vector<1x16xf32>
    %136 = vector.shape_cast %135 : vector<1x16xf32> to vector<1x16x1xf32>
    %137 = tpu.reciprocal %136 {approx = true} : vector<1x16x1xf32> -> vector<1x16x1xf32>
    %138 = vector.broadcast %137 : vector<1x16x1xf32> to vector<1x16x16xf32>
    %139 = arith.mulf %134, %138 : vector<1x16x16xf32>
    "tpu.trace_start"() <{level = 10 : i32, message = "bnm,bmd->bnd"}> : () -> ()
    %cst_47 = arith.constant dense<0.000000e+00> : vector<1x16x16xf32>
    %140 = tpu.matmul %139, %102, %cst_47 {dimension_numbers = #tpu.dot_dimension_numbers<[2], [1], [1], [2], [0, 0, 0, 1, 1, 2], [0], [0]>} : vector<1x16x16xf32>, vector<1x16x16xf32>, vector<1x16x16xf32> -> vector<1x16x16xf32>
    "tpu.trace_stop"() : () -> ()
    %141 = vector.shape_cast %140 : vector<1x16x16xf32> to vector<16x16xf32>
    %142 = vector.extract_strided_slice %5 {offsets = [0, 48], sizes = [16, 16], strides = [1, 1]} : vector<16x192xf32> to vector<16x16xf32>
    %143 = vector.extract_strided_slice %5 {offsets = [0, 112], sizes = [16, 16], strides = [1, 1]} : vector<16x192xf32> to vector<16x16xf32>
    %144 = vector.extract_strided_slice %5 {offsets = [0, 176], sizes = [16, 16], strides = [1, 1]} : vector<16x192xf32> to vector<16x16xf32>
    %145 = vector.shape_cast %142 : vector<16x16xf32> to vector<1x16x16xf32>
    %146 = vector.shape_cast %143 : vector<16x16xf32> to vector<1x16x16xf32>
    %147 = vector.shape_cast %144 : vector<16x16xf32> to vector<1x16x16xf32>
    %148 = arith.mulf %145, %145 : vector<1x16x16xf32>
    %cst_48 = arith.constant dense<0.000000e+00> : vector<1x16xf32>
    %149 = vector.multi_reduction <add>, %148, %cst_48 [2] : vector<1x16x16xf32> to vector<1x16xf32>
    %150 = vector.shape_cast %149 : vector<1x16xf32> to vector<1x16x1xf32>
    %cst_49 = arith.constant 1.000000e-24 : f32
    %151 = vector.broadcast %cst_49 : f32 to vector<1x16x1xf32>
    %152 = arith.maximumf %150, %151 : vector<1x16x1xf32>
    %153 = math.rsqrt %152 : vector<1x16x1xf32>
    %154 = vector.broadcast %153 : vector<1x16x1xf32> to vector<1x16x16xf32>
    %155 = arith.mulf %145, %154 : vector<1x16x16xf32>
    %156 = arith.mulf %146, %146 : vector<1x16x16xf32>
    %cst_50 = arith.constant dense<0.000000e+00> : vector<1x16xf32>
    %157 = vector.multi_reduction <add>, %156, %cst_50 [2] : vector<1x16x16xf32> to vector<1x16xf32>
    %158 = vector.shape_cast %157 : vector<1x16xf32> to vector<1x16x1xf32>
    %cst_51 = arith.constant 1.000000e-24 : f32
    %159 = vector.broadcast %cst_51 : f32 to vector<1x16x1xf32>
    %160 = arith.maximumf %158, %159 : vector<1x16x1xf32>
    %161 = math.rsqrt %160 : vector<1x16x1xf32>
    %162 = vector.broadcast %161 : vector<1x16x1xf32> to vector<1x16x16xf32>
    %163 = arith.mulf %146, %162 : vector<1x16x16xf32>
    "tpu.trace_start"() <{level = 10 : i32, message = "bnd,bmd->bnm"}> : () -> ()
    %cst_52 = arith.constant dense<0.000000e+00> : vector<1x16x16xf32>
    %164 = tpu.matmul %155, %163, %cst_52 {dimension_numbers = #tpu.dot_dimension_numbers<[2], [2], [1], [1], [0, 0, 0, 1, 1, 1], [0], [0]>} : vector<1x16x16xf32>, vector<1x16x16xf32>, vector<1x16x16xf32> -> vector<1x16x16xf32>
    "tpu.trace_stop"() : () -> ()
    %c3 = arith.constant 3 : index
    %c0_53 = arith.constant 0 : index
    %c0_54 = arith.constant 0 : index
    %165 = vector.load %arg16[%c3, %c0_53, %c0_54] : memref<4x1x1xf32, #tpu.memory_space<vmem>>, vector<1x1x1xf32>
    %166 = vector.shape_cast %165 : vector<1x1x1xf32> to vector<1x1xf32>
    %167 = vector.shape_cast %166 : vector<1x1xf32> to vector<1x1x1xf32>
    %168 = vector.broadcast %167 : vector<1x1x1xf32> to vector<1x16x16xf32>
    %169 = arith.mulf %164, %168 : vector<1x16x16xf32>
    %c3_55 = arith.constant 3 : index
    %c0_56 = arith.constant 0 : index
    %c0_57 = arith.constant 0 : index
    %170 = vector.load %arg14[%c3_55, %c0_56, %c0_57] : memref<4x16x16xf32, #tpu.memory_space<vmem>>, vector<1x16x16xf32>
    %171 = vector.shape_cast %170 : vector<1x16x16xf32> to vector<16x16xf32>
    %172 = vector.shape_cast %171 : vector<16x16xf32> to vector<1x16x16xf32>
    %173 = arith.addf %169, %172 : vector<1x16x16xf32>
    %174 = arith.addf %173, %6 : vector<1x16x16xf32>
    %cst_58 = arith.constant dense<0xFF800000> : vector<1x16xf32>
    %175 = vector.multi_reduction <maximumf>, %174, %cst_58 [2] : vector<1x16x16xf32> to vector<1x16xf32>
    %176 = vector.shape_cast %175 : vector<1x16xf32> to vector<1x16x1xf32>
    %177 = vector.broadcast %176 : vector<1x16x1xf32> to vector<1x16x16xf32>
    %178 = arith.subf %174, %177 : vector<1x16x16xf32>
    %179 = math.exp %178 : vector<1x16x16xf32>
    %cst_59 = arith.constant dense<0.000000e+00> : vector<1x16xf32>
    %180 = vector.multi_reduction <add>, %179, %cst_59 [2] : vector<1x16x16xf32> to vector<1x16xf32>
    %181 = vector.shape_cast %180 : vector<1x16xf32> to vector<1x16x1xf32>
    %182 = tpu.reciprocal %181 {approx = true} : vector<1x16x1xf32> -> vector<1x16x1xf32>
    %183 = vector.broadcast %182 : vector<1x16x1xf32> to vector<1x16x16xf32>
    %184 = arith.mulf %179, %183 : vector<1x16x16xf32>
    "tpu.trace_start"() <{level = 10 : i32, message = "bnm,bmd->bnd"}> : () -> ()
    %cst_60 = arith.constant dense<0.000000e+00> : vector<1x16x16xf32>
    %185 = tpu.matmul %184, %147, %cst_60 {dimension_numbers = #tpu.dot_dimension_numbers<[2], [1], [1], [2], [0, 0, 0, 1, 1, 2], [0], [0]>} : vector<1x16x16xf32>, vector<1x16x16xf32>, vector<1x16x16xf32> -> vector<1x16x16xf32>
    "tpu.trace_stop"() : () -> ()
    %186 = vector.shape_cast %185 : vector<1x16x16xf32> to vector<16x16xf32>
    %187 = tpu.concatenate %51, %96, %141, %186 in 1 : vector<16x16xf32>, vector<16x16xf32>, vector<16x16xf32>, vector<16x16xf32> -> vector<16x64xf32>
    %c0_61 = arith.constant 0 : index
    %c0_62 = arith.constant 0 : index
    %188 = vector.load %arg4[%c0_61, %c0_62] : memref<64x64xf32, #tpu.memory_space<vmem>>, vector<64x64xf32>
    %cst_63 = arith.constant dense<0.000000e+00> : vector<16x64xf32>
    %189 = tpu.matmul %187, %188, %cst_63 {dimension_numbers = #tpu.dot_dimension_numbers<[1], [0], [0], [1], [0, 0, 1, 1], [], []>} : vector<16x64xf32>, vector<64x64xf32>, vector<16x64xf32> -> vector<16x64xf32>
    %c0_64 = arith.constant 0 : index
    %c0_65 = arith.constant 0 : index
    %190 = vector.load %arg5[%c0_64, %c0_65] : memref<1x64xf32, #tpu.memory_space<vmem>>, vector<1x64xf32>
    %191 = vector.broadcast %190 : vector<1x64xf32> to vector<16x64xf32>
    %192 = arith.addf %189, %191 : vector<16x64xf32>
    %c0_66 = arith.constant 0 : index
    %c0_67 = arith.constant 0 : index
    %193 = vector.load %arg6[%c0_66, %c0_67] : memref<1x64xf32, #tpu.memory_space<vmem>>, vector<1x64xf32>
    %c0_68 = arith.constant 0 : index
    %c0_69 = arith.constant 0 : index
    %194 = vector.load %arg7[%c0_68, %c0_69] : memref<1x64xf32, #tpu.memory_space<vmem>>, vector<1x64xf32>
    %cst_70 = arith.constant dense<0.000000e+00> : vector<16xf32>
    %195 = vector.multi_reduction <add>, %192, %cst_70 [1] : vector<16x64xf32> to vector<16xf32>
    %196 = vector.shape_cast %195 : vector<16xf32> to vector<16x1xf32>
    %cst_71 = arith.constant 6.400000e+01 : f32
    %197 = vector.broadcast %cst_71 : f32 to vector<16x1xf32>
    %198 = arith.divf %196, %197 : vector<16x1xf32>
    %199 = vector.broadcast %198 : vector<16x1xf32> to vector<16x64xf32>
    %200 = arith.subf %192, %199 : vector<16x64xf32>
    %201 = arith.mulf %200, %200 : vector<16x64xf32>
    %cst_72 = arith.constant dense<0.000000e+00> : vector<16xf32>
    %202 = vector.multi_reduction <add>, %201, %cst_72 [1] : vector<16x64xf32> to vector<16xf32>
    %203 = vector.shape_cast %202 : vector<16xf32> to vector<16x1xf32>
    %cst_73 = arith.constant 6.400000e+01 : f32
    %204 = vector.broadcast %cst_73 : f32 to vector<16x1xf32>
    %205 = arith.divf %203, %204 : vector<16x1xf32>
    %206 = vector.broadcast %198 : vector<16x1xf32> to vector<16x64xf32>
    %207 = arith.subf %192, %206 : vector<16x64xf32>
    %cst_74 = arith.constant 9.99999974E-6 : f32
    %208 = vector.broadcast %cst_74 : f32 to vector<16x1xf32>
    %209 = arith.addf %205, %208 : vector<16x1xf32>
    %210 = math.rsqrt %209 : vector<16x1xf32>
    %211 = vector.broadcast %210 : vector<16x1xf32> to vector<16x64xf32>
    %212 = arith.mulf %207, %211 : vector<16x64xf32>
    %213 = vector.broadcast %193 : vector<1x64xf32> to vector<16x64xf32>
    %214 = arith.mulf %212, %213 : vector<16x64xf32>
    %215 = vector.broadcast %194 : vector<1x64xf32> to vector<16x64xf32>
    %216 = arith.addf %214, %215 : vector<16x64xf32>
    %217 = arith.addf %0, %216 : vector<16x64xf32>
    %c0_75 = arith.constant 0 : index
    %c0_76 = arith.constant 0 : index
    %218 = vector.load %arg8[%c0_75, %c0_76] : memref<64x128xf32, #tpu.memory_space<vmem>>, vector<64x128xf32>
    %cst_77 = arith.constant dense<0.000000e+00> : vector<16x128xf32>
    %219 = tpu.matmul %217, %218, %cst_77 {dimension_numbers = #tpu.dot_dimension_numbers<[1], [0], [0], [1], [0, 0, 1, 1], [], []>} : vector<16x64xf32>, vector<64x128xf32>, vector<16x128xf32> -> vector<16x128xf32>
    %c0_78 = arith.constant 0 : index
    %c0_79 = arith.constant 0 : index
    %220 = vector.load %arg9[%c0_78, %c0_79] : memref<1x128xf32, #tpu.memory_space<vmem>>, vector<1x128xf32>
    %221 = vector.broadcast %220 : vector<1x128xf32> to vector<16x128xf32>
    %222 = arith.addf %219, %221 : vector<16x128xf32>
    %cst_80 = arith.constant 5.000000e-01 : f32
    %223 = vector.broadcast %cst_80 : f32 to vector<16x128xf32>
    %224 = arith.mulf %223, %222 : vector<16x128xf32>
    %cst_81 = arith.constant 0.707106769 : f32
    %225 = vector.broadcast %cst_81 : f32 to vector<16x128xf32>
    %226 = arith.mulf %222, %225 : vector<16x128xf32>
    %cst_82 = arith.constant 0.000000e+00 : f32
    %227 = vector.broadcast %cst_82 : f32 to vector<16x128xf32>
    %228 = arith.cmpf olt, %226, %227 : vector<16x128xf32>
    %cst_83 = arith.constant -1.000000e+00 : f32
    %cst_84 = arith.constant 1.000000e+00 : f32
    %229 = vector.broadcast %cst_83 : f32 to vector<16x128xf32>
    %230 = vector.broadcast %cst_84 : f32 to vector<16x128xf32>
    %231 = arith.select %228, %229, %230 : vector<16x128xi1>, vector<16x128xf32>
    %232 = math.absf %226 : vector<16x128xf32>
    %cst_85 = arith.constant 0.327591091 : f32
    %233 = vector.broadcast %cst_85 : f32 to vector<16x128xf32>
    %234 = arith.mulf %233, %232 : vector<16x128xf32>
    %cst_86 = arith.constant 1.000000e+00 : f32
    %235 = vector.broadcast %cst_86 : f32 to vector<16x128xf32>
    %236 = arith.addf %235, %234 : vector<16x128xf32>
    %cst_87 = arith.constant 1.000000e+00 : f32
    %237 = vector.broadcast %cst_87 : f32 to vector<16x128xf32>
    %238 = arith.divf %237, %236 : vector<16x128xf32>
    %cst_88 = arith.constant 1.06140542 : f32
    %239 = vector.broadcast %cst_88 : f32 to vector<16x128xf32>
    %240 = arith.mulf %239, %238 : vector<16x128xf32>
    %cst_89 = arith.constant -1.45315206 : f32
    %241 = vector.broadcast %cst_89 : f32 to vector<16x128xf32>
    %242 = arith.addf %240, %241 : vector<16x128xf32>
    %243 = arith.mulf %242, %238 : vector<16x128xf32>
    %cst_90 = arith.constant 1.42141378 : f32
    %244 = vector.broadcast %cst_90 : f32 to vector<16x128xf32>
    %245 = arith.addf %243, %244 : vector<16x128xf32>
    %246 = arith.mulf %245, %238 : vector<16x128xf32>
    %cst_91 = arith.constant -0.284496725 : f32
    %247 = vector.broadcast %cst_91 : f32 to vector<16x128xf32>
    %248 = arith.addf %246, %247 : vector<16x128xf32>
    %249 = arith.mulf %248, %238 : vector<16x128xf32>
    %cst_92 = arith.constant 0.254829586 : f32
    %250 = vector.broadcast %cst_92 : f32 to vector<16x128xf32>
    %251 = arith.addf %249, %250 : vector<16x128xf32>
    %252 = arith.mulf %251, %238 : vector<16x128xf32>
    %cst_93 = arith.constant 0.000000e+00 : f32
    %253 = vector.broadcast %cst_93 : f32 to vector<16x128xf32>
    %254 = arith.subf %253, %232 : vector<16x128xf32>
    %255 = arith.mulf %254, %232 : vector<16x128xf32>
    %256 = math.exp %255 : vector<16x128xf32>
    %257 = arith.mulf %252, %256 : vector<16x128xf32>
    %cst_94 = arith.constant 1.000000e+00 : f32
    %258 = vector.broadcast %cst_94 : f32 to vector<16x128xf32>
    %259 = arith.subf %258, %257 : vector<16x128xf32>
    %260 = arith.mulf %231, %259 : vector<16x128xf32>
    %cst_95 = arith.constant 1.000000e+00 : f32
    %261 = vector.broadcast %cst_95 : f32 to vector<16x128xf32>
    %262 = arith.addf %261, %260 : vector<16x128xf32>
    %263 = arith.mulf %224, %262 : vector<16x128xf32>
    %c0_96 = arith.constant 0 : index
    %c0_97 = arith.constant 0 : index
    %264 = vector.load %arg10[%c0_96, %c0_97] : memref<128x64xf32, #tpu.memory_space<vmem>>, vector<128x64xf32>
    %cst_98 = arith.constant dense<0.000000e+00> : vector<16x64xf32>
    %265 = tpu.matmul %263, %264, %cst_98 {dimension_numbers = #tpu.dot_dimension_numbers<[1], [0], [0], [1], [0, 0, 1, 1], [], []>} : vector<16x128xf32>, vector<128x64xf32>, vector<16x64xf32> -> vector<16x64xf32>
    %c0_99 = arith.constant 0 : index
    %c0_100 = arith.constant 0 : index
    %266 = vector.load %arg11[%c0_99, %c0_100] : memref<1x64xf32, #tpu.memory_space<vmem>>, vector<1x64xf32>
    %267 = vector.broadcast %266 : vector<1x64xf32> to vector<16x64xf32>
    %268 = arith.addf %265, %267 : vector<16x64xf32>
    %c0_101 = arith.constant 0 : index
    %c0_102 = arith.constant 0 : index
    %269 = vector.load %arg12[%c0_101, %c0_102] : memref<1x64xf32, #tpu.memory_space<vmem>>, vector<1x64xf32>
    %c0_103 = arith.constant 0 : index
    %c0_104 = arith.constant 0 : index
    %270 = vector.load %arg13[%c0_103, %c0_104] : memref<1x64xf32, #tpu.memory_space<vmem>>, vector<1x64xf32>
    %cst_105 = arith.constant dense<0.000000e+00> : vector<16xf32>
    %271 = vector.multi_reduction <add>, %268, %cst_105 [1] : vector<16x64xf32> to vector<16xf32>
    %272 = vector.shape_cast %271 : vector<16xf32> to vector<16x1xf32>
    %cst_106 = arith.constant 6.400000e+01 : f32
    %273 = vector.broadcast %cst_106 : f32 to vector<16x1xf32>
    %274 = arith.divf %272, %273 : vector<16x1xf32>
    %275 = vector.broadcast %274 : vector<16x1xf32> to vector<16x64xf32>
    %276 = arith.subf %268, %275 : vector<16x64xf32>
    %277 = arith.mulf %276, %276 : vector<16x64xf32>
    %cst_107 = arith.constant dense<0.000000e+00> : vector<16xf32>
    %278 = vector.multi_reduction <add>, %277, %cst_107 [1] : vector<16x64xf32> to vector<16xf32>
    %279 = vector.shape_cast %278 : vector<16xf32> to vector<16x1xf32>
    %cst_108 = arith.constant 6.400000e+01 : f32
    %280 = vector.broadcast %cst_108 : f32 to vector<16x1xf32>
    %281 = arith.divf %279, %280 : vector<16x1xf32>
    %282 = vector.broadcast %274 : vector<16x1xf32> to vector<16x64xf32>
    %283 = arith.subf %268, %282 : vector<16x64xf32>
    %cst_109 = arith.constant 9.99999974E-6 : f32
    %284 = vector.broadcast %cst_109 : f32 to vector<16x1xf32>
    %285 = arith.addf %281, %284 : vector<16x1xf32>
    %286 = math.rsqrt %285 : vector<16x1xf32>
    %287 = vector.broadcast %286 : vector<16x1xf32> to vector<16x64xf32>
    %288 = arith.mulf %283, %287 : vector<16x64xf32>
    %289 = vector.broadcast %269 : vector<1x64xf32> to vector<16x64xf32>
    %290 = arith.mulf %288, %289 : vector<16x64xf32>
    %291 = vector.broadcast %270 : vector<1x64xf32> to vector<16x64xf32>
    %292 = arith.addf %290, %291 : vector<16x64xf32>
    %293 = arith.addf %217, %292 : vector<16x64xf32>
    %c0_110 = arith.constant 0 : index
    %c0_111 = arith.constant 0 : index
    %294 = vector.load %arg17[%c0_110, %c0_111] : memref<16x64xf32, #tpu.memory_space<vmem>>, vector<16x64xf32>
    tpu.vector_store %arg17[%c0_110, %c0_111], %293 {strides = array<i32>} : memref<16x64xf32, #tpu.memory_space<vmem>>, vector<16x64xf32>,
    return
  }
  func.func @transform_0(%arg0: i32) -> (i32, i32) {
    %c0_i32 = arith.constant 0 : i32
    %c0_i32_0 = arith.constant 0 : i32
    %c0_i32_1 = arith.constant 0 : i32
    return %c0_i32, %c0_i32_0 : i32, i32
  }
  func.func @transform_1(%arg0: i32) -> (i32, i32) {
    %c0_i32 = arith.constant 0 : i32
    %c0_i32_0 = arith.constant 0 : i32
    %c0_i32_1 = arith.constant 0 : i32
    return %c0_i32, %c0_i32_0 : i32, i32
  }
  func.func @transform_2(%arg0: i32) -> (i32, i32) {
    %c0_i32 = arith.constant 0 : i32
    %c0_i32_0 = arith.constant 0 : i32
    %c0_i32_1 = arith.constant 0 : i32
    return %c0_i32, %c0_i32_0 : i32, i32
  }
  func.func @transform_3(%arg0: i32) -> (i32, i32) {
    %c0_i32 = arith.constant 0 : i32
    %c0_i32_0 = arith.constant 0 : i32
    %c0_i32_1 = arith.constant 0 : i32
    return %c0_i32, %c0_i32_0 : i32, i32
  }
  func.func @transform_4(%arg0: i32) -> (i32, i32) {
    %c0_i32 = arith.constant 0 : i32
    %c0_i32_0 = arith.constant 0 : i32
    %c0_i32_1 = arith.constant 0 : i32
    return %c0_i32, %c0_i32_0 : i32, i32
  }
  func.func @transform_5(%arg0: i32) -> (i32, i32) {
    %c0_i32 = arith.constant 0 : i32
    %c0_i32_0 = arith.constant 0 : i32
    %c0_i32_1 = arith.constant 0 : i32
    return %c0_i32, %c0_i32_0 : i32, i32
  }
  func.func @transform_6(%arg0: i32) -> (i32, i32) {
    %c0_i32 = arith.constant 0 : i32
    %c0_i32_0 = arith.constant 0 : i32
    %c0_i32_1 = arith.constant 0 : i32
    return %c0_i32, %c0_i32_0 : i32, i32
  }
  func.func @transform_7(%arg0: i32) -> (i32, i32) {
    %c0_i32 = arith.constant 0 : i32
    %c0_i32_0 = arith.constant 0 : i32
    %c0_i32_1 = arith.constant 0 : i32
    return %c0_i32, %c0_i32_0 : i32, i32
  }
  func.func @transform_8(%arg0: i32) -> (i32, i32) {
    %c0_i32 = arith.constant 0 : i32
    %c0_i32_0 = arith.constant 0 : i32
    %c0_i32_1 = arith.constant 0 : i32
    return %c0_i32, %c0_i32_0 : i32, i32
  }
  func.func @transform_9(%arg0: i32) -> (i32, i32) {
    %c0_i32 = arith.constant 0 : i32
    %c0_i32_0 = arith.constant 0 : i32
    %c0_i32_1 = arith.constant 0 : i32
    return %c0_i32, %c0_i32_0 : i32, i32
  }
  func.func @transform_10(%arg0: i32) -> (i32, i32) {
    %c0_i32 = arith.constant 0 : i32
    %c0_i32_0 = arith.constant 0 : i32
    %c0_i32_1 = arith.constant 0 : i32
    return %c0_i32, %c0_i32_0 : i32, i32
  }
  func.func @transform_11(%arg0: i32) -> (i32, i32) {
    %c0_i32 = arith.constant 0 : i32
    %c0_i32_0 = arith.constant 0 : i32
    %c0_i32_1 = arith.constant 0 : i32
    return %c0_i32, %c0_i32_0 : i32, i32
  }
  func.func @transform_12(%arg0: i32) -> (i32, i32) {
    %c0_i32 = arith.constant 0 : i32
    %c0_i32_0 = arith.constant 0 : i32
    %c0_i32_1 = arith.constant 0 : i32
    return %c0_i32, %c0_i32_0 : i32, i32
  }
  func.func @transform_13(%arg0: i32) -> (i32, i32, i32) {
    %c0_i32 = arith.constant 0 : i32
    %c0_i32_0 = arith.constant 0 : i32
    %c0_i32_1 = arith.constant 0 : i32
    %c0_i32_2 = arith.constant 0 : i32
    return %c0_i32, %c0_i32_0, %c0_i32_1 : i32, i32, i32
  }
  func.func @transform_14(%arg0: i32) -> (i32, i32, i32) {
    %c0_i32 = arith.constant 0 : i32
    %c0_i32_0 = arith.constant 0 : i32
    %c0_i32_1 = arith.constant 0 : i32
    %c0_i32_2 = arith.constant 0 : i32
    return %c0_i32, %c0_i32_0, %c0_i32_1 : i32, i32, i32
  }
  func.func @transform_15(%arg0: i32) -> (i32, i32, i32) {
    %c0_i32 = arith.constant 0 : i32
    %c0_i32_0 = arith.constant 0 : i32
    %c0_i32_1 = arith.constant 0 : i32
    %c0_i32_2 = arith.constant 0 : i32
    return %c0_i32, %c0_i32_0, %c0_i32_1 : i32, i32, i32
  }
  func.func @transform_16(%arg0: i32) -> (i32, i32) {
    %c0_i32 = arith.constant 0 : i32
    %c0_i32_0 = arith.constant 0 : i32
    %c0_i32_1 = arith.constant 0 : i32
    return %c0_i32, %c0_i32_0 : i32, i32
  }
}

module attributes {stable_mosaic.version = 11 : i64} {
  func.func @_ln_kernel(%arg0: i32, %arg1: memref<16x64xf32, #tpu.memory_space<vmem>>, %arg2: memref<1x64xf32, #tpu.memory_space<vmem>>, %arg3: memref<1x64xf32, #tpu.memory_space<vmem>>, %arg4: memref<16x64xf32, #tpu.memory_space<vmem>>) attributes {dimension_semantics = [#tpu.dimension_semantics<parallel>], iteration_bounds = array<i64: 1>, scalar_prefetch = 0 : i64, scratch_operands = 0 : i64, tpu.core_type = #tpu.core_type<tc>, window_params = [{transform_indices = @transform_0, window_bounds = array<i64: 16, 64>}, {pipeline_mode = #tpu.pipeline_mode<synchronous>, transform_indices = @transform_1, window_bounds = array<i64: 1, 64>}, {pipeline_mode = #tpu.pipeline_mode<synchronous>, transform_indices = @transform_2, window_bounds = array<i64: 1, 64>}, {transform_indices = @transform_3, window_bounds = array<i64: 16, 64>}]} {
    %c0 = arith.constant 0 : index
    %c0_0 = arith.constant 0 : index
    %0 = vector.load %arg1[%c0, %c0_0] : memref<16x64xf32, #tpu.memory_space<vmem>>, vector<16x64xf32>
    %c0_1 = arith.constant 0 : index
    %c0_2 = arith.constant 0 : index
    %1 = vector.load %arg2[%c0_1, %c0_2] : memref<1x64xf32, #tpu.memory_space<vmem>>, vector<1x64xf32>
    %c0_3 = arith.constant 0 : index
    %c0_4 = arith.constant 0 : index
    %2 = vector.load %arg3[%c0_3, %c0_4] : memref<1x64xf32, #tpu.memory_space<vmem>>, vector<1x64xf32>
    %cst = arith.constant dense<0.000000e+00> : vector<16xf32>
    %3 = vector.multi_reduction <add>, %0, %cst [1] : vector<16x64xf32> to vector<16xf32>
    %4 = vector.shape_cast %3 : vector<16xf32> to vector<16x1xf32>
    %cst_5 = arith.constant 6.400000e+01 : f32
    %5 = vector.broadcast %cst_5 : f32 to vector<16x1xf32>
    %6 = arith.divf %4, %5 : vector<16x1xf32>
    %7 = vector.broadcast %6 : vector<16x1xf32> to vector<16x64xf32>
    %8 = arith.subf %0, %7 : vector<16x64xf32>
    %9 = arith.mulf %8, %8 : vector<16x64xf32>
    %cst_6 = arith.constant dense<0.000000e+00> : vector<16xf32>
    %10 = vector.multi_reduction <add>, %9, %cst_6 [1] : vector<16x64xf32> to vector<16xf32>
    %11 = vector.shape_cast %10 : vector<16xf32> to vector<16x1xf32>
    %cst_7 = arith.constant 6.400000e+01 : f32
    %12 = vector.broadcast %cst_7 : f32 to vector<16x1xf32>
    %13 = arith.divf %11, %12 : vector<16x1xf32>
    %14 = vector.broadcast %6 : vector<16x1xf32> to vector<16x64xf32>
    %15 = arith.subf %0, %14 : vector<16x64xf32>
    %cst_8 = arith.constant 9.99999974E-6 : f32
    %16 = vector.broadcast %cst_8 : f32 to vector<16x1xf32>
    %17 = arith.addf %13, %16 : vector<16x1xf32>
    %18 = math.rsqrt %17 : vector<16x1xf32>
    %19 = vector.broadcast %18 : vector<16x1xf32> to vector<16x64xf32>
    %20 = arith.mulf %15, %19 : vector<16x64xf32>
    %21 = vector.broadcast %1 : vector<1x64xf32> to vector<16x64xf32>
    %22 = arith.mulf %20, %21 : vector<16x64xf32>
    %23 = vector.broadcast %2 : vector<1x64xf32> to vector<16x64xf32>
    %24 = arith.addf %22, %23 : vector<16x64xf32>
    %c0_9 = arith.constant 0 : index
    %c0_10 = arith.constant 0 : index
    %25 = vector.load %arg4[%c0_9, %c0_10] : memref<16x64xf32, #tpu.memory_space<vmem>>, vector<16x64xf32>
    tpu.vector_store %arg4[%c0_9, %c0_10], %24 {strides = array<i32>} : memref<16x64xf32, #tpu.memory_space<vmem>>, vector<16x64xf32>,
    return
  }
  func.func @transform_0(%arg0: i32) -> (i32, i32) {
    %c0_i32 = arith.constant 0 : i32
    %c0_i32_0 = arith.constant 0 : i32
    return %arg0, %c0_i32 : i32, i32
  }
  func.func @transform_1(%arg0: i32) -> (i32, i32) {
    %c0_i32 = arith.constant 0 : i32
    %c0_i32_0 = arith.constant 0 : i32
    %c0_i32_1 = arith.constant 0 : i32
    return %c0_i32, %c0_i32_0 : i32, i32
  }
  func.func @transform_2(%arg0: i32) -> (i32, i32) {
    %c0_i32 = arith.constant 0 : i32
    %c0_i32_0 = arith.constant 0 : i32
    %c0_i32_1 = arith.constant 0 : i32
    return %c0_i32, %c0_i32_0 : i32, i32
  }
  func.func @transform_3(%arg0: i32) -> (i32, i32) {
    %c0_i32 = arith.constant 0 : i32
    %c0_i32_0 = arith.constant 0 : i32
    return %arg0, %c0_i32 : i32, i32
  }
}

</mosaic_0001>

<bundles_post_ra>
// kernel: swinv2_forward.7
= control target key start
LH: loop header
LB: loop body
LE: loop exit
PB: predicated region body
PF: predicated region fallthrough
CT: control target
= control target key end

     0   :  { %vm41_vm0 = vcmask 392192   ;;  %vm173_vm1 = vcmask 261120   ;;  %s579_s1 = inlined_call_operand.vmem [shape: f32[48,32], index: 1, kind: input, shape index: {}]   ;;  %s580_s0 = inlined_call_operand.vmem [shape: f32[64,48], index: 0, kind: input, shape index: {}]   ;;  %s581_s2 = inlined_call_operand.vmem [shape: f32[1,32], index: 2, kind: input, shape index: {}]   ;;  %s582_s3 = inlined_call_operand.vmem [shape: f32[1,32], index: 3, kind: input, shape index: {}]   ;;  %s583_s4 = inlined_call_operand.vmem [shape: f32[1,32], index: 4, kind: input, shape index: {}]   ;;  %s584_s5 = inlined_call_operand.vmem [shape: f32[64,32], index: 5, kind: output, shape index: {}]  }
   0x1   :  { %v28_v0 = vld [vmem:[%s579_s1] sm:$0xff]  ;;  %v29_v1 = vld [vmem:[%s579_s1 + $0x8] sm:$0xff]  ;;  %v30_v2 = vld [vmem:[%s579_s1 + $0x10] sm:$0xff] }
   0x2   :  { %v368_v3 = vpack.c.bf16 %v29_v1, %v28_v0  ;;  %v31_v4 = vld [vmem:[%s579_s1 + $0x18] sm:$0xff]  ;;  %v32_v6 = vld [vmem:[%s579_s1 + $0x20] sm:$0xff]  ;;  %v33_v7 = vld [vmem:[%s579_s1 + $0x28] sm:$0xff] }
   0x3   :  { %v372_v5 = vpack.c.bf16 %v31_v4, %v30_v2  ;;  %v20_v8 = vld [vmem:[%s580_s0] sm:$0xff]  ;;  %v376_v10 = vpack.c.bf16 %v33_v7, %v32_v6  ;;  %v21_v11 = vld [vmem:[%s580_s0 + $0x8] sm:$0xff]  ;;  %v22_v13 = vld [vmem:[%s580_s0 + $0x10] sm:$0xff] }
   0x4   :  { %369 = vmatprep.subr.bf16.mxu0 %v368_v3  ;;  %380 = vmatprep.subr.bf16.mxu1 %v368_v3  ;;  %v24_v9 = vld [vmem:[%s580_s0 + $0x20] sm:$0xff]  ;;  %v25_v12 = vld [vmem:[%s580_s0 + $0x28] sm:$0xff]  ;;  %v26_v14 = vld [vmem:[%s580_s0 + $0x30] sm:$0xff] }
   0x5   :  { %371 = vmatpush3.bf16.msra.mxu0 %v368_v3  ;;  %383 = vmatpush3.bf16.msra.mxu1 %v368_v3  ;;  %v23_v15 = vld [vmem:[%s580_s0 + $0x18] sm:$0xff]  ;;  %v319_v17 = vld [vmem:[%s581_s2] ss:$0 sm:$0xff] }
   0x6   :  { %373 = vmatprep.subr.bf16.mxu0 %v372_v5  ;;  %381 = vmatprep.subr.bf16.mxu1 %v372_v5  ;;  %v27_v16 = vld [vmem:[%s580_s0 + $0x38] sm:$0xff] }
   0x7   :  { %356 = vmatprep.mubr.msk.f32.mxu0 %vm41_vm0, %v20_v8  ;;  %362 = vmatprep.mubr.msk.f32.mxu1 %vm41_vm0, %v24_v9 }
   0x9   :  { %375 = vmatpush3.bf16.msra.mxu0 %v372_v5  ;;  %384 = vmatpush3.bf16.msra.mxu1 %v372_v5 }
   0xa   :  { %377 = vmatprep.subr.bf16.mxu0 %v376_v10  ;;  %382 = vmatprep.subr.bf16.mxu1 %v376_v10 }
   0xd   :  { %379 = vmatpush3.bf16.msra.mxu0 %v376_v10  ;;  %385 = vmatpush3.bf16.msra.mxu1 %v376_v10 }
  0x10   :  { %357 = vmatmul.mubr.msk.f32.vlgmr.msra.gmra.mrb[0].mxu0 %vm41_vm0, %v21_v11  ;;  %363 = vmatmul.mubr.msk.f32.vlgmr.msra.gmra.mrb[0].mxu1 %vm41_vm0, %v25_v12 }
  0x11   :  { %359 = vmatprep.mubr.msk.f32.mxu0 %vm41_vm0, %v22_v13  ;;  %365 = vmatprep.mubr.msk.f32.mxu1 %vm41_vm0, %v26_v14 }
  0x14   :  { %360 = vmatmul.mubr.msk.f32.gmra.mrb[2].mxu0 %vm41_vm0, %v23_v15  ;;  %366 = vmatmul.mubr.msk.f32.gmra.mrb[2].mxu1 %vm41_vm0, %v27_v16 }
  0xe3   :  { %v358_v18 = vpop.f32.mrb[0].mxu0  ;;  %v364_v19 = vpop.f32.mrb[0].mxu1 }
  0xe4   :  { %v138_v20 = vadd.f32 %v358_v18, %v319_v17  ;;  %v158_v21 = vadd.f32 %v364_v19, %v319_v17  ;;  %v132_v22 = vpop.f32.mrb[1].mxu0  ;;  %v152_v23 = vpop.f32.mrb[1].mxu1 }
  0xe5   :  { %v133_v24 = vadd.f32 %v319_v17, %v132_v22  ;;  %v153_v33 = vadd.f32 %v319_v17, %v152_v23 }
  0xe6   :  { %v189_v25 = vsel %vm173_vm1, %v158_v21, 0.0  ;;  %v177_v26 = vsel %vm173_vm1, %v138_v20, 0.0 }
  0xe7   :  { %190 = vadd.xlane.f32.xlu1 %v189_v25  ;;  %178 = vadd.xlane.f32.xlu0 %v177_v26  ;;  %v361_v27 = vpop.f32.mrb[2].mxu0  ;;  %v367_v28 = vpop.f32.mrb[2].mxu1  ;;  %v174_v35 = vsel %vm173_vm1, %v133_v24, 0.0  ;;  %v186_v39 = vsel %vm173_vm1, %v153_v33, 0.0 }
  0xe8   :  { %v148_v29 = vadd.f32 %v361_v27, %v319_v17  ;;  %v142_v30 = vpop.f32.mrb[3].mxu0  ;;  %v162_v31 = vpop.f32.mrb[3].mxu1  ;;  %v168_v36 = vadd.f32 %v367_v28, %v319_v17 }
  0xe9   :  { %v143_v32 = vadd.f32 %v319_v17, %v142_v30  ;;  %v163_v37 = vadd.f32 %v319_v17, %v162_v31 }
  0xea   :  { %v183_v34 = vsel %vm173_vm1, %v148_v29, 0.0  ;;  %v195_v40 = vsel %vm173_vm1, %v168_v36, 0.0 }
  0xeb   :  { %184 = vadd.xlane.f32.xlu1 %v183_v34  ;;  %175 = vadd.xlane.f32.xlu0 %v174_v35  ;;  %v180_v38 = vsel %vm173_vm1, %v143_v32, 0.0  ;;  %v192_v41 = vsel %vm173_vm1, %v163_v37, 0.0 }
  0xef   :  { %181 = vadd.xlane.f32.xlu1 %v180_v38  ;;  %187 = vadd.xlane.f32.xlu0 %v186_v39  ;;  %v328_v38 = vld [vmem:[%s582_s3] ss:$0 sm:$0xff] }
  0xf3   :  { %196 = vadd.xlane.f32.xlu1 %v195_v40  ;;  %193 = vadd.xlane.f32.xlu0 %v192_v41 }
 0x174   :  { %v191_v42 = vpop.xlane.xlu1 %190  ;;  %v179_v43 = vpop.xlane.xlu0 %178 }
 0x175   :  { %v204_v44 = vmul.f32 0.03125, %v191_v42  ;;  %v200_v45 = vmul.f32 0.03125, %v179_v43  ;;  %v329_v43 = vld [vmem:[%s583_s4] ss:$0 sm:$0xff] }
 0x177   :  { %v493_v46 = vsub.f32 %v158_v21, %v204_v44  ;;  %v495_v47 = vsub.f32 %v138_v20, %v200_v45 }
 0x178   :  { %v185_v48 = vpop.xlane.xlu1 %184  ;;  %v176_v49 = vpop.xlane.xlu0 %175 }
 0x179   :  { %v202_v50 = vmul.f32 0.03125, %v185_v48  ;;  %v199_v51 = vmul.f32 0.03125, %v176_v49  ;;  %v216_v52 = vmul.f32 %v495_v47, %v495_v47  ;;  %v220_v56 = vmul.f32 %v493_v46, %v493_v46 }
 0x17b   :  { %v499_v53 = vsub.f32 %v148_v29, %v202_v50  ;;  %v501_v54 = vsub.f32 %v133_v24, %v199_v51  ;;  %v226_v55 = vsel %vm173_vm1, %v216_v52, 0.0  ;;  %v238_v1 = vsel %vm173_vm1, %v220_v56, 0.0 }
 0x17c   :  { %227 = vadd.xlane.f32.xlu1 %v226_v55  ;;  %v182_v57 = vpop.xlane.xlu1 %181  ;;  %v188_v58 = vpop.xlane.xlu0 %187 }
 0x17d   :  { %v201_v59 = vmul.f32 0.03125, %v182_v57  ;;  %v203_v60 = vmul.f32 0.03125, %v188_v58  ;;  %v215_v61 = vmul.f32 %v501_v54, %v501_v54  ;;  %v218_v62 = vmul.f32 %v499_v53, %v499_v53 }
 0x17f   :  { %v510_v63 = vsub.f32 %v143_v32, %v201_v59  ;;  %v512_v0 = vsub.f32 %v153_v33, %v203_v60  ;;  %v223_v2 = vsel %vm173_vm1, %v215_v61, 0.0  ;;  %v232_v8 = vsel %vm173_vm1, %v218_v62, 0.0 }
 0x180   :  { %239 = vadd.xlane.f32.xlu1 %v238_v1  ;;  %v197_v3 = vpop.xlane.xlu1 %196  ;;  %224 = vadd.xlane.f32.xlu0 %v223_v2  ;;  %v194_v4 = vpop.xlane.xlu0 %193 }
 0x181   :  { %v206_v5 = vmul.f32 0.03125, %v197_v3  ;;  %v205_v6 = vmul.f32 0.03125, %v194_v4  ;;  %v219_v7 = vmul.f32 %v512_v0, %v512_v0  ;;  %v217_v12 = vmul.f32 %v510_v63, %v510_v63 }
 0x183   :  { %v519_v9 = vsub.f32 %v168_v36, %v206_v5  ;;  %v521_v10 = vsub.f32 %v163_v37, %v205_v6  ;;  %v235_v11 = vsel %vm173_vm1, %v219_v7, 0.0  ;;  %v229_v15 = vsel %vm173_vm1, %v217_v12, 0.0 }
 0x184   :  { %233 = vadd.xlane.f32.xlu1 %v232_v8  ;;  %236 = vadd.xlane.f32.xlu0 %v235_v11 }
 0x185   :  { %v222_v13 = vmul.f32 %v519_v9, %v519_v9  ;;  %v221_v16 = vmul.f32 %v521_v10, %v521_v10 }
 0x187   :  { %v244_v14 = vsel %vm173_vm1, %v222_v13, 0.0  ;;  %v241_v17 = vsel %vm173_vm1, %v221_v16, 0.0 }
 0x188   :  { %245 = vadd.xlane.f32.xlu1 %v244_v14  ;;  %230 = vadd.xlane.f32.xlu0 %v229_v15 }
 0x18c   :  { %242 = vadd.xlane.f32.xlu0 %v241_v17 }
 0x209   :  { %v228_v18 = vpop.xlane.xlu1 %227 }
 0x20a   :  { %v248_v19 = vmul.f32 0.03125, %v228_v18 }
 0x20c   :  { %v256_v20 = vadd.f32 1e-05, %v248_v19 }
 0x20d   :  { %v240_v21 = vpop.xlane.xlu1 %239  ;;  %v225_v22 = vpop.xlane.xlu0 %224 }
 0x20e   :  { %386 = vrsqrt.f32 %v256_v20  ;;  %v252_v23 = vmul.f32 0.03125, %v240_v21  ;;  %v247_v24 = vmul.f32 0.03125, %v225_v22 }
 0x210   :  { %v260_v25 = vadd.f32 1e-05, %v252_v23  ;;  %v255_v26 = vadd.f32 1e-05, %v247_v24 }
 0x211   :  { %v234_v27 = vpop.xlane.xlu1 %233  ;;  %v237_v28 = vpop.xlane.xlu0 %236 }
 0x212   :  { %388 = vrsqrt.f32 %v260_v25  ;;  %v250_v29 = vmul.f32 0.03125, %v234_v27  ;;  %v251_v30 = vmul.f32 0.03125, %v237_v28 }
 0x213   :  { %390 = vrsqrt.f32 %v255_v26 }
 0x214   :  { %v258_v31 = vadd.f32 1e-05, %v250_v29  ;;  %v259_v32 = vadd.f32 1e-05, %v251_v30 }
 0x215   :  { %v246_v33 = vpop.xlane.xlu1 %245  ;;  %v231_v34 = vpop.xlane.xlu0 %230 }
 0x216   :  { %392 = vrsqrt.f32 %v258_v31  ;;  %v254_v35 = vmul.f32 0.03125, %v246_v33  ;;  %v249_v36 = vmul.f32 0.03125, %v231_v34 }
 0x217   :  { %394 = vrsqrt.f32 %v259_v32 }
 0x218   :  { %v387_v37 = vpop.eup %386  ;;  %v262_v39 = vadd.f32 1e-05, %v254_v35  ;;  %v257_v40 = vadd.f32 1e-05, %v249_v36 }
 0x219   :  { %v272_v41 = vmul.f32 %v387_v37, %v495_v47  ;;  %v243_v42 = vpop.xlane.xlu0 %242 }
 0x21a   :  { %396 = vrsqrt.f32 %v262_v39  ;;  %v253_v44 = vmul.f32 0.03125, %v243_v42 }
 0x21b   :  { %v286_v45 = vmul.f32 %v328_v38, %v272_v41  ;;  %398 = vrsqrt.f32 %v257_v40 }
 0x21c   :  { %v389_v48 = vpop.eup %388  ;;  %v261_v49 = vadd.f32 1e-05, %v253_v44 }
 0x21d   :  { %v391_v50 = vpop.eup %390  ;;  %v300_v51 = vadd.f32 %v329_v43, %v286_v45  ;;  %v276_v52 = vmul.f32 %v389_v48, %v493_v46 }
 0x21e   :  { %v271_v55 = vmul.f32 %v391_v50, %v501_v54  ;;  %400 = vrsqrt.f32 %v261_v49 }
 0x21f   :  { %308 = vst.msk [vmem:[%s584_s5 + $0x8] sm:$0xff] %vm173_vm1, %v300_v51  ;;  %v290_v47 = vmul.f32 %v328_v38, %v276_v52 }
 0x220   :  { %v393_v56 = vpop.eup %392  ;;  %v285_v57 = vmul.f32 %v328_v38, %v271_v55 }
 0x221   :  { %v395_v58 = vpop.eup %394  ;;  %v304_v59 = vadd.f32 %v329_v43, %v290_v47  ;;  %v274_v60 = vmul.f32 %v393_v56, %v499_v53 }
 0x222   :  { %v299_v61 = vadd.f32 %v329_v43, %v285_v57  ;;  %v275_v62 = vmul.f32 %v395_v58, %v512_v0 }
 0x223   :  { %312 = vst.msk [vmem:[%s584_s5 + $0x28] sm:$0xff] %vm173_vm1, %v304_v59  ;;  %v288_v46 = vmul.f32 %v328_v38, %v274_v60 }
 0x224   :  { %v397_v54 = vpop.eup %396  ;;  %307 = vst.msk [vmem:[%s584_s5] sm:$0xff] %vm173_vm1, %v299_v61  ;;  %v289_v1 = vmul.f32 %v328_v38, %v275_v62 }
 0x225   :  { %v399_v2 = vpop.eup %398  ;;  %v302_v3 = vadd.f32 %v329_v43, %v288_v46  ;;  %v278_v53 = vmul.f32 %v397_v54, %v519_v9 }
 0x226   :  { %v303_v4 = vadd.f32 %v329_v43, %v289_v1  ;;  %v273_v0 = vmul.f32 %v399_v2, %v510_v63 }
 0x227   :  { %310 = vst.msk [vmem:[%s584_s5 + $0x18] sm:$0xff] %vm173_vm1, %v302_v3  ;;  %v292_v5 = vmul.f32 %v328_v38, %v278_v53 }
 0x228   :  { %v401_v6 = vpop.eup %400  ;;  %311 = vst.msk [vmem:[%s584_s5 + $0x20] sm:$0xff] %vm173_vm1, %v303_v4  ;;  %v287_v7 = vmul.f32 %v328_v38, %v273_v0 }
 0x229   :  { %v306_v8 = vadd.f32 %v329_v43, %v292_v5  ;;  %v277_v11 = vmul.f32 %v401_v6, %v521_v10 }
 0x22a   :  { %v301_v9 = vadd.f32 %v329_v43, %v287_v7 }
 0x22b   :  { %314 = vst.msk [vmem:[%s584_s5 + $0x38] sm:$0xff] %vm173_vm1, %v306_v8  ;;  %v291_v63 = vmul.f32 %v328_v38, %v277_v11 }
 0x22c   :  { %309 = vst.msk [vmem:[%s584_s5 + $0x10] sm:$0xff] %vm173_vm1, %v301_v9 }
 0x22d   :  { %v305_v12 = vadd.f32 %v329_v43, %v291_v63 }
 0x22f   :  { %313 = vst.msk [vmem:[%s584_s5 + $0x30] sm:$0xff] %vm173_vm1, %v305_v12 }

// kernel: swinv2_forward.10
= control target key start
LH: loop header
LB: loop body
LE: loop exit
PB: predicated region body
PF: predicated region fallthrough
CT: control target
= control target key end

     0   :  { %vm122_vm0 = vcmask 523264   ;;  %s369_s1 = inlined_call_operand.vmem [shape: f32[128,64], index: 1, kind: input, shape index: {}]   ;;  %s370_s0 = inlined_call_operand.vmem [shape: f32[16,128], index: 0, kind: input, shape index: {}]   ;;  %s371_s2 = inlined_call_operand.vmem [shape: f32[1,64], index: 2, kind: input, shape index: {}]   ;;  %s372_s3 = inlined_call_operand.vmem [shape: f32[1,64], index: 3, kind: input, shape index: {}]   ;;  %s373_s4 = inlined_call_operand.vmem [shape: f32[1,64], index: 4, kind: input, shape index: {}]   ;;  %s374_s5 = inlined_call_operand.vmem [shape: f32[16,64], index: 5, kind: output, shape index: {}]  }
   0x1   :  { %v22_v0 = vld [vmem:[%s369_s1] sm:$0xff]  ;;  %v23_v1 = vld [vmem:[%s369_s1 + $0x8] sm:$0xff]  ;;  %v24_v2 = vld [vmem:[%s369_s1 + $0x10] sm:$0xff] }
   0x2   :  { %v228_v3 = vpack.c.bf16 %v23_v1, %v22_v0  ;;  %v25_v4 = vld [vmem:[%s369_s1 + $0x18] sm:$0xff]  ;;  %v26_v6 = vld [vmem:[%s369_s1 + $0x20] sm:$0xff]  ;;  %v27_v7 = vld [vmem:[%s369_s1 + $0x28] sm:$0xff] }
   0x3   :  { %v232_v5 = vpack.c.bf16 %v25_v4, %v24_v2  ;;  %v236_v8 = vpack.c.bf16 %v27_v7, %v26_v6  ;;  %v20_v9 = vld [vmem:[%s370_s0] sm:$0xff]  ;;  %v28_v10 = vld [vmem:[%s369_s1 + $0x30] sm:$0xff]  ;;  %v29_v11 = vld [vmem:[%s369_s1 + $0x38] sm:$0xff] }
   0x4   :  { %229 = vmatprep.subr.bf16.mxu0 %v228_v3  ;;  %225 = vmatprep.mubr.f32.mxu0 %v20_v9  ;;  %v240_v12 = vpack.c.bf16 %v29_v11, %v28_v10  ;;  %v30_v13 = vld [vmem:[%s369_s1 + $0x40] sm:$0xff]  ;;  %v31_v14 = vld [vmem:[%s369_s1 + $0x48] sm:$0xff]  ;;  %v32_v16 = vld [vmem:[%s369_s1 + $0x50] sm:$0xff] }
   0x5   :  { %231 = vmatpush3.bf16.msra.mxu0 %v228_v3  ;;  %v244_v15 = vpack.c.bf16 %v31_v14, %v30_v13  ;;  %v33_v17 = vld [vmem:[%s369_s1 + $0x58] sm:$0xff]  ;;  %v34_v19 = vld [vmem:[%s369_s1 + $0x60] sm:$0xff]  ;;  %v35_v20 = vld [vmem:[%s369_s1 + $0x68] sm:$0xff] }
   0x6   :  { %233 = vmatprep.subr.bf16.mxu0 %v232_v5  ;;  %v248_v18 = vpack.c.bf16 %v33_v17, %v32_v16  ;;  %v252_v21 = vpack.c.bf16 %v35_v20, %v34_v19  ;;  %v36_v22 = vld [vmem:[%s369_s1 + $0x70] sm:$0xff]  ;;  %v37_v23 = vld [vmem:[%s369_s1 + $0x78] sm:$0xff]  ;;  %v21_v25 = vld [vmem:[%s370_s0 + $0x8] sm:$0xff] }
   0x7   :  { %v256_v24 = vpack.c.bf16 %v37_v23, %v36_v22  ;;  %v172_v26 = vld [vmem:[%s371_s2] ss:$0 sm:$0xff] }
   0x8   :  { %v173_v50 = vld [vmem:[%s372_s3] ss:$0 sm:$0xff] }
   0x9   :  { %235 = vmatpush3.bf16.msra.mxu0 %v232_v5  ;;  %v174_v52 = vld [vmem:[%s373_s4] ss:$0 sm:$0xff] }
   0xa   :  { %237 = vmatprep.subr.bf16.mxu0 %v236_v8 }
   0xd   :  { %239 = vmatpush3.bf16.msra.mxu0 %v236_v8 }
   0xe   :  { %241 = vmatprep.subr.bf16.mxu0 %v240_v12 }
  0x11   :  { %243 = vmatpush3.bf16.msra.mxu0 %v240_v12 }
  0x12   :  { %245 = vmatprep.subr.bf16.mxu0 %v244_v15 }
  0x15   :  { %247 = vmatpush3.bf16.msra.mxu0 %v244_v15 }
  0x16   :  { %249 = vmatprep.subr.bf16.mxu0 %v248_v18 }
  0x19   :  { %251 = vmatpush3.bf16.msra.mxu0 %v248_v18 }
  0x1a   :  { %253 = vmatprep.subr.bf16.mxu0 %v252_v21 }
  0x1d   :  { %255 = vmatpush3.bf16.msra.mxu0 %v252_v21 }
  0x1e   :  { %257 = vmatprep.subr.bf16.mxu0 %v256_v24 }
  0x21   :  { %259 = vmatpush3.bf16.msra.mxu0 %v256_v24 }
  0x24   :  { %226 = vmatmul.mubr.f32.vlgmr.msra.gmra.mrb[0].mxu0 %v21_v25 }
  0xf7   :  { %v227_v27 = vpop.f32.mrb[0].mxu0 }
  0xf8   :  { %v111_v28 = vpop.f32.mrb[1].mxu0  ;;  %v117_v30 = vadd.f32 %v227_v27, %v172_v26 }
  0xf9   :  { %v112_v29 = vadd.f32 %v172_v26, %v111_v28 }
  0xfa   :  { %v126_v32 = vsel %vm122_vm0, %v117_v30, 0.0 }
  0xfb   :  { %v123_v31 = vsel %vm122_vm0, %v112_v29, 0.0 }
  0xfc   :  { %124 = vadd.xlane.f32.xlu0 %v123_v31 }
 0x100   :  { %127 = vadd.xlane.f32.xlu0 %v126_v32 }
 0x189   :  { %v125_v33 = vpop.xlane.xlu0 %124 }
 0x18a   :  { %v130_v34 = vmul.f32 0.015625, %v125_v33 }
 0x18c   :  { %v132_v35 = vsub.f32 %v112_v29, %v130_v34 }
 0x18d   :  { %v128_v36 = vpop.xlane.xlu0 %127 }
 0x18e   :  { %v131_v37 = vmul.f32 0.015625, %v128_v36  ;;  %v134_v38 = vmul.f32 %v132_v35, %v132_v35 }
 0x190   :  { %v133_v39 = vsub.f32 %v117_v30, %v131_v37  ;;  %v136_v40 = vsel %vm122_vm0, %v134_v38, 0.0 }
 0x191   :  { %137 = vadd.xlane.f32.xlu1 %v136_v40 }
 0x192   :  { %v135_v41 = vmul.f32 %v133_v39, %v133_v39 }
 0x194   :  { %v139_v42 = vsel %vm122_vm0, %v135_v41, 0.0 }
 0x195   :  { %140 = vadd.xlane.f32.xlu1 %v139_v42 }
 0x21e   :  { %v138_v43 = vpop.xlane.xlu1 %137 }
 0x21f   :  { %v142_v44 = vmul.f32 0.015625, %v138_v43 }
 0x221   :  { %v144_v45 = vadd.f32 1e-05, %v142_v44 }
 0x222   :  { %v141_v46 = vpop.xlane.xlu1 %140 }
 0x223   :  { %260 = vrsqrt.f32 %v144_v45  ;;  %v143_v47 = vmul.f32 0.015625, %v141_v46 }
 0x225   :  { %v145_v48 = vadd.f32 1e-05, %v143_v47 }
 0x227   :  { %262 = vrsqrt.f32 %v145_v48 }
 0x22d   :  { %v261_v49 = vpop.eup %260 }
 0x22e   :  { %v148_v51 = vmul.f32 %v261_v49, %v132_v35 }
 0x230   :  { %v156_v53 = vmul.f32 %v173_v50, %v148_v51 }
 0x231   :  { %v263_v54 = vpop.eup %262 }
 0x232   :  { %v164_v55 = vadd.f32 %v174_v52, %v156_v53  ;;  %v149_v56 = vmul.f32 %v263_v54, %v133_v39 }
 0x234   :  { %166 = vst.msk [vmem:[%s374_s5] sm:$0xff] %vm122_vm0, %v164_v55  ;;  %v157_v57 = vmul.f32 %v173_v50, %v149_v56 }
 0x236   :  { %v165_v58 = vadd.f32 %v174_v52, %v157_v57 }
 0x238   :  { %167 = vst.msk [vmem:[%s374_s5 + $0x8] sm:$0xff] %vm122_vm0, %v165_v58 }

// kernel: swinv2_forward.8
= control target key start
LH: loop header
LB: loop body
LE: loop exit
PB: predicated region body
PF: predicated region fallthrough
CT: control target
= control target key end

     0   :  { %vm72_vm0 = vcmask 261120   ;;  %s3983_s18 = smov 96   ;;  %vm212_vm1 = vcmask 130048   ;;  %v3984_v63 = vmov 0   ;;  %s3985_s20 = smov 80   ;;  %vm2877_vm5 = vcmask 523264   ;;  %s5057_s1 = inlined_call_operand.vmem [shape: f32[32,96], index: 1, kind: input, shape index: {}]   ;;  %s5058_s0 = inlined_call_operand.vmem [shape: f32[64,32], index: 0, kind: input, shape index: {}]   ;;  %s5059_s2 = inlined_call_operand.vmem [shape: f32[1,96], index: 2, kind: input, shape index: {}]   ;;  %s5060_s15 = inlined_call_operand.vmem [shape: f32[2,1,1], index: 15, kind: input, shape index: {}]   ;;  %s5061_s13 = inlined_call_operand.vmem [shape: f32[2,16,16], index: 13, kind: input, shape index: {}]   ;;  %s5062_s14 = inlined_call_operand.vmem [shape: f32[1,16,16], index: 14, kind: input, shape index: {}]   ;;  %s5063_s3 = inlined_call_operand.vmem [shape: f32[32,32], index: 3, kind: input, shape index: {}]   ;;  %s5064_s4 = inlined_call_operand.vmem [shape: f32[1,32], index: 4, kind: input, shape index: {}]   ;;  %s5065_s7 = inlined_call_operand.vmem [shape: f32[32,64], index: 7, kind: input, shape index: {}]   ;;  %s5066_s5 = inlined_call_operand.vmem [shape: f32[1,32], index: 5, kind: input, shape index: {}]   ;;  %s5067_s6 = inlined_call_operand.vmem [shape: f32[1,32], index: 6, kind: input, shape index: {}]   ;;  %s5068_s9 = inlined_call_operand.vmem [shape: f32[64,32], index: 9, kind: input, shape index: {}]   ;;  %s5069_s8 = inlined_call_operand.vmem [shape: f32[1,64], index: 8, kind: input, shape index: {}]   ;;  %s5070_s10 = inlined_call_operand.vmem [shape: f32[1,32], index: 10, kind: input, shape index: {}]   ;;  %s5071_s11 = inlined_call_operand.vmem [shape: f32[1,32], index: 11, kind: input, shape index: {}]   ;;  %s5072_s12 = inlined_call_operand.vmem [shape: f32[1,32], index: 12, kind: input, shape index: {}]   ;;  %s5073_s16 = inlined_call_operand.vmem [shape: f32[64,32], index: 16, kind: output, shape index: {}]  }
   0x1   :  { %5075 = sst [smem:[#allocation2_spill]] %s5057_s1  ;;  %v53_v5 = vld [vmem:[%s5058_s0] sm:$0xff]  ;;  %v54_v8 = vld [vmem:[%s5058_s0 + $0x8] sm:$0xff]  ;;  %v55_v10 = vld [vmem:[%s5058_s0 + $0x10] sm:$0xff]  ;;  %3722 = vset.pattern.permute.xlu0 %v3984_v63  ;;  %s3986_s21 = smov 112  }
   0x2   :  { %s5076_s23 = sld [smem:[#allocation2_spill]]  ;;  %3378 = vmatprep.mubr.msk.f32.mxu0 %vm72_vm0, %v53_v5  ;;  %v57_v7 = vld [vmem:[%s5058_s0 + $0x20] sm:$0xff]  ;;  %v58_v9 = vld [vmem:[%s5058_s0 + $0x28] sm:$0xff]  ;;  %v59_v11 = vld [vmem:[%s5058_s0 + $0x30] sm:$0xff]  ;;  %s3987_s22 = smov 64  }
   0x3   :  { %3384 = vmatprep.mubr.msk.f32.mxu1 %vm72_vm0, %v57_v7  ;;  %v56_v12 = vld [vmem:[%s5058_s0 + $0x18] sm:$0xff]  ;;  %v3161_v14 = vld [vmem:[%s5059_s2] ss:$0 sm:$0xff]  ;;  %vm4264_vm2 = vmpackc.low %vm212_vm1, %vm212_vm1  ;;  %s3989_s27 = smov 16  }
   0x4   :  { %v60_v13 = vld [vmem:[%s5058_s0 + $0x38] sm:$0xff] }
   0x8   :  { %v61_v0 = vld [vmem:[%s5076_s23] sm:$0xff]  ;;  %v62_v1 = vld [vmem:[%s5076_s23 + $0x8] sm:$0xff]  ;;  %v63_v2 = vld [vmem:[%s5076_s23 + $0x10] sm:$0xff] }
   0x9   :  { %v3570_v3 = vpack.c.bf16 %v62_v1, %v61_v0  ;;  %v64_v4 = vld [vmem:[%s5076_s23 + $0x18] sm:$0xff] }
   0xa   :  { %v3574_v6 = vpack.c.bf16 %v64_v4, %v63_v2 }
   0xb   :  { %3571 = vmatprep.subr.bf16.mxu0 %v3570_v3  ;;  %3690 = vmatprep.subr.bf16.mxu1 %v3570_v3 }
   0xc   :  { %3573 = vmatpush3.bf16.msra.mxu0 %v3570_v3  ;;  %3692 = vmatpush3.bf16.msra.mxu1 %v3570_v3 }
   0xd   :  { %3575 = vmatprep.subr.bf16.mxu0 %v3574_v6  ;;  %3691 = vmatprep.subr.bf16.mxu1 %v3574_v6 }
  0x10   :  { %3577 = vmatpush3.bf16.msra.mxu0 %v3574_v6  ;;  %3693 = vmatpush3.bf16.msra.mxu1 %v3574_v6 }
  0x13   :  { %3379 = vmatmul.mubr.msk.f32.vlgmr.msra.gmra.mrb[0].mxu0 %vm72_vm0, %v54_v8  ;;  %3385 = vmatmul.mubr.msk.f32.vlgmr.msra.gmra.mrb[0].mxu1 %vm72_vm0, %v58_v9 }
  0x14   :  { %3381 = vmatprep.mubr.msk.f32.mxu0 %vm72_vm0, %v55_v10  ;;  %3387 = vmatprep.mubr.msk.f32.mxu1 %vm72_vm0, %v59_v11 }
  0x17   :  { %3382 = vmatmul.mubr.msk.f32.gmra.mrb[2].mxu0 %vm72_vm0, %v56_v12  ;;  %3388 = vmatmul.mubr.msk.f32.gmra.mrb[2].mxu1 %vm72_vm0, %v60_v13 }
  0xe6   :  { %v3380_v15 = vpop.f32.mrb[0].mxu0  ;;  %v3386_v16 = vpop.f32.mrb[0].mxu1 }
  0xe7   :  { %v163_v17 = vpop.f32.mrb[1].mxu0  ;;  %v183_v18 = vpop.f32.mrb[1].mxu1  ;;  %v4125_v20 = vadd.f32 %v3380_v15, %v3161_v14  ;;  %v4147_v31 = vadd.f32 %v3386_v16, %v3161_v14 }
  0xe8   :  { %v4123_v19 = vadd.f32 %v3161_v14, %v163_v17  ;;  %v4135_v27 = vadd.f32 %v3161_v14, %v183_v18 }
  0xe9   :  { %v4145_v30 = vmul.f32 %v4125_v20, %v4125_v20  ;;  %v4171_v36 = vmul.f32 %v4147_v31, %v4147_v31 }
  0xea   :  { %v3383_v21 = vpop.f32.mrb[2].mxu0  ;;  %v4129_v22 = vmul.f32 %v4123_v19, %v4123_v19  ;;  %v3389_v23 = vpop.f32.mrb[2].mxu1  ;;  %v4157_v33 = vmul.f32 %v4135_v27, %v4135_v27 }
  0xeb   :  { %v173_v24 = vpop.f32.mrb[3].mxu0  ;;  %v193_v25 = vpop.f32.mrb[3].mxu1  ;;  %v4137_v28 = vadd.f32 %v3383_v21, %v3161_v14  ;;  %v4163_v35 = vadd.f32 %v3389_v23, %v3161_v14  ;;  %v216_v56 = vsel %vm212_vm1, %v4145_v30, 0.0  ;;  %v228_v60 = vsel %vm212_vm1, %v4171_v36, 0.0 }
  0xec   :  { %v4131_v26 = vadd.f32 %v3161_v14, %v173_v24  ;;  %269 = vrot.lane.b32.xlu0 %v4129_v22, %s3983_s18  ;;  %v4153_v32 = vadd.f32 %v3161_v14, %v193_v25  ;;  %v213_v55 = vsel %vm212_vm1, %v4129_v22, 0.0  ;;  %v225_v59 = vsel %vm212_vm1, %v4157_v33, 0.0 }
  0xed   :  { %v4161_v34 = vmul.f32 %v4137_v28, %v4137_v28  ;;  %v4183_v38 = vmul.f32 %v4163_v35, %v4163_v35 }
  0xee   :  { %v4141_v29 = vmul.f32 %v4131_v26, %v4131_v26  ;;  %v4175_v37 = vmul.f32 %v4153_v32, %v4153_v32 }
  0xef   :  { %v222_v58 = vsel %vm212_vm1, %v4161_v34, 0.0  ;;  %v234_v62 = vsel %vm212_vm1, %v4183_v38, 0.0 }
  0xf0   :  { %273 = vrot.lane.b32.xlu1 %v4141_v29, %s3983_s18  ;;  %271 = vrot.lane.b32.xlu0 %v4145_v30, %s3983_s18  ;;  %v219_v57 = vsel %vm212_vm1, %v4141_v29, 0.0  ;;  %v231_v61 = vsel %vm212_vm1, %v4175_v37, 0.0 }
  0xf4   :  { %275 = vrot.lane.b32.xlu1 %v4161_v34, %s3983_s18  ;;  %277 = vrot.lane.b32.xlu0 %v4157_v33, %s3983_s18 }
  0xf8   :  { %279 = vrot.lane.b32.xlu1 %v4171_v36, %s3983_s18  ;;  %281 = vrot.lane.b32.xlu0 %v4175_v37, %s3983_s18 }
  0xfc   :  { %283 = vrot.lane.b32.xlu1 %v4183_v38, %s3983_s18 }
 0x15e   :  { %v270_v39 = vpop.permute.xlu0 %269 }
 0x15f   :  { %v293_v40 = vsel %vm212_vm1, %v270_v39, 0.0 }
 0x160   :  { %294 = vadd.xlane.f32.xlu0 %v293_v40 }
 0x162   :  { %v274_v41 = vpop.permute.xlu1 %273  ;;  %v272_v42 = vpop.permute.xlu0 %271 }
 0x163   :  { %v299_v43 = vsel %vm212_vm1, %v274_v41, 0.0  ;;  %v296_v44 = vsel %vm212_vm1, %v272_v42, 0.0 }
 0x164   :  { %300 = vadd.xlane.f32.xlu0 %v299_v43  ;;  %297 = vadd.xlane.f32.xlu1 %v296_v44 }
 0x166   :  { %v276_v45 = vpop.permute.xlu1 %275  ;;  %v278_v46 = vpop.permute.xlu0 %277 }
 0x167   :  { %v302_v47 = vsel %vm212_vm1, %v276_v45, 0.0  ;;  %v305_v48 = vsel %vm212_vm1, %v278_v46, 0.0 }
 0x168   :  { %303 = vadd.xlane.f32.xlu0 %v302_v47  ;;  %306 = vadd.xlane.f32.xlu1 %v305_v48 }
 0x16a   :  { %v280_v49 = vpop.permute.xlu1 %279  ;;  %v282_v50 = vpop.permute.xlu0 %281 }
 0x16b   :  { %v308_v51 = vsel %vm212_vm1, %v280_v49, 0.0  ;;  %v311_v52 = vsel %vm212_vm1, %v282_v50, 0.0 }
 0x16c   :  { %309 = vadd.xlane.f32.xlu0 %v308_v51  ;;  %312 = vadd.xlane.f32.xlu1 %v311_v52  ;;  %v3186_v52 = vld [vmem:[%s5060_s15] ss:$0 sm:$0xff] }
 0x16e   :  { %v284_v53 = vpop.permute.xlu1 %283 }
 0x16f   :  { %v314_v54 = vsel %vm212_vm1, %v284_v53, 0.0 }
 0x170   :  { %315 = vadd.xlane.f32.xlu0 %v314_v54  ;;  %214 = vadd.xlane.f32.xlu1 %v213_v55 }
 0x174   :  { %217 = vadd.xlane.f32.xlu0 %v216_v56  ;;  %220 = vadd.xlane.f32.xlu1 %v219_v57 }
 0x178   :  { %223 = vadd.xlane.f32.xlu0 %v222_v58  ;;  %226 = vadd.xlane.f32.xlu1 %v225_v59 }
 0x17c   :  { %229 = vadd.xlane.f32.xlu0 %v228_v60  ;;  %232 = vadd.xlane.f32.xlu1 %v231_v61 }
 0x180   :  { %235 = vadd.xlane.f32.xlu0 %v234_v62 }
 0x1ed   :  { %v295_v0 = vpop.xlane.xlu0 %294 }
 0x1ee   :  { %v317_v1 = vmax.f32 %v295_v0, 1e-24 }
 0x1f0   :  { %3783 = vrsqrt.f32 %v317_v1 }
 0x1f1   :  { %v298_v2 = vpop.xlane.xlu1 %297  ;;  %v301_v3 = vpop.xlane.xlu0 %300 }
 0x1f2   :  { %v318_v4 = vmax.f32 %v298_v2, 1e-24  ;;  %v319_v5 = vmax.f32 %v301_v3, 1e-24 }
 0x1f4   :  { %3785 = vrsqrt.f32 %v318_v4 }
 0x1f5   :  { %v307_v6 = vpop.xlane.xlu1 %306  ;;  %v304_v7 = vpop.xlane.xlu0 %303  ;;  %3787 = vrsqrt.f32 %v319_v5 }
 0x1f6   :  { %v320_v8 = vmax.f32 %v304_v7, 1e-24  ;;  %v321_v9 = vmax.f32 %v307_v6, 1e-24 }
 0x1f8   :  { %3789 = vrsqrt.f32 %v320_v8 }
 0x1f9   :  { %v313_v10 = vpop.xlane.xlu1 %312  ;;  %v310_v11 = vpop.xlane.xlu0 %309  ;;  %3791 = vrsqrt.f32 %v321_v9 }
 0x1fa   :  { %v323_v12 = vmax.f32 %v313_v10, 1e-24  ;;  %v322_v13 = vmax.f32 %v310_v11, 1e-24  ;;  %v3784_v14 = vpop.eup %3783 }
 0x1fb   :  { %v333_v23 = vmul.f32 %v3784_v14, %v4123_v19 }
 0x1fc   :  { %3793 = vrsqrt.f32 %v322_v13 }
 0x1fd   :  { %v316_v15 = vpop.xlane.xlu0 %315  ;;  %v215_v16 = vpop.xlane.xlu1 %214  ;;  %3795 = vrsqrt.f32 %v323_v12 }
 0x1fe   :  { %v3786_v17 = vpop.eup %3785  ;;  %v324_v18 = vmax.f32 %v316_v15, 1e-24  ;;  %v237_v21 = vmax.f32 %v215_v16, 1e-24 }
 0x1ff   :  { %v334_v24 = vmul.f32 %v3786_v17, %v4125_v20  ;;  %v3788_v25 = vpop.eup %3787 }
 0x200   :  { %3797 = vrsqrt.f32 %v324_v18  ;;  %v335_v42 = vmul.f32 %v3788_v25, %v4131_v26 }
 0x201   :  { %3799 = vrsqrt.f32 %v237_v21  ;;  %v221_v39 = vpop.xlane.xlu1 %220  ;;  %v3702_v40 = vpack.i.bf16 %v334_v24, %v333_v23 }
 0x202   :  { %v3790_v41 = vpop.eup %3789 }
 0x203   :  { %3703 = vrot.lane.b32.xlu1 %v3702_v40, %s3983_s18  ;;  %v336_v43 = vmul.f32 %v3790_v41, %v4137_v28  ;;  %v3792_v44 = vpop.eup %3791 }
 0x204   :  { %v337_v50 = vmul.f32 %v3792_v44, %v4135_v27 }
 0x205   :  { %v227_v45 = vpop.xlane.xlu1 %226  ;;  %v3707_v47 = vpack.i.bf16 %v336_v43, %v335_v42 }
 0x206   :  { %v241_v46 = vmax.f32 %v227_v45, 1e-24  ;;  %v3794_v48 = vpop.eup %3793 }
 0x207   :  { %v3796_v49 = vpop.eup %3795  ;;  %3708 = vrot.lane.b32.xlu0 %v3707_v47, %s3983_s18  ;;  %v338_v51 = vmul.f32 %v3794_v48, %v4147_v31 }
 0x208   :  { %3801 = vrsqrt.f32 %v241_v46  ;;  %v339_v56 = vmul.f32 %v3796_v49, %v4153_v32 }
 0x209   :  { %v3712_v54 = vpack.i.bf16 %v338_v51, %v337_v50  ;;  %v233_v63 = vpop.xlane.xlu1 %232 }
 0x20a   :  { %v3798_v53 = vpop.eup %3797  ;;  %v243_v4 = vmax.f32 %v233_v63, 1e-24 }
 0x20b   :  { %v3800_v55 = vpop.eup %3799  ;;  %v340_v57 = vmul.f32 %v3798_v53, %v4163_v35  ;;  %712 = vperm.xlu0 %3722, %v3186_v52   ;;  %3713 = vrot.lane.b32.xlu1 %v3712_v54, %s3983_s18 }
 0x20c   :  { %v253_v58 = vmul.f32 %v3800_v55, %v4123_v19 }
 0x20d   :  { %v3717_v59 = vpack.i.bf16 %v340_v57, %v339_v56 }
 0x20e   :  { %3394 = vmatprep.mubr.msk.f32.mxu1 %vm212_vm1, %v253_v58 }
 0x20f   :  { %1261 = vrot.lane.b32.xlu0 %v4141_v29, %s3985_s20  ;;  %3718 = vrot.lane.b32.xlu1 %v3717_v59, %s3983_s18 }
 0x212   :  { %v3802_v60 = vpop.eup %3801 }
 0x213   :  { %1265 = vrot.lane.b32.xlu0 %v4157_v33, %s3985_s20  ;;  %1257 = vrot.lane.b32.xlu1 %v4129_v22, %s3985_s20  ;;  %v257_v61 = vmul.f32 %v3802_v60, %v4135_v27 }
 0x215   :  { %3408 = vmatprep.mubr.msk.f32.mxu0 %vm212_vm1, %v257_v61 }
 0x217   :  { %1185 = vrot.lane.b32.xlu0 %v4129_v22, %s3986_s21  ;;  %1259 = vrot.lane.b32.xlu1 %v4145_v30, %s3985_s20  ;;  %v218_v22 = vpop.xlane.xlu0 %217 }
 0x21b   :  { %1269 = vrot.lane.b32.xlu0 %v4175_v37, %s3985_s20  ;;  %1263 = vrot.lane.b32.xlu1 %v4161_v34, %s3985_s20 }
 0x21f   :  { %1189 = vrot.lane.b32.xlu0 %v4141_v29, %s3986_s21  ;;  %1267 = vrot.lane.b32.xlu1 %v4171_v36, %s3985_s20  ;;  %v224_v29 = vpop.xlane.xlu0 %223 }
 0x220   :  { %v240_v3 = vmax.f32 %v224_v29, 1e-24 }
 0x223   :  { %1193 = vrot.lane.b32.xlu0 %v4157_v33, %s3986_s21  ;;  %1187 = vrot.lane.b32.xlu1 %v4145_v30, %s3986_s21  ;;  %v238_v33 = vmax.f32 %v218_v22, 1e-24  ;;  %v230_v62 = vpop.xlane.xlu0 %229  ;;  %v239_v30 = vmax.f32 %v221_v39, 1e-24 }
 0x225   :  { %3803 = vrsqrt.f32 %v238_v33 }
 0x226   :  { %3805 = vrsqrt.f32 %v239_v30 }
 0x227   :  { %1197 = vrot.lane.b32.xlu0 %v4175_v37, %s3986_s21  ;;  %1271 = vrot.lane.b32.xlu1 %v4183_v38, %s3985_s20  ;;  %v236_v0 = vpop.xlane.xlu0 %235  ;;  %3807 = vrsqrt.f32 %v240_v3 }
 0x228   :  { %v244_v12 = vmax.f32 %v236_v0, 1e-24 }
 0x22b   :  { %1191 = vrot.lane.b32.xlu1 %v4161_v34, %s3986_s21  ;;  %v3214_v34 = vld [vmem:[%s5061_s13 + $0x18] sm:$0xff] }
 0x22f   :  { %1195 = vrot.lane.b32.xlu1 %v4171_v36, %s3986_s21  ;;  %v242_v36 = vmax.f32 %v230_v62, 1e-24  ;;  %v3804_v8 = vpop.eup %3803 }
 0x230   :  { %v3806_v11 = vpop.eup %3805  ;;  %v254_v15 = vmul.f32 %v3804_v8, %v4125_v20  ;;  %v4316_v8 = vpack.i.bf16 %v4125_v20, %v4123_v19 }
 0x231   :  { %3809 = vrsqrt.f32 %v242_v36  ;;  %v255_v18 = vmul.f32 %v3806_v11, %v4131_v26  ;;  %v3808_v24 = vpop.eup %3807  ;;  %v4331_v11 = vpack.i.bf16 %v4163_v35, %v4153_v32 }
 0x232   :  { %3811 = vrsqrt.f32 %v243_v4  ;;  %v256_v43 = vmul.f32 %v3808_v24, %v4137_v28 }
 0x233   :  { %1199 = vrot.lane.b32.xlu1 %v4183_v38, %s3986_s21  ;;  %3813 = vrsqrt.f32 %v244_v12 }
 0x23b   :  { %v3810_v39 = vpop.eup %3809 }
 0x23c   :  { %v3812_v41 = vpop.eup %3811  ;;  %v258_v44 = vmul.f32 %v3810_v39, %v4147_v31 }
 0x23d   :  { %v259_v46 = vmul.f32 %v3812_v41, %v4153_v32  ;;  %v3814_v49 = vpop.eup %3813 }
 0x23e   :  { %v260_v54 = vmul.f32 %v3814_v49, %v4163_v35 }
 0x275   :  { %v3704_v37 = vpop.permute.xlu1 %3703 }
 0x276   :  { %v3706_v1 = vunpack.i.h.bf16 %v3704_v37  ;;  %v3705_v2 = vunpack.i.l.bf16 %v3704_v37 }
 0x278   :  { %v3578_v38 = vpack.c.bf16 %v3706_v1, %v3705_v2 }
 0x279   :  { %v3709_v5 = vpop.permute.xlu0 %3708 }
 0x27a   :  { %3580 = vmatprep.subr.msk.bf16.mxu1 %vm4264_vm2, %v3578_v38  ;;  %v3711_v6 = vunpack.i.h.bf16 %v3709_v5  ;;  %v3710_v7 = vunpack.i.l.bf16 %v3709_v5 }
 0x27b   :  { %3583 = vmatpush3.bf16.xpose.msk.msra.mxu1 %vm4264_vm2, %v3578_v38 }
 0x27c   :  { %v3584_v9 = vpack.c.bf16 %v3711_v6, %v3710_v7 }
 0x27d   :  { %v3714_v10 = vpop.permute.xlu1 %3713 }
 0x27e   :  { %v3716_v13 = vunpack.i.h.bf16 %v3714_v10  ;;  %v3715_v14 = vunpack.i.l.bf16 %v3714_v10  ;;  %3586 = vmatprep.subr.msk.bf16.mxu1 %vm4264_vm2, %v3584_v9  ;;  %v4325_v10 = vpack.i.bf16 %v4137_v28, %v4131_v26 }
 0x280   :  { %v3590_v16 = vpack.c.bf16 %v3716_v13, %v3715_v14 }
 0x281   :  { %v3719_v17 = vpop.permute.xlu1 %3718 }
 0x282   :  { %3395 = vmatmul.mubr.msk.f32.vlgmr.msra.gmra.mrb[4].mxu1 %vm212_vm1, %v254_v15  ;;  %v3721_v21 = vunpack.i.h.bf16 %v3719_v17  ;;  %v3720_v23 = vunpack.i.l.bf16 %v3719_v17  ;;  %3592 = vmatprep.subr.msk.bf16.mxu0 %vm4264_vm2, %v3590_v16 }
 0x283   :  { %3589 = vmatpush3.bf16.xpose.msk.msra.mxu1 %vm4264_vm2, %v3584_v9  ;;  %3401 = vmatprep.mubr.msk.f32.mxu1 %vm212_vm1, %v255_v18  ;;  %v4321_v9 = vpack.i.bf16 %v4147_v31, %v4135_v27 }
 0x284   :  { %3595 = vmatpush3.bf16.xpose.msk.msra.mxu0 %vm4264_vm2, %v3590_v16  ;;  %v3596_v25 = vpack.c.bf16 %v3721_v21, %v3720_v23 }
 0x285   :  { %v1258_v40 = vpop.permute.xlu1 %1257 }
 0x286   :  { %3598 = vmatprep.subr.msk.bf16.mxu1 %vm4264_vm2, %v3596_v25  ;;  %v1281_v42 = vsel %vm212_vm1, %v1258_v40, 0.0 }
 0x287   :  { %1282 = vadd.xlane.f32.xlu1 %v1281_v42 }
 0x289   :  { %v1260_v45 = vpop.permute.xlu1 %1259 }
 0x28a   :  { %3402 = vmatmul.mubr.msk.f32.vlgmr.msra.gmra.mrb[6].mxu1 %vm212_vm1, %v256_v43  ;;  %v4291_v47 = vpop.permute.xlu0 %712  ;;  %v1284_v48 = vsel %vm212_vm1, %v1260_v45, 0.0 }
 0x28b   :  { %3409 = vmatmul.mubr.msk.f32.vlgmr.msra.gmra.mrb[4].mxu0 %vm212_vm1, %v258_v44  ;;  %3601 = vmatpush3.bf16.xpose.msk.msra.mxu1 %vm4264_vm2, %v3596_v25 }
 0x28c   :  { %1285 = vadd.xlane.f32.xlu0 %v1284_v48  ;;  %3415 = vmatprep.mubr.msk.f32.mxu1 %vm212_vm1, %v259_v46 }
 0x28d   :  { %v1264_v50 = vpop.permute.xlu1 %1263 }
 0x28e   :  { %v1262_v51 = vpop.permute.xlu0 %1261  ;;  %v1290_v52 = vsel %vm212_vm1, %v1264_v50, 0.0 }
 0x28f   :  { %v1287_v53 = vsel %vm212_vm1, %v1262_v51, 0.0 }
 0x290   :  { %1291 = vadd.xlane.f32.xlu0 %v1290_v52  ;;  %1288 = vadd.xlane.f32.xlu1 %v1287_v53 }
 0x291   :  { %v1268_v55 = vpop.permute.xlu1 %1267 }
 0x292   :  { %3416 = vmatmul.mubr.msk.f32.vlgmr.msra.gmra.mrb[8].mxu1 %vm212_vm1, %v260_v54  ;;  %v1266_v56 = vpop.permute.xlu0 %1265  ;;  %v1296_v57 = vsel %vm212_vm1, %v1268_v55, 0.0 }
 0x293   :  { %v1293_v58 = vsel %vm212_vm1, %v1266_v56, 0.0 }
 0x294   :  { %1297 = vadd.xlane.f32.xlu0 %v1296_v57  ;;  %1294 = vadd.xlane.f32.xlu1 %v1293_v58 }
 0x295   :  { %v1188_v59 = vpop.permute.xlu1 %1187 }
 0x296   :  { %v1186_v60 = vpop.permute.xlu0 %1185  ;;  %v1212_v61 = vsel %vm212_vm1, %v1188_v59, 0.0 }
 0x297   :  { %v1209_v22 = vsel %vm212_vm1, %v1186_v60, 0.0 }
 0x298   :  { %1213 = vadd.xlane.f32.xlu0 %v1212_v61  ;;  %1210 = vadd.xlane.f32.xlu1 %v1209_v22  ;;  %v724_v22 = vld [vmem:[%s5061_s13 + $0x8] sm:$0xff] }
 0x299   :  { %v1272_v29 = vpop.permute.xlu1 %1271 }
 0x29a   :  { %v1270_v33 = vpop.permute.xlu0 %1269  ;;  %v1302_v62 = vsel %vm212_vm1, %v1272_v29, 0.0 }
 0x29b   :  { %v1299_v30 = vsel %vm212_vm1, %v1270_v33, 0.0 }
 0x29c   :  { %1303 = vadd.xlane.f32.xlu0 %v1302_v62  ;;  %1300 = vadd.xlane.f32.xlu1 %v1299_v30  ;;  %v4377_v62 = vld [vmem:[%s5062_s14 + $0x8] sm:$0xff] }
 0x29d   :  { %v1192_v63 = vpop.permute.xlu1 %1191 }
 0x29e   :  { %v1190_v37 = vpop.permute.xlu0 %1189  ;;  %v1218_v0 = vsel %vm212_vm1, %v1192_v63, 0.0 }
 0x29f   :  { %v1215_v1 = vsel %vm212_vm1, %v1190_v37, 0.0 }
 0x2a0   :  { %1219 = vadd.xlane.f32.xlu0 %v1218_v0  ;;  %1216 = vadd.xlane.f32.xlu1 %v1215_v1 }
 0x2a1   :  { %v1196_v2 = vpop.permute.xlu1 %1195 }
 0x2a2   :  { %v1194_v3 = vpop.permute.xlu0 %1193  ;;  %v1224_v36 = vsel %vm212_vm1, %v1196_v2, 0.0  ;;  %v723_v2 = vld [vmem:[%s5061_s13] sm:$0xff] }
 0x2a3   :  { %v1221_v38 = vsel %vm212_vm1, %v1194_v3, 0.0 }
 0x2a4   :  { %1225 = vadd.xlane.f32.xlu0 %v1224_v36  ;;  %1222 = vadd.xlane.f32.xlu1 %v1221_v38 }
 0x2a5   :  { %v1200_v4 = vpop.permute.xlu1 %1199 }
 0x2a6   :  { %v1198_v5 = vpop.permute.xlu0 %1197  ;;  %v1230_v6 = vsel %vm212_vm1, %v1200_v4, 0.0 }
 0x2a7   :  { %v1227_v7 = vsel %vm212_vm1, %v1198_v5, 0.0 }
 0x2a8   :  { %1231 = vadd.xlane.f32.xlu0 %v1230_v6  ;;  %1228 = vadd.xlane.f32.xlu1 %v1227_v7 }
 0x2b9   :  { %3724 = vrot.lane.b32.xlu1 %v4316_v8, %s3987_s22 }
 0x2bd   :  { %3734 = vrot.lane.b32.xlu1 %v4321_v9, %s3987_s22 }
 0x2be   :  { %3729 = vrot.lane.b32.xlu0 %v4325_v10, %s3987_s22 }
 0x2c1   :  { %3739 = vrot.lane.b32.xlu1 %v4331_v11, %s3987_s22 }
 0x314   :  { %v4336_v13 = vpop.xlane.xlu1 %1282 }
 0x319   :  { %v4334_v12 = vpop.xlane.xlu0 %1285 }
 0x31d   :  { %v1292_v14 = vpop.xlane.xlu0 %1291  ;;  %v4338_v15 = vpop.xlane.xlu1 %1288 }
 0x31e   :  { %v1308_v38 = vmax.f32 %v1292_v14, 1e-24  ;;  %v1307_v6 = vmax.f32 %v4338_v15, 1e-24 }
 0x320   :  { %3815 = vrsqrt.f32 %v1308_v38 }
 0x321   :  { %v4340_v16 = vpop.xlane.xlu0 %1297  ;;  %v4342_v17 = vpop.xlane.xlu1 %1294  ;;  %3817 = vrsqrt.f32 %v1307_v6 }
 0x325   :  { %v4344_v18 = vpop.xlane.xlu0 %1213  ;;  %v4346_v21 = vpop.xlane.xlu1 %1210 }
 0x329   :  { %v4348_v23 = vpop.xlane.xlu0 %1303  ;;  %v4350_v24 = vpop.xlane.xlu1 %1300 }
 0x32d   :  { %v4352_v25 = vpop.xlane.xlu0 %1219  ;;  %v4354_v39 = vpop.xlane.xlu1 %1216 }
 0x331   :  { %v4356_v40 = vpop.xlane.xlu0 %1225  ;;  %v4358_v41 = vpop.xlane.xlu1 %1222 }
 0x335   :  { %v4360_v42 = vpop.xlane.xlu0 %1231  ;;  %v4362_v43 = vpop.xlane.xlu1 %1228 }
 0x339   :  { %v3730_v44 = vpop.permute.xlu0 %3729  ;;  %v3725_v48 = vpop.permute.xlu1 %3724 }
 0x33a   :  { %v3732_v45 = vunpack.i.h.bf16 %v3730_v44  ;;  %v3731_v46 = vunpack.i.l.bf16 %v3730_v44  ;;  %v3727_v49 = vunpack.i.h.bf16 %v3725_v48  ;;  %v3726_v50 = vunpack.i.l.bf16 %v3725_v48 }
 0x33c   :  { %v3606_v51 = vpack.c.bf16 %v3732_v45, %v3731_v46  ;;  %v3602_v52 = vpack.c.bf16 %v3727_v49, %v3726_v50  ;;  %v4395_v49 = vld [vmem:[%s5062_s14] sm:$0xff] }
 0x33d   :  { %v3735_v53 = vpop.permute.xlu1 %3734 }
 0x33e   :  { %3607 = vmatprep.subr.bf16.mxu1 %v3606_v51  ;;  %v3737_v54 = vunpack.i.h.bf16 %v3735_v53  ;;  %v3736_v55 = vunpack.i.l.bf16 %v3735_v53  ;;  %3603 = vmatprep.subr.bf16.mxu0 %v3602_v52 }
 0x33f   :  { %3609 = vmatpush3.bf16.msra.mxu1 %v3606_v51  ;;  %3605 = vmatpush3.bf16.msra.mxu0 %v3602_v52 }
 0x340   :  { %v4364_v56 = vpack.c.bf16 %v3737_v54, %v3736_v55 }
 0x341   :  { %v3740_v57 = vpop.permute.xlu1 %3739 }
 0x342   :  { %v3742_v58 = vunpack.i.h.bf16 %v3740_v57  ;;  %v3741_v59 = vunpack.i.l.bf16 %v3740_v57  ;;  %3611 = vmatprep.subr.bf16.mxu0 %v4364_v56 }
 0x344   :  { %v4367_v60 = vpack.c.bf16 %v3742_v58, %v3741_v59 }
 0x346   :  { %3615 = vmatprep.subr.bf16.mxu1 %v4367_v60 }
 0x355   :  { %v3396_v61 = vpop.f32.mrb[4].mxu1 }
 0x356   :  { %v716_v29 = vmul.f32 %v3396_v61, %v4291_v47  ;;  %v423_v33 = vpop.f32.mrb[5].mxu1 }
 0x357   :  { %v715_v0 = vmul.f32 %v4291_v47, %v423_v33  ;;  %v3816_v33 = vpop.eup %3815 }
 0x358   :  { %v726_v30 = vadd.f32 %v724_v22, %v716_v29 }
 0x359   :  { %v725_v44 = vadd.f32 %v723_v2, %v715_v0 }
 0x35a   :  { %v4380_v63 = vadd.f32 %v726_v30, %v4377_v62 }
 0x35b   :  { %v733_v54 = vadd.f32 %v725_v44, %v4395_v49 }
 0x35c   :  { %v744_v37 = vsel %vm212_vm1, %v4380_v63, -inf }
 0x35d   :  { %745 = vmax.xlane.f32.xlu1 %v744_v37  ;;  %v3403_v1 = vpop.f32.mrb[6].mxu1  ;;  %v741_v61 = vsel %vm212_vm1, %v733_v54, -inf }
 0x35e   :  { %v3410_v3 = vpop.f32.mrb[4].mxu0  ;;  %v514_v36 = vpop.f32.mrb[7].mxu1  ;;  %v718_v46 = vmul.f32 %v3403_v1, %v4291_v47 }
 0x35f   :  { %v720_v4 = vmul.f32 %v3410_v3, %v4291_v47  ;;  %v605_v5 = vpop.f32.mrb[5].mxu0  ;;  %v717_v15 = vmul.f32 %v4291_v47, %v514_v36  ;;  %v3818_v1 = vpop.eup %3817 }
 0x360   :  { %v719_v7 = vmul.f32 %v4291_v47, %v605_v5  ;;  %v728_v51 = vadd.f32 %v724_v22, %v718_v46  ;;  %v1323_v38 = vmul.f32 %v3818_v1, %v4131_v26 }
 0x361   :  { %v730_v45 = vadd.f32 %v724_v22, %v720_v4  ;;  %v727_v58 = vadd.f32 %v723_v2, %v717_v15  ;;  %v1324_v4 = vmul.f32 %v3816_v33, %v4137_v28 }
 0x362   :  { %v729_v48 = vadd.f32 %v723_v2, %v719_v7  ;;  %v736_v29 = vadd.f32 %v728_v51, %v4377_v62  ;;  %v1305_v7 = vmax.f32 %v4336_v13, 1e-24 }
 0x363   :  { %v738_v14 = vadd.f32 %v730_v45, %v4377_v62  ;;  %v4408_v0 = vadd.f32 %v727_v58, %v4395_v49  ;;  %v3748_v6 = vpack.i.bf16 %v1324_v4, %v1323_v38 }
 0x364   :  { %v737_v50 = vadd.f32 %v729_v48, %v4395_v49  ;;  %v750_v37 = vsel %vm212_vm1, %v736_v29, -inf }
 0x365   :  { %v756_v52 = vsel %vm212_vm1, %v738_v14, -inf  ;;  %v3417_v53 = vpop.f32.mrb[8].mxu1  ;;  %v747_v3 = vsel %vm212_vm1, %v4408_v0, -inf }
 0x366   :  { %757 = vmax.xlane.f32.xlu0 %v756_v52  ;;  %v753_v55 = vsel %vm212_vm1, %v737_v50, -inf  ;;  %v696_v57 = vpop.f32.mrb[9].mxu1  ;;  %v722_v59 = vmul.f32 %v3417_v53, %v4291_v47 }
 0x367   :  { %754 = vmax.xlane.f32.xlu1 %v753_v55 }
 0x368   :  { %v732_v30 = vadd.f32 %v724_v22, %v722_v59  ;;  %v1306_v22 = vmax.f32 %v4334_v12, 1e-24  ;;  %v721_v12 = vmul.f32 %v4291_v47, %v696_v57 }
 0x36a   :  { %742 = vmax.xlane.f32.xlu0 %v741_v61  ;;  %v4413_v36 = vadd.f32 %v732_v30, %v4377_v62  ;;  %3819 = vrsqrt.f32 %v1306_v22  ;;  %v731_v15 = vadd.f32 %v723_v2, %v721_v12 }
 0x36b   :  { %3821 = vrsqrt.f32 %v1305_v7  ;;  %v1310_v7 = vmax.f32 %v4340_v16, 1e-24 }
 0x36c   :  { %v762_v5 = vsel %vm212_vm1, %v4413_v36, -inf  ;;  %v4427_v52 = vadd.f32 %v731_v15, %v4395_v49 }
 0x36e   :  { %751 = vmax.xlane.f32.xlu0 %v750_v37  ;;  %v759_v13 = vsel %vm212_vm1, %v4427_v52, -inf }
 0x372   :  { %748 = vmax.xlane.f32.xlu0 %v747_v3 }
 0x374   :  { %v3820_v44 = vpop.eup %3819 }
 0x375   :  { %v3822_v45 = vpop.eup %3821  ;;  %v1322_v46 = vmul.f32 %v3820_v44, %v4125_v20  ;;  %v1233_v44 = vmax.f32 %v4346_v21, 1e-24 }
 0x376   :  { %763 = vmax.xlane.f32.xlu0 %v762_v5  ;;  %v1321_v48 = vmul.f32 %v3822_v45, %v4123_v19  ;;  %v1309_v45 = vmax.f32 %v4342_v17, 1e-24 }
 0x378   :  { %3749 = vrot.lane.b32.xlu1 %v3748_v6, %s3985_s20  ;;  %v3743_v51 = vpack.i.bf16 %v1322_v46, %v1321_v48 }
 0x38c   :  { %3744 = vrot.lane.b32.xlu0 %v3743_v51, %s3985_s20 }
 0x39c   :  { %760 = vmax.xlane.f32.xlu1 %v759_v13 }
 0x3ea   :  { %v746_v53 = vpop.xlane.xlu1 %745 }
 0x3eb   :  { %v766_v55 = vsub.f32 %v4380_v63, %v746_v53 }
 0x3ed   :  { %v775_v58 = vmul.f32 1.442695, %v766_v55 }
 0x3ef   :  { %3823 = vpow2.f32 %v775_v58 }
 0x3f3   :  { %v758_v59 = vpop.xlane.xlu0 %757 }
 0x3f4   :  { %v770_v61 = vsub.f32 %v738_v14, %v758_v59  ;;  %v755_v33 = vpop.xlane.xlu1 %754 }
 0x3f5   :  { %v769_v37 = vsub.f32 %v737_v50, %v755_v33 }
 0x3f6   :  { %v783_v30 = vmul.f32 1.442695, %v770_v61 }
 0x3f7   :  { %v743_v1 = vpop.xlane.xlu0 %742  ;;  %v781_v57 = vmul.f32 1.442695, %v769_v37 }
 0x3f8   :  { %3825 = vpow2.f32 %v783_v30  ;;  %v765_v47 = vsub.f32 %v733_v54, %v743_v1  ;;  %v1311_v30 = vmax.f32 %v4350_v24, 1e-24 }
 0x3f9   :  { %v4432_v2 = vpop.eup %3823 }
 0x3fa   :  { %v773_v3 = vmul.f32 1.442695, %v765_v47  ;;  %v792_v38 = vsel %vm212_vm1, %v4432_v2, 0.0 }
 0x3fb   :  { %v752_v4 = vpop.xlane.xlu0 %751  ;;  %793 = vadd.xlane.f32.xlu0 %v792_v38 }
 0x3fc   :  { %3827 = vpow2.f32 %v773_v3  ;;  %v768_v63 = vsub.f32 %v736_v29, %v752_v4  ;;  %v1237_v3 = vmax.f32 %v4358_v41, 1e-24 }
 0x3fd   :  { %3829 = vpow2.f32 %v781_v57 }
 0x3fe   :  { %v779_v22 = vmul.f32 1.442695, %v768_v63  ;;  %v1239_v63 = vmax.f32 %v4362_v43, 1e-24 }
 0x3ff   :  { %v749_v53 = vpop.xlane.xlu0 %748 }
 0x400   :  { %3831 = vpow2.f32 %v779_v22  ;;  %v767_v58 = vsub.f32 %v4408_v0, %v749_v53 }
 0x401   :  { %3833 = vrsqrt.f32 %v1310_v7 }
 0x402   :  { %v4436_v14 = vpop.eup %3825  ;;  %3835 = vrsqrt.f32 %v1233_v44  ;;  %v777_v61 = vmul.f32 1.442695, %v767_v58 }
 0x403   :  { %v804_v50 = vsel %vm212_vm1, %v4436_v14, 0.0  ;;  %3837 = vrsqrt.f32 %v1309_v45  ;;  %v764_v55 = vpop.xlane.xlu0 %763 }
 0x404   :  { %805 = vadd.xlane.f32.xlu0 %v804_v50  ;;  %v772_v59 = vsub.f32 %v4413_v36, %v764_v55  ;;  %3839 = vpow2.f32 %v777_v61  ;;  %v1234_v36 = vmax.f32 %v4344_v18, 1e-24 }
 0x406   :  { %v4440_v54 = vpop.eup %3827  ;;  %v787_v33 = vmul.f32 1.442695, %v772_v59 }
 0x407   :  { %v789_v5 = vsel %vm212_vm1, %v4440_v54, 0.0  ;;  %v4444_v6 = vpop.eup %3829  ;;  %v3745_v53 = vpop.permute.xlu0 %3744 }
 0x408   :  { %790 = vadd.xlane.f32.xlu1 %v789_v5  ;;  %v801_v48 = vsel %vm212_vm1, %v4444_v6, 0.0  ;;  %3841 = vpow2.f32 %v787_v33  ;;  %v3747_v61 = vunpack.i.h.bf16 %v3745_v53 }
 0x40a   :  { %v4447_v29 = vpop.eup %3831 }
 0x40b   :  { %v798_v46 = vsel %vm212_vm1, %v4447_v29, 0.0  ;;  %v3834_v51 = vpop.eup %3833 }
 0x40c   :  { %799 = vadd.xlane.f32.xlu0 %v798_v46  ;;  %802 = vadd.xlane.f32.xlu1 %v801_v48  ;;  %v3836_v12 = vpop.eup %3835  ;;  %v1326_v17 = vmul.f32 %v3834_v51, %v4147_v31 }
 0x40d   :  { %v3838_v16 = vpop.eup %3837  ;;  %v1249_v15 = vmul.f32 %v3836_v12, %v4123_v19  ;;  %v1312_v19 = vmax.f32 %v4348_v23, 1e-24  ;;  %v1235_v23 = vmax.f32 %v4354_v39, 1e-24  ;;  %v4481_v39 = vpop.permute.xlu1 %3749 }
 0x40e   :  { %v1325_v21 = vmul.f32 %v3838_v16, %v4135_v27  ;;  %v4464_v37 = vpop.eup %3839 }
 0x40f   :  { %3843 = vrsqrt.f32 %v1312_v19  ;;  %v795_v0 = vsel %vm212_vm1, %v4464_v37, 0.0 }
 0x410   :  { %v3753_v13 = vpack.i.bf16 %v1326_v17, %v1325_v21  ;;  %3845 = vrsqrt.f32 %v1311_v30 }
 0x411   :  { %3847 = vrsqrt.f32 %v1234_v36 }
 0x412   :  { %v4466_v1 = vpop.eup %3841  ;;  %3849 = vrsqrt.f32 %v1235_v23 }
 0x413   :  { %v810_v47 = vsel %vm212_vm1, %v4466_v1, 0.0  ;;  %3851 = vrsqrt.f32 %v1237_v3 }
 0x414   :  { %3853 = vrsqrt.f32 %v1239_v63 }
 0x419   :  { %v3844_v57 = vpop.eup %3843 }
 0x41a   :  { %v3846_v24 = vpop.eup %3845  ;;  %v1328_v4 = vmul.f32 %v3844_v57, %v4163_v35 }
 0x41b   :  { %v1327_v38 = vmul.f32 %v3846_v24, %v4153_v32  ;;  %v3848_v50 = vpop.eup %3847 }
 0x41c   :  { %v1250_v18 = vmul.f32 %v3848_v50, %v4125_v20  ;;  %v3850_v5 = vpop.eup %3849  ;;  %v3751_v50 = vunpack.i.l.bf16 %v4481_v39 }
 0x41d   :  { %1331 = vrot.lane.b32.xlu1 %v1249_v15, %s3986_s21  ;;  %v3758_v22 = vpack.i.bf16 %v1328_v4, %v1327_v38  ;;  %v1251_v41 = vmul.f32 %v3850_v5, %v4131_v26  ;;  %v3852_v7 = vpop.eup %3851  ;;  %v3212_v26 = vld [vmem:[%s5060_s15 + $0x1] ss:$0 sm:$0xff] }
 0x41e   :  { %v1253_v43 = vmul.f32 %v3852_v7, %v4135_v27  ;;  %v3854_v45 = vpop.eup %3853  ;;  %v1236_v27 = vmax.f32 %v4352_v25, 1e-24 }
 0x41f   :  { %v1255_v20 = vmul.f32 %v3854_v45, %v4153_v32  ;;  %v1238_v32 = vmax.f32 %v4356_v40, 1e-24 }
 0x422   :  { %3754 = vrot.lane.b32.xlu0 %v3753_v13, %s3985_s20 }
 0x429   :  { %v761_v44 = vpop.xlane.xlu1 %760 }
 0x42a   :  { %v771_v46 = vsub.f32 %v4427_v52, %v761_v44  ;;  %v1240_v52 = vmax.f32 %v4360_v42, 1e-24 }
 0x42c   :  { %v785_v48 = vmul.f32 1.442695, %v771_v46 }
 0x42e   :  { %3855 = vpow2.f32 %v785_v48 }
 0x42f   :  { %3857 = vrsqrt.f32 %v1236_v27 }
 0x430   :  { %3859 = vrsqrt.f32 %v1238_v32 }
 0x431   :  { %3861 = vrsqrt.f32 %v1240_v52 }
 0x438   :  { %v4493_v51 = vpop.eup %3855 }
 0x439   :  { %v807_v12 = vsel %vm212_vm1, %v4493_v51, 0.0  ;;  %v3858_v16 = vpop.eup %3857 }
 0x43a   :  { %v1252_v15 = vmul.f32 %v3858_v16, %v4137_v28  ;;  %v3860_v21 = vpop.eup %3859 }
 0x43b   :  { %v1254_v17 = vmul.f32 %v3860_v21, %v4147_v31  ;;  %v3862_v25 = vpop.eup %3861  ;;  %v3746_v31 = vunpack.i.l.bf16 %v3745_v53 }
 0x43c   :  { %v1256_v13 = vmul.f32 %v3862_v25, %v4163_v35  ;;  %v3213_v25 = vld [vmem:[%s5061_s13 + $0x10] sm:$0xff]  ;;  %s3988_s13 = smov 48  }
 0x441   :  { %811 = vadd.xlane.f32.xlu0 %v810_v47  ;;  %796 = vadd.xlane.f32.xlu1 %v795_v0  ;;  %v3618_v47 = vpack.c.bf16 %v3747_v61, %v3746_v31 }
 0x452   :  { %3759 = vrot.lane.b32.xlu1 %v3758_v22, %s3985_s20  ;;  %v3752_v22 = vunpack.i.h.bf16 %v4481_v39 }
 0x454   :  { %v3624_v7 = vpack.c.bf16 %v3752_v22, %v3751_v50 }
 0x457   :  { %1333 = vrot.lane.b32.xlu0 %v1250_v18, %s3986_s21 }
 0x45b   :  { %1426 = vrot.lane.b32.xlu0 %v1251_v41, %s3986_s21 }
 0x45f   :  { %1521 = vrot.lane.b32.xlu0 %v1253_v43, %s3986_s21 }
 0x463   :  { %1616 = vrot.lane.b32.xlu0 %v1255_v20, %s3986_s21 }
 0x467   :  { %1717 = vperm.xlu0 %3722, %v3212_v26  }
 0x476   :  { %808 = vadd.xlane.f32.xlu1 %v807_v12 }
 0x487   :  { %1428 = vrot.lane.b32.xlu1 %v1252_v15, %s3986_s21 }
 0x488   :  { %v794_v40 = vpop.xlane.xlu0 %793 }
 0x489   :  { %3863 = vrcp.f32 %v794_v40 }
 0x48b   :  { %1523 = vrot.lane.b32.xlu1 %v1254_v17, %s3986_s21 }
 0x48f   :  { %1618 = vrot.lane.b32.xlu1 %v1256_v13, %s3986_s21 }
 0x491   :  { %v806_v55 = vpop.xlane.xlu0 %805 }
 0x493   :  { %v3864_v28 = vpop.eup %3863 }
 0x494   :  { %v822_v35 = vmul.f32 %v3864_v28, %v4432_v2 }
 0x495   :  { %v791_v42 = vpop.xlane.xlu1 %790 }
 0x496   :  { %3865 = vrcp.f32 %v791_v42 }
 0x497   :  { %3867 = vrcp.f32 %v806_v55 }
 0x499   :  { %v803_v58 = vpop.xlane.xlu1 %802  ;;  %v800_v33 = vpop.xlane.xlu0 %799 }
 0x49a   :  { %3869 = vrcp.f32 %v803_v58 }
 0x49b   :  { %3871 = vrcp.f32 %v800_v33 }
 0x49d   :  { %v3755_v36 = vpop.permute.xlu0 %3754  ;;  %v1332_v24 = vpop.permute.xlu1 %1331 }
 0x49e   :  { %v3757_v2 = vunpack.i.h.bf16 %v3755_v36 }
 0x4a0   :  { %v3866_v59 = vpop.eup %3865 }
 0x4a1   :  { %v821_v19 = vmul.f32 %v3866_v59, %v4440_v54  ;;  %v3868_v30 = vpop.eup %3867  ;;  %v3756_v54 = vunpack.i.l.bf16 %v3755_v36 }
 0x4a2   :  { %v826_v23 = vmul.f32 %v3868_v30, %v4436_v14 }
 0x4a3   :  { %3422 = vmatprep.mubr.msk.f32.mxu0 %vm212_vm1, %v821_v19  ;;  %v3630_v3 = vpack.c.bf16 %v3757_v2, %v3756_v54 }
 0x4a4   :  { %3423 = vmatmul.mubr.msk.f32.vlgmr.msra.gmra.mrb[6].mxu0 %vm212_vm1, %v822_v35  ;;  %v3870_v0 = vpop.eup %3869 }
 0x4a5   :  { %3613 = vmatpush3.bf16.msra.mxu0 %v4364_v56  ;;  %v825_v57 = vmul.f32 %v3870_v0, %v4444_v6  ;;  %v3872_v4 = vpop.eup %3871 }
 0x4a6   :  { %3620 = vmatprep.subr.msk.bf16.mxu0 %vm4264_vm2, %v3618_v47  ;;  %v824_v41 = vmul.f32 %v3872_v4, %v4447_v29 }
 0x4a7   :  { %3436 = vmatprep.mubr.msk.f32.mxu0 %vm212_vm1, %v825_v57 }
 0x4a8   :  { %3437 = vmatmul.mubr.msk.f32.vlgmr.msra.gmra.mrb[8].mxu0 %vm212_vm1, %v826_v23 }
 0x4a9   :  { %3450 = vmatprep.mubr.msk.f32.mxu0 %vm212_vm1, %v1332_v24 }
 0x4ae   :  { %3623 = vmatpush3.bf16.xpose.msk.msra.mxu0 %vm4264_vm2, %v3618_v47 }
 0x4af   :  { %3632 = vmatprep.subr.msk.bf16.mxu0 %vm4264_vm2, %v3630_v3 }
 0x4ce   :  { %v812_v56 = vpop.xlane.xlu0 %811  ;;  %v797_v6 = vpop.xlane.xlu1 %796 }
 0x4cf   :  { %3873 = vrcp.f32 %v797_v6 }
 0x4d0   :  { %3875 = vrcp.f32 %v812_v56 }
 0x4d2   :  { %v1334_v14 = vpop.permute.xlu0 %1333  ;;  %v3760_v44 = vpop.permute.xlu1 %3759 }
 0x4d3   :  { %3451 = vmatmul.mubr.msk.f32.vlgmr.msra.gmra.mrb[10].mxu0 %vm212_vm1, %v1334_v14  ;;  %v3762_v46 = vunpack.i.h.bf16 %v3760_v44  ;;  %v3761_v20 = vunpack.i.l.bf16 %v3760_v44 }
 0x4d4   :  { %3635 = vmatpush3.bf16.xpose.msk.msra.mxu0 %vm4264_vm2, %v3630_v3 }
 0x4d6   :  { %v1427_v38 = vpop.permute.xlu0 %1426 }
 0x4d9   :  { %v3874_v63 = vpop.eup %3873 }
 0x4da   :  { %v1522_v18 = vpop.permute.xlu0 %1521  ;;  %v823_v5 = vmul.f32 %v3874_v63, %v4464_v37  ;;  %v3876_v37 = vpop.eup %3875 }
 0x4db   :  { %3464 = vmatprep.mubr.msk.f32.mxu0 %vm212_vm1, %v1522_v18  ;;  %v828_v26 = vmul.f32 %v3876_v37, %v4466_v1 }
 0x4dc   :  { %3429 = vmatprep.mubr.msk.f32.mxu1 %vm212_vm1, %v823_v5 }
 0x4dd   :  { %3430 = vmatmul.mubr.msk.f32.vlgmr.msra.gmra.mrb[10].mxu1 %vm212_vm1, %v824_v41 }
 0x4de   :  { %3617 = vmatpush3.bf16.msra.mxu1 %v4367_v60  ;;  %v3636_v60 = vpack.c.bf16 %v3762_v46, %v3761_v20  ;;  %v1617_v27 = vpop.permute.xlu0 %1616 }
 0x4df   :  { %3626 = vmatprep.subr.msk.bf16.mxu1 %vm4264_vm2, %v3624_v7 }
 0x4e6   :  { %v1718_v16 = vpop.permute.xlu0 %1717 }
 0x503   :  { %v809_v39 = vpop.xlane.xlu1 %808 }
 0x504   :  { %3877 = vrcp.f32 %v809_v39 }
 0x507   :  { %v1429_v43 = vpop.permute.xlu1 %1428 }
 0x50b   :  { %v1524_v45 = vpop.permute.xlu1 %1523 }
 0x50c   :  { %3465 = vmatmul.mubr.msk.f32.vlgmr.msra.gmra.mrb[12].mxu0 %vm212_vm1, %v1524_v45 }
 0x50e   :  { %v3878_v29 = vpop.eup %3877 }
 0x50f   :  { %v827_v48 = vmul.f32 %v3878_v29, %v4493_v51  ;;  %v1619_v1 = vpop.permute.xlu1 %1618 }
 0x511   :  { %3443 = vmatprep.mubr.msk.f32.mxu1 %vm212_vm1, %v827_v48 }
 0x512   :  { %3444 = vmatmul.mubr.msk.f32.vlgmr.msra.gmra.mrb[12].mxu1 %vm212_vm1, %v828_v26 }
 0x513   :  { %3629 = vmatpush3.bf16.xpose.msk.msra.mxu1 %vm4264_vm2, %v3624_v7  ;;  %3457 = vmatprep.mubr.msk.f32.mxu1 %vm212_vm1, %v1427_v38 }
 0x514   :  { %3638 = vmatprep.subr.msk.bf16.mxu1 %vm4264_vm2, %v3636_v60 }
 0x51a   :  { %3458 = vmatmul.mubr.msk.f32.vlgmr.msra.gmra.mrb[14].mxu1 %vm212_vm1, %v1429_v43 }
 0x51b   :  { %3641 = vmatpush3.bf16.xpose.msk.msra.mxu1 %vm4264_vm2, %v3636_v60  ;;  %3471 = vmatprep.mubr.msk.f32.mxu1 %vm212_vm1, %v1617_v27 }
 0x522   :  { %3472 = vmatmul.mubr.msk.f32.vlgmr.msra.gmra.mrb[16].mxu1 %vm212_vm1, %v1619_v1 }
 0x577   :  { %v4550_v51 = vpop.f32.mrb[6].mxu0 }
 0x578   :  { %v4552_v12 = vpop.f32.mrb[7].mxu0 }
 0x57b   :  { %v4554_v32 = vpop.f32.mrb[8].mxu0 }
 0x57c   :  { %v4556_v52 = vpop.f32.mrb[9].mxu0 }
 0x5a6   :  { %v3452_v15 = vpop.f32.mrb[10].mxu0 }
 0x5a7   :  { %v1721_v21 = vmul.f32 %v3452_v15, %v1718_v16  ;;  %v1415_v17 = vpop.f32.mrb[11].mxu0 }
 0x5a8   :  { %v1720_v13 = vmul.f32 %v1718_v16, %v1415_v17 }
 0x5a9   :  { %v1732_v53 = vadd.f32 %v3214_v34, %v1721_v21 }
 0x5aa   :  { %v1731_v40 = vadd.f32 %v3213_v25, %v1720_v13 }
 0x5ab   :  { %v1740_v42 = vadd.f32 %v1732_v53, %v4377_v62 }
 0x5ac   :  { %v1739_v55 = vadd.f32 %v1731_v40, %v4395_v49 }
 0x5ad   :  { %v1750_v58 = vsel %vm212_vm1, %v1740_v42, -inf }
 0x5ae   :  { %1751 = vmax.xlane.f32.xlu0 %v1750_v58  ;;  %v1747_v28 = vsel %vm212_vm1, %v1739_v55, -inf }
 0x5af   :  { %1748 = vmax.xlane.f32.xlu1 %v1747_v28 }
 0x5b0   :  { %v4568_v59 = vpop.f32.mrb[10].mxu1 }
 0x5b1   :  { %v4570_v61 = vpop.f32.mrb[11].mxu1 }
 0x5df   :  { %v3466_v31 = vpop.f32.mrb[12].mxu0 }
 0x5e0   :  { %v1605_v33 = vpop.f32.mrb[13].mxu0  ;;  %v1725_v30 = vmul.f32 %v3466_v31, %v1718_v16 }
 0x5e1   :  { %v1724_v47 = vmul.f32 %v1718_v16, %v1605_v33 }
 0x5e2   :  { %v1736_v2 = vadd.f32 %v3214_v34, %v1725_v30 }
 0x5e3   :  { %v1735_v24 = vadd.f32 %v3213_v25, %v1724_v47 }
 0x5e4   :  { %v1744_v38 = vadd.f32 %v1736_v2, %v4377_v62 }
 0x5e5   :  { %v4572_v19 = vpop.f32.mrb[12].mxu1  ;;  %v1743_v22 = vadd.f32 %v1735_v24, %v4395_v49 }
 0x5e6   :  { %v4574_v35 = vpop.f32.mrb[13].mxu1  ;;  %v1762_v7 = vsel %vm212_vm1, %v1744_v38, -inf }
 0x5e7   :  { %v1759_v39 = vsel %vm212_vm1, %v1743_v22, -inf }
 0x5ed   :  { %v3459_v0 = vpop.f32.mrb[14].mxu1 }
 0x5ee   :  { %v1723_v36 = vmul.f32 %v3459_v0, %v1718_v16  ;;  %v1510_v57 = vpop.f32.mrb[15].mxu1 }
 0x5ef   :  { %v1722_v23 = vmul.f32 %v1718_v16, %v1510_v57 }
 0x5f0   :  { %v1734_v54 = vadd.f32 %v3214_v34, %v1723_v36 }
 0x5f1   :  { %v1733_v3 = vadd.f32 %v3213_v25, %v1722_v23 }
 0x5f2   :  { %v1742_v56 = vadd.f32 %v1734_v54, %v4377_v62 }
 0x5f3   :  { %v1741_v6 = vadd.f32 %v1733_v3, %v4395_v49 }
 0x5f4   :  { %v1756_v14 = vsel %vm212_vm1, %v1742_v56, -inf }
 0x5f5   :  { %1757 = vmax.xlane.f32.xlu1 %v1756_v14  ;;  %v3473_v4 = vpop.f32.mrb[16].mxu1  ;;  %v1753_v63 = vsel %vm212_vm1, %v1741_v6, -inf }
 0x5f6   :  { %v1727_v50 = vmul.f32 %v3473_v4, %v1718_v16  ;;  %1754 = vmax.xlane.f32.xlu0 %v1753_v63  ;;  %v1700_v18 = vpop.f32.mrb[17].mxu1 }
 0x5f7   :  { %v1726_v5 = vmul.f32 %v1718_v16, %v1700_v18 }
 0x5f8   :  { %v1738_v41 = vadd.f32 %v3214_v34, %v1727_v50 }
 0x5f9   :  { %v1737_v44 = vadd.f32 %v3213_v25, %v1726_v5  ;;  %1763 = vmax.xlane.f32.xlu1 %v1762_v7 }
 0x5fa   :  { %1760 = vmax.xlane.f32.xlu0 %v1759_v39  ;;  %v1746_v43 = vadd.f32 %v1738_v41, %v4377_v62 }
 0x5fb   :  { %v1745_v45 = vadd.f32 %v1737_v44, %v4395_v49 }
 0x5fc   :  { %v1768_v37 = vsel %vm212_vm1, %v1746_v43, -inf }
 0x5fd   :  { %1769 = vmax.xlane.f32.xlu1 %v1768_v37  ;;  %v1765_v29 = vsel %vm212_vm1, %v1745_v45, -inf }
 0x5fe   :  { %1766 = vmax.xlane.f32.xlu0 %v1765_v29 }
 0x60e   :  { %3769 = vrot.lane.b32.xlu1 %v4325_v10, %s3988_s13 }
 0x614   :  { %3764 = vrot.lane.b32.xlu0 %v4316_v8, %s3988_s13 }
 0x63b   :  { %v1752_v46 = vpop.xlane.xlu0 %1751 }
 0x63c   :  { %v1772_v20 = vsub.f32 %v1740_v42, %v1752_v46  ;;  %v1749_v48 = vpop.xlane.xlu1 %1748 }
 0x63d   :  { %v1771_v26 = vsub.f32 %v1739_v55, %v1749_v48 }
 0x63e   :  { %v1781_v62 = vmul.f32 1.442695, %v1772_v20 }
 0x63f   :  { %v1779_v60 = vmul.f32 1.442695, %v1771_v26 }
 0x640   :  { %3879 = vpow2.f32 %v1781_v62 }
 0x641   :  { %3881 = vpow2.f32 %v1779_v60 }
 0x64a   :  { %v4592_v49 = vpop.eup %3879 }
 0x64b   :  { %v4594_v27 = vpop.eup %3881  ;;  %v1798_v1 = vsel %vm212_vm1, %v4592_v49, 0.0 }
 0x64c   :  { %1799 = vadd.xlane.f32.xlu1 %v1798_v1  ;;  %v1795_v10 = vsel %vm212_vm1, %v4594_v27, 0.0 }
 0x64d   :  { %1796 = vadd.xlane.f32.xlu0 %v1795_v10 }
 0x682   :  { %v1758_v8 = vpop.xlane.xlu1 %1757 }
 0x683   :  { %v1774_v16 = vsub.f32 %v1742_v56, %v1758_v8  ;;  %v1755_v15 = vpop.xlane.xlu0 %1754 }
 0x684   :  { %v1773_v34 = vsub.f32 %v1741_v6, %v1755_v15 }
 0x685   :  { %v1785_v21 = vmul.f32 1.442695, %v1774_v16 }
 0x686   :  { %v1783_v17 = vmul.f32 1.442695, %v1773_v34  ;;  %v1764_v25 = vpop.xlane.xlu1 %1763 }
 0x687   :  { %3883 = vpow2.f32 %v1785_v21  ;;  %v1776_v13 = vsub.f32 %v1744_v38, %v1764_v25  ;;  %v1761_v53 = vpop.xlane.xlu0 %1760 }
 0x688   :  { %3885 = vpow2.f32 %v1783_v17  ;;  %v1775_v40 = vsub.f32 %v1743_v22, %v1761_v53 }
 0x689   :  { %v1789_v42 = vmul.f32 1.442695, %v1776_v13 }
 0x68a   :  { %v1787_v55 = vmul.f32 1.442695, %v1775_v40  ;;  %v1770_v58 = vpop.xlane.xlu1 %1769 }
 0x68b   :  { %3887 = vpow2.f32 %v1789_v42  ;;  %v1778_v28 = vsub.f32 %v1746_v43, %v1770_v58  ;;  %v1767_v31 = vpop.xlane.xlu0 %1766 }
 0x68c   :  { %3889 = vpow2.f32 %v1787_v55  ;;  %v1777_v33 = vsub.f32 %v1745_v45, %v1767_v31  ;;  %v2223_v31 = vld [vmem:[%s5063_s3] sm:$0xff] }
 0x68d   :  { %v1793_v30 = vmul.f32 1.442695, %v1778_v28 }
 0x68e   :  { %v1791_v47 = vmul.f32 1.442695, %v1777_v33  ;;  %v3770_v0 = vpop.permute.xlu1 %3769  ;;  %v2224_v33 = vld [vmem:[%s5063_s3 + $0x8] sm:$0xff] }
 0x68f   :  { %3891 = vpow2.f32 %v1793_v30  ;;  %v3772_v36 = vunpack.i.h.bf16 %v3770_v0  ;;  %v3771_v57 = vunpack.i.l.bf16 %v3770_v0  ;;  %v3765_v23 = vpop.permute.xlu0 %3764  ;;  %v2225_v30 = vld [vmem:[%s5063_s3 + $0x10] sm:$0xff]  ;;  %v2226_v0 = vld [vmem:[%s5063_s3 + $0x18] sm:$0xff] }
 0x690   :  { %3893 = vpow2.f32 %v1791_v47  ;;  %v3767_v2 = vunpack.i.h.bf16 %v3765_v23  ;;  %v3766_v54 = vunpack.i.l.bf16 %v3765_v23  ;;  %v3658_v47 = vpack.c.bf16 %v2224_v33, %v2223_v31  ;;  %v2506_v33 = vld [vmem:[%s5065_s7] sm:$0xff] }
 0x691   :  { %v3884_v24 = vpop.eup %3883  ;;  %v3646_v3 = vpack.c.bf16 %v3772_v36, %v3771_v57  ;;  %v3662_v36 = vpack.c.bf16 %v2226_v0, %v2225_v30  ;;  %v2507_v30 = vld [vmem:[%s5065_s7 + $0x8] sm:$0xff]  ;;  %v2508_v0 = vld [vmem:[%s5065_s7 + $0x10] sm:$0xff] }
 0x692   :  { %v3886_v56 = vpop.eup %3885  ;;  %v3642_v6 = vpack.c.bf16 %v3767_v2, %v3766_v54  ;;  %v1804_v14 = vsel %vm212_vm1, %v3884_v24, 0.0 }
 0x693   :  { %1805 = vadd.xlane.f32.xlu1 %v1804_v14  ;;  %3647 = vmatprep.subr.bf16.mxu1 %v3646_v3  ;;  %v1801_v38 = vsel %vm212_vm1, %v3886_v56, 0.0 }
 0x694   :  { %3649 = vmatpush3.bf16.msra.mxu1 %v3646_v3  ;;  %1802 = vadd.xlane.f32.xlu0 %v1801_v38 }
 0x695   :  { %v3888_v4 = vpop.eup %3887  ;;  %3643 = vmatprep.subr.bf16.mxu0 %v3642_v6 }
 0x696   :  { %v3890_v63 = vpop.eup %3889  ;;  %3645 = vmatpush3.bf16.msra.mxu0 %v3642_v6  ;;  %v1810_v22 = vsel %vm212_vm1, %v3888_v4, 0.0 }
 0x697   :  { %1811 = vadd.xlane.f32.xlu1 %v1810_v22  ;;  %v1807_v50 = vsel %vm212_vm1, %v3890_v63, 0.0 }
 0x698   :  { %1808 = vadd.xlane.f32.xlu0 %v1807_v50 }
 0x699   :  { %v3892_v18 = vpop.eup %3891 }
 0x69a   :  { %v3894_v5 = vpop.eup %3893  ;;  %v1816_v41 = vsel %vm212_vm1, %v3892_v18, 0.0 }
 0x69b   :  { %1817 = vadd.xlane.f32.xlu1 %v1816_v41  ;;  %v1813_v7 = vsel %vm212_vm1, %v3894_v5, 0.0 }
 0x69c   :  { %1814 = vadd.xlane.f32.xlu0 %v1813_v7 }
 0x6ac   :  { %3774 = vrot.lane.b32.xlu1 %v4321_v9, %s3988_s13 }
 0x6b2   :  { %3779 = vrot.lane.b32.xlu0 %v4331_v11, %s3988_s13 }
 0x6d9   :  { %v1800_v44 = vpop.xlane.xlu1 %1799 }
 0x6da   :  { %3895 = vrcp.f32 %v1800_v44  ;;  %v1797_v39 = vpop.xlane.xlu0 %1796 }
 0x6db   :  { %3897 = vrcp.f32 %v1797_v39 }
 0x6e4   :  { %v3896_v43 = vpop.eup %3895 }
 0x6e5   :  { %v3898_v45 = vpop.eup %3897  ;;  %v1828_v29 = vmul.f32 %v3896_v43, %v4592_v49 }
 0x6e6   :  { %v1827_v37 = vmul.f32 %v3898_v45, %v4594_v27 }
 0x6e8   :  { %3478 = vmatprep.mubr.msk.f32.mxu0 %vm212_vm1, %v1827_v37 }
 0x6e9   :  { %3479 = vmatmul.mubr.msk.f32.vlgmr.msra.gmra.mrb[14].mxu0 %vm212_vm1, %v1828_v29 }
 0x720   :  { %v1806_v46 = vpop.xlane.xlu1 %1805 }
 0x721   :  { %3899 = vrcp.f32 %v1806_v46  ;;  %v1803_v9 = vpop.xlane.xlu0 %1802 }
 0x722   :  { %3901 = vrcp.f32 %v1803_v9 }
 0x724   :  { %v1812_v20 = vpop.xlane.xlu1 %1811 }
 0x725   :  { %3903 = vrcp.f32 %v1812_v20  ;;  %v1809_v11 = vpop.xlane.xlu0 %1808 }
 0x726   :  { %3905 = vrcp.f32 %v1809_v11 }
 0x728   :  { %v1818_v48 = vpop.xlane.xlu1 %1817 }
 0x729   :  { %3907 = vrcp.f32 %v1818_v48  ;;  %v1815_v26 = vpop.xlane.xlu0 %1814 }
 0x72a   :  { %3909 = vrcp.f32 %v1815_v26 }
 0x72b   :  { %v3900_v62 = vpop.eup %3899 }
 0x72c   :  { %v3902_v60 = vpop.eup %3901  ;;  %v3775_v27 = vpop.permute.xlu1 %3774  ;;  %v1830_v16 = vmul.f32 %v3900_v62, %v3884_v24 }
 0x72d   :  { %v3777_v49 = vunpack.i.h.bf16 %v3775_v27  ;;  %v3776_v1 = vunpack.i.l.bf16 %v3775_v27  ;;  %v3780_v10 = vpop.permute.xlu0 %3779  ;;  %v1829_v8 = vmul.f32 %v3902_v60, %v3886_v56 }
 0x72e   :  { %v3782_v15 = vunpack.i.h.bf16 %v3780_v10  ;;  %v3781_v34 = vunpack.i.l.bf16 %v3780_v10 }
 0x72f   :  { %v3904_v21 = vpop.eup %3903  ;;  %v3650_v17 = vpack.c.bf16 %v3777_v49, %v3776_v1  ;;  %3485 = vmatprep.mubr.msk.f32.mxu1 %vm212_vm1, %v1829_v8 }
 0x730   :  { %v3906_v25 = vpop.eup %3905  ;;  %v3654_v13 = vpack.c.bf16 %v3782_v15, %v3781_v34  ;;  %3486 = vmatmul.mubr.msk.f32.vlgmr.msra.gmra.mrb[18].mxu1 %vm212_vm1, %v1830_v16  ;;  %v1832_v42 = vmul.f32 %v3904_v21, %v3888_v4 }
 0x731   :  { %3651 = vmatprep.subr.bf16.mxu0 %v3650_v17  ;;  %v1831_v53 = vmul.f32 %v3906_v25, %v3890_v63 }
 0x732   :  { %3653 = vmatpush3.bf16.msra.mxu0 %v3650_v17  ;;  %3655 = vmatprep.subr.bf16.mxu1 %v3654_v13 }
 0x733   :  { %v3908_v40 = vpop.eup %3907  ;;  %3492 = vmatprep.mubr.msk.f32.mxu0 %vm212_vm1, %v1831_v53  ;;  %3657 = vmatpush3.bf16.msra.mxu1 %v3654_v13 }
 0x734   :  { %v3910_v55 = vpop.eup %3909  ;;  %v1834_v28 = vmul.f32 %v3908_v40, %v3892_v18  ;;  %3659 = vmatprep.subr.bf16.mxu0 %v3658_v47 }
 0x735   :  { %3493 = vmatmul.mubr.msk.f32.vlgmr.msra.gmra.mrb[16].mxu0 %vm212_vm1, %v1832_v42  ;;  %v1833_v58 = vmul.f32 %v3910_v55, %v3894_v5 }
 0x736   :  { %3661 = vmatpush3.bf16.msra.mxu0 %v3658_v47  ;;  %v3666_v47 = vpack.c.bf16 %v2507_v30, %v2506_v33 }
 0x737   :  { %3499 = vmatprep.mubr.msk.f32.mxu1 %vm212_vm1, %v1833_v58  ;;  %3663 = vmatprep.subr.bf16.mxu0 %v3662_v36 }
 0x738   :  { %3500 = vmatmul.mubr.msk.f32.vlgmr.msra.gmra.mrb[20].mxu1 %vm212_vm1, %v1834_v28  ;;  %3667 = vmatprep.subr.bf16.mxu1 %v3666_v47 }
 0x739   :  { %3669 = vmatpush3.bf16.msra.mxu1 %v3666_v47 }
 0x73a   :  { %3665 = vmatpush3.bf16.msra.mxu0 %v3662_v36  ;;  %v2509_v36 = vld [vmem:[%s5065_s7 + $0x18] sm:$0xff] }
 0x7bc   :  { %v3480_v57 = vpop.f32.mrb[14].mxu0 }
 0x7bd   :  { %2193 = vrot.lane.b32.xlu0 %v3480_v57, %s3989_s27  ;;  %v1913_v23 = vpop.f32.mrb[15].mxu0  ;;  %v3670_v57 = vpack.c.bf16 %v2509_v36, %v2508_v0 }
 0x7be   :  { %2191 = vrot.lane.b32.xlu1 %v1913_v23, %s3989_s27 }
 0x7bf   :  { %3671 = vmatprep.subr.bf16.mxu1 %v3670_v57 }
 0x7c0   :  { %3673 = vmatpush3.bf16.msra.mxu1 %v3670_v57 }
 0x803   :  { %v3487_v2 = vpop.f32.mrb[18].mxu1 }
 0x804   :  { %v2000_v54 = vpop.f32.mrb[19].mxu1  ;;  %2197 = vrot.lane.b32.xlu0 %v3487_v2, %s3989_s27 }
 0x805   :  { %2195 = vrot.lane.b32.xlu1 %v2000_v54, %s3989_s27 }
 0x808   :  { %v3494_v24 = vpop.f32.mrb[16].mxu0 }
 0x809   :  { %2201 = vrot.lane.b32.xlu0 %v3494_v24, %s3989_s27  ;;  %v2087_v3 = vpop.f32.mrb[17].mxu0 }
 0x80a   :  { %2199 = vrot.lane.b32.xlu1 %v2087_v3, %s3989_s27 }
 0x80b   :  { %v3501_v56 = vpop.f32.mrb[20].mxu1 }
 0x80c   :  { %v2174_v6 = vpop.f32.mrb[21].mxu1 }
 0x80d   :  { %2205 = vrot.lane.b32.xlu0 %v3501_v56, %s3989_s27 }
 0x80e   :  { %2203 = vrot.lane.b32.xlu1 %v2174_v6, %s3989_s27 }
 0x82f   :  { %v2194_v14 = vpop.permute.xlu0 %2193 }
 0x830   :  { %v2192_v38 = vpop.permute.xlu1 %2191  ;;  %v2216_v63 = vsel %vm212_vm1, %v4550_v51, %v2194_v14 }
 0x831   :  { %v2215_v4 = vsel %vm212_vm1, %v4552_v12, %v2192_v38 }
 0x832   :  { %3510 = vmatprep.mubr.msk.f32.mxu0 %vm72_vm0, %v2215_v4 }
 0x833   :  { %3511 = vmatmul.mubr.msk.f32.vlgmr.msra.gmra.mrb[18].mxu0 %vm72_vm0, %v2216_v63 }
 0x876   :  { %v2198_v22 = vpop.permute.xlu0 %2197 }
 0x877   :  { %v2196_v50 = vpop.permute.xlu1 %2195  ;;  %v2218_v5 = vsel %vm212_vm1, %v4568_v59, %v2198_v22 }
 0x878   :  { %v2217_v18 = vsel %vm212_vm1, %v4570_v61, %v2196_v50 }
 0x879   :  { %3513 = vmatprep.mubr.msk.f32.mxu0 %vm72_vm0, %v2217_v18 }
 0x87a   :  { %3514 = vmatmul.mubr.msk.f32.gmra.mrb[20].mxu0 %vm72_vm0, %v2218_v5 }
 0x87b   :  { %v2202_v12 = vpop.permute.xlu0 %2201 }
 0x87c   :  { %v2200_v41 = vpop.permute.xlu1 %2199  ;;  %v2220_v7 = vsel %vm212_vm1, %v4554_v32, %v2202_v12  ;;  %v3223_v32 = vld [vmem:[%s5064_s4] ss:$0 sm:$0xff] }
 0x87d   :  { %v2219_v51 = vsel %vm212_vm1, %v4556_v52, %v2200_v41 }
 0x87e   :  { %3516 = vmatprep.mubr.msk.f32.mxu0 %vm72_vm0, %v2219_v51 }
 0x87f   :  { %v2206_v44 = vpop.permute.xlu0 %2205  ;;  %3517 = vmatmul.mubr.msk.f32.gmra.mrb[22].mxu0 %vm72_vm0, %v2220_v7 }
 0x880   :  { %v2204_v61 = vpop.permute.xlu1 %2203  ;;  %v2222_v39 = vsel %vm212_vm1, %v4572_v19, %v2206_v44 }
 0x881   :  { %v2221_v59 = vsel %vm212_vm1, %v4574_v35, %v2204_v61 }
 0x882   :  { %3519 = vmatprep.mubr.msk.f32.mxu0 %vm72_vm0, %v2221_v59 }
 0x883   :  { %3520 = vmatmul.mubr.msk.f32.gmra.mrb[24].mxu0 %vm72_vm0, %v2222_v39 }
 0x906   :  { %v3512_v52 = vpop.f32.mrb[18].mxu0 }
 0x907   :  { %v2330_v43 = vadd.f32 %v3512_v52, %v3223_v32  ;;  %v2324_v45 = vpop.f32.mrb[19].mxu0 }
 0x908   :  { %v2325_v37 = vadd.f32 %v3223_v32, %v2324_v45 }
 0x909   :  { %v2368_v29 = vsel %vm72_vm0, %v2330_v43, 0.0 }
 0x90a   :  { %2369 = vadd.xlane.f32.xlu0 %v2368_v29  ;;  %v2365_v35 = vsel %vm72_vm0, %v2325_v37, 0.0 }
 0x90b   :  { %2366 = vadd.xlane.f32.xlu1 %v2365_v35 }
 0x94d   :  { %v3515_v46 = vpop.f32.mrb[20].mxu0 }
 0x94e   :  { %v2340_v19 = vadd.f32 %v3515_v46, %v3223_v32  ;;  %v2334_v9 = vpop.f32.mrb[21].mxu0 }
 0x94f   :  { %v2335_v20 = vadd.f32 %v3223_v32, %v2334_v9 }
 0x950   :  { %v2374_v11 = vsel %vm72_vm0, %v2340_v19, 0.0 }
 0x951   :  { %2375 = vadd.xlane.f32.xlu1 %v2374_v11  ;;  %v2371_v48 = vsel %vm72_vm0, %v2335_v20, 0.0 }
 0x952   :  { %v3518_v26 = vpop.f32.mrb[22].mxu0  ;;  %2372 = vadd.xlane.f32.xlu0 %v2371_v48 }
 0x953   :  { %v2350_v62 = vadd.f32 %v3518_v26, %v3223_v32  ;;  %v2344_v60 = vpop.f32.mrb[23].mxu0 }
 0x954   :  { %v2345_v27 = vadd.f32 %v3223_v32, %v2344_v60 }
 0x955   :  { %v2380_v49 = vsel %vm72_vm0, %v2350_v62, 0.0 }
 0x956   :  { %v3521_v1 = vpop.f32.mrb[24].mxu0  ;;  %2381 = vadd.xlane.f32.xlu1 %v2380_v49  ;;  %v2377_v10 = vsel %vm72_vm0, %v2345_v27, 0.0 }
 0x957   :  { %v2360_v8 = vadd.f32 %v3521_v1, %v3223_v32  ;;  %v2354_v16 = vpop.f32.mrb[25].mxu0  ;;  %2378 = vadd.xlane.f32.xlu0 %v2377_v10  ;;  %v4729_v1 = vld [vmem:[%s5067_s6] ss:$0 sm:$0xff] }
 0x958   :  { %v2355_v15 = vadd.f32 %v3223_v32, %v2354_v16 }
 0x959   :  { %v2386_v34 = vsel %vm72_vm0, %v2360_v8, 0.0 }
 0x95a   :  { %2387 = vadd.xlane.f32.xlu1 %v2386_v34  ;;  %v2383_v21 = vsel %vm72_vm0, %v2355_v15, 0.0  ;;  %v3975_v34 = vld [vmem:[%s5058_s0] sm:$0xff] }
 0x95b   :  { %2384 = vadd.xlane.f32.xlu0 %v2383_v21 }
 0x997   :  { %v2370_v17 = vpop.xlane.xlu0 %2369 }
 0x998   :  { %v2391_v25 = vmul.f32 0.03125, %v2370_v17  ;;  %v2367_v13 = vpop.xlane.xlu1 %2366  ;;  %v3976_v17 = vld [vmem:[%s5058_s0 + $0x8] sm:$0xff] }
 0x999   :  { %v2390_v53 = vmul.f32 0.03125, %v2367_v13 }
 0x99a   :  { %v4667_v40 = vsub.f32 %v2330_v43, %v2391_v25 }
 0x99b   :  { %v4669_v42 = vsub.f32 %v2325_v37, %v2390_v53 }
 0x99c   :  { %v2407_v55 = vmul.f32 %v4667_v40, %v4667_v40 }
 0x99d   :  { %v2406_v58 = vmul.f32 %v4669_v42, %v4669_v42 }
 0x99e   :  { %v2417_v28 = vsel %vm72_vm0, %v2407_v55, 0.0 }
 0x99f   :  { %2418 = vadd.xlane.f32.xlu1 %v2417_v28  ;;  %v2414_v31 = vsel %vm72_vm0, %v2406_v58, 0.0 }
 0x9a0   :  { %2415 = vadd.xlane.f32.xlu0 %v2414_v31 }
 0x9de   :  { %v2376_v23 = vpop.xlane.xlu1 %2375 }
 0x9df   :  { %v2393_v2 = vmul.f32 0.03125, %v2376_v23  ;;  %v2373_v54 = vpop.xlane.xlu0 %2372 }
 0x9e0   :  { %v2392_v24 = vmul.f32 0.03125, %v2373_v54 }
 0x9e1   :  { %v4689_v3 = vsub.f32 %v2340_v19, %v2393_v2 }
 0x9e2   :  { %v4691_v56 = vsub.f32 %v2335_v20, %v2392_v24 }
 0x9e3   :  { %v2382_v6 = vpop.xlane.xlu1 %2381  ;;  %v2409_v14 = vmul.f32 %v4689_v3, %v4689_v3 }
 0x9e4   :  { %v2395_v38 = vmul.f32 0.03125, %v2382_v6  ;;  %v2379_v4 = vpop.xlane.xlu0 %2378  ;;  %v2408_v63 = vmul.f32 %v4691_v56, %v4691_v56 }
 0x9e5   :  { %v2394_v22 = vmul.f32 0.03125, %v2379_v4  ;;  %v2423_v50 = vsel %vm72_vm0, %v2409_v14, 0.0 }
 0x9e6   :  { %v4698_v18 = vsub.f32 %v2350_v62, %v2395_v38  ;;  %2424 = vadd.xlane.f32.xlu1 %v2423_v50  ;;  %v2420_v5 = vsel %vm72_vm0, %v2408_v63, 0.0  ;;  %v4722_v62 = vld [vmem:[%s5066_s5] ss:$0 sm:$0xff] }
 0x9e7   :  { %v4701_v12 = vsub.f32 %v2345_v27, %v2394_v22  ;;  %2421 = vadd.xlane.f32.xlu0 %v2420_v5  ;;  %v2388_v41 = vpop.xlane.xlu1 %2387 }
 0x9e8   :  { %v2397_v51 = vmul.f32 0.03125, %v2388_v41  ;;  %v2385_v7 = vpop.xlane.xlu0 %2384  ;;  %v2411_v44 = vmul.f32 %v4698_v18, %v4698_v18 }
 0x9e9   :  { %v2396_v61 = vmul.f32 0.03125, %v2385_v7  ;;  %v2410_v59 = vmul.f32 %v4701_v12, %v4701_v12 }
 0x9ea   :  { %v4707_v39 = vsub.f32 %v2360_v8, %v2397_v51  ;;  %v2429_v32 = vsel %vm72_vm0, %v2411_v44, 0.0 }
 0x9eb   :  { %v4710_v52 = vsub.f32 %v2355_v15, %v2396_v61  ;;  %2430 = vadd.xlane.f32.xlu1 %v2429_v32  ;;  %v2426_v43 = vsel %vm72_vm0, %v2410_v59, 0.0  ;;  %v3978_v32 = vld [vmem:[%s5058_s0 + $0x18] sm:$0xff] }
 0x9ec   :  { %2427 = vadd.xlane.f32.xlu0 %v2426_v43  ;;  %v2413_v45 = vmul.f32 %v4707_v39, %v4707_v39 }
 0x9ed   :  { %v2412_v37 = vmul.f32 %v4710_v52, %v4710_v52 }
 0x9ee   :  { %v2435_v29 = vsel %vm72_vm0, %v2413_v45, 0.0 }
 0x9ef   :  { %2436 = vadd.xlane.f32.xlu1 %v2435_v29  ;;  %v2432_v35 = vsel %vm72_vm0, %v2412_v37, 0.0 }
 0x9f0   :  { %2433 = vadd.xlane.f32.xlu0 %v2432_v35 }
 0xa2c   :  { %v2419_v46 = vpop.xlane.xlu1 %2418 }
 0xa2d   :  { %v2439_v19 = vmul.f32 0.03125, %v2419_v46  ;;  %v2416_v9 = vpop.xlane.xlu0 %2415 }
 0xa2e   :  { %v2438_v20 = vmul.f32 0.03125, %v2416_v9 }
 0xa2f   :  { %v2447_v11 = vadd.f32 1e-05, %v2439_v19  ;;  %v3979_v19 = vld [vmem:[%s5058_s0 + $0x20] sm:$0xff] }
 0xa30   :  { %v2446_v48 = vadd.f32 1e-05, %v2438_v20  ;;  %v3980_v20 = vld [vmem:[%s5058_s0 + $0x28] sm:$0xff] }
 0xa31   :  { %3911 = vrsqrt.f32 %v2447_v11 }
 0xa32   :  { %3913 = vrsqrt.f32 %v2446_v48 }
 0xa3b   :  { %v3912_v26 = vpop.eup %3911 }
 0xa3c   :  { %v3914_v60 = vpop.eup %3913  ;;  %v2463_v27 = vmul.f32 %v3912_v26, %v4667_v40  ;;  %v3981_v26 = vld [vmem:[%s5058_s0 + $0x30] sm:$0xff] }
 0xa3d   :  { %v2462_v49 = vmul.f32 %v3914_v60, %v4669_v42  ;;  %v3982_v60 = vld [vmem:[%s5058_s0 + $0x38] sm:$0xff] }
 0xa3e   :  { %v2477_v10 = vmul.f32 %v4722_v62, %v2463_v27 }
 0xa3f   :  { %v2476_v8 = vmul.f32 %v4722_v62, %v2462_v49  ;;  %v2862_v49 = vld [vmem:[%s5068_s9] sm:$0xff] }
 0xa40   :  { %v2491_v16 = vadd.f32 %v4729_v1, %v2477_v10 }
 0xa41   :  { %v2490_v15 = vadd.f32 %v4729_v1, %v2476_v8  ;;  %v2864_v8 = vld [vmem:[%s5068_s9 + $0x10] sm:$0xff] }
 0xa42   :  { %v4743_v25 = vadd.f32 %v3976_v17, %v2491_v16  ;;  %v2865_v16 = vld [vmem:[%s5068_s9 + $0x18] sm:$0xff]  ;;  %v2867_v17 = vld [vmem:[%s5068_s9 + $0x28] sm:$0xff] }
 0xa43   :  { %v4738_v21 = vadd.f32 %v3975_v34, %v2490_v15  ;;  %v3678_v15 = vpack.c.bf16 %v2865_v16, %v2864_v8  ;;  %v2866_v34 = vld [vmem:[%s5068_s9 + $0x20] sm:$0xff] }
 0xa45   :  { %3530 = vmatprep.mubr.msk.f32.mxu1 %vm72_vm0, %v4738_v21 }
 0xa46   :  { %3531 = vmatmul.mubr.msk.f32.vlgmr.msra.gmra.mrb[22].mxu1 %vm72_vm0, %v4743_v25 }
 0xa73   :  { %v2425_v13 = vpop.xlane.xlu1 %2424 }
 0xa74   :  { %v2441_v53 = vmul.f32 0.03125, %v2425_v13  ;;  %v2422_v40 = vpop.xlane.xlu0 %2421  ;;  %v3682_v13 = vpack.c.bf16 %v2867_v17, %v2866_v34 }
 0xa75   :  { %v2440_v42 = vmul.f32 0.03125, %v2422_v40  ;;  %v2869_v40 = vld [vmem:[%s5068_s9 + $0x38] sm:$0xff] }
 0xa76   :  { %v2449_v55 = vadd.f32 1e-05, %v2441_v53  ;;  %v2868_v53 = vld [vmem:[%s5068_s9 + $0x30] sm:$0xff] }
 0xa77   :  { %v2448_v58 = vadd.f32 1e-05, %v2440_v42  ;;  %v3686_v42 = vpack.c.bf16 %v2869_v40, %v2868_v53 }
 0xa78   :  { %3915 = vrsqrt.f32 %v2449_v55  ;;  %v2431_v28 = vpop.xlane.xlu1 %2430  ;;  %v4836_v55 = vld [vmem:[%s5069_s8] ss:$0 sm:$0xff] }
 0xa79   :  { %3917 = vrsqrt.f32 %v2448_v58  ;;  %v2443_v31 = vmul.f32 0.03125, %v2431_v28  ;;  %v2428_v33 = vpop.xlane.xlu0 %2427 }
 0xa7a   :  { %v2442_v30 = vmul.f32 0.03125, %v2428_v33 }
 0xa7b   :  { %v2451_v47 = vadd.f32 1e-05, %v2443_v31 }
 0xa7c   :  { %v2450_v0 = vadd.f32 1e-05, %v2442_v30  ;;  %v2437_v36 = vpop.xlane.xlu1 %2436 }
 0xa7d   :  { %3919 = vrsqrt.f32 %v2451_v47  ;;  %v2445_v57 = vmul.f32 0.03125, %v2437_v36  ;;  %v2434_v23 = vpop.xlane.xlu0 %2433 }
 0xa7e   :  { %3921 = vrsqrt.f32 %v2450_v0  ;;  %v2444_v2 = vmul.f32 0.03125, %v2434_v23 }
 0xa7f   :  { %v2453_v54 = vadd.f32 1e-05, %v2445_v57 }
 0xa80   :  { %v2452_v24 = vadd.f32 1e-05, %v2444_v2 }
 0xa81   :  { %3923 = vrsqrt.f32 %v2453_v54 }
 0xa82   :  { %v3916_v6 = vpop.eup %3915  ;;  %3925 = vrsqrt.f32 %v2452_v24 }
 0xa83   :  { %v3918_v14 = vpop.eup %3917  ;;  %v2465_v38 = vmul.f32 %v3916_v6, %v4689_v3  ;;  %v3977_v3 = vld [vmem:[%s5058_s0 + $0x10] sm:$0xff] }
 0xa84   :  { %v2464_v4 = vmul.f32 %v3918_v14, %v4691_v56 }
 0xa85   :  { %v2479_v63 = vmul.f32 %v4722_v62, %v2465_v38 }
 0xa86   :  { %v2478_v22 = vmul.f32 %v4722_v62, %v2464_v4 }
 0xa87   :  { %v3920_v50 = vpop.eup %3919  ;;  %v2493_v5 = vadd.f32 %v4729_v1, %v2479_v63 }
 0xa88   :  { %v3922_v41 = vpop.eup %3921  ;;  %v2467_v51 = vmul.f32 %v3920_v50, %v4698_v18  ;;  %v2492_v7 = vadd.f32 %v4729_v1, %v2478_v22 }
 0xa89   :  { %v2466_v44 = vmul.f32 %v3922_v41, %v4701_v12  ;;  %v4766_v43 = vadd.f32 %v3978_v32, %v2493_v5 }
 0xa8a   :  { %v4760_v61 = vadd.f32 %v3977_v3, %v2492_v7  ;;  %v2481_v56 = vmul.f32 %v4722_v62, %v2467_v51 }
 0xa8b   :  { %v3924_v59 = vpop.eup %3923  ;;  %v2480_v18 = vmul.f32 %v4722_v62, %v2466_v44 }
 0xa8c   :  { %v3926_v45 = vpop.eup %3925  ;;  %v2469_v12 = vmul.f32 %v3924_v59, %v4707_v39  ;;  %3533 = vmatprep.mubr.msk.f32.mxu1 %vm72_vm0, %v4760_v61  ;;  %v2495_v37 = vadd.f32 %v4729_v1, %v2481_v56 }
 0xa8d   :  { %v2468_v29 = vmul.f32 %v3926_v45, %v4710_v52  ;;  %3534 = vmatmul.mubr.msk.f32.gmra.mrb[24].mxu1 %vm72_vm0, %v4766_v43  ;;  %v2494_v35 = vadd.f32 %v4729_v1, %v2480_v18 }
 0xa8e   :  { %v2483_v46 = vmul.f32 %v4722_v62, %v2469_v12  ;;  %v4787_v52 = vadd.f32 %v3980_v20, %v2495_v37 }
 0xa8f   :  { %v4781_v9 = vadd.f32 %v3979_v19, %v2494_v35  ;;  %v2482_v39 = vmul.f32 %v4722_v62, %v2468_v29 }
 0xa90   :  { %v2497_v11 = vadd.f32 %v4729_v1, %v2483_v46 }
 0xa91   :  { %3536 = vmatprep.mubr.msk.f32.mxu1 %vm72_vm0, %v4781_v9  ;;  %v2496_v48 = vadd.f32 %v4729_v1, %v2482_v39  ;;  %v2863_v1 = vld [vmem:[%s5068_s9 + $0x8] sm:$0xff] }
 0xa92   :  { %3537 = vmatmul.mubr.msk.f32.gmra.mrb[26].mxu1 %vm72_vm0, %v4787_v52  ;;  %v4803_v27 = vadd.f32 %v3982_v60, %v2497_v11  ;;  %v3674_v10 = vpack.c.bf16 %v2863_v1, %v2862_v49  ;;  %v3990_v49 = vmov 1.0  }
 0xa93   :  { %v4798_v62 = vadd.f32 %v3981_v26, %v2496_v48 }
 0xa94   :  { %3675 = vmatprep.subr.bf16.mxu0 %v3674_v10 }
 0xa95   :  { %3539 = vmatprep.mubr.msk.f32.mxu1 %vm72_vm0, %v4798_v62  ;;  %3677 = vmatpush3.bf16.msra.mxu0 %v3674_v10 }
 0xa96   :  { %3540 = vmatmul.mubr.msk.f32.gmra.mrb[28].mxu1 %vm72_vm0, %v4803_v27  ;;  %3679 = vmatprep.subr.bf16.mxu0 %v3678_v15 }
 0xa99   :  { %3681 = vmatpush3.bf16.msra.mxu0 %v3678_v15 }
 0xa9a   :  { %3683 = vmatprep.subr.bf16.mxu0 %v3682_v13 }
 0xa9d   :  { %3685 = vmatpush3.bf16.msra.mxu0 %v3682_v13 }
 0xa9e   :  { %3687 = vmatprep.subr.bf16.mxu0 %v3686_v42 }
 0xaa1   :  { %3689 = vmatpush3.bf16.msra.mxu0 %v3686_v42 }
 0xb19   :  { %v3532_v58 = vpop.f32.mrb[22].mxu1 }
 0xb1a   :  { %v2613_v28 = vadd.f32 %v3532_v58, %v4836_v55  ;;  %v2607_v31 = vpop.f32.mrb[23].mxu1 }
 0xb1b   :  { %v2608_v33 = vadd.f32 %v4836_v55, %v2607_v31 }
 0xb1c   :  { %v2655_v30 = vmul.f32 0.70710677, %v2613_v28  ;;  %v2647_v53 = vmul.f32 0.5, %v2613_v28 }
 0xb1d   :  { %v2654_v47 = vmul.f32 0.70710677, %v2608_v33  ;;  %v2646_v17 = vmul.f32 0.5, %v2608_v33 }
 0xb1e   :  { %v2679_v0 = vand.u32 2147483647, %v2655_v30  ;;  %vm2663_vm3 = vcmp.lt.f32.partialorder %v2655_v30, 0.0 }
 0xb1f   :  { %v2678_v36 = vand.u32 2147483647, %v2654_v47  ;;  %vm2662_vm4 = vcmp.lt.f32.partialorder %v2654_v47, 0.0  ;;  %v2671_v1 = vsel %vm2663_vm3, -1.0, %v3990_v49 }
 0xb20   :  { %v2687_v57 = vmul.f32 0.3275911, %v2679_v0  ;;  %v2791_v24 = vsub.f32 0.0, %v2679_v0  ;;  %v2670_v16 = vsel %vm2662_vm4, -1.0, %v3990_v49 }
 0xb21   :  { %v2686_v23 = vmul.f32 0.3275911, %v2678_v36  ;;  %v2790_v6 = vsub.f32 0.0, %v2678_v36 }
 0xb22   :  { %v2695_v2 = vadd.f32 1.0, %v2687_v57  ;;  %v2799_v38 = vmul.f32 %v2791_v24, %v2679_v0 }
 0xb23   :  { %v2694_v54 = vadd.f32 1.0, %v2686_v23  ;;  %v2798_v22 = vmul.f32 %v2790_v6, %v2678_v36 }
 0xb24   :  { %3927 = vrcp.f32 %v2695_v2  ;;  %v2808_v41 = vmul.f32 1.442695, %v2799_v38 }
 0xb25   :  { %3929 = vrcp.f32 %v2694_v54  ;;  %v2806_v44 = vmul.f32 1.442695, %v2798_v22 }
 0xb26   :  { %3931 = vpow2.f32 %v2808_v41 }
 0xb27   :  { %3933 = vpow2.f32 %v2806_v44 }
 0xb2e   :  { %v3928_v14 = vpop.eup %3927 }
 0xb2f   :  { %v3930_v4 = vpop.eup %3929  ;;  %v2719_v63 = vmul.f32 1.0614054, %v3928_v14 }
 0xb30   :  { %v2718_v50 = vmul.f32 1.0614054, %v3930_v4  ;;  %v3932_v39 = vpop.eup %3931 }
 0xb31   :  { %v2727_v5 = vadd.f32 -1.4531521, %v2719_v63  ;;  %v3934_v11 = vpop.eup %3933 }
 0xb32   :  { %v2726_v51 = vadd.f32 -1.4531521, %v2718_v50 }
 0xb33   :  { %v2735_v7 = vmul.f32 %v3928_v14, %v2727_v5 }
 0xb34   :  { %v2734_v3 = vmul.f32 %v3930_v4, %v2726_v51 }
 0xb35   :  { %v2743_v56 = vadd.f32 1.4214138, %v2735_v7 }
 0xb36   :  { %v2742_v59 = vadd.f32 1.4214138, %v2734_v3 }
 0xb37   :  { %v2751_v32 = vmul.f32 %v3928_v14, %v2743_v56 }
 0xb38   :  { %v2750_v18 = vmul.f32 %v3930_v4, %v2742_v59 }
 0xb39   :  { %v2759_v45 = vadd.f32 -0.28449672, %v2751_v32 }
 0xb3a   :  { %v2758_v12 = vadd.f32 -0.28449672, %v2750_v18 }
 0xb3b   :  { %v2767_v37 = vmul.f32 %v3928_v14, %v2759_v45 }
 0xb3c   :  { %v2766_v29 = vmul.f32 %v3930_v4, %v2758_v12 }
 0xb3d   :  { %v2775_v35 = vadd.f32 0.2548296, %v2767_v37 }
 0xb3e   :  { %v2774_v46 = vadd.f32 0.2548296, %v2766_v29 }
 0xb3f   :  { %v2783_v19 = vmul.f32 %v3928_v14, %v2775_v35 }
 0xb40   :  { %v2782_v20 = vmul.f32 %v3930_v4, %v2774_v46 }
 0xb41   :  { %v2823_v48 = vmul.f32 %v3932_v39, %v2783_v19 }
 0xb42   :  { %v2822_v26 = vmul.f32 %v3934_v11, %v2782_v20 }
 0xb43   :  { %v2831_v60 = vsub.f32 1.0, %v2823_v48 }
 0xb44   :  { %v2830_v10 = vsub.f32 1.0, %v2822_v26 }
 0xb45   :  { %v2839_v8 = vmul.f32 %v2831_v60, %v2671_v1 }
 0xb46   :  { %v2838_v15 = vmul.f32 %v2830_v10, %v2670_v16 }
 0xb47   :  { %v2847_v34 = vadd.f32 1.0, %v2839_v8 }
 0xb48   :  { %v2846_v13 = vadd.f32 1.0, %v2838_v15 }
 0xb49   :  { %v2855_v42 = vmul.f32 %v2847_v34, %v2647_v53 }
 0xb4a   :  { %v2854_v40 = vmul.f32 %v2846_v13, %v2646_v17 }
 0xb4c   :  { %3558 = vmatprep.mubr.msk.f32.mxu0 %vm2877_vm5, %v2854_v40 }
 0xb4d   :  { %3559 = vmatmul.mubr.msk.f32.vlgmr.msra.gmra.mrb[26].mxu0 %vm2877_vm5, %v2855_v42 }
 0xb60   :  { %v3535_v58 = vpop.f32.mrb[24].mxu1 }
 0xb61   :  { %v4845_v31 = vadd.f32 %v3535_v58, %v4836_v55  ;;  %v2617_v30 = vpop.f32.mrb[25].mxu1 }
 0xb62   :  { %v4848_v47 = vadd.f32 %v4836_v55, %v2617_v30 }
 0xb63   :  { %v4851_v0 = vmul.f32 0.70710677, %v4845_v31 }
 0xb64   :  { %v4854_v28 = vmul.f32 0.70710677, %v4848_v47 }
 0xb65   :  { %v2681_v33 = vand.u32 2147483647, %v4851_v0  ;;  %v3538_v36 = vpop.f32.mrb[26].mxu1  ;;  %vm2665_vm6 = vcmp.lt.f32.partialorder %v4851_v0, 0.0  ;;  %v2649_v0 = vmul.f32 0.5, %v4845_v31 }
 0xb66   :  { %v2680_v57 = vand.u32 2147483647, %v4854_v28  ;;  %v4859_v23 = vadd.f32 %v3538_v36, %v4836_v55  ;;  %v2627_v2 = vpop.f32.mrb[27].mxu1  ;;  %vm2664_vm7 = vcmp.lt.f32.partialorder %v4854_v28, 0.0 }
 0xb67   :  { %v2689_v54 = vmul.f32 0.3275911, %v2681_v33  ;;  %v4862_v24 = vadd.f32 %v4836_v55, %v2627_v2  ;;  %v2793_v32 = vsub.f32 0.0, %v2681_v33 }
 0xb68   :  { %v2688_v6 = vmul.f32 0.3275911, %v2680_v57  ;;  %v4865_v14 = vmul.f32 0.70710677, %v4859_v23  ;;  %v2792_v37 = vsub.f32 0.0, %v2680_v57 }
 0xb69   :  { %v2697_v38 = vadd.f32 1.0, %v2689_v54  ;;  %v4868_v4 = vmul.f32 0.70710677, %v4862_v24  ;;  %v3541_v63 = vpop.f32.mrb[28].mxu1  ;;  %v2801_v46 = vmul.f32 %v2793_v32, %v2681_v33 }
 0xb6a   :  { %v2696_v22 = vadd.f32 1.0, %v2688_v6  ;;  %v2683_v50 = vand.u32 2147483647, %v4865_v14  ;;  %v2637_v5 = vpop.f32.mrb[29].mxu1  ;;  %v4873_v7 = vadd.f32 %v3541_v63, %v4836_v55  ;;  %v2800_v26 = vmul.f32 %v2792_v37, %v2680_v57 }
 0xb6b   :  { %3935 = vrcp.f32 %v2697_v38  ;;  %v2682_v51 = vand.u32 2147483647, %v4868_v4  ;;  %v4876_v3 = vadd.f32 %v4836_v55, %v2637_v5  ;;  %v2812_v8 = vmul.f32 1.442695, %v2801_v46 }
 0xb6c   :  { %3937 = vrcp.f32 %v2696_v22  ;;  %v2691_v41 = vmul.f32 0.3275911, %v2683_v50  ;;  %v4879_v59 = vmul.f32 0.70710677, %v4873_v7  ;;  %v2795_v39 = vsub.f32 0.0, %v2683_v50 }
 0xb6d   :  { %v2690_v56 = vmul.f32 0.3275911, %v2682_v51  ;;  %v4882_v18 = vmul.f32 0.70710677, %v4876_v3  ;;  %v2794_v34 = vsub.f32 0.0, %v2682_v51  ;;  %vm2667_vm8 = vcmp.lt.f32.partialorder %v4865_v14, 0.0 }
 0xb6e   :  { %v2699_v44 = vadd.f32 1.0, %v2691_v41  ;;  %v2685_v12 = vand.u32 2147483647, %v4879_v59  ;;  %v2803_v15 = vmul.f32 %v2795_v39, %v2683_v50  ;;  %v2810_v53 = vmul.f32 1.442695, %v2800_v26 }
 0xb6f   :  { %v2698_v45 = vadd.f32 1.0, %v2690_v56  ;;  %v2684_v29 = vand.u32 2147483647, %v4882_v18  ;;  %v2802_v54 = vmul.f32 %v2794_v34, %v2682_v51  ;;  %vm2666_vm9 = vcmp.lt.f32.partialorder %v4868_v4, 0.0 }
 0xb70   :  { %3939 = vrcp.f32 %v2699_v44  ;;  %v2693_v35 = vmul.f32 0.3275911, %v2685_v12  ;;  %v2797_v58 = vsub.f32 0.0, %v2685_v12  ;;  %v2816_v2 = vmul.f32 1.442695, %v2803_v15 }
 0xb71   :  { %3941 = vrcp.f32 %v2698_v45  ;;  %v2692_v55 = vmul.f32 0.3275911, %v2684_v29  ;;  %v2796_v63 = vsub.f32 0.0, %v2684_v29  ;;  %v2814_v37 = vmul.f32 1.442695, %v2802_v54 }
 0xb72   :  { %v2701_v20 = vadd.f32 1.0, %v2693_v35  ;;  %v2805_v5 = vmul.f32 %v2797_v58, %v2685_v12  ;;  %vm2669_vm10 = vcmp.lt.f32.partialorder %v4879_v59, 0.0  ;;  %vm2668_vm11 = vcmp.lt.f32.partialorder %v4882_v18, 0.0 }
 0xb73   :  { %v2700_v60 = vadd.f32 1.0, %v2692_v55  ;;  %v2804_v39 = vmul.f32 %v2796_v63, %v2684_v29  ;;  %v2676_v59 = vsel %vm2668_vm11, -1.0, %v3990_v49  ;;  %v2652_v18 = vmul.f32 0.5, %v4876_v3 }
 0xb74   :  { %3943 = vrcp.f32 %v2701_v20  ;;  %v2820_v12 = vmul.f32 1.442695, %v2805_v5  ;;  %v2673_v5 = vsel %vm2665_vm6, -1.0, %v3990_v49 }
 0xb75   :  { %v3936_v19 = vpop.eup %3935  ;;  %3945 = vrcp.f32 %v2700_v60  ;;  %v2818_v29 = vmul.f32 1.442695, %v2804_v39 }
 0xb76   :  { %v3938_v11 = vpop.eup %3937  ;;  %v2721_v48 = vmul.f32 1.0614054, %v3936_v19  ;;  %3947 = vpow2.f32 %v2812_v8 }
 0xb77   :  { %v2720_v1 = vmul.f32 1.0614054, %v3938_v11  ;;  %3949 = vpow2.f32 %v2810_v53 }
 0xb78   :  { %v2729_v10 = vadd.f32 -1.4531521, %v2721_v48  ;;  %3951 = vpow2.f32 %v2816_v2 }
 0xb79   :  { %v2728_v16 = vadd.f32 -1.4531521, %v2720_v1  ;;  %3953 = vpow2.f32 %v2814_v37  ;;  %v2672_v37 = vsel %vm2664_vm7, -1.0, %v3990_v49 }
 0xb7a   :  { %v4886_v17 = vpop.eup %3939  ;;  %v2737_v13 = vmul.f32 %v3936_v19, %v2729_v10  ;;  %3955 = vpow2.f32 %v2820_v12 }
 0xb7b   :  { %v2736_v40 = vmul.f32 %v3938_v11, %v2728_v16  ;;  %v2723_v42 = vmul.f32 1.0614054, %v4886_v17  ;;  %v4889_v33 = vpop.eup %3941  ;;  %3957 = vpow2.f32 %v2818_v29 }
 0xb7c   :  { %v2745_v30 = vadd.f32 1.4214138, %v2737_v13  ;;  %v2722_v38 = vmul.f32 1.0614054, %v4889_v33 }
 0xb7d   :  { %v2744_v36 = vadd.f32 1.4214138, %v2736_v40  ;;  %v2731_v57 = vadd.f32 -1.4531521, %v2723_v42 }
 0xb7e   :  { %v2753_v6 = vmul.f32 %v3936_v19, %v2745_v30  ;;  %v2730_v44 = vadd.f32 -1.4531521, %v2722_v38  ;;  %v4893_v56 = vpop.eup %3943 }
 0xb7f   :  { %v2752_v22 = vmul.f32 %v3938_v11, %v2744_v36  ;;  %v2739_v50 = vmul.f32 %v4886_v17, %v2731_v57  ;;  %v4895_v35 = vpop.eup %3945  ;;  %v2725_v55 = vmul.f32 1.0614054, %v4893_v56 }
 0xb80   :  { %v2761_v41 = vadd.f32 -0.28449672, %v2753_v6  ;;  %v2738_v46 = vmul.f32 %v4889_v33, %v2730_v44  ;;  %v2724_v26 = vmul.f32 1.0614054, %v4895_v35  ;;  %v3948_v34 = vpop.eup %3947 }
 0xb81   :  { %v2760_v32 = vadd.f32 -0.28449672, %v2752_v22  ;;  %v2747_v45 = vadd.f32 1.4214138, %v2739_v50  ;;  %v2733_v10 = vadd.f32 -1.4531521, %v2725_v55  ;;  %v3950_v36 = vpop.eup %3949 }
 0xb82   :  { %v2769_v51 = vmul.f32 %v3936_v19, %v2761_v41  ;;  %v2746_v1 = vadd.f32 1.4214138, %v2738_v46  ;;  %v2732_v15 = vadd.f32 -1.4531521, %v2724_v26 }
 0xb83   :  { %v2768_v20 = vmul.f32 %v3938_v11, %v2760_v32  ;;  %v2755_v48 = vmul.f32 %v4886_v17, %v2747_v45  ;;  %v2741_v40 = vmul.f32 %v4893_v56, %v2733_v10 }
 0xb84   :  { %v2777_v60 = vadd.f32 0.2548296, %v2769_v51  ;;  %v2754_v53 = vmul.f32 %v4889_v33, %v2746_v1  ;;  %v2740_v30 = vmul.f32 %v4895_v35, %v2732_v15 }
 0xb85   :  { %v2776_v8 = vadd.f32 0.2548296, %v2768_v20  ;;  %v2763_v16 = vadd.f32 -0.28449672, %v2755_v48  ;;  %v2749_v54 = vadd.f32 1.4214138, %v2741_v40 }
 0xb86   :  { %v2785_v13 = vmul.f32 %v3936_v19, %v2777_v60  ;;  %v2762_v2 = vadd.f32 -0.28449672, %v2754_v53  ;;  %v2748_v38 = vadd.f32 1.4214138, %v2740_v30  ;;  %v2648_v60 = vmul.f32 0.5, %v4848_v47 }
 0xb87   :  { %v2784_v42 = vmul.f32 %v3938_v11, %v2776_v8  ;;  %v2771_v58 = vmul.f32 %v4886_v17, %v2763_v16  ;;  %v2757_v50 = vmul.f32 %v4893_v56, %v2749_v54  ;;  %v3952_v11 = vpop.eup %3951  ;;  %v2675_v8 = vsel %vm2667_vm8, -1.0, %v3990_v49 }
 0xb88   :  { %v2825_v57 = vmul.f32 %v3948_v34, %v2785_v13  ;;  %v2770_v22 = vmul.f32 %v4889_v33, %v2762_v2  ;;  %v2756_v32 = vmul.f32 %v4895_v35, %v2748_v38  ;;  %v3954_v26 = vpop.eup %3953  ;;  %v2674_v47 = vsel %vm2666_vm9, -1.0, %v3990_v49 }
 0xb89   :  { %v2824_v6 = vmul.f32 %v3950_v36, %v2784_v42  ;;  %v2779_v19 = vadd.f32 0.2548296, %v2771_v58  ;;  %v2765_v46 = vadd.f32 -0.28449672, %v2757_v50  ;;  %v3956_v40 = vpop.eup %3955  ;;  %v2651_v54 = vmul.f32 0.5, %v4859_v23 }
 0xb8a   :  { %v2833_v63 = vsub.f32 1.0, %v2825_v57  ;;  %v2778_v51 = vadd.f32 0.2548296, %v2770_v22  ;;  %v2764_v20 = vadd.f32 -0.28449672, %v2756_v32  ;;  %v3958_v42 = vpop.eup %3957 }
 0xb8b   :  { %v2832_v41 = vsub.f32 1.0, %v2824_v6  ;;  %v2787_v44 = vmul.f32 %v4886_v17, %v2779_v19  ;;  %v2773_v17 = vmul.f32 %v4893_v56, %v2765_v46 }
 0xb8c   :  { %v2841_v45 = vmul.f32 %v2833_v63, %v2673_v5  ;;  %v2786_v12 = vmul.f32 %v4889_v33, %v2778_v51  ;;  %v2772_v10 = vmul.f32 %v4895_v35, %v2764_v20 }
 0xb8d   :  { %v2840_v55 = vmul.f32 %v2832_v41, %v2672_v37  ;;  %v2827_v39 = vmul.f32 %v3952_v11, %v2787_v44  ;;  %v2781_v16 = vadd.f32 0.2548296, %v2773_v17 }
 0xb8e   :  { %v2849_v48 = vadd.f32 1.0, %v2841_v45  ;;  %v2826_v14 = vmul.f32 %v3954_v26, %v2786_v12  ;;  %v2780_v34 = vadd.f32 0.2548296, %v2772_v10 }
 0xb8f   :  { %v2848_v1 = vadd.f32 1.0, %v2840_v55  ;;  %v2835_v28 = vsub.f32 1.0, %v2827_v39  ;;  %v2789_v53 = vmul.f32 %v4893_v56, %v2781_v16  ;;  %v2650_v56 = vmul.f32 0.5, %v4862_v24 }
 0xb90   :  { %v2857_v13 = vmul.f32 %v2849_v48, %v2649_v0  ;;  %v2834_v33 = vsub.f32 1.0, %v2826_v14  ;;  %v2788_v29 = vmul.f32 %v4895_v35, %v2780_v34  ;;  %v2677_v35 = vsel %vm2669_vm10, -1.0, %v3990_v49  ;;  %v3243_v49 = vld [vmem:[%s5070_s10] ss:$0 sm:$0xff] }
 0xb91   :  { %v2856_v15 = vmul.f32 %v2848_v1, %v2648_v60  ;;  %v2843_v31 = vmul.f32 %v2835_v28, %v2675_v8  ;;  %v2829_v4 = vmul.f32 %v3956_v40, %v2789_v53  ;;  %v2653_v24 = vmul.f32 0.5, %v4873_v7 }
 0xb92   :  { %v2842_v58 = vmul.f32 %v2834_v33, %v2674_v47  ;;  %v2828_v36 = vmul.f32 %v3958_v42, %v2788_v29 }
 0xb93   :  { %3561 = vmatprep.mubr.msk.f32.mxu0 %vm2877_vm5, %v2856_v15  ;;  %v2851_v30 = vadd.f32 1.0, %v2843_v31  ;;  %v2837_v2 = vsub.f32 1.0, %v2829_v4 }
 0xb94   :  { %3562 = vmatmul.mubr.msk.f32.gmra.mrb[28].mxu0 %vm2877_vm5, %v2857_v13  ;;  %v2850_v57 = vadd.f32 1.0, %v2842_v58  ;;  %v2836_v6 = vsub.f32 1.0, %v2828_v36 }
 0xb95   :  { %v2845_v38 = vmul.f32 %v2837_v2, %v2677_v35  ;;  %v2859_v63 = vmul.f32 %v2851_v30, %v2651_v54 }
 0xb96   :  { %v2858_v19 = vmul.f32 %v2850_v57, %v2650_v56  ;;  %v2844_v22 = vmul.f32 %v2836_v6, %v2676_v59 }
 0xb97   :  { %v2853_v50 = vadd.f32 1.0, %v2845_v38 }
 0xb98   :  { %3564 = vmatprep.mubr.msk.f32.mxu0 %vm2877_vm5, %v2858_v19  ;;  %v2852_v11 = vadd.f32 1.0, %v2844_v22 }
 0xb99   :  { %3565 = vmatmul.mubr.msk.f32.gmra.mrb[30].mxu0 %vm2877_vm5, %v2859_v63  ;;  %v2861_v5 = vmul.f32 %v2853_v50, %v2653_v24 }
 0xb9a   :  { %v2860_v23 = vmul.f32 %v2852_v11, %v2652_v18 }
 0xb9c   :  { %3567 = vmatprep.mubr.msk.f32.mxu0 %vm2877_vm5, %v2860_v23 }
 0xb9d   :  { %3568 = vmatmul.mubr.msk.f32.gmra.mrb[32].mxu0 %vm2877_vm5, %v2861_v5 }
 0xc20   :  { %v3560_v41 = vpop.f32.mrb[26].mxu0 }
 0xc21   :  { %v2974_v44 = vadd.f32 %v3560_v41, %v3243_v49  ;;  %v2968_v32 = vpop.f32.mrb[27].mxu0 }
 0xc22   :  { %v2969_v45 = vadd.f32 %v3243_v49, %v2968_v32 }
 0xc23   :  { %v3012_v3 = vsel %vm72_vm0, %v2974_v44, 0.0 }
 0xc24   :  { %3013 = vadd.xlane.f32.xlu1 %v3012_v3  ;;  %v3009_v37 = vsel %vm72_vm0, %v2969_v45, 0.0 }
 0xc25   :  { %3010 = vadd.xlane.f32.xlu0 %v3009_v37 }
 0xc67   :  { %v3563_v7 = vpop.f32.mrb[28].mxu0 }
 0xc68   :  { %v2984_v51 = vadd.f32 %v3563_v7, %v3243_v49  ;;  %v2978_v46 = vpop.f32.mrb[29].mxu0 }
 0xc69   :  { %v2979_v55 = vadd.f32 %v3243_v49, %v2978_v46 }
 0xc6a   :  { %v3018_v39 = vsel %vm72_vm0, %v2984_v51, 0.0 }
 0xc6b   :  { %3019 = vadd.xlane.f32.xlu1 %v3018_v39  ;;  %v3015_v20 = vsel %vm72_vm0, %v2979_v55, 0.0 }
 0xc6c   :  { %3016 = vadd.xlane.f32.xlu0 %v3015_v20  ;;  %v3566_v0 = vpop.f32.mrb[30].mxu0 }
 0xc6d   :  { %v2994_v48 = vadd.f32 %v3566_v0, %v3243_v49  ;;  %v2988_v12 = vpop.f32.mrb[31].mxu0 }
 0xc6e   :  { %v2989_v17 = vadd.f32 %v3243_v49, %v2988_v12 }
 0xc6f   :  { %v3024_v26 = vsel %vm72_vm0, %v2994_v48, 0.0 }
 0xc70   :  { %3025 = vadd.xlane.f32.xlu1 %v3024_v26  ;;  %v3021_v60 = vsel %vm72_vm0, %v2989_v17, 0.0  ;;  %v3569_v1 = vpop.f32.mrb[32].mxu0 }
 0xc71   :  { %3022 = vadd.xlane.f32.xlu0 %v3021_v60  ;;  %v3004_v28 = vadd.f32 %v3569_v1, %v3243_v49  ;;  %v2998_v10 = vpop.f32.mrb[33].mxu0  ;;  %v4993_v1 = vld [vmem:[%s5072_s12] ss:$0 sm:$0xff] }
 0xc72   :  { %v2999_v8 = vadd.f32 %v3243_v49, %v2998_v10 }
 0xc73   :  { %v3030_v14 = vsel %vm72_vm0, %v3004_v28, 0.0 }
 0xc74   :  { %3031 = vadd.xlane.f32.xlu1 %v3030_v14  ;;  %v3027_v16 = vsel %vm72_vm0, %v2999_v8, 0.0 }
 0xc75   :  { %3028 = vadd.xlane.f32.xlu0 %v3027_v16 }
 0xcb1   :  { %v3014_v15 = vpop.xlane.xlu1 %3013 }
 0xcb2   :  { %v3034_v31 = vmul.f32 0.03125, %v3014_v15  ;;  %v3011_v34 = vpop.xlane.xlu0 %3010 }
 0xcb3   :  { %v3033_v13 = vmul.f32 0.03125, %v3011_v34 }
 0xcb4   :  { %v3042_v33 = vsub.f32 %v2974_v44, %v3034_v31 }
 0xcb5   :  { %v3041_v53 = vsub.f32 %v2969_v45, %v3033_v13 }
 0xcb6   :  { %v3050_v40 = vmul.f32 %v3042_v33, %v3042_v33 }
 0xcb7   :  { %v3049_v47 = vmul.f32 %v3041_v53, %v3041_v53 }
 0xcb8   :  { %v3060_v29 = vsel %vm72_vm0, %v3050_v40, 0.0 }
 0xcb9   :  { %3061 = vadd.xlane.f32.xlu1 %v3060_v29  ;;  %v3057_v42 = vsel %vm72_vm0, %v3049_v47, 0.0 }
 0xcba   :  { %3058 = vadd.xlane.f32.xlu0 %v3057_v42 }
 0xcf8   :  { %v3020_v58 = vpop.xlane.xlu1 %3019 }
 0xcf9   :  { %v3036_v4 = vmul.f32 0.03125, %v3020_v58  ;;  %v3017_v30 = vpop.xlane.xlu0 %3016 }
 0xcfa   :  { %v3035_v36 = vmul.f32 0.03125, %v3017_v30 }
 0xcfb   :  { %v4955_v56 = vsub.f32 %v2984_v51, %v3036_v4 }
 0xcfc   :  { %v4957_v57 = vsub.f32 %v2979_v55, %v3035_v36 }
 0xcfd   :  { %v3052_v2 = vmul.f32 %v4955_v56, %v4955_v56  ;;  %v3026_v35 = vpop.xlane.xlu1 %3025 }
 0xcfe   :  { %v3051_v54 = vmul.f32 %v4957_v57, %v4957_v57  ;;  %v3038_v19 = vmul.f32 0.03125, %v3026_v35  ;;  %v3023_v38 = vpop.xlane.xlu0 %3022 }
 0xcff   :  { %v3066_v6 = vsel %vm72_vm0, %v3052_v2, 0.0  ;;  %v3037_v63 = vmul.f32 0.03125, %v3023_v38 }
 0xd00   :  { %3067 = vadd.xlane.f32.xlu1 %v3066_v6  ;;  %v3063_v59 = vsel %vm72_vm0, %v3051_v54, 0.0  ;;  %v4965_v22 = vsub.f32 %v2994_v48, %v3038_v19 }
 0xd01   :  { %3064 = vadd.xlane.f32.xlu0 %v3063_v59  ;;  %v4967_v50 = vsub.f32 %v2989_v17, %v3037_v63  ;;  %v3032_v18 = vpop.xlane.xlu1 %3031  ;;  %v4988_v17 = vld [vmem:[%s5071_s11] ss:$0 sm:$0xff] }
 0xd02   :  { %v3054_v11 = vmul.f32 %v4965_v22, %v4965_v22  ;;  %v3040_v24 = vmul.f32 0.03125, %v3032_v18  ;;  %v3029_v23 = vpop.xlane.xlu0 %3028 }
 0xd03   :  { %v3053_v5 = vmul.f32 %v4967_v50, %v4967_v50  ;;  %v3039_v49 = vmul.f32 0.03125, %v3029_v23 }
 0xd04   :  { %v3072_v41 = vsel %vm72_vm0, %v3054_v11, 0.0  ;;  %v4974_v44 = vsub.f32 %v3004_v28, %v3040_v24 }
 0xd05   :  { %3073 = vadd.xlane.f32.xlu1 %v3072_v41  ;;  %v3069_v32 = vsel %vm72_vm0, %v3053_v5, 0.0  ;;  %v4977_v45 = vsub.f32 %v2999_v8, %v3039_v49 }
 0xd06   :  { %3070 = vadd.xlane.f32.xlu0 %v3069_v32  ;;  %v3056_v3 = vmul.f32 %v4974_v44, %v4974_v44 }
 0xd07   :  { %v3055_v37 = vmul.f32 %v4977_v45, %v4977_v45 }
 0xd08   :  { %v3078_v7 = vsel %vm72_vm0, %v3056_v3, 0.0 }
 0xd09   :  { %3079 = vadd.xlane.f32.xlu1 %v3078_v7  ;;  %v3075_v51 = vsel %vm72_vm0, %v3055_v37, 0.0 }
 0xd0a   :  { %3076 = vadd.xlane.f32.xlu0 %v3075_v51 }
 0xd46   :  { %v3062_v46 = vpop.xlane.xlu1 %3061 }
 0xd47   :  { %v3082_v55 = vmul.f32 0.03125, %v3062_v46  ;;  %v3059_v39 = vpop.xlane.xlu0 %3058 }
 0xd48   :  { %v3081_v20 = vmul.f32 0.03125, %v3059_v39 }
 0xd49   :  { %v3090_v0 = vadd.f32 1e-05, %v3082_v55 }
 0xd4a   :  { %v3089_v48 = vadd.f32 1e-05, %v3081_v20 }
 0xd4b   :  { %3959 = vrsqrt.f32 %v3090_v0 }
 0xd4c   :  { %3961 = vrsqrt.f32 %v3089_v48 }
 0xd55   :  { %v3960_v12 = vpop.eup %3959 }
 0xd56   :  { %v3962_v26 = vpop.eup %3961  ;;  %v3106_v60 = vmul.f32 %v3960_v12, %v3042_v33 }
 0xd57   :  { %v3105_v28 = vmul.f32 %v3962_v26, %v3041_v53 }
 0xd58   :  { %v3120_v10 = vmul.f32 %v4988_v17, %v3106_v60 }
 0xd59   :  { %v3119_v8 = vmul.f32 %v4988_v17, %v3105_v28 }
 0xd5a   :  { %v3134_v14 = vadd.f32 %v4993_v1, %v3120_v10 }
 0xd5b   :  { %v3133_v16 = vadd.f32 %v4993_v1, %v3119_v8 }
 0xd5c   :  { %v3142_v15 = vadd.f32 %v3134_v14, %v4743_v25 }
 0xd5d   :  { %v3141_v31 = vadd.f32 %v3133_v16, %v4738_v21 }
 0xd5e   :  { %3150 = vst.msk [vmem:[%s5073_s16 + $0x8] sm:$0xff] %vm72_vm0, %v3142_v15 }
 0xd5f   :  { %3149 = vst.msk [vmem:[%s5073_s16] sm:$0xff] %vm72_vm0, %v3141_v31 }
 0xd8d   :  { %v3068_v34 = vpop.xlane.xlu1 %3067 }
 0xd8e   :  { %v3084_v13 = vmul.f32 0.03125, %v3068_v34  ;;  %v3065_v33 = vpop.xlane.xlu0 %3064 }
 0xd8f   :  { %v3083_v53 = vmul.f32 0.03125, %v3065_v33 }
 0xd90   :  { %v3092_v40 = vadd.f32 1e-05, %v3084_v13 }
 0xd91   :  { %v3091_v47 = vadd.f32 1e-05, %v3083_v53 }
 0xd92   :  { %3963 = vrsqrt.f32 %v3092_v40  ;;  %v3074_v25 = vpop.xlane.xlu1 %3073 }
 0xd93   :  { %3965 = vrsqrt.f32 %v3091_v47  ;;  %v3086_v21 = vmul.f32 0.03125, %v3074_v25  ;;  %v3071_v29 = vpop.xlane.xlu0 %3070 }
 0xd94   :  { %v3085_v42 = vmul.f32 0.03125, %v3071_v29 }
 0xd95   :  { %v3094_v58 = vadd.f32 1e-05, %v3086_v21 }
 0xd96   :  { %v3093_v4 = vadd.f32 1e-05, %v3085_v42  ;;  %v3080_v30 = vpop.xlane.xlu1 %3079 }
 0xd97   :  { %3967 = vrsqrt.f32 %v3094_v58  ;;  %v3088_v36 = vmul.f32 0.03125, %v3080_v30  ;;  %v3077_v2 = vpop.xlane.xlu0 %3076 }
 0xd98   :  { %3969 = vrsqrt.f32 %v3093_v4  ;;  %v3087_v54 = vmul.f32 0.03125, %v3077_v2 }
 0xd99   :  { %v3096_v6 = vadd.f32 1e-05, %v3088_v36 }
 0xd9a   :  { %v3095_v59 = vadd.f32 1e-05, %v3087_v54 }
 0xd9b   :  { %3971 = vrsqrt.f32 %v3096_v6 }
 0xd9c   :  { %v3964_v35 = vpop.eup %3963  ;;  %3973 = vrsqrt.f32 %v3095_v59 }
 0xd9d   :  { %v3966_v19 = vpop.eup %3965  ;;  %v3108_v38 = vmul.f32 %v3964_v35, %v4955_v56 }
 0xd9e   :  { %v3107_v63 = vmul.f32 %v3966_v19, %v4957_v57 }
 0xd9f   :  { %v3122_v18 = vmul.f32 %v4988_v17, %v3108_v38 }
 0xda0   :  { %v3121_v11 = vmul.f32 %v4988_v17, %v3107_v63 }
 0xda1   :  { %v3136_v24 = vadd.f32 %v4993_v1, %v3122_v18  ;;  %v3968_v5 = vpop.eup %3967 }
 0xda2   :  { %v3135_v23 = vadd.f32 %v4993_v1, %v3121_v11  ;;  %v3970_v41 = vpop.eup %3969  ;;  %v3110_v56 = vmul.f32 %v3968_v5, %v4965_v22 }
 0xda3   :  { %v3144_v49 = vadd.f32 %v3136_v24, %v4766_v43  ;;  %v3109_v57 = vmul.f32 %v3970_v41, %v4967_v50 }
 0xda4   :  { %v3143_v32 = vadd.f32 %v3135_v23, %v4760_v61  ;;  %v3124_v3 = vmul.f32 %v4988_v17, %v3110_v56 }
 0xda5   :  { %3152 = vst.msk [vmem:[%s5073_s16 + $0x18] sm:$0xff] %vm72_vm0, %v3144_v49  ;;  %v3123_v43 = vmul.f32 %v4988_v17, %v3109_v57  ;;  %v3972_v37 = vpop.eup %3971 }
 0xda6   :  { %3151 = vst.msk [vmem:[%s5073_s16 + $0x10] sm:$0xff] %vm72_vm0, %v3143_v32  ;;  %v3138_v61 = vadd.f32 %v4993_v1, %v3124_v3  ;;  %v3974_v22 = vpop.eup %3973  ;;  %v3112_v51 = vmul.f32 %v3972_v37, %v4974_v44 }
 0xda7   :  { %v3137_v7 = vadd.f32 %v4993_v1, %v3123_v43  ;;  %v3111_v50 = vmul.f32 %v3974_v22, %v4977_v45 }
 0xda8   :  { %v3146_v46 = vadd.f32 %v3138_v61, %v4787_v52  ;;  %v3126_v39 = vmul.f32 %v4988_v17, %v3112_v51 }
 0xda9   :  { %v3145_v55 = vadd.f32 %v3137_v7, %v4781_v9  ;;  %v3125_v20 = vmul.f32 %v4988_v17, %v3111_v50 }
 0xdaa   :  { %3154 = vst.msk [vmem:[%s5073_s16 + $0x28] sm:$0xff] %vm72_vm0, %v3146_v46  ;;  %v3140_v52 = vadd.f32 %v4993_v1, %v3126_v39 }
 0xdab   :  { %3153 = vst.msk [vmem:[%s5073_s16 + $0x20] sm:$0xff] %vm72_vm0, %v3145_v55  ;;  %v3139_v44 = vadd.f32 %v4993_v1, %v3125_v20 }
 0xdac   :  { %v3148_v9 = vadd.f32 %v3140_v52, %v4803_v27 }
 0xdad   :  { %v3147_v45 = vadd.f32 %v3139_v44, %v4798_v62 }
 0xdae   :  { %3156 = vst.msk [vmem:[%s5073_s16 + $0x38] sm:$0xff] %vm72_vm0, %v3148_v9 }
 0xdaf   :  { %3155 = vst.msk [vmem:[%s5073_s16 + $0x30] sm:$0xff] %vm72_vm0, %v3147_v45 }

// kernel: swinv2_forward.9
= control target key start
LH: loop header
LB: loop body
LE: loop exit
PB: predicated region body
PF: predicated region fallthrough
CT: control target
= control target key end

     0   :  { %vm72_vm0 = vcmask 261120   ;;  %s3989_s18 = smov 96   ;;  %vm218_vm1 = vcmask 130048   ;;  %v3990_v63 = vmov 0   ;;  %s3991_s20 = smov 80   ;;  %vm2883_vm5 = vcmask 523264   ;;  %s5096_s1 = inlined_call_operand.vmem [shape: f32[32,96], index: 1, kind: input, shape index: {}]   ;;  %s5097_s0 = inlined_call_operand.vmem [shape: f32[64,32], index: 0, kind: input, shape index: {}]   ;;  %s5098_s2 = inlined_call_operand.vmem [shape: f32[1,96], index: 2, kind: input, shape index: {}]   ;;  %s5099_s15 = inlined_call_operand.vmem [shape: f32[2,1,1], index: 15, kind: input, shape index: {}]   ;;  %s5100_s13 = inlined_call_operand.vmem [shape: f32[2,16,16], index: 13, kind: input, shape index: {}]   ;;  %s5101_s14 = inlined_call_operand.vmem [shape: f32[4,16,16], index: 14, kind: input, shape index: {}]   ;;  %s5102_s3 = inlined_call_operand.vmem [shape: f32[32,32], index: 3, kind: input, shape index: {}]   ;;  %s5103_s4 = inlined_call_operand.vmem [shape: f32[1,32], index: 4, kind: input, shape index: {}]   ;;  %s5104_s7 = inlined_call_operand.vmem [shape: f32[32,64], index: 7, kind: input, shape index: {}]   ;;  %s5105_s5 = inlined_call_operand.vmem [shape: f32[1,32], index: 5, kind: input, shape index: {}]   ;;  %s5106_s6 = inlined_call_operand.vmem [shape: f32[1,32], index: 6, kind: input, shape index: {}]   ;;  %s5107_s9 = inlined_call_operand.vmem [shape: f32[64,32], index: 9, kind: input, shape index: {}]   ;;  %s5108_s8 = inlined_call_operand.vmem [shape: f32[1,64], index: 8, kind: input, shape index: {}]   ;;  %s5109_s10 = inlined_call_operand.vmem [shape: f32[1,32], index: 10, kind: input, shape index: {}]   ;;  %s5110_s11 = inlined_call_operand.vmem [shape: f32[1,32], index: 11, kind: input, shape index: {}]   ;;  %s5111_s12 = inlined_call_operand.vmem [shape: f32[1,32], index: 12, kind: input, shape index: {}]   ;;  %s5112_s16 = inlined_call_operand.vmem [shape: f32[64,32], index: 16, kind: output, shape index: {}]  }
   0x1   :  { %5114 = sst [smem:[#allocation2_spill]] %s5096_s1  ;;  %v53_v5 = vld [vmem:[%s5097_s0] sm:$0xff]  ;;  %v54_v8 = vld [vmem:[%s5097_s0 + $0x8] sm:$0xff]  ;;  %v55_v10 = vld [vmem:[%s5097_s0 + $0x10] sm:$0xff]  ;;  %3728 = vset.pattern.permute.xlu0 %v3990_v63  ;;  %s3992_s21 = smov 112  }
   0x2   :  { %s5115_s23 = sld [smem:[#allocation2_spill]]  ;;  %3384 = vmatprep.mubr.msk.f32.mxu0 %vm72_vm0, %v53_v5  ;;  %v57_v7 = vld [vmem:[%s5097_s0 + $0x20] sm:$0xff]  ;;  %v58_v9 = vld [vmem:[%s5097_s0 + $0x28] sm:$0xff]  ;;  %v59_v11 = vld [vmem:[%s5097_s0 + $0x30] sm:$0xff]  ;;  %s3993_s22 = smov 64  }
   0x3   :  { %3390 = vmatprep.mubr.msk.f32.mxu1 %vm72_vm0, %v57_v7  ;;  %v56_v12 = vld [vmem:[%s5097_s0 + $0x18] sm:$0xff]  ;;  %v3167_v14 = vld [vmem:[%s5098_s2] ss:$0 sm:$0xff]  ;;  %vm4270_vm2 = vmpackc.low %vm218_vm1, %vm218_vm1  ;;  %s3995_s25 = smov 16  }
   0x4   :  { %v60_v13 = vld [vmem:[%s5097_s0 + $0x38] sm:$0xff] }
   0x8   :  { %v61_v0 = vld [vmem:[%s5115_s23] sm:$0xff]  ;;  %v62_v1 = vld [vmem:[%s5115_s23 + $0x8] sm:$0xff]  ;;  %v63_v2 = vld [vmem:[%s5115_s23 + $0x10] sm:$0xff] }
   0x9   :  { %v3576_v3 = vpack.c.bf16 %v62_v1, %v61_v0  ;;  %v64_v4 = vld [vmem:[%s5115_s23 + $0x18] sm:$0xff] }
   0xa   :  { %v3580_v6 = vpack.c.bf16 %v64_v4, %v63_v2 }
   0xb   :  { %3577 = vmatprep.subr.bf16.mxu0 %v3576_v3  ;;  %3696 = vmatprep.subr.bf16.mxu1 %v3576_v3 }
   0xc   :  { %3579 = vmatpush3.bf16.msra.mxu0 %v3576_v3  ;;  %3698 = vmatpush3.bf16.msra.mxu1 %v3576_v3 }
   0xd   :  { %3581 = vmatprep.subr.bf16.mxu0 %v3580_v6  ;;  %3697 = vmatprep.subr.bf16.mxu1 %v3580_v6 }
  0x10   :  { %3583 = vmatpush3.bf16.msra.mxu0 %v3580_v6  ;;  %3699 = vmatpush3.bf16.msra.mxu1 %v3580_v6 }
  0x13   :  { %3385 = vmatmul.mubr.msk.f32.vlgmr.msra.gmra.mrb[0].mxu0 %vm72_vm0, %v54_v8  ;;  %3391 = vmatmul.mubr.msk.f32.vlgmr.msra.gmra.mrb[0].mxu1 %vm72_vm0, %v58_v9 }
  0x14   :  { %3387 = vmatprep.mubr.msk.f32.mxu0 %vm72_vm0, %v55_v10  ;;  %3393 = vmatprep.mubr.msk.f32.mxu1 %vm72_vm0, %v59_v11 }
  0x17   :  { %3388 = vmatmul.mubr.msk.f32.gmra.mrb[2].mxu0 %vm72_vm0, %v56_v12  ;;  %3394 = vmatmul.mubr.msk.f32.gmra.mrb[2].mxu1 %vm72_vm0, %v60_v13 }
  0xe6   :  { %v3386_v15 = vpop.f32.mrb[0].mxu0  ;;  %v3392_v16 = vpop.f32.mrb[0].mxu1 }
  0xe7   :  { %v163_v17 = vpop.f32.mrb[1].mxu0  ;;  %v183_v18 = vpop.f32.mrb[1].mxu1  ;;  %v4131_v20 = vadd.f32 %v3386_v15, %v3167_v14  ;;  %v4153_v31 = vadd.f32 %v3392_v16, %v3167_v14 }
  0xe8   :  { %v4129_v19 = vadd.f32 %v3167_v14, %v163_v17  ;;  %v4141_v27 = vadd.f32 %v3167_v14, %v183_v18 }
  0xe9   :  { %v4151_v30 = vmul.f32 %v4131_v20, %v4131_v20  ;;  %v4177_v36 = vmul.f32 %v4153_v31, %v4153_v31 }
  0xea   :  { %v3389_v21 = vpop.f32.mrb[2].mxu0  ;;  %v4135_v22 = vmul.f32 %v4129_v19, %v4129_v19  ;;  %v3395_v23 = vpop.f32.mrb[2].mxu1  ;;  %v4163_v33 = vmul.f32 %v4141_v27, %v4141_v27 }
  0xeb   :  { %v173_v24 = vpop.f32.mrb[3].mxu0  ;;  %v193_v25 = vpop.f32.mrb[3].mxu1  ;;  %v4143_v28 = vadd.f32 %v3389_v21, %v3167_v14  ;;  %v4169_v35 = vadd.f32 %v3395_v23, %v3167_v14  ;;  %v222_v56 = vsel %vm218_vm1, %v4151_v30, 0.0  ;;  %v234_v60 = vsel %vm218_vm1, %v4177_v36, 0.0 }
  0xec   :  { %v4137_v26 = vadd.f32 %v3167_v14, %v173_v24  ;;  %275 = vrot.lane.b32.xlu0 %v4135_v22, %s3989_s18  ;;  %v4159_v32 = vadd.f32 %v3167_v14, %v193_v25  ;;  %v219_v55 = vsel %vm218_vm1, %v4135_v22, 0.0  ;;  %v231_v59 = vsel %vm218_vm1, %v4163_v33, 0.0 }
  0xed   :  { %v4167_v34 = vmul.f32 %v4143_v28, %v4143_v28  ;;  %v4189_v38 = vmul.f32 %v4169_v35, %v4169_v35 }
  0xee   :  { %v4147_v29 = vmul.f32 %v4137_v26, %v4137_v26  ;;  %v4181_v37 = vmul.f32 %v4159_v32, %v4159_v32 }
  0xef   :  { %v228_v58 = vsel %vm218_vm1, %v4167_v34, 0.0  ;;  %v240_v62 = vsel %vm218_vm1, %v4189_v38, 0.0 }
  0xf0   :  { %279 = vrot.lane.b32.xlu1 %v4147_v29, %s3989_s18  ;;  %277 = vrot.lane.b32.xlu0 %v4151_v30, %s3989_s18  ;;  %v225_v57 = vsel %vm218_vm1, %v4147_v29, 0.0  ;;  %v237_v61 = vsel %vm218_vm1, %v4181_v37, 0.0 }
  0xf4   :  { %281 = vrot.lane.b32.xlu1 %v4167_v34, %s3989_s18  ;;  %283 = vrot.lane.b32.xlu0 %v4163_v33, %s3989_s18 }
  0xf8   :  { %285 = vrot.lane.b32.xlu1 %v4177_v36, %s3989_s18  ;;  %287 = vrot.lane.b32.xlu0 %v4181_v37, %s3989_s18 }
  0xfc   :  { %289 = vrot.lane.b32.xlu1 %v4189_v38, %s3989_s18 }
 0x15e   :  { %v276_v39 = vpop.permute.xlu0 %275 }
 0x15f   :  { %v299_v40 = vsel %vm218_vm1, %v276_v39, 0.0 }
 0x160   :  { %300 = vadd.xlane.f32.xlu0 %v299_v40 }
 0x162   :  { %v280_v41 = vpop.permute.xlu1 %279  ;;  %v278_v42 = vpop.permute.xlu0 %277 }
 0x163   :  { %v305_v43 = vsel %vm218_vm1, %v280_v41, 0.0  ;;  %v302_v44 = vsel %vm218_vm1, %v278_v42, 0.0 }
 0x164   :  { %306 = vadd.xlane.f32.xlu0 %v305_v43  ;;  %303 = vadd.xlane.f32.xlu1 %v302_v44 }
 0x166   :  { %v282_v45 = vpop.permute.xlu1 %281  ;;  %v284_v46 = vpop.permute.xlu0 %283 }
 0x167   :  { %v308_v47 = vsel %vm218_vm1, %v282_v45, 0.0  ;;  %v311_v48 = vsel %vm218_vm1, %v284_v46, 0.0 }
 0x168   :  { %309 = vadd.xlane.f32.xlu0 %v308_v47  ;;  %312 = vadd.xlane.f32.xlu1 %v311_v48 }
 0x16a   :  { %v286_v49 = vpop.permute.xlu1 %285  ;;  %v288_v50 = vpop.permute.xlu0 %287 }
 0x16b   :  { %v314_v51 = vsel %vm218_vm1, %v286_v49, 0.0  ;;  %v317_v52 = vsel %vm218_vm1, %v288_v50, 0.0 }
 0x16c   :  { %315 = vadd.xlane.f32.xlu0 %v314_v51  ;;  %318 = vadd.xlane.f32.xlu1 %v317_v52  ;;  %v3192_v52 = vld [vmem:[%s5099_s15] ss:$0 sm:$0xff] }
 0x16e   :  { %v290_v53 = vpop.permute.xlu1 %289 }
 0x16f   :  { %v320_v54 = vsel %vm218_vm1, %v290_v53, 0.0 }
 0x170   :  { %321 = vadd.xlane.f32.xlu0 %v320_v54  ;;  %220 = vadd.xlane.f32.xlu1 %v219_v55 }
 0x174   :  { %223 = vadd.xlane.f32.xlu0 %v222_v56  ;;  %226 = vadd.xlane.f32.xlu1 %v225_v57 }
 0x178   :  { %229 = vadd.xlane.f32.xlu0 %v228_v58  ;;  %232 = vadd.xlane.f32.xlu1 %v231_v59 }
 0x17c   :  { %235 = vadd.xlane.f32.xlu0 %v234_v60  ;;  %238 = vadd.xlane.f32.xlu1 %v237_v61 }
 0x180   :  { %241 = vadd.xlane.f32.xlu0 %v240_v62 }
 0x1ed   :  { %v301_v0 = vpop.xlane.xlu0 %300 }
 0x1ee   :  { %v323_v1 = vmax.f32 %v301_v0, 1e-24 }
 0x1f0   :  { %3789 = vrsqrt.f32 %v323_v1 }
 0x1f1   :  { %v304_v2 = vpop.xlane.xlu1 %303  ;;  %v307_v3 = vpop.xlane.xlu0 %306 }
 0x1f2   :  { %v324_v4 = vmax.f32 %v304_v2, 1e-24  ;;  %v325_v5 = vmax.f32 %v307_v3, 1e-24 }
 0x1f4   :  { %3791 = vrsqrt.f32 %v324_v4 }
 0x1f5   :  { %v313_v6 = vpop.xlane.xlu1 %312  ;;  %v310_v7 = vpop.xlane.xlu0 %309  ;;  %3793 = vrsqrt.f32 %v325_v5 }
 0x1f6   :  { %v326_v8 = vmax.f32 %v310_v7, 1e-24  ;;  %v327_v9 = vmax.f32 %v313_v6, 1e-24 }
 0x1f8   :  { %3795 = vrsqrt.f32 %v326_v8 }
 0x1f9   :  { %v319_v10 = vpop.xlane.xlu1 %318  ;;  %v316_v11 = vpop.xlane.xlu0 %315  ;;  %3797 = vrsqrt.f32 %v327_v9 }
 0x1fa   :  { %v329_v12 = vmax.f32 %v319_v10, 1e-24  ;;  %v328_v13 = vmax.f32 %v316_v11, 1e-24  ;;  %v3790_v14 = vpop.eup %3789 }
 0x1fb   :  { %v339_v23 = vmul.f32 %v3790_v14, %v4129_v19 }
 0x1fc   :  { %3799 = vrsqrt.f32 %v328_v13 }
 0x1fd   :  { %v322_v15 = vpop.xlane.xlu0 %321  ;;  %v221_v16 = vpop.xlane.xlu1 %220  ;;  %3801 = vrsqrt.f32 %v329_v12 }
 0x1fe   :  { %v3792_v17 = vpop.eup %3791  ;;  %v330_v18 = vmax.f32 %v322_v15, 1e-24  ;;  %v243_v21 = vmax.f32 %v221_v16, 1e-24 }
 0x1ff   :  { %v340_v24 = vmul.f32 %v3792_v17, %v4131_v20  ;;  %v3794_v25 = vpop.eup %3793 }
 0x200   :  { %3803 = vrsqrt.f32 %v330_v18  ;;  %v341_v42 = vmul.f32 %v3794_v25, %v4137_v26 }
 0x201   :  { %3805 = vrsqrt.f32 %v243_v21  ;;  %v227_v39 = vpop.xlane.xlu1 %226  ;;  %v3708_v40 = vpack.i.bf16 %v340_v24, %v339_v23 }
 0x202   :  { %v3796_v41 = vpop.eup %3795 }
 0x203   :  { %3709 = vrot.lane.b32.xlu1 %v3708_v40, %s3989_s18  ;;  %v342_v43 = vmul.f32 %v3796_v41, %v4143_v28  ;;  %v3798_v44 = vpop.eup %3797 }
 0x204   :  { %v343_v50 = vmul.f32 %v3798_v44, %v4141_v27 }
 0x205   :  { %v233_v45 = vpop.xlane.xlu1 %232  ;;  %v3713_v47 = vpack.i.bf16 %v342_v43, %v341_v42 }
 0x206   :  { %v247_v46 = vmax.f32 %v233_v45, 1e-24  ;;  %v3800_v48 = vpop.eup %3799 }
 0x207   :  { %v3802_v49 = vpop.eup %3801  ;;  %3714 = vrot.lane.b32.xlu0 %v3713_v47, %s3989_s18  ;;  %v344_v51 = vmul.f32 %v3800_v48, %v4153_v31 }
 0x208   :  { %3807 = vrsqrt.f32 %v247_v46  ;;  %v345_v56 = vmul.f32 %v3802_v49, %v4159_v32 }
 0x209   :  { %v3718_v54 = vpack.i.bf16 %v344_v51, %v343_v50  ;;  %v239_v63 = vpop.xlane.xlu1 %238 }
 0x20a   :  { %v3804_v53 = vpop.eup %3803  ;;  %v249_v4 = vmax.f32 %v239_v63, 1e-24 }
 0x20b   :  { %v3806_v55 = vpop.eup %3805  ;;  %v346_v57 = vmul.f32 %v3804_v53, %v4169_v35  ;;  %718 = vperm.xlu0 %3728, %v3192_v52   ;;  %3719 = vrot.lane.b32.xlu1 %v3718_v54, %s3989_s18 }
 0x20c   :  { %v259_v58 = vmul.f32 %v3806_v55, %v4129_v19 }
 0x20d   :  { %v3723_v59 = vpack.i.bf16 %v346_v57, %v345_v56 }
 0x20e   :  { %3400 = vmatprep.mubr.msk.f32.mxu1 %vm218_vm1, %v259_v58 }
 0x20f   :  { %1267 = vrot.lane.b32.xlu0 %v4147_v29, %s3991_s20  ;;  %3724 = vrot.lane.b32.xlu1 %v3723_v59, %s3989_s18 }
 0x212   :  { %v3808_v60 = vpop.eup %3807 }
 0x213   :  { %1271 = vrot.lane.b32.xlu0 %v4163_v33, %s3991_s20  ;;  %1263 = vrot.lane.b32.xlu1 %v4135_v22, %s3991_s20  ;;  %v263_v61 = vmul.f32 %v3808_v60, %v4141_v27 }
 0x215   :  { %3414 = vmatprep.mubr.msk.f32.mxu0 %vm218_vm1, %v263_v61 }
 0x217   :  { %1191 = vrot.lane.b32.xlu0 %v4135_v22, %s3992_s21  ;;  %1265 = vrot.lane.b32.xlu1 %v4151_v30, %s3991_s20  ;;  %v224_v22 = vpop.xlane.xlu0 %223 }
 0x21b   :  { %1275 = vrot.lane.b32.xlu0 %v4181_v37, %s3991_s20  ;;  %1269 = vrot.lane.b32.xlu1 %v4167_v34, %s3991_s20 }
 0x21f   :  { %1195 = vrot.lane.b32.xlu0 %v4147_v29, %s3992_s21  ;;  %1273 = vrot.lane.b32.xlu1 %v4177_v36, %s3991_s20  ;;  %v230_v29 = vpop.xlane.xlu0 %229 }
 0x220   :  { %v246_v3 = vmax.f32 %v230_v29, 1e-24 }
 0x223   :  { %1199 = vrot.lane.b32.xlu0 %v4163_v33, %s3992_s21  ;;  %1193 = vrot.lane.b32.xlu1 %v4151_v30, %s3992_s21  ;;  %v244_v33 = vmax.f32 %v224_v22, 1e-24  ;;  %v236_v62 = vpop.xlane.xlu0 %235  ;;  %v245_v30 = vmax.f32 %v227_v39, 1e-24 }
 0x225   :  { %3809 = vrsqrt.f32 %v244_v33 }
 0x226   :  { %3811 = vrsqrt.f32 %v245_v30 }
 0x227   :  { %1203 = vrot.lane.b32.xlu0 %v4181_v37, %s3992_s21  ;;  %1277 = vrot.lane.b32.xlu1 %v4189_v38, %s3991_s20  ;;  %v242_v0 = vpop.xlane.xlu0 %241  ;;  %3813 = vrsqrt.f32 %v246_v3 }
 0x228   :  { %v250_v12 = vmax.f32 %v242_v0, 1e-24 }
 0x22b   :  { %1197 = vrot.lane.b32.xlu1 %v4167_v34, %s3992_s21  ;;  %v3220_v34 = vld [vmem:[%s5100_s13 + $0x18] sm:$0xff] }
 0x22f   :  { %1201 = vrot.lane.b32.xlu1 %v4177_v36, %s3992_s21  ;;  %v248_v36 = vmax.f32 %v236_v62, 1e-24  ;;  %v3810_v8 = vpop.eup %3809 }
 0x230   :  { %v3812_v11 = vpop.eup %3811  ;;  %v260_v15 = vmul.f32 %v3810_v8, %v4131_v20  ;;  %v4322_v8 = vpack.i.bf16 %v4131_v20, %v4129_v19 }
 0x231   :  { %3815 = vrsqrt.f32 %v248_v36  ;;  %v261_v18 = vmul.f32 %v3812_v11, %v4137_v26  ;;  %v3814_v24 = vpop.eup %3813  ;;  %v4337_v11 = vpack.i.bf16 %v4169_v35, %v4159_v32 }
 0x232   :  { %3817 = vrsqrt.f32 %v249_v4  ;;  %v262_v43 = vmul.f32 %v3814_v24, %v4143_v28 }
 0x233   :  { %1205 = vrot.lane.b32.xlu1 %v4189_v38, %s3992_s21  ;;  %3819 = vrsqrt.f32 %v250_v12 }
 0x23b   :  { %v3816_v39 = vpop.eup %3815 }
 0x23c   :  { %v3818_v41 = vpop.eup %3817  ;;  %v264_v44 = vmul.f32 %v3816_v39, %v4153_v31 }
 0x23d   :  { %v265_v46 = vmul.f32 %v3818_v41, %v4159_v32  ;;  %v3820_v49 = vpop.eup %3819 }
 0x23e   :  { %v266_v54 = vmul.f32 %v3820_v49, %v4169_v35 }
 0x275   :  { %v3710_v37 = vpop.permute.xlu1 %3709 }
 0x276   :  { %v3712_v1 = vunpack.i.h.bf16 %v3710_v37  ;;  %v3711_v2 = vunpack.i.l.bf16 %v3710_v37 }
 0x278   :  { %v3584_v38 = vpack.c.bf16 %v3712_v1, %v3711_v2 }
 0x279   :  { %v3715_v5 = vpop.permute.xlu0 %3714 }
 0x27a   :  { %3586 = vmatprep.subr.msk.bf16.mxu1 %vm4270_vm2, %v3584_v38  ;;  %v3717_v6 = vunpack.i.h.bf16 %v3715_v5  ;;  %v3716_v7 = vunpack.i.l.bf16 %v3715_v5 }
 0x27b   :  { %3589 = vmatpush3.bf16.xpose.msk.msra.mxu1 %vm4270_vm2, %v3584_v38 }
 0x27c   :  { %v3590_v9 = vpack.c.bf16 %v3717_v6, %v3716_v7 }
 0x27d   :  { %v3720_v10 = vpop.permute.xlu1 %3719 }
 0x27e   :  { %v3722_v13 = vunpack.i.h.bf16 %v3720_v10  ;;  %v3721_v14 = vunpack.i.l.bf16 %v3720_v10  ;;  %3592 = vmatprep.subr.msk.bf16.mxu1 %vm4270_vm2, %v3590_v9  ;;  %v4331_v10 = vpack.i.bf16 %v4143_v28, %v4137_v26 }
 0x280   :  { %v3596_v16 = vpack.c.bf16 %v3722_v13, %v3721_v14 }
 0x281   :  { %v3725_v17 = vpop.permute.xlu1 %3724 }
 0x282   :  { %3401 = vmatmul.mubr.msk.f32.vlgmr.msra.gmra.mrb[4].mxu1 %vm218_vm1, %v260_v15  ;;  %v3727_v21 = vunpack.i.h.bf16 %v3725_v17  ;;  %v3726_v23 = vunpack.i.l.bf16 %v3725_v17  ;;  %3598 = vmatprep.subr.msk.bf16.mxu0 %vm4270_vm2, %v3596_v16 }
 0x283   :  { %3595 = vmatpush3.bf16.xpose.msk.msra.mxu1 %vm4270_vm2, %v3590_v9  ;;  %3407 = vmatprep.mubr.msk.f32.mxu1 %vm218_vm1, %v261_v18  ;;  %v4327_v9 = vpack.i.bf16 %v4153_v31, %v4141_v27 }
 0x284   :  { %3601 = vmatpush3.bf16.xpose.msk.msra.mxu0 %vm4270_vm2, %v3596_v16  ;;  %v3602_v25 = vpack.c.bf16 %v3727_v21, %v3726_v23 }
 0x285   :  { %v1264_v40 = vpop.permute.xlu1 %1263 }
 0x286   :  { %3604 = vmatprep.subr.msk.bf16.mxu1 %vm4270_vm2, %v3602_v25  ;;  %v1287_v42 = vsel %vm218_vm1, %v1264_v40, 0.0 }
 0x287   :  { %1288 = vadd.xlane.f32.xlu1 %v1287_v42 }
 0x289   :  { %v1266_v45 = vpop.permute.xlu1 %1265 }
 0x28a   :  { %3408 = vmatmul.mubr.msk.f32.vlgmr.msra.gmra.mrb[6].mxu1 %vm218_vm1, %v262_v43  ;;  %v4297_v47 = vpop.permute.xlu0 %718  ;;  %v1290_v48 = vsel %vm218_vm1, %v1266_v45, 0.0 }
 0x28b   :  { %3415 = vmatmul.mubr.msk.f32.vlgmr.msra.gmra.mrb[4].mxu0 %vm218_vm1, %v264_v44  ;;  %3607 = vmatpush3.bf16.xpose.msk.msra.mxu1 %vm4270_vm2, %v3602_v25 }
 0x28c   :  { %1291 = vadd.xlane.f32.xlu0 %v1290_v48  ;;  %3421 = vmatprep.mubr.msk.f32.mxu1 %vm218_vm1, %v265_v46 }
 0x28d   :  { %v1270_v50 = vpop.permute.xlu1 %1269 }
 0x28e   :  { %v1268_v51 = vpop.permute.xlu0 %1267  ;;  %v1296_v52 = vsel %vm218_vm1, %v1270_v50, 0.0 }
 0x28f   :  { %v1293_v53 = vsel %vm218_vm1, %v1268_v51, 0.0 }
 0x290   :  { %1297 = vadd.xlane.f32.xlu0 %v1296_v52  ;;  %1294 = vadd.xlane.f32.xlu1 %v1293_v53 }
 0x291   :  { %v1274_v55 = vpop.permute.xlu1 %1273 }
 0x292   :  { %3422 = vmatmul.mubr.msk.f32.vlgmr.msra.gmra.mrb[8].mxu1 %vm218_vm1, %v266_v54  ;;  %v1272_v56 = vpop.permute.xlu0 %1271  ;;  %v1302_v57 = vsel %vm218_vm1, %v1274_v55, 0.0 }
 0x293   :  { %v1299_v58 = vsel %vm218_vm1, %v1272_v56, 0.0 }
 0x294   :  { %1303 = vadd.xlane.f32.xlu0 %v1302_v57  ;;  %1300 = vadd.xlane.f32.xlu1 %v1299_v58 }
 0x295   :  { %v1194_v59 = vpop.permute.xlu1 %1193 }
 0x296   :  { %v1192_v60 = vpop.permute.xlu0 %1191  ;;  %v1218_v61 = vsel %vm218_vm1, %v1194_v59, 0.0 }
 0x297   :  { %v1215_v22 = vsel %vm218_vm1, %v1192_v60, 0.0 }
 0x298   :  { %1219 = vadd.xlane.f32.xlu0 %v1218_v61  ;;  %1216 = vadd.xlane.f32.xlu1 %v1215_v22  ;;  %v730_v22 = vld [vmem:[%s5100_s13 + $0x8] sm:$0xff] }
 0x299   :  { %v1278_v29 = vpop.permute.xlu1 %1277 }
 0x29a   :  { %v1276_v33 = vpop.permute.xlu0 %1275  ;;  %v1308_v62 = vsel %vm218_vm1, %v1278_v29, 0.0 }
 0x29b   :  { %v1305_v30 = vsel %vm218_vm1, %v1276_v33, 0.0 }
 0x29c   :  { %1309 = vadd.xlane.f32.xlu0 %v1308_v62  ;;  %1306 = vadd.xlane.f32.xlu1 %v1305_v30  ;;  %v4385_v62 = vld [vmem:[%s5101_s14 + $0x8] sm:$0xff] }
 0x29d   :  { %v1198_v63 = vpop.permute.xlu1 %1197 }
 0x29e   :  { %v1196_v37 = vpop.permute.xlu0 %1195  ;;  %v1224_v0 = vsel %vm218_vm1, %v1198_v63, 0.0 }
 0x29f   :  { %v1221_v1 = vsel %vm218_vm1, %v1196_v37, 0.0 }
 0x2a0   :  { %1225 = vadd.xlane.f32.xlu0 %v1224_v0  ;;  %1222 = vadd.xlane.f32.xlu1 %v1221_v1 }
 0x2a1   :  { %v1202_v2 = vpop.permute.xlu1 %1201 }
 0x2a2   :  { %v1200_v3 = vpop.permute.xlu0 %1199  ;;  %v1230_v36 = vsel %vm218_vm1, %v1202_v2, 0.0  ;;  %v729_v2 = vld [vmem:[%s5100_s13] sm:$0xff] }
 0x2a3   :  { %v1227_v38 = vsel %vm218_vm1, %v1200_v3, 0.0 }
 0x2a4   :  { %1231 = vadd.xlane.f32.xlu0 %v1230_v36  ;;  %1228 = vadd.xlane.f32.xlu1 %v1227_v38 }
 0x2a5   :  { %v1206_v4 = vpop.permute.xlu1 %1205 }
 0x2a6   :  { %v1204_v5 = vpop.permute.xlu0 %1203  ;;  %v1236_v6 = vsel %vm218_vm1, %v1206_v4, 0.0 }
 0x2a7   :  { %v1233_v7 = vsel %vm218_vm1, %v1204_v5, 0.0 }
 0x2a8   :  { %1237 = vadd.xlane.f32.xlu0 %v1236_v6  ;;  %1234 = vadd.xlane.f32.xlu1 %v1233_v7 }
 0x2b9   :  { %3730 = vrot.lane.b32.xlu1 %v4322_v8, %s3993_s22 }
 0x2bd   :  { %3740 = vrot.lane.b32.xlu1 %v4327_v9, %s3993_s22 }
 0x2be   :  { %3735 = vrot.lane.b32.xlu0 %v4331_v10, %s3993_s22 }
 0x2c1   :  { %3745 = vrot.lane.b32.xlu1 %v4337_v11, %s3993_s22 }
 0x314   :  { %v4342_v13 = vpop.xlane.xlu1 %1288 }
 0x319   :  { %v4340_v12 = vpop.xlane.xlu0 %1291 }
 0x31d   :  { %v4344_v14 = vpop.xlane.xlu0 %1297  ;;  %v4346_v15 = vpop.xlane.xlu1 %1294 }
 0x31e   :  { %v1314_v38 = vmax.f32 %v4344_v14, 1e-24  ;;  %v1313_v6 = vmax.f32 %v4346_v15, 1e-24  ;;  %v4409_v14 = vld [vmem:[%s5101_s14 + $0x20] sm:$0xff] }
 0x31f   :  { %v4414_v15 = vld [vmem:[%s5101_s14] sm:$0xff] }
 0x320   :  { %3821 = vrsqrt.f32 %v1314_v38 }
 0x321   :  { %v4348_v16 = vpop.xlane.xlu0 %1303  ;;  %v4350_v17 = vpop.xlane.xlu1 %1300  ;;  %3823 = vrsqrt.f32 %v1313_v6 }
 0x325   :  { %v4352_v18 = vpop.xlane.xlu0 %1219  ;;  %v4354_v21 = vpop.xlane.xlu1 %1216 }
 0x329   :  { %v4356_v23 = vpop.xlane.xlu0 %1309  ;;  %v4358_v24 = vpop.xlane.xlu1 %1306 }
 0x32d   :  { %v4360_v25 = vpop.xlane.xlu0 %1225  ;;  %v4362_v39 = vpop.xlane.xlu1 %1222 }
 0x331   :  { %v4364_v40 = vpop.xlane.xlu0 %1231  ;;  %v4366_v41 = vpop.xlane.xlu1 %1228 }
 0x335   :  { %v4368_v42 = vpop.xlane.xlu0 %1237  ;;  %v4370_v43 = vpop.xlane.xlu1 %1234 }
 0x339   :  { %v3736_v44 = vpop.permute.xlu0 %3735  ;;  %v3731_v48 = vpop.permute.xlu1 %3730 }
 0x33a   :  { %v3738_v45 = vunpack.i.h.bf16 %v3736_v44  ;;  %v3737_v46 = vunpack.i.l.bf16 %v3736_v44  ;;  %v3733_v49 = vunpack.i.h.bf16 %v3731_v48  ;;  %v3732_v50 = vunpack.i.l.bf16 %v3731_v48  ;;  %v4403_v44 = vld [vmem:[%s5101_s14 + $0x28] sm:$0xff] }
 0x33c   :  { %v3612_v51 = vpack.c.bf16 %v3738_v45, %v3737_v46  ;;  %v3608_v52 = vpack.c.bf16 %v3733_v49, %v3732_v50 }
 0x33d   :  { %v3741_v53 = vpop.permute.xlu1 %3740 }
 0x33e   :  { %3613 = vmatprep.subr.bf16.mxu1 %v3612_v51  ;;  %v3743_v54 = vunpack.i.h.bf16 %v3741_v53  ;;  %v3742_v55 = vunpack.i.l.bf16 %v3741_v53  ;;  %3609 = vmatprep.subr.bf16.mxu0 %v3608_v52 }
 0x33f   :  { %3615 = vmatpush3.bf16.msra.mxu1 %v3612_v51  ;;  %3611 = vmatpush3.bf16.msra.mxu0 %v3608_v52 }
 0x340   :  { %v4372_v56 = vpack.c.bf16 %v3743_v54, %v3742_v55 }
 0x341   :  { %v3746_v57 = vpop.permute.xlu1 %3745 }
 0x342   :  { %v3748_v58 = vunpack.i.h.bf16 %v3746_v57  ;;  %v3747_v59 = vunpack.i.l.bf16 %v3746_v57  ;;  %3617 = vmatprep.subr.bf16.mxu0 %v4372_v56 }
 0x344   :  { %v4375_v60 = vpack.c.bf16 %v3748_v58, %v3747_v59 }
 0x346   :  { %3621 = vmatprep.subr.bf16.mxu1 %v4375_v60 }
 0x355   :  { %v3402_v61 = vpop.f32.mrb[4].mxu1 }
 0x356   :  { %v722_v29 = vmul.f32 %v3402_v61, %v4297_v47  ;;  %v429_v33 = vpop.f32.mrb[5].mxu1  ;;  %v4425_v61 = vld [vmem:[%s5101_s14 + $0x18] sm:$0xff] }
 0x357   :  { %v721_v0 = vmul.f32 %v4297_v47, %v429_v33 }
 0x358   :  { %v732_v30 = vadd.f32 %v730_v22, %v722_v29 }
 0x359   :  { %v731_v45 = vadd.f32 %v729_v2, %v721_v0  ;;  %v4433_v0 = vld [vmem:[%s5101_s14 + $0x10] sm:$0xff] }
 0x35a   :  { %v4388_v63 = vadd.f32 %v732_v30, %v4385_v62 }
 0x35b   :  { %v739_v57 = vadd.f32 %v731_v45, %v4414_v15 }
 0x35c   :  { %v750_v37 = vsel %vm218_vm1, %v4388_v63, -inf }
 0x35d   :  { %751 = vmax.xlane.f32.xlu1 %v750_v37  ;;  %v3409_v1 = vpop.f32.mrb[6].mxu1  ;;  %v747_v30 = vsel %vm218_vm1, %v739_v57, -inf }
 0x35e   :  { %v3416_v3 = vpop.f32.mrb[4].mxu0  ;;  %v520_v36 = vpop.f32.mrb[7].mxu1  ;;  %v724_v48 = vmul.f32 %v3409_v1, %v4297_v47 }
 0x35f   :  { %v726_v4 = vmul.f32 %v3416_v3, %v4297_v47  ;;  %v611_v5 = vpop.f32.mrb[5].mxu0  ;;  %v723_v53 = vmul.f32 %v4297_v47, %v520_v36  ;;  %v3822_v1 = vpop.eup %3821 }
 0x360   :  { %v725_v7 = vmul.f32 %v4297_v47, %v611_v5  ;;  %v734_v52 = vadd.f32 %v730_v22, %v724_v48  ;;  %v4442_v5 = vld [vmem:[%s5101_s14 + $0x38] sm:$0xff]  ;;  %v1330_v45 = vmul.f32 %v3822_v1, %v4143_v28 }
 0x361   :  { %v736_v46 = vadd.f32 %v730_v22, %v726_v4  ;;  %v733_v29 = vadd.f32 %v729_v2, %v723_v53  ;;  %v3824_v4 = vpop.eup %3823 }
 0x362   :  { %v735_v49 = vadd.f32 %v729_v2, %v725_v7  ;;  %v742_v37 = vadd.f32 %v734_v52, %v4425_v61  ;;  %v1311_v52 = vmax.f32 %v4342_v13, 1e-24  ;;  %v4463_v13 = vld [vmem:[%s5101_s14 + $0x30] sm:$0xff] }
 0x363   :  { %v744_v50 = vadd.f32 %v736_v46, %v4403_v44  ;;  %v4437_v38 = vadd.f32 %v733_v29, %v4433_v0  ;;  %v1312_v46 = vmax.f32 %v4340_v12, 1e-24 }
 0x364   :  { %v743_v51 = vadd.f32 %v735_v49, %v4409_v14  ;;  %v756_v36 = vsel %vm218_vm1, %v742_v37, -inf }
 0x365   :  { %v762_v54 = vsel %vm218_vm1, %v744_v50, -inf  ;;  %v3423_v55 = vpop.f32.mrb[8].mxu1  ;;  %v753_v6 = vsel %vm218_vm1, %v4437_v38, -inf  ;;  %3825 = vrsqrt.f32 %v1312_v46 }
 0x366   :  { %763 = vmax.xlane.f32.xlu0 %v762_v54  ;;  %v759_v58 = vsel %vm218_vm1, %v743_v51, -inf  ;;  %v702_v59 = vpop.f32.mrb[9].mxu1  ;;  %v728_v33 = vmul.f32 %v3423_v55, %v4297_v47  ;;  %3827 = vrsqrt.f32 %v1311_v52 }
 0x367   :  { %760 = vmax.xlane.f32.xlu1 %v759_v58  ;;  %v727_v12 = vmul.f32 %v4297_v47, %v702_v59 }
 0x368   :  { %v738_v3 = vadd.f32 %v730_v22, %v728_v33  ;;  %v1329_v22 = vmul.f32 %v3824_v4, %v4137_v26 }
 0x369   :  { %v737_v33 = vadd.f32 %v729_v2, %v727_v12  ;;  %v1316_v12 = vmax.f32 %v4348_v16, 1e-24 }
 0x36a   :  { %748 = vmax.xlane.f32.xlu0 %v747_v30  ;;  %v4447_v7 = vadd.f32 %v738_v3, %v4442_v5  ;;  %v3754_v49 = vpack.i.bf16 %v1330_v45, %v1329_v22 }
 0x36b   :  { %v4466_v30 = vadd.f32 %v737_v33, %v4463_v13  ;;  %v1239_v33 = vmax.f32 %v4354_v21, 1e-24 }
 0x36c   :  { %v768_v48 = vsel %vm218_vm1, %v4447_v7, -inf }
 0x36d   :  { %v765_v1 = vsel %vm218_vm1, %v4466_v30, -inf }
 0x36e   :  { %757 = vmax.xlane.f32.xlu0 %v756_v36 }
 0x36f   :  { %v3826_v53 = vpop.eup %3825 }
 0x370   :  { %v3828_v54 = vpop.eup %3827  ;;  %v1328_v55 = vmul.f32 %v3826_v53, %v4131_v20 }
 0x371   :  { %v1327_v58 = vmul.f32 %v3828_v54, %v4129_v19 }
 0x372   :  { %754 = vmax.xlane.f32.xlu0 %v753_v6 }
 0x373   :  { %v3749_v29 = vpack.i.bf16 %v1328_v55, %v1327_v58 }
 0x376   :  { %769 = vmax.xlane.f32.xlu0 %v768_v48 }
 0x378   :  { %3755 = vrot.lane.b32.xlu1 %v3754_v49, %s3991_s20 }
 0x38c   :  { %3750 = vrot.lane.b32.xlu0 %v3749_v29, %s3991_s20 }
 0x39c   :  { %766 = vmax.xlane.f32.xlu1 %v765_v1  ;;  %v1315_v1 = vmax.f32 %v4350_v17, 1e-24 }
 0x3ea   :  { %v752_v3 = vpop.xlane.xlu1 %751 }
 0x3eb   :  { %v772_v36 = vsub.f32 %v4388_v63, %v752_v3 }
 0x3ed   :  { %v781_v4 = vmul.f32 1.442695, %v772_v36 }
 0x3ef   :  { %3829 = vpow2.f32 %v781_v4 }
 0x3f3   :  { %v764_v6 = vpop.xlane.xlu0 %763 }
 0x3f4   :  { %v776_v47 = vsub.f32 %v744_v50, %v764_v6  ;;  %v761_v2 = vpop.xlane.xlu1 %760 }
 0x3f5   :  { %v775_v22 = vsub.f32 %v743_v51, %v761_v2 }
 0x3f6   :  { %v789_v59 = vmul.f32 1.442695, %v776_v47 }
 0x3f7   :  { %v749_v45 = vpop.xlane.xlu0 %748  ;;  %v787_v49 = vmul.f32 1.442695, %v775_v22 }
 0x3f8   :  { %3831 = vpow2.f32 %v789_v59  ;;  %v771_v46 = vsub.f32 %v739_v57, %v749_v45 }
 0x3f9   :  { %v4471_v48 = vpop.eup %3829 }
 0x3fa   :  { %v779_v52 = vmul.f32 1.442695, %v771_v46  ;;  %v798_v53 = vsel %vm218_vm1, %v4471_v48, 0.0 }
 0x3fb   :  { %v758_v54 = vpop.xlane.xlu0 %757  ;;  %799 = vadd.xlane.f32.xlu0 %v798_v53  ;;  %v1317_v53 = vmax.f32 %v4358_v24, 1e-24 }
 0x3fc   :  { %3833 = vpow2.f32 %v779_v52  ;;  %v774_v63 = vsub.f32 %v742_v37, %v758_v54 }
 0x3fd   :  { %3835 = vpow2.f32 %v787_v49 }
 0x3fe   :  { %v785_v55 = vmul.f32 1.442695, %v774_v63 }
 0x3ff   :  { %v755_v59 = vpop.xlane.xlu0 %754 }
 0x400   :  { %3837 = vpow2.f32 %v785_v55  ;;  %v773_v45 = vsub.f32 %v4437_v38, %v755_v59 }
 0x401   :  { %3839 = vrsqrt.f32 %v1316_v12 }
 0x402   :  { %v4475_v50 = vpop.eup %3831  ;;  %3841 = vrsqrt.f32 %v1239_v33  ;;  %v783_v49 = vmul.f32 1.442695, %v773_v45 }
 0x403   :  { %v810_v51 = vsel %vm218_vm1, %v4475_v50, 0.0  ;;  %3843 = vrsqrt.f32 %v1315_v1  ;;  %v770_v22 = vpop.xlane.xlu0 %769  ;;  %v1245_v1 = vmax.f32 %v4370_v43, 1e-24 }
 0x404   :  { %811 = vadd.xlane.f32.xlu0 %v810_v51  ;;  %v778_v46 = vsub.f32 %v4447_v7, %v770_v22  ;;  %3845 = vpow2.f32 %v783_v49  ;;  %v1240_v7 = vmax.f32 %v4352_v18, 1e-24 }
 0x406   :  { %v4479_v57 = vpop.eup %3833  ;;  %v793_v52 = vmul.f32 1.442695, %v778_v46 }
 0x407   :  { %v795_v58 = vsel %vm218_vm1, %v4479_v57, 0.0  ;;  %v4483_v29 = vpop.eup %3835 }
 0x408   :  { %796 = vadd.xlane.f32.xlu1 %v795_v58  ;;  %v807_v36 = vsel %vm218_vm1, %v4483_v29, 0.0  ;;  %3847 = vpow2.f32 %v793_v52  ;;  %v1243_v58 = vmax.f32 %v4366_v41, 1e-24 }
 0x40a   :  { %v4486_v37 = vpop.eup %3837 }
 0x40b   :  { %v804_v3 = vsel %vm218_vm1, %v4486_v37, 0.0  ;;  %v3840_v4 = vpop.eup %3839 }
 0x40c   :  { %805 = vadd.xlane.f32.xlu0 %v804_v3  ;;  %808 = vadd.xlane.f32.xlu1 %v807_v36  ;;  %v3842_v6 = vpop.eup %3841  ;;  %v1332_v17 = vmul.f32 %v3840_v4, %v4153_v31 }
 0x40d   :  { %v3844_v16 = vpop.eup %3843  ;;  %v1255_v47 = vmul.f32 %v3842_v6, %v4129_v19  ;;  %v1318_v19 = vmax.f32 %v4356_v23, 1e-24  ;;  %v1241_v23 = vmax.f32 %v4362_v39, 1e-24  ;;  %v4520_v39 = vpop.permute.xlu1 %3755 }
 0x40e   :  { %v1331_v21 = vmul.f32 %v3844_v16, %v4141_v27  ;;  %v4503_v54 = vpop.eup %3845 }
 0x40f   :  { %3849 = vrsqrt.f32 %v1318_v19  ;;  %v801_v38 = vsel %vm218_vm1, %v4503_v54, 0.0  ;;  %v3751_v19 = vpop.permute.xlu0 %3750 }
 0x410   :  { %v3759_v2 = vpack.i.bf16 %v1332_v17, %v1331_v21  ;;  %3851 = vrsqrt.f32 %v1317_v53 }
 0x411   :  { %3853 = vrsqrt.f32 %v1240_v7  ;;  %v3753_v7 = vunpack.i.h.bf16 %v3751_v19 }
 0x412   :  { %v4505_v63 = vpop.eup %3847  ;;  %3855 = vrsqrt.f32 %v1241_v23 }
 0x413   :  { %v816_v55 = vsel %vm218_vm1, %v4505_v63, 0.0  ;;  %3857 = vrsqrt.f32 %v1243_v58 }
 0x414   :  { %3859 = vrsqrt.f32 %v1245_v1 }
 0x419   :  { %v3850_v51 = vpop.eup %3849 }
 0x41a   :  { %v3852_v24 = vpop.eup %3851  ;;  %v1334_v33 = vmul.f32 %v3850_v51, %v4169_v35 }
 0x41b   :  { %v1333_v12 = vmul.f32 %v3852_v24, %v4159_v32  ;;  %v3854_v36 = vpop.eup %3853 }
 0x41c   :  { %v1256_v18 = vmul.f32 %v3854_v36, %v4131_v20  ;;  %v3856_v4 = vpop.eup %3855 }
 0x41d   :  { %1337 = vrot.lane.b32.xlu1 %v1255_v47, %s3992_s21  ;;  %v3764_v3 = vpack.i.bf16 %v1334_v33, %v1333_v12  ;;  %v1257_v41 = vmul.f32 %v3856_v4, %v4137_v26  ;;  %v3858_v6 = vpop.eup %3857  ;;  %v3218_v26 = vld [vmem:[%s5099_s15 + $0x1] ss:$0 sm:$0xff] }
 0x41e   :  { %v1259_v43 = vmul.f32 %v3858_v6, %v4141_v27  ;;  %v3860_v47 = vpop.eup %3859  ;;  %v1242_v27 = vmax.f32 %v4360_v25, 1e-24 }
 0x41f   :  { %v1261_v20 = vmul.f32 %v3860_v47, %v4159_v32  ;;  %v1244_v32 = vmax.f32 %v4364_v40, 1e-24 }
 0x422   :  { %3760 = vrot.lane.b32.xlu0 %v3759_v2, %s3991_s20 }
 0x429   :  { %v767_v16 = vpop.xlane.xlu1 %766 }
 0x42a   :  { %v777_v21 = vsub.f32 %v4466_v30, %v767_v16  ;;  %v1246_v30 = vmax.f32 %v4368_v42, 1e-24  ;;  %v3758_v16 = vunpack.i.h.bf16 %v4520_v39 }
 0x42c   :  { %v791_v17 = vmul.f32 1.442695, %v777_v21 }
 0x42e   :  { %3861 = vpow2.f32 %v791_v17 }
 0x42f   :  { %3863 = vrsqrt.f32 %v1242_v27 }
 0x430   :  { %3865 = vrsqrt.f32 %v1244_v32 }
 0x431   :  { %3867 = vrsqrt.f32 %v1246_v30 }
 0x438   :  { %v4532_v2 = vpop.eup %3861 }
 0x439   :  { %v813_v59 = vsel %vm218_vm1, %v4532_v2, 0.0  ;;  %v3864_v22 = vpop.eup %3863 }
 0x43a   :  { %v1258_v45 = vmul.f32 %v3864_v22, %v4143_v28  ;;  %v3866_v46 = vpop.eup %3865 }
 0x43b   :  { %v1260_v49 = vmul.f32 %v3866_v46, %v4153_v31  ;;  %v3868_v25 = vpop.eup %3867  ;;  %v3752_v31 = vunpack.i.l.bf16 %v3751_v19 }
 0x43c   :  { %v1262_v52 = vmul.f32 %v3868_v25, %v4169_v35 }
 0x43d   :  { %v3624_v58 = vpack.c.bf16 %v3753_v7, %v3752_v31 }
 0x441   :  { %817 = vadd.xlane.f32.xlu0 %v816_v55  ;;  %802 = vadd.xlane.f32.xlu1 %v801_v38 }
 0x452   :  { %3765 = vrot.lane.b32.xlu1 %v3764_v3, %s3991_s20 }
 0x457   :  { %1339 = vrot.lane.b32.xlu0 %v1256_v18, %s3992_s21 }
 0x45b   :  { %1432 = vrot.lane.b32.xlu0 %v1257_v41, %s3992_s21 }
 0x45f   :  { %1527 = vrot.lane.b32.xlu0 %v1259_v43, %s3992_s21  ;;  %v3757_v43 = vunpack.i.l.bf16 %v4520_v39 }
 0x461   :  { %v3630_v17 = vpack.c.bf16 %v3758_v16, %v3757_v43 }
 0x463   :  { %1622 = vrot.lane.b32.xlu0 %v1261_v20, %s3992_s21 }
 0x467   :  { %1723 = vperm.xlu0 %3728, %v3218_v26  }
 0x476   :  { %814 = vadd.xlane.f32.xlu1 %v813_v59 }
 0x487   :  { %1434 = vrot.lane.b32.xlu1 %v1258_v45, %s3992_s21 }
 0x488   :  { %v800_v40 = vpop.xlane.xlu0 %799 }
 0x489   :  { %3869 = vrcp.f32 %v800_v40 }
 0x48b   :  { %1529 = vrot.lane.b32.xlu1 %v1260_v49, %s3992_s21 }
 0x48f   :  { %1624 = vrot.lane.b32.xlu1 %v1262_v52, %s3992_s21 }
 0x491   :  { %v812_v53 = vpop.xlane.xlu0 %811 }
 0x493   :  { %v3870_v28 = vpop.eup %3869 }
 0x494   :  { %v828_v35 = vmul.f32 %v3870_v28, %v4471_v48 }
 0x495   :  { %v797_v42 = vpop.xlane.xlu1 %796 }
 0x496   :  { %3871 = vrcp.f32 %v797_v42 }
 0x497   :  { %3873 = vrcp.f32 %v812_v53 }
 0x499   :  { %v809_v55 = vpop.xlane.xlu1 %808  ;;  %v806_v51 = vpop.xlane.xlu0 %805 }
 0x49a   :  { %3875 = vrcp.f32 %v809_v55  ;;  %v3219_v55 = vld [vmem:[%s5100_s13 + $0x10] sm:$0xff]  ;;  %s3994_s13 = smov 48  }
 0x49b   :  { %3877 = vrcp.f32 %v806_v51 }
 0x49d   :  { %v3761_v33 = vpop.permute.xlu0 %3760  ;;  %v1338_v36 = vpop.permute.xlu1 %1337 }
 0x49e   :  { %v3763_v48 = vunpack.i.h.bf16 %v3761_v33 }
 0x4a0   :  { %v3872_v38 = vpop.eup %3871 }
 0x4a1   :  { %v827_v23 = vmul.f32 %v3872_v38, %v4479_v57  ;;  %v3874_v24 = vpop.eup %3873  ;;  %v3762_v57 = vunpack.i.l.bf16 %v3761_v33 }
 0x4a2   :  { %v832_v3 = vmul.f32 %v3874_v24, %v4475_v50 }
 0x4a3   :  { %3428 = vmatprep.mubr.msk.f32.mxu0 %vm218_vm1, %v827_v23  ;;  %v3636_v18 = vpack.c.bf16 %v3763_v48, %v3762_v57 }
 0x4a4   :  { %3429 = vmatmul.mubr.msk.f32.vlgmr.msra.gmra.mrb[6].mxu0 %vm218_vm1, %v828_v35  ;;  %v3876_v12 = vpop.eup %3875 }
 0x4a5   :  { %3619 = vmatpush3.bf16.msra.mxu0 %v4372_v56  ;;  %v831_v1 = vmul.f32 %v3876_v12, %v4483_v29  ;;  %v3878_v41 = vpop.eup %3877 }
 0x4a6   :  { %3626 = vmatprep.subr.msk.bf16.mxu0 %vm4270_vm2, %v3624_v58  ;;  %v830_v20 = vmul.f32 %v3878_v41, %v4486_v37 }
 0x4a7   :  { %3442 = vmatprep.mubr.msk.f32.mxu0 %vm218_vm1, %v831_v1 }
 0x4a8   :  { %3443 = vmatmul.mubr.msk.f32.vlgmr.msra.gmra.mrb[8].mxu0 %vm218_vm1, %v832_v3 }
 0x4a9   :  { %3456 = vmatprep.mubr.msk.f32.mxu0 %vm218_vm1, %v1338_v36 }
 0x4ae   :  { %3629 = vmatpush3.bf16.xpose.msk.msra.mxu0 %vm4270_vm2, %v3624_v58 }
 0x4af   :  { %3638 = vmatprep.subr.msk.bf16.mxu0 %vm4270_vm2, %v3636_v18 }
 0x4ce   :  { %v818_v56 = vpop.xlane.xlu0 %817  ;;  %v803_v29 = vpop.xlane.xlu1 %802 }
 0x4cf   :  { %3879 = vrcp.f32 %v803_v29 }
 0x4d0   :  { %3881 = vrcp.f32 %v818_v56 }
 0x4d2   :  { %v1340_v50 = vpop.permute.xlu0 %1339  ;;  %v3766_v26 = vpop.permute.xlu1 %3765 }
 0x4d3   :  { %3457 = vmatmul.mubr.msk.f32.vlgmr.msra.gmra.mrb[10].mxu0 %vm218_vm1, %v1340_v50  ;;  %v3768_v32 = vunpack.i.h.bf16 %v3766_v26  ;;  %v3767_v30 = vunpack.i.l.bf16 %v3766_v26 }
 0x4d4   :  { %3641 = vmatpush3.bf16.xpose.msk.msra.mxu0 %vm4270_vm2, %v3636_v18 }
 0x4d6   :  { %v1433_v4 = vpop.permute.xlu0 %1432 }
 0x4d9   :  { %v3880_v6 = vpop.eup %3879 }
 0x4da   :  { %v1528_v47 = vpop.permute.xlu0 %1527  ;;  %v829_v21 = vmul.f32 %v3880_v6, %v4503_v54  ;;  %v3882_v54 = vpop.eup %3881 }
 0x4db   :  { %3470 = vmatprep.mubr.msk.f32.mxu0 %vm218_vm1, %v1528_v47  ;;  %v834_v45 = vmul.f32 %v3882_v54, %v4505_v63 }
 0x4dc   :  { %3435 = vmatprep.mubr.msk.f32.mxu1 %vm218_vm1, %v829_v21 }
 0x4dd   :  { %3436 = vmatmul.mubr.msk.f32.vlgmr.msra.gmra.mrb[10].mxu1 %vm218_vm1, %v830_v20 }
 0x4de   :  { %3623 = vmatpush3.bf16.msra.mxu1 %v4375_v60  ;;  %v3642_v60 = vpack.c.bf16 %v3768_v32, %v3767_v30  ;;  %v1623_v46 = vpop.permute.xlu0 %1622 }
 0x4df   :  { %3632 = vmatprep.subr.msk.bf16.mxu1 %vm4270_vm2, %v3630_v17 }
 0x4e6   :  { %v1724_v19 = vpop.permute.xlu0 %1723 }
 0x503   :  { %v815_v39 = vpop.xlane.xlu1 %814 }
 0x504   :  { %3883 = vrcp.f32 %v815_v39 }
 0x507   :  { %v1435_v27 = vpop.permute.xlu1 %1434 }
 0x50b   :  { %v1530_v59 = vpop.permute.xlu1 %1529 }
 0x50c   :  { %3471 = vmatmul.mubr.msk.f32.vlgmr.msra.gmra.mrb[12].mxu0 %vm218_vm1, %v1530_v59 }
 0x50e   :  { %v3884_v37 = vpop.eup %3883 }
 0x50f   :  { %v833_v22 = vmul.f32 %v3884_v37, %v4532_v2  ;;  %v1625_v63 = vpop.permute.xlu1 %1624 }
 0x511   :  { %3449 = vmatprep.mubr.msk.f32.mxu1 %vm218_vm1, %v833_v22 }
 0x512   :  { %3450 = vmatmul.mubr.msk.f32.vlgmr.msra.gmra.mrb[12].mxu1 %vm218_vm1, %v834_v45 }
 0x513   :  { %3635 = vmatpush3.bf16.xpose.msk.msra.mxu1 %vm4270_vm2, %v3630_v17  ;;  %3463 = vmatprep.mubr.msk.f32.mxu1 %vm218_vm1, %v1433_v4 }
 0x514   :  { %3644 = vmatprep.subr.msk.bf16.mxu1 %vm4270_vm2, %v3642_v60 }
 0x51a   :  { %3464 = vmatmul.mubr.msk.f32.vlgmr.msra.gmra.mrb[14].mxu1 %vm218_vm1, %v1435_v27 }
 0x51b   :  { %3647 = vmatpush3.bf16.xpose.msk.msra.mxu1 %vm4270_vm2, %v3642_v60  ;;  %3477 = vmatprep.mubr.msk.f32.mxu1 %vm218_vm1, %v1623_v46 }
 0x522   :  { %3478 = vmatmul.mubr.msk.f32.vlgmr.msra.gmra.mrb[16].mxu1 %vm218_vm1, %v1625_v63 }
 0x577   :  { %v4589_v2 = vpop.f32.mrb[6].mxu0 }
 0x578   :  { %v4591_v49 = vpop.f32.mrb[7].mxu0 }
 0x57b   :  { %v4593_v25 = vpop.f32.mrb[8].mxu0 }
 0x57c   :  { %v4595_v52 = vpop.f32.mrb[9].mxu0 }
 0x5a6   :  { %v3458_v40 = vpop.f32.mrb[10].mxu0 }
 0x5a7   :  { %v1727_v42 = vmul.f32 %v3458_v40, %v1724_v19  ;;  %v1421_v53 = vpop.f32.mrb[11].mxu0 }
 0x5a8   :  { %v1726_v28 = vmul.f32 %v1724_v19, %v1421_v53 }
 0x5a9   :  { %v1738_v38 = vadd.f32 %v3220_v34, %v1727_v42 }
 0x5aa   :  { %v1737_v7 = vadd.f32 %v3219_v55, %v1726_v28 }
 0x5ab   :  { %v1746_v31 = vadd.f32 %v1738_v38, %v4385_v62 }
 0x5ac   :  { %v1745_v51 = vadd.f32 %v1737_v7, %v4414_v15 }
 0x5ad   :  { %v1756_v23 = vsel %vm218_vm1, %v1746_v31, -inf }
 0x5ae   :  { %1757 = vmax.xlane.f32.xlu0 %v1756_v23  ;;  %v1753_v35 = vsel %vm218_vm1, %v1745_v51, -inf }
 0x5af   :  { %1754 = vmax.xlane.f32.xlu1 %v1753_v35 }
 0x5b0   :  { %v4607_v24 = vpop.f32.mrb[10].mxu1 }
 0x5b1   :  { %v4609_v58 = vpop.f32.mrb[11].mxu1 }
 0x5df   :  { %v3472_v12 = vpop.f32.mrb[12].mxu0 }
 0x5e0   :  { %v1611_v33 = vpop.f32.mrb[13].mxu0  ;;  %v1731_v48 = vmul.f32 %v3472_v12, %v1724_v19 }
 0x5e1   :  { %v1730_v62 = vmul.f32 %v1724_v19, %v1611_v33 }
 0x5e2   :  { %v1742_v56 = vadd.f32 %v3220_v34, %v1731_v48 }
 0x5e3   :  { %v1741_v50 = vadd.f32 %v3219_v55, %v1730_v62 }
 0x5e4   :  { %v1750_v43 = vadd.f32 %v1742_v56, %v4403_v44 }
 0x5e5   :  { %v4611_v1 = vpop.f32.mrb[12].mxu1  ;;  %v1749_v20 = vadd.f32 %v1741_v50, %v4409_v14 }
 0x5e6   :  { %v4613_v3 = vpop.f32.mrb[13].mxu1  ;;  %v1768_v59 = vsel %vm218_vm1, %v1750_v43, -inf }
 0x5ed   :  { %v3465_v57 = vpop.f32.mrb[14].mxu1 }
 0x5ee   :  { %v1729_v15 = vmul.f32 %v3465_v57, %v1724_v19  ;;  %v1516_v36 = vpop.f32.mrb[15].mxu1 }
 0x5ef   :  { %v1728_v18 = vmul.f32 %v1724_v19, %v1516_v36 }
 0x5f0   :  { %v1740_v29 = vadd.f32 %v3220_v34, %v1729_v15 }
 0x5f1   :  { %v1739_v4 = vadd.f32 %v3219_v55, %v1728_v18 }
 0x5f2   :  { %v1748_v41 = vadd.f32 %v1740_v29, %v4425_v61 }
 0x5f3   :  { %v1747_v6 = vadd.f32 %v1739_v4, %v4433_v0  ;;  %v1765_v0 = vsel %vm218_vm1, %v1749_v20, -inf }
 0x5f4   :  { %v1762_v16 = vsel %vm218_vm1, %v1748_v41, -inf }
 0x5f5   :  { %1763 = vmax.xlane.f32.xlu1 %v1762_v16  ;;  %v3479_v47 = vpop.f32.mrb[16].mxu1  ;;  %v1759_v21 = vsel %vm218_vm1, %v1747_v6, -inf }
 0x5f6   :  { %v1733_v17 = vmul.f32 %v3479_v47, %v1724_v19  ;;  %1760 = vmax.xlane.f32.xlu0 %v1759_v21  ;;  %v1706_v26 = vpop.f32.mrb[17].mxu1 }
 0x5f7   :  { %v1732_v39 = vmul.f32 %v1724_v19, %v1706_v26 }
 0x5f8   :  { %v1744_v27 = vadd.f32 %v3220_v34, %v1733_v17 }
 0x5f9   :  { %v1743_v61 = vadd.f32 %v3219_v55, %v1732_v39  ;;  %1769 = vmax.xlane.f32.xlu1 %v1768_v59 }
 0x5fa   :  { %1766 = vmax.xlane.f32.xlu0 %v1765_v0  ;;  %v1752_v44 = vadd.f32 %v1744_v27, %v4442_v5 }
 0x5fb   :  { %v1751_v54 = vadd.f32 %v1743_v61, %v4463_v13 }
 0x5fc   :  { %v1774_v37 = vsel %vm218_vm1, %v1752_v44, -inf }
 0x5fd   :  { %1775 = vmax.xlane.f32.xlu1 %v1774_v37  ;;  %v1771_v14 = vsel %vm218_vm1, %v1751_v54, -inf }
 0x5fe   :  { %1772 = vmax.xlane.f32.xlu0 %v1771_v14 }
 0x60e   :  { %3775 = vrot.lane.b32.xlu1 %v4331_v10, %s3994_s13 }
 0x614   :  { %3770 = vrot.lane.b32.xlu0 %v4322_v8, %s3994_s13 }
 0x63b   :  { %v1758_v32 = vpop.xlane.xlu0 %1757 }
 0x63c   :  { %v1778_v30 = vsub.f32 %v1746_v31, %v1758_v32  ;;  %v1755_v22 = vpop.xlane.xlu1 %1754 }
 0x63d   :  { %v1777_v45 = vsub.f32 %v1745_v51, %v1755_v22 }
 0x63e   :  { %v1787_v5 = vmul.f32 1.442695, %v1778_v30 }
 0x63f   :  { %v1785_v60 = vmul.f32 1.442695, %v1777_v45 }
 0x640   :  { %3885 = vpow2.f32 %v1787_v5 }
 0x641   :  { %3887 = vpow2.f32 %v1785_v60 }
 0x64a   :  { %v4631_v13 = vpop.eup %3885 }
 0x64b   :  { %v4633_v46 = vpop.eup %3887  ;;  %v1804_v63 = vsel %vm218_vm1, %v4631_v13, 0.0 }
 0x64c   :  { %1805 = vadd.xlane.f32.xlu1 %v1804_v63  ;;  %v1801_v10 = vsel %vm218_vm1, %v4633_v46, 0.0 }
 0x64d   :  { %1802 = vadd.xlane.f32.xlu0 %v1801_v10 }
 0x682   :  { %v1764_v8 = vpop.xlane.xlu1 %1763 }
 0x683   :  { %v1780_v19 = vsub.f32 %v1748_v41, %v1764_v8  ;;  %v1761_v40 = vpop.xlane.xlu0 %1760 }
 0x684   :  { %v1779_v34 = vsub.f32 %v1747_v6, %v1761_v40 }
 0x685   :  { %v1791_v42 = vmul.f32 1.442695, %v1780_v19 }
 0x686   :  { %v1789_v53 = vmul.f32 1.442695, %v1779_v34  ;;  %v1770_v55 = vpop.xlane.xlu1 %1769 }
 0x687   :  { %3889 = vpow2.f32 %v1791_v42  ;;  %v1782_v28 = vsub.f32 %v1750_v43, %v1770_v55  ;;  %v1767_v38 = vpop.xlane.xlu0 %1766 }
 0x688   :  { %3891 = vpow2.f32 %v1789_v53  ;;  %v1781_v7 = vsub.f32 %v1749_v20, %v1767_v38 }
 0x689   :  { %v1795_v31 = vmul.f32 1.442695, %v1782_v28 }
 0x68a   :  { %v1793_v51 = vmul.f32 1.442695, %v1781_v7  ;;  %v1776_v23 = vpop.xlane.xlu1 %1775 }
 0x68b   :  { %3893 = vpow2.f32 %v1795_v31  ;;  %v1784_v35 = vsub.f32 %v1752_v44, %v1776_v23  ;;  %v1773_v12 = vpop.xlane.xlu0 %1772 }
 0x68c   :  { %3895 = vpow2.f32 %v1793_v51  ;;  %v1783_v33 = vsub.f32 %v1751_v54, %v1773_v12  ;;  %v2229_v12 = vld [vmem:[%s5102_s3] sm:$0xff] }
 0x68d   :  { %v1799_v48 = vmul.f32 1.442695, %v1784_v35 }
 0x68e   :  { %v1797_v62 = vmul.f32 1.442695, %v1783_v33  ;;  %v3776_v57 = vpop.permute.xlu1 %3775  ;;  %v2230_v33 = vld [vmem:[%s5102_s3 + $0x8] sm:$0xff] }
 0x68f   :  { %3897 = vpow2.f32 %v1799_v48  ;;  %v3778_v15 = vunpack.i.h.bf16 %v3776_v57  ;;  %v3777_v36 = vunpack.i.l.bf16 %v3776_v57  ;;  %v3771_v18 = vpop.permute.xlu0 %3770  ;;  %v2231_v48 = vld [vmem:[%s5102_s3 + $0x10] sm:$0xff]  ;;  %v2232_v57 = vld [vmem:[%s5102_s3 + $0x18] sm:$0xff] }
 0x690   :  { %3899 = vpow2.f32 %v1797_v62  ;;  %v3773_v56 = vunpack.i.h.bf16 %v3771_v18  ;;  %v3772_v29 = vunpack.i.l.bf16 %v3771_v18  ;;  %v3664_v62 = vpack.c.bf16 %v2230_v33, %v2229_v12  ;;  %v2512_v33 = vld [vmem:[%s5104_s7] sm:$0xff] }
 0x691   :  { %v3890_v50 = vpop.eup %3889  ;;  %v3652_v4 = vpack.c.bf16 %v3778_v15, %v3777_v36  ;;  %v3668_v15 = vpack.c.bf16 %v2232_v57, %v2231_v48  ;;  %v2513_v48 = vld [vmem:[%s5104_s7 + $0x8] sm:$0xff]  ;;  %v2514_v57 = vld [vmem:[%s5104_s7 + $0x10] sm:$0xff] }
 0x692   :  { %v3892_v41 = vpop.eup %3891  ;;  %v3648_v6 = vpack.c.bf16 %v3773_v56, %v3772_v29  ;;  %v1810_v16 = vsel %vm218_vm1, %v3890_v50, 0.0 }
 0x693   :  { %1811 = vadd.xlane.f32.xlu1 %v1810_v16  ;;  %3653 = vmatprep.subr.bf16.mxu1 %v3652_v4  ;;  %v1807_v43 = vsel %vm218_vm1, %v3892_v41, 0.0 }
 0x694   :  { %3655 = vmatpush3.bf16.msra.mxu1 %v3652_v4  ;;  %1808 = vadd.xlane.f32.xlu0 %v1807_v43 }
 0x695   :  { %v3894_v47 = vpop.eup %3893  ;;  %3649 = vmatprep.subr.bf16.mxu0 %v3648_v6 }
 0x696   :  { %v3896_v21 = vpop.eup %3895  ;;  %3651 = vmatpush3.bf16.msra.mxu0 %v3648_v6  ;;  %v1816_v20 = vsel %vm218_vm1, %v3894_v47, 0.0 }
 0x697   :  { %1817 = vadd.xlane.f32.xlu1 %v1816_v20  ;;  %v1813_v17 = vsel %vm218_vm1, %v3896_v21, 0.0 }
 0x698   :  { %1814 = vadd.xlane.f32.xlu0 %v1813_v17 }
 0x699   :  { %v3898_v26 = vpop.eup %3897 }
 0x69a   :  { %v3900_v39 = vpop.eup %3899  ;;  %v1822_v27 = vsel %vm218_vm1, %v3898_v26, 0.0 }
 0x69b   :  { %1823 = vadd.xlane.f32.xlu1 %v1822_v27  ;;  %v1819_v59 = vsel %vm218_vm1, %v3900_v39, 0.0 }
 0x69c   :  { %1820 = vadd.xlane.f32.xlu0 %v1819_v59 }
 0x6ac   :  { %3780 = vrot.lane.b32.xlu1 %v4327_v9, %s3994_s13 }
 0x6b2   :  { %3785 = vrot.lane.b32.xlu0 %v4337_v11, %s3994_s13 }
 0x6d9   :  { %v1806_v61 = vpop.xlane.xlu1 %1805 }
 0x6da   :  { %3901 = vrcp.f32 %v1806_v61  ;;  %v1803_v0 = vpop.xlane.xlu0 %1802 }
 0x6db   :  { %3903 = vrcp.f32 %v1803_v0 }
 0x6e4   :  { %v3902_v44 = vpop.eup %3901 }
 0x6e5   :  { %v3904_v54 = vpop.eup %3903  ;;  %v1834_v14 = vmul.f32 %v3902_v44, %v4631_v13 }
 0x6e6   :  { %v1833_v37 = vmul.f32 %v3904_v54, %v4633_v46 }
 0x6e8   :  { %3484 = vmatprep.mubr.msk.f32.mxu0 %vm218_vm1, %v1833_v37 }
 0x6e9   :  { %3485 = vmatmul.mubr.msk.f32.vlgmr.msra.gmra.mrb[14].mxu0 %vm218_vm1, %v1834_v14 }
 0x720   :  { %v1812_v32 = vpop.xlane.xlu1 %1811 }
 0x721   :  { %3905 = vrcp.f32 %v1812_v32  ;;  %v1809_v9 = vpop.xlane.xlu0 %1808 }
 0x722   :  { %3907 = vrcp.f32 %v1809_v9 }
 0x724   :  { %v1818_v30 = vpop.xlane.xlu1 %1817 }
 0x725   :  { %3909 = vrcp.f32 %v1818_v30  ;;  %v1815_v11 = vpop.xlane.xlu0 %1814 }
 0x726   :  { %3911 = vrcp.f32 %v1815_v11 }
 0x728   :  { %v1824_v22 = vpop.xlane.xlu1 %1823 }
 0x729   :  { %3913 = vrcp.f32 %v1824_v22  ;;  %v1821_v45 = vpop.xlane.xlu0 %1820 }
 0x72a   :  { %3915 = vrcp.f32 %v1821_v45 }
 0x72b   :  { %v3906_v5 = vpop.eup %3905 }
 0x72c   :  { %v3908_v60 = vpop.eup %3907  ;;  %v3781_v46 = vpop.permute.xlu1 %3780  ;;  %v1836_v19 = vmul.f32 %v3906_v5, %v3890_v50 }
 0x72d   :  { %v3783_v13 = vunpack.i.h.bf16 %v3781_v46  ;;  %v3782_v63 = vunpack.i.l.bf16 %v3781_v46  ;;  %v3786_v10 = vpop.permute.xlu0 %3785  ;;  %v1835_v8 = vmul.f32 %v3908_v60, %v3892_v41 }
 0x72e   :  { %v3788_v40 = vunpack.i.h.bf16 %v3786_v10  ;;  %v3787_v34 = vunpack.i.l.bf16 %v3786_v10 }
 0x72f   :  { %v3910_v42 = vpop.eup %3909  ;;  %v3656_v53 = vpack.c.bf16 %v3783_v13, %v3782_v63  ;;  %3491 = vmatprep.mubr.msk.f32.mxu1 %vm218_vm1, %v1835_v8 }
 0x730   :  { %v3912_v55 = vpop.eup %3911  ;;  %v3660_v28 = vpack.c.bf16 %v3788_v40, %v3787_v34  ;;  %3492 = vmatmul.mubr.msk.f32.vlgmr.msra.gmra.mrb[18].mxu1 %vm218_vm1, %v1836_v19  ;;  %v1838_v31 = vmul.f32 %v3910_v42, %v3894_v47 }
 0x731   :  { %3657 = vmatprep.subr.bf16.mxu0 %v3656_v53  ;;  %v1837_v38 = vmul.f32 %v3912_v55, %v3896_v21 }
 0x732   :  { %3659 = vmatpush3.bf16.msra.mxu0 %v3656_v53  ;;  %3661 = vmatprep.subr.bf16.mxu1 %v3660_v28 }
 0x733   :  { %v3914_v7 = vpop.eup %3913  ;;  %3498 = vmatprep.mubr.msk.f32.mxu0 %vm218_vm1, %v1837_v38  ;;  %3663 = vmatpush3.bf16.msra.mxu1 %v3660_v28 }
 0x734   :  { %v3916_v51 = vpop.eup %3915  ;;  %v1840_v35 = vmul.f32 %v3914_v7, %v3898_v26  ;;  %3665 = vmatprep.subr.bf16.mxu0 %v3664_v62 }
 0x735   :  { %3499 = vmatmul.mubr.msk.f32.vlgmr.msra.gmra.mrb[16].mxu0 %vm218_vm1, %v1838_v31  ;;  %v1839_v23 = vmul.f32 %v3916_v51, %v3900_v39 }
 0x736   :  { %3667 = vmatpush3.bf16.msra.mxu0 %v3664_v62  ;;  %v3672_v62 = vpack.c.bf16 %v2513_v48, %v2512_v33 }
 0x737   :  { %3505 = vmatprep.mubr.msk.f32.mxu1 %vm218_vm1, %v1839_v23  ;;  %3669 = vmatprep.subr.bf16.mxu0 %v3668_v15 }
 0x738   :  { %3506 = vmatmul.mubr.msk.f32.vlgmr.msra.gmra.mrb[20].mxu1 %vm218_vm1, %v1840_v35  ;;  %3673 = vmatprep.subr.bf16.mxu1 %v3672_v62 }
 0x739   :  { %3675 = vmatpush3.bf16.msra.mxu1 %v3672_v62 }
 0x73a   :  { %3671 = vmatpush3.bf16.msra.mxu0 %v3668_v15  ;;  %v2515_v15 = vld [vmem:[%s5104_s7 + $0x18] sm:$0xff] }
 0x7bc   :  { %v3486_v36 = vpop.f32.mrb[14].mxu0 }
 0x7bd   :  { %2199 = vrot.lane.b32.xlu0 %v3486_v36, %s3995_s25  ;;  %v1919_v18 = vpop.f32.mrb[15].mxu0  ;;  %v3676_v36 = vpack.c.bf16 %v2515_v15, %v2514_v57 }
 0x7be   :  { %2197 = vrot.lane.b32.xlu1 %v1919_v18, %s3995_s25 }
 0x7bf   :  { %3677 = vmatprep.subr.bf16.mxu1 %v3676_v36 }
 0x7c0   :  { %3679 = vmatpush3.bf16.msra.mxu1 %v3676_v36 }
 0x803   :  { %v3493_v56 = vpop.f32.mrb[18].mxu1 }
 0x804   :  { %v2006_v29 = vpop.f32.mrb[19].mxu1  ;;  %2203 = vrot.lane.b32.xlu0 %v3493_v56, %s3995_s25 }
 0x805   :  { %2201 = vrot.lane.b32.xlu1 %v2006_v29, %s3995_s25 }
 0x808   :  { %v3500_v50 = vpop.f32.mrb[16].mxu0 }
 0x809   :  { %2207 = vrot.lane.b32.xlu0 %v3500_v50, %s3995_s25  ;;  %v2093_v4 = vpop.f32.mrb[17].mxu0 }
 0x80a   :  { %2205 = vrot.lane.b32.xlu1 %v2093_v4, %s3995_s25 }
 0x80b   :  { %v3507_v41 = vpop.f32.mrb[20].mxu1 }
 0x80c   :  { %v2180_v6 = vpop.f32.mrb[21].mxu1 }
 0x80d   :  { %2211 = vrot.lane.b32.xlu0 %v3507_v41, %s3995_s25 }
 0x80e   :  { %2209 = vrot.lane.b32.xlu1 %v2180_v6, %s3995_s25 }
 0x82f   :  { %v2200_v16 = vpop.permute.xlu0 %2199 }
 0x830   :  { %v2198_v43 = vpop.permute.xlu1 %2197  ;;  %v2222_v21 = vsel %vm218_vm1, %v4589_v2, %v2200_v16 }
 0x831   :  { %v2221_v47 = vsel %vm218_vm1, %v4591_v49, %v2198_v43 }
 0x832   :  { %3516 = vmatprep.mubr.msk.f32.mxu0 %vm72_vm0, %v2221_v47 }
 0x833   :  { %3517 = vmatmul.mubr.msk.f32.vlgmr.msra.gmra.mrb[18].mxu0 %vm72_vm0, %v2222_v21 }
 0x876   :  { %v2204_v20 = vpop.permute.xlu0 %2203 }
 0x877   :  { %v2202_v17 = vpop.permute.xlu1 %2201  ;;  %v2224_v39 = vsel %vm218_vm1, %v4607_v24, %v2204_v20 }
 0x878   :  { %v2223_v26 = vsel %vm218_vm1, %v4609_v58, %v2202_v17 }
 0x879   :  { %3519 = vmatprep.mubr.msk.f32.mxu0 %vm72_vm0, %v2223_v26 }
 0x87a   :  { %3520 = vmatmul.mubr.msk.f32.gmra.mrb[20].mxu0 %vm72_vm0, %v2224_v39 }
 0x87b   :  { %v2208_v49 = vpop.permute.xlu0 %2207 }
 0x87c   :  { %v2206_v27 = vpop.permute.xlu1 %2205  ;;  %v2226_v59 = vsel %vm218_vm1, %v4593_v25, %v2208_v49  ;;  %v3229_v25 = vld [vmem:[%s5103_s4] ss:$0 sm:$0xff] }
 0x87d   :  { %v2225_v2 = vsel %vm218_vm1, %v4595_v52, %v2206_v27 }
 0x87e   :  { %3522 = vmatprep.mubr.msk.f32.mxu0 %vm72_vm0, %v2225_v2 }
 0x87f   :  { %v2212_v61 = vpop.permute.xlu0 %2211  ;;  %3523 = vmatmul.mubr.msk.f32.gmra.mrb[22].mxu0 %vm72_vm0, %v2226_v59 }
 0x880   :  { %v2210_v58 = vpop.permute.xlu1 %2209  ;;  %v2228_v0 = vsel %vm218_vm1, %v4611_v1, %v2212_v61 }
 0x881   :  { %v2227_v24 = vsel %vm218_vm1, %v4613_v3, %v2210_v58 }
 0x882   :  { %3525 = vmatprep.mubr.msk.f32.mxu0 %vm72_vm0, %v2227_v24 }
 0x883   :  { %3526 = vmatmul.mubr.msk.f32.gmra.mrb[24].mxu0 %vm72_vm0, %v2228_v0 }
 0x906   :  { %v3518_v52 = vpop.f32.mrb[18].mxu0 }
 0x907   :  { %v2336_v44 = vadd.f32 %v3518_v52, %v3229_v25  ;;  %v2330_v54 = vpop.f32.mrb[19].mxu0 }
 0x908   :  { %v2331_v37 = vadd.f32 %v3229_v25, %v2330_v54 }
 0x909   :  { %v2374_v14 = vsel %vm72_vm0, %v2336_v44, 0.0 }
 0x90a   :  { %2375 = vadd.xlane.f32.xlu0 %v2374_v14  ;;  %v2371_v3 = vsel %vm72_vm0, %v2331_v37, 0.0 }
 0x90b   :  { %2372 = vadd.xlane.f32.xlu1 %v2371_v3 }
 0x94d   :  { %v3521_v32 = vpop.f32.mrb[20].mxu0 }
 0x94e   :  { %v2346_v1 = vadd.f32 %v3521_v32, %v3229_v25  ;;  %v2340_v9 = vpop.f32.mrb[21].mxu0 }
 0x94f   :  { %v2341_v30 = vadd.f32 %v3229_v25, %v2340_v9 }
 0x950   :  { %v2380_v11 = vsel %vm72_vm0, %v2346_v1, 0.0 }
 0x951   :  { %2381 = vadd.xlane.f32.xlu1 %v2380_v11  ;;  %v2377_v22 = vsel %vm72_vm0, %v2341_v30, 0.0 }
 0x952   :  { %v3524_v45 = vpop.f32.mrb[22].mxu0  ;;  %2378 = vadd.xlane.f32.xlu0 %v2377_v22 }
 0x953   :  { %v2356_v5 = vadd.f32 %v3524_v45, %v3229_v25  ;;  %v2350_v60 = vpop.f32.mrb[23].mxu0 }
 0x954   :  { %v2351_v46 = vadd.f32 %v3229_v25, %v2350_v60 }
 0x955   :  { %v2386_v13 = vsel %vm72_vm0, %v2356_v5, 0.0 }
 0x956   :  { %v3527_v63 = vpop.f32.mrb[24].mxu0  ;;  %2387 = vadd.xlane.f32.xlu1 %v2386_v13  ;;  %v2383_v10 = vsel %vm72_vm0, %v2351_v46, 0.0 }
 0x957   :  { %v2366_v8 = vadd.f32 %v3527_v63, %v3229_v25  ;;  %v2360_v19 = vpop.f32.mrb[25].mxu0  ;;  %2384 = vadd.xlane.f32.xlu0 %v2383_v10  ;;  %v4768_v63 = vld [vmem:[%s5106_s6] ss:$0 sm:$0xff] }
 0x958   :  { %v2361_v40 = vadd.f32 %v3229_v25, %v2360_v19 }
 0x959   :  { %v2392_v34 = vsel %vm72_vm0, %v2366_v8, 0.0 }
 0x95a   :  { %2393 = vadd.xlane.f32.xlu1 %v2392_v34  ;;  %v2389_v42 = vsel %vm72_vm0, %v2361_v40, 0.0  ;;  %v3981_v34 = vld [vmem:[%s5097_s0] sm:$0xff] }
 0x95b   :  { %2390 = vadd.xlane.f32.xlu0 %v2389_v42 }
 0x997   :  { %v2376_v53 = vpop.xlane.xlu0 %2375 }
 0x998   :  { %v2397_v55 = vmul.f32 0.03125, %v2376_v53  ;;  %v2373_v28 = vpop.xlane.xlu1 %2372  ;;  %v3982_v53 = vld [vmem:[%s5097_s0 + $0x8] sm:$0xff] }
 0x999   :  { %v2396_v38 = vmul.f32 0.03125, %v2373_v28 }
 0x99a   :  { %v4706_v7 = vsub.f32 %v2336_v44, %v2397_v55 }
 0x99b   :  { %v4708_v31 = vsub.f32 %v2331_v37, %v2396_v38 }
 0x99c   :  { %v2413_v51 = vmul.f32 %v4706_v7, %v4706_v7 }
 0x99d   :  { %v2412_v23 = vmul.f32 %v4708_v31, %v4708_v31 }
 0x99e   :  { %v2423_v35 = vsel %vm72_vm0, %v2413_v51, 0.0 }
 0x99f   :  { %2424 = vadd.xlane.f32.xlu1 %v2423_v35  ;;  %v2420_v12 = vsel %vm72_vm0, %v2412_v23, 0.0 }
 0x9a0   :  { %2421 = vadd.xlane.f32.xlu0 %v2420_v12 }
 0x9de   :  { %v2382_v18 = vpop.xlane.xlu1 %2381 }
 0x9df   :  { %v2399_v56 = vmul.f32 0.03125, %v2382_v18  ;;  %v2379_v29 = vpop.xlane.xlu0 %2378 }
 0x9e0   :  { %v2398_v50 = vmul.f32 0.03125, %v2379_v29 }
 0x9e1   :  { %v4728_v4 = vsub.f32 %v2346_v1, %v2399_v56 }
 0x9e2   :  { %v4730_v41 = vsub.f32 %v2341_v30, %v2398_v50 }
 0x9e3   :  { %v2388_v6 = vpop.xlane.xlu1 %2387  ;;  %v2415_v16 = vmul.f32 %v4728_v4, %v4728_v4 }
 0x9e4   :  { %v2401_v43 = vmul.f32 0.03125, %v2388_v6  ;;  %v2385_v47 = vpop.xlane.xlu0 %2384  ;;  %v2414_v21 = vmul.f32 %v4730_v41, %v4730_v41 }
 0x9e5   :  { %v2400_v20 = vmul.f32 0.03125, %v2385_v47  ;;  %v2429_v17 = vsel %vm72_vm0, %v2415_v16, 0.0 }
 0x9e6   :  { %v4737_v26 = vsub.f32 %v2356_v5, %v2401_v43  ;;  %2430 = vadd.xlane.f32.xlu1 %v2429_v17  ;;  %v2426_v39 = vsel %vm72_vm0, %v2414_v21, 0.0  ;;  %v4761_v5 = vld [vmem:[%s5105_s5] ss:$0 sm:$0xff] }
 0x9e7   :  { %v4740_v49 = vsub.f32 %v2351_v46, %v2400_v20  ;;  %2427 = vadd.xlane.f32.xlu0 %v2426_v39  ;;  %v2394_v27 = vpop.xlane.xlu1 %2393 }
 0x9e8   :  { %v2403_v2 = vmul.f32 0.03125, %v2394_v27  ;;  %v2391_v59 = vpop.xlane.xlu0 %2390  ;;  %v2417_v61 = vmul.f32 %v4737_v26, %v4737_v26 }
 0x9e9   :  { %v2402_v58 = vmul.f32 0.03125, %v2391_v59  ;;  %v2416_v24 = vmul.f32 %v4740_v49, %v4740_v49 }
 0x9ea   :  { %v4746_v0 = vsub.f32 %v2366_v8, %v2403_v2  ;;  %v2435_v25 = vsel %vm72_vm0, %v2417_v61, 0.0 }
 0x9eb   :  { %v4749_v52 = vsub.f32 %v2361_v40, %v2402_v58  ;;  %2436 = vadd.xlane.f32.xlu1 %v2435_v25  ;;  %v2432_v44 = vsel %vm72_vm0, %v2416_v24, 0.0  ;;  %v3984_v25 = vld [vmem:[%s5097_s0 + $0x18] sm:$0xff] }
 0x9ec   :  { %2433 = vadd.xlane.f32.xlu0 %v2432_v44  ;;  %v2419_v54 = vmul.f32 %v4746_v0, %v4746_v0 }
 0x9ed   :  { %v2418_v37 = vmul.f32 %v4749_v52, %v4749_v52 }
 0x9ee   :  { %v2441_v14 = vsel %vm72_vm0, %v2419_v54, 0.0 }
 0x9ef   :  { %2442 = vadd.xlane.f32.xlu1 %v2441_v14  ;;  %v2438_v3 = vsel %vm72_vm0, %v2418_v37, 0.0 }
 0x9f0   :  { %2439 = vadd.xlane.f32.xlu0 %v2438_v3 }
 0xa2c   :  { %v2425_v32 = vpop.xlane.xlu1 %2424 }
 0xa2d   :  { %v2445_v1 = vmul.f32 0.03125, %v2425_v32  ;;  %v2422_v9 = vpop.xlane.xlu0 %2421 }
 0xa2e   :  { %v2444_v30 = vmul.f32 0.03125, %v2422_v9 }
 0xa2f   :  { %v2453_v11 = vadd.f32 1e-05, %v2445_v1  ;;  %v3985_v1 = vld [vmem:[%s5097_s0 + $0x20] sm:$0xff] }
 0xa30   :  { %v2452_v22 = vadd.f32 1e-05, %v2444_v30  ;;  %v3986_v30 = vld [vmem:[%s5097_s0 + $0x28] sm:$0xff] }
 0xa31   :  { %3917 = vrsqrt.f32 %v2453_v11 }
 0xa32   :  { %3919 = vrsqrt.f32 %v2452_v22 }
 0xa3b   :  { %v3918_v45 = vpop.eup %3917 }
 0xa3c   :  { %v3920_v60 = vpop.eup %3919  ;;  %v2469_v46 = vmul.f32 %v3918_v45, %v4706_v7  ;;  %v3987_v45 = vld [vmem:[%s5097_s0 + $0x30] sm:$0xff] }
 0xa3d   :  { %v2468_v13 = vmul.f32 %v3920_v60, %v4708_v31  ;;  %v3988_v60 = vld [vmem:[%s5097_s0 + $0x38] sm:$0xff] }
 0xa3e   :  { %v2483_v10 = vmul.f32 %v4761_v5, %v2469_v46 }
 0xa3f   :  { %v2482_v8 = vmul.f32 %v4761_v5, %v2468_v13  ;;  %v2868_v13 = vld [vmem:[%s5107_s9] sm:$0xff] }
 0xa40   :  { %v2497_v19 = vadd.f32 %v4768_v63, %v2483_v10 }
 0xa41   :  { %v2496_v40 = vadd.f32 %v4768_v63, %v2482_v8  ;;  %v2870_v8 = vld [vmem:[%s5107_s9 + $0x10] sm:$0xff] }
 0xa42   :  { %v4782_v55 = vadd.f32 %v3982_v53, %v2497_v19  ;;  %v2871_v19 = vld [vmem:[%s5107_s9 + $0x18] sm:$0xff]  ;;  %v2873_v53 = vld [vmem:[%s5107_s9 + $0x28] sm:$0xff] }
 0xa43   :  { %v4777_v42 = vadd.f32 %v3981_v34, %v2496_v40  ;;  %v3684_v40 = vpack.c.bf16 %v2871_v19, %v2870_v8  ;;  %v2872_v34 = vld [vmem:[%s5107_s9 + $0x20] sm:$0xff] }
 0xa45   :  { %3536 = vmatprep.mubr.msk.f32.mxu1 %vm72_vm0, %v4777_v42 }
 0xa46   :  { %3537 = vmatmul.mubr.msk.f32.vlgmr.msra.gmra.mrb[22].mxu1 %vm72_vm0, %v4782_v55 }
 0xa73   :  { %v2431_v28 = vpop.xlane.xlu1 %2430 }
 0xa74   :  { %v2447_v38 = vmul.f32 0.03125, %v2431_v28  ;;  %v2428_v7 = vpop.xlane.xlu0 %2427  ;;  %v3688_v28 = vpack.c.bf16 %v2873_v53, %v2872_v34 }
 0xa75   :  { %v2446_v31 = vmul.f32 0.03125, %v2428_v7  ;;  %v2875_v7 = vld [vmem:[%s5107_s9 + $0x38] sm:$0xff] }
 0xa76   :  { %v2455_v51 = vadd.f32 1e-05, %v2447_v38  ;;  %v2874_v38 = vld [vmem:[%s5107_s9 + $0x30] sm:$0xff] }
 0xa77   :  { %v2454_v23 = vadd.f32 1e-05, %v2446_v31  ;;  %v3692_v31 = vpack.c.bf16 %v2875_v7, %v2874_v38 }
 0xa78   :  { %3921 = vrsqrt.f32 %v2455_v51  ;;  %v2437_v35 = vpop.xlane.xlu1 %2436  ;;  %v4875_v51 = vld [vmem:[%s5108_s8] ss:$0 sm:$0xff] }
 0xa79   :  { %3923 = vrsqrt.f32 %v2454_v23  ;;  %v2449_v12 = vmul.f32 0.03125, %v2437_v35  ;;  %v2434_v33 = vpop.xlane.xlu0 %2433 }
 0xa7a   :  { %v2448_v48 = vmul.f32 0.03125, %v2434_v33 }
 0xa7b   :  { %v2457_v62 = vadd.f32 1e-05, %v2449_v12 }
 0xa7c   :  { %v2456_v57 = vadd.f32 1e-05, %v2448_v48  ;;  %v2443_v15 = vpop.xlane.xlu1 %2442 }
 0xa7d   :  { %3925 = vrsqrt.f32 %v2457_v62  ;;  %v2451_v36 = vmul.f32 0.03125, %v2443_v15  ;;  %v2440_v18 = vpop.xlane.xlu0 %2439 }
 0xa7e   :  { %3927 = vrsqrt.f32 %v2456_v57  ;;  %v2450_v56 = vmul.f32 0.03125, %v2440_v18 }
 0xa7f   :  { %v2459_v29 = vadd.f32 1e-05, %v2451_v36 }
 0xa80   :  { %v2458_v50 = vadd.f32 1e-05, %v2450_v56 }
 0xa81   :  { %3929 = vrsqrt.f32 %v2459_v29 }
 0xa82   :  { %v3922_v6 = vpop.eup %3921  ;;  %3931 = vrsqrt.f32 %v2458_v50 }
 0xa83   :  { %v3924_v16 = vpop.eup %3923  ;;  %v2471_v43 = vmul.f32 %v3922_v6, %v4728_v4  ;;  %v3983_v4 = vld [vmem:[%s5097_s0 + $0x10] sm:$0xff] }
 0xa84   :  { %v2470_v47 = vmul.f32 %v3924_v16, %v4730_v41 }
 0xa85   :  { %v2485_v21 = vmul.f32 %v4761_v5, %v2471_v43 }
 0xa86   :  { %v2484_v20 = vmul.f32 %v4761_v5, %v2470_v47 }
 0xa87   :  { %v3926_v17 = vpop.eup %3925  ;;  %v2499_v39 = vadd.f32 %v4768_v63, %v2485_v21 }
 0xa88   :  { %v3928_v27 = vpop.eup %3927  ;;  %v2473_v2 = vmul.f32 %v3926_v17, %v4737_v26  ;;  %v2498_v59 = vadd.f32 %v4768_v63, %v2484_v20 }
 0xa89   :  { %v2472_v61 = vmul.f32 %v3928_v27, %v4740_v49  ;;  %v4805_v44 = vadd.f32 %v3984_v25, %v2499_v39 }
 0xa8a   :  { %v4799_v58 = vadd.f32 %v3983_v4, %v2498_v59  ;;  %v2487_v41 = vmul.f32 %v4761_v5, %v2473_v2 }
 0xa8b   :  { %v3930_v24 = vpop.eup %3929  ;;  %v2486_v26 = vmul.f32 %v4761_v5, %v2472_v61 }
 0xa8c   :  { %v3932_v54 = vpop.eup %3931  ;;  %v2475_v49 = vmul.f32 %v3930_v24, %v4746_v0  ;;  %3539 = vmatprep.mubr.msk.f32.mxu1 %vm72_vm0, %v4799_v58  ;;  %v2501_v37 = vadd.f32 %v4768_v63, %v2487_v41 }
 0xa8d   :  { %v2474_v14 = vmul.f32 %v3932_v54, %v4749_v52  ;;  %3540 = vmatmul.mubr.msk.f32.gmra.mrb[24].mxu1 %vm72_vm0, %v4805_v44  ;;  %v2500_v3 = vadd.f32 %v4768_v63, %v2486_v26 }
 0xa8e   :  { %v2489_v32 = vmul.f32 %v4761_v5, %v2475_v49  ;;  %v4826_v52 = vadd.f32 %v3986_v30, %v2501_v37 }
 0xa8f   :  { %v4820_v9 = vadd.f32 %v3985_v1, %v2500_v3  ;;  %v2488_v0 = vmul.f32 %v4761_v5, %v2474_v14 }
 0xa90   :  { %v2503_v11 = vadd.f32 %v4768_v63, %v2489_v32 }
 0xa91   :  { %3542 = vmatprep.mubr.msk.f32.mxu1 %vm72_vm0, %v4820_v9  ;;  %v2502_v22 = vadd.f32 %v4768_v63, %v2488_v0  ;;  %v2869_v63 = vld [vmem:[%s5107_s9 + $0x8] sm:$0xff] }
 0xa92   :  { %3543 = vmatmul.mubr.msk.f32.gmra.mrb[26].mxu1 %vm72_vm0, %v4826_v52  ;;  %v4842_v46 = vadd.f32 %v3988_v60, %v2503_v11  ;;  %v3680_v10 = vpack.c.bf16 %v2869_v63, %v2868_v13  ;;  %v3996_v13 = vmov 1.0  }
 0xa93   :  { %v4837_v5 = vadd.f32 %v3987_v45, %v2502_v22 }
 0xa94   :  { %3681 = vmatprep.subr.bf16.mxu0 %v3680_v10 }
 0xa95   :  { %3545 = vmatprep.mubr.msk.f32.mxu1 %vm72_vm0, %v4837_v5  ;;  %3683 = vmatpush3.bf16.msra.mxu0 %v3680_v10 }
 0xa96   :  { %3546 = vmatmul.mubr.msk.f32.gmra.mrb[28].mxu1 %vm72_vm0, %v4842_v46  ;;  %3685 = vmatprep.subr.bf16.mxu0 %v3684_v40 }
 0xa99   :  { %3687 = vmatpush3.bf16.msra.mxu0 %v3684_v40 }
 0xa9a   :  { %3689 = vmatprep.subr.bf16.mxu0 %v3688_v28 }
 0xa9d   :  { %3691 = vmatpush3.bf16.msra.mxu0 %v3688_v28 }
 0xa9e   :  { %3693 = vmatprep.subr.bf16.mxu0 %v3692_v31 }
 0xaa1   :  { %3695 = vmatpush3.bf16.msra.mxu0 %v3692_v31 }
 0xb19   :  { %v3538_v23 = vpop.f32.mrb[22].mxu1 }
 0xb1a   :  { %v2619_v35 = vadd.f32 %v3538_v23, %v4875_v51  ;;  %v2613_v12 = vpop.f32.mrb[23].mxu1 }
 0xb1b   :  { %v2614_v33 = vadd.f32 %v4875_v51, %v2613_v12 }
 0xb1c   :  { %v2661_v48 = vmul.f32 0.70710677, %v2619_v35  ;;  %v2653_v38 = vmul.f32 0.5, %v2619_v35 }
 0xb1d   :  { %v2660_v62 = vmul.f32 0.70710677, %v2614_v33  ;;  %v2652_v53 = vmul.f32 0.5, %v2614_v33 }
 0xb1e   :  { %v2685_v57 = vand.u32 2147483647, %v2661_v48  ;;  %vm2669_vm3 = vcmp.lt.f32.partialorder %v2661_v48, 0.0 }
 0xb1f   :  { %v2684_v15 = vand.u32 2147483647, %v2660_v62  ;;  %vm2668_vm4 = vcmp.lt.f32.partialorder %v2660_v62, 0.0  ;;  %v2677_v63 = vsel %vm2669_vm3, -1.0, %v3996_v13 }
 0xb20   :  { %v2693_v36 = vmul.f32 0.3275911, %v2685_v57  ;;  %v2797_v50 = vsub.f32 0.0, %v2685_v57  ;;  %v2676_v19 = vsel %vm2668_vm4, -1.0, %v3996_v13 }
 0xb21   :  { %v2692_v18 = vmul.f32 0.3275911, %v2684_v15  ;;  %v2796_v6 = vsub.f32 0.0, %v2684_v15 }
 0xb22   :  { %v2701_v56 = vadd.f32 1.0, %v2693_v36  ;;  %v2805_v43 = vmul.f32 %v2797_v50, %v2685_v57 }
 0xb23   :  { %v2700_v29 = vadd.f32 1.0, %v2692_v18  ;;  %v2804_v20 = vmul.f32 %v2796_v6, %v2684_v15 }
 0xb24   :  { %3933 = vrcp.f32 %v2701_v56  ;;  %v2814_v27 = vmul.f32 1.442695, %v2805_v43 }
 0xb25   :  { %3935 = vrcp.f32 %v2700_v29  ;;  %v2812_v61 = vmul.f32 1.442695, %v2804_v20 }
 0xb26   :  { %3937 = vpow2.f32 %v2814_v27 }
 0xb27   :  { %3939 = vpow2.f32 %v2812_v61 }
 0xb2e   :  { %v3934_v16 = vpop.eup %3933 }
 0xb2f   :  { %v3936_v47 = vpop.eup %3935  ;;  %v2725_v21 = vmul.f32 1.0614054, %v3934_v16 }
 0xb30   :  { %v2724_v17 = vmul.f32 1.0614054, %v3936_v47  ;;  %v3938_v0 = vpop.eup %3937 }
 0xb31   :  { %v2733_v39 = vadd.f32 -1.4531521, %v2725_v21  ;;  %v3940_v11 = vpop.eup %3939 }
 0xb32   :  { %v2732_v2 = vadd.f32 -1.4531521, %v2724_v17 }
 0xb33   :  { %v2741_v59 = vmul.f32 %v3934_v16, %v2733_v39 }
 0xb34   :  { %v2740_v4 = vmul.f32 %v3936_v47, %v2732_v2 }
 0xb35   :  { %v2749_v41 = vadd.f32 1.4214138, %v2741_v59 }
 0xb36   :  { %v2748_v24 = vadd.f32 1.4214138, %v2740_v4 }
 0xb37   :  { %v2757_v25 = vmul.f32 %v3934_v16, %v2749_v41 }
 0xb38   :  { %v2756_v26 = vmul.f32 %v3936_v47, %v2748_v24 }
 0xb39   :  { %v2765_v54 = vadd.f32 -0.28449672, %v2757_v25 }
 0xb3a   :  { %v2764_v49 = vadd.f32 -0.28449672, %v2756_v26 }
 0xb3b   :  { %v2773_v37 = vmul.f32 %v3934_v16, %v2765_v54 }
 0xb3c   :  { %v2772_v14 = vmul.f32 %v3936_v47, %v2764_v49 }
 0xb3d   :  { %v2781_v3 = vadd.f32 0.2548296, %v2773_v37 }
 0xb3e   :  { %v2780_v32 = vadd.f32 0.2548296, %v2772_v14 }
 0xb3f   :  { %v2789_v1 = vmul.f32 %v3934_v16, %v2781_v3 }
 0xb40   :  { %v2788_v30 = vmul.f32 %v3936_v47, %v2780_v32 }
 0xb41   :  { %v2829_v22 = vmul.f32 %v3938_v0, %v2789_v1 }
 0xb42   :  { %v2828_v45 = vmul.f32 %v3940_v11, %v2788_v30 }
 0xb43   :  { %v2837_v60 = vsub.f32 1.0, %v2829_v22 }
 0xb44   :  { %v2836_v10 = vsub.f32 1.0, %v2828_v45 }
 0xb45   :  { %v2845_v8 = vmul.f32 %v2837_v60, %v2677_v63 }
 0xb46   :  { %v2844_v40 = vmul.f32 %v2836_v10, %v2676_v19 }
 0xb47   :  { %v2853_v34 = vadd.f32 1.0, %v2845_v8 }
 0xb48   :  { %v2852_v28 = vadd.f32 1.0, %v2844_v40 }
 0xb49   :  { %v2861_v31 = vmul.f32 %v2853_v34, %v2653_v38 }
 0xb4a   :  { %v2860_v7 = vmul.f32 %v2852_v28, %v2652_v53 }
 0xb4c   :  { %3564 = vmatprep.mubr.msk.f32.mxu0 %vm2883_vm5, %v2860_v7 }
 0xb4d   :  { %3565 = vmatmul.mubr.msk.f32.vlgmr.msra.gmra.mrb[26].mxu0 %vm2883_vm5, %v2861_v31 }
 0xb60   :  { %v3541_v23 = vpop.f32.mrb[24].mxu1 }
 0xb61   :  { %v4884_v12 = vadd.f32 %v3541_v23, %v4875_v51  ;;  %v2623_v48 = vpop.f32.mrb[25].mxu1 }
 0xb62   :  { %v4887_v62 = vadd.f32 %v4875_v51, %v2623_v48 }
 0xb63   :  { %v4890_v57 = vmul.f32 0.70710677, %v4884_v12 }
 0xb64   :  { %v4893_v35 = vmul.f32 0.70710677, %v4887_v62 }
 0xb65   :  { %v2687_v33 = vand.u32 2147483647, %v4890_v57  ;;  %v3544_v15 = vpop.f32.mrb[26].mxu1  ;;  %vm2671_vm6 = vcmp.lt.f32.partialorder %v4890_v57, 0.0  ;;  %v2655_v57 = vmul.f32 0.5, %v4884_v12 }
 0xb66   :  { %v2686_v36 = vand.u32 2147483647, %v4893_v35  ;;  %v4898_v18 = vadd.f32 %v3544_v15, %v4875_v51  ;;  %v2633_v56 = vpop.f32.mrb[27].mxu1  ;;  %vm2670_vm7 = vcmp.lt.f32.partialorder %v4893_v35, 0.0 }
 0xb67   :  { %v2695_v29 = vmul.f32 0.3275911, %v2687_v33  ;;  %v4901_v50 = vadd.f32 %v4875_v51, %v2633_v56  ;;  %v2799_v25 = vsub.f32 0.0, %v2687_v33 }
 0xb68   :  { %v2694_v6 = vmul.f32 0.3275911, %v2686_v36  ;;  %v4904_v16 = vmul.f32 0.70710677, %v4898_v18  ;;  %v2798_v37 = vsub.f32 0.0, %v2686_v36 }
 0xb69   :  { %v2703_v43 = vadd.f32 1.0, %v2695_v29  ;;  %v4907_v47 = vmul.f32 0.70710677, %v4901_v50  ;;  %v3547_v21 = vpop.f32.mrb[28].mxu1  ;;  %v2807_v32 = vmul.f32 %v2799_v25, %v2687_v33 }
 0xb6a   :  { %v2702_v20 = vadd.f32 1.0, %v2694_v6  ;;  %v2689_v17 = vand.u32 2147483647, %v4904_v16  ;;  %v2643_v39 = vpop.f32.mrb[29].mxu1  ;;  %v4912_v59 = vadd.f32 %v3547_v21, %v4875_v51  ;;  %v2806_v45 = vmul.f32 %v2798_v37, %v2686_v36 }
 0xb6b   :  { %3941 = vrcp.f32 %v2703_v43  ;;  %v2688_v2 = vand.u32 2147483647, %v4907_v47  ;;  %v4915_v4 = vadd.f32 %v4875_v51, %v2643_v39  ;;  %v2818_v8 = vmul.f32 1.442695, %v2807_v32 }
 0xb6c   :  { %3943 = vrcp.f32 %v2702_v20  ;;  %v2697_v27 = vmul.f32 0.3275911, %v2689_v17  ;;  %v4918_v24 = vmul.f32 0.70710677, %v4912_v59  ;;  %v2801_v0 = vsub.f32 0.0, %v2689_v17 }
 0xb6d   :  { %v2696_v41 = vmul.f32 0.3275911, %v2688_v2  ;;  %v4921_v26 = vmul.f32 0.70710677, %v4915_v4  ;;  %v2800_v34 = vsub.f32 0.0, %v2688_v2  ;;  %vm2673_vm8 = vcmp.lt.f32.partialorder %v4904_v16, 0.0 }
 0xb6e   :  { %v2705_v61 = vadd.f32 1.0, %v2697_v27  ;;  %v2691_v49 = vand.u32 2147483647, %v4918_v24  ;;  %v2809_v40 = vmul.f32 %v2801_v0, %v2689_v17  ;;  %v2816_v38 = vmul.f32 1.442695, %v2806_v45 }
 0xb6f   :  { %v2704_v54 = vadd.f32 1.0, %v2696_v41  ;;  %v2690_v14 = vand.u32 2147483647, %v4921_v26  ;;  %v2808_v29 = vmul.f32 %v2800_v34, %v2688_v2  ;;  %vm2672_vm9 = vcmp.lt.f32.partialorder %v4907_v47, 0.0 }
 0xb70   :  { %3945 = vrcp.f32 %v2705_v61  ;;  %v2699_v3 = vmul.f32 0.3275911, %v2691_v49  ;;  %v2803_v23 = vsub.f32 0.0, %v2691_v49  ;;  %v2822_v56 = vmul.f32 1.442695, %v2809_v40 }
 0xb71   :  { %3947 = vrcp.f32 %v2704_v54  ;;  %v2698_v51 = vmul.f32 0.3275911, %v2690_v14  ;;  %v2802_v21 = vsub.f32 0.0, %v2690_v14  ;;  %v2820_v37 = vmul.f32 1.442695, %v2808_v29 }
 0xb72   :  { %v2707_v30 = vadd.f32 1.0, %v2699_v3  ;;  %v2811_v39 = vmul.f32 %v2803_v23, %v2691_v49  ;;  %vm2675_vm10 = vcmp.lt.f32.partialorder %v4918_v24, 0.0  ;;  %vm2674_vm11 = vcmp.lt.f32.partialorder %v4921_v26, 0.0 }
 0xb73   :  { %v2706_v60 = vadd.f32 1.0, %v2698_v51  ;;  %v2810_v0 = vmul.f32 %v2802_v21, %v2690_v14  ;;  %v2682_v24 = vsel %vm2674_vm11, -1.0, %v3996_v13  ;;  %v2658_v26 = vmul.f32 0.5, %v4915_v4 }
 0xb74   :  { %3949 = vrcp.f32 %v2707_v30  ;;  %v2826_v49 = vmul.f32 1.442695, %v2811_v39  ;;  %v2679_v39 = vsel %vm2671_vm6, -1.0, %v3996_v13 }
 0xb75   :  { %v3942_v1 = vpop.eup %3941  ;;  %3951 = vrcp.f32 %v2706_v60  ;;  %v2824_v14 = vmul.f32 1.442695, %v2810_v0 }
 0xb76   :  { %v3944_v11 = vpop.eup %3943  ;;  %v2727_v22 = vmul.f32 1.0614054, %v3942_v1  ;;  %3953 = vpow2.f32 %v2818_v8 }
 0xb77   :  { %v2726_v63 = vmul.f32 1.0614054, %v3944_v11  ;;  %3955 = vpow2.f32 %v2816_v38 }
 0xb78   :  { %v2735_v10 = vadd.f32 -1.4531521, %v2727_v22  ;;  %3957 = vpow2.f32 %v2822_v56 }
 0xb79   :  { %v2734_v19 = vadd.f32 -1.4531521, %v2726_v63  ;;  %3959 = vpow2.f32 %v2820_v37  ;;  %v2678_v37 = vsel %vm2670_vm7, -1.0, %v3996_v13 }
 0xb7a   :  { %v4925_v53 = vpop.eup %3945  ;;  %v2743_v28 = vmul.f32 %v3942_v1, %v2735_v10  ;;  %3961 = vpow2.f32 %v2826_v49 }
 0xb7b   :  { %v2742_v7 = vmul.f32 %v3944_v11, %v2734_v19  ;;  %v2729_v31 = vmul.f32 1.0614054, %v4925_v53  ;;  %v4928_v33 = vpop.eup %3947  ;;  %3963 = vpow2.f32 %v2824_v14 }
 0xb7c   :  { %v2751_v48 = vadd.f32 1.4214138, %v2743_v28  ;;  %v2728_v43 = vmul.f32 1.0614054, %v4928_v33 }
 0xb7d   :  { %v2750_v15 = vadd.f32 1.4214138, %v2742_v7  ;;  %v2737_v36 = vadd.f32 -1.4531521, %v2729_v31 }
 0xb7e   :  { %v2759_v6 = vmul.f32 %v3942_v1, %v2751_v48  ;;  %v2736_v61 = vadd.f32 -1.4531521, %v2728_v43  ;;  %v4932_v41 = vpop.eup %3949 }
 0xb7f   :  { %v2758_v20 = vmul.f32 %v3944_v11, %v2750_v15  ;;  %v2745_v17 = vmul.f32 %v4925_v53, %v2737_v36  ;;  %v4934_v3 = vpop.eup %3951  ;;  %v2731_v51 = vmul.f32 1.0614054, %v4932_v41 }
 0xb80   :  { %v2767_v27 = vadd.f32 -0.28449672, %v2759_v6  ;;  %v2744_v32 = vmul.f32 %v4928_v33, %v2736_v61  ;;  %v2730_v45 = vmul.f32 1.0614054, %v4934_v3  ;;  %v3954_v34 = vpop.eup %3953 }
 0xb81   :  { %v2766_v25 = vadd.f32 -0.28449672, %v2758_v20  ;;  %v2753_v54 = vadd.f32 1.4214138, %v2745_v17  ;;  %v2739_v10 = vadd.f32 -1.4531521, %v2731_v51  ;;  %v3956_v15 = vpop.eup %3955 }
 0xb82   :  { %v2775_v2 = vmul.f32 %v3942_v1, %v2767_v27  ;;  %v2752_v63 = vadd.f32 1.4214138, %v2744_v32  ;;  %v2738_v40 = vadd.f32 -1.4531521, %v2730_v45 }
 0xb83   :  { %v2774_v30 = vmul.f32 %v3944_v11, %v2766_v25  ;;  %v2761_v22 = vmul.f32 %v4925_v53, %v2753_v54  ;;  %v2747_v7 = vmul.f32 %v4932_v41, %v2739_v10 }
 0xb84   :  { %v2783_v60 = vadd.f32 0.2548296, %v2775_v2  ;;  %v2760_v38 = vmul.f32 %v4928_v33, %v2752_v63  ;;  %v2746_v48 = vmul.f32 %v4934_v3, %v2738_v40 }
 0xb85   :  { %v2782_v8 = vadd.f32 0.2548296, %v2774_v30  ;;  %v2769_v19 = vadd.f32 -0.28449672, %v2761_v22  ;;  %v2755_v29 = vadd.f32 1.4214138, %v2747_v7 }
 0xb86   :  { %v2791_v28 = vmul.f32 %v3942_v1, %v2783_v60  ;;  %v2768_v56 = vadd.f32 -0.28449672, %v2760_v38  ;;  %v2754_v43 = vadd.f32 1.4214138, %v2746_v48  ;;  %v2654_v60 = vmul.f32 0.5, %v4887_v62 }
 0xb87   :  { %v2790_v31 = vmul.f32 %v3944_v11, %v2782_v8  ;;  %v2777_v23 = vmul.f32 %v4925_v53, %v2769_v19  ;;  %v2763_v17 = vmul.f32 %v4932_v41, %v2755_v29  ;;  %v3958_v11 = vpop.eup %3957  ;;  %v2681_v8 = vsel %vm2673_vm8, -1.0, %v3996_v13 }
 0xb88   :  { %v2831_v36 = vmul.f32 %v3954_v34, %v2791_v28  ;;  %v2776_v20 = vmul.f32 %v4928_v33, %v2768_v56  ;;  %v2762_v25 = vmul.f32 %v4934_v3, %v2754_v43  ;;  %v3960_v45 = vpop.eup %3959  ;;  %v2680_v62 = vsel %vm2672_vm9, -1.0, %v3996_v13 }
 0xb89   :  { %v2830_v6 = vmul.f32 %v3956_v15, %v2790_v31  ;;  %v2785_v1 = vadd.f32 0.2548296, %v2777_v23  ;;  %v2771_v32 = vadd.f32 -0.28449672, %v2763_v17  ;;  %v3962_v7 = vpop.eup %3961  ;;  %v2657_v29 = vmul.f32 0.5, %v4898_v18 }
 0xb8a   :  { %v2839_v21 = vsub.f32 1.0, %v2831_v36  ;;  %v2784_v2 = vadd.f32 0.2548296, %v2776_v20  ;;  %v2770_v30 = vadd.f32 -0.28449672, %v2762_v25  ;;  %v3964_v31 = vpop.eup %3963 }
 0xb8b   :  { %v2838_v27 = vsub.f32 1.0, %v2830_v6  ;;  %v2793_v61 = vmul.f32 %v4925_v53, %v2785_v1  ;;  %v2779_v53 = vmul.f32 %v4932_v41, %v2771_v32 }
 0xb8c   :  { %v2847_v54 = vmul.f32 %v2839_v21, %v2679_v39  ;;  %v2792_v49 = vmul.f32 %v4928_v33, %v2784_v2  ;;  %v2778_v10 = vmul.f32 %v4934_v3, %v2770_v30 }
 0xb8d   :  { %v2846_v51 = vmul.f32 %v2838_v27, %v2678_v37  ;;  %v2833_v0 = vmul.f32 %v3958_v11, %v2793_v61  ;;  %v2787_v19 = vadd.f32 0.2548296, %v2779_v53 }
 0xb8e   :  { %v2855_v22 = vadd.f32 1.0, %v2847_v54  ;;  %v2832_v16 = vmul.f32 %v3960_v45, %v2792_v49  ;;  %v2786_v34 = vadd.f32 0.2548296, %v2778_v10 }
 0xb8f   :  { %v2854_v63 = vadd.f32 1.0, %v2846_v51  ;;  %v2841_v35 = vsub.f32 1.0, %v2833_v0  ;;  %v2795_v38 = vmul.f32 %v4932_v41, %v2787_v19  ;;  %v2656_v41 = vmul.f32 0.5, %v4901_v50 }
 0xb90   :  { %v2863_v28 = vmul.f32 %v2855_v22, %v2655_v57  ;;  %v2840_v33 = vsub.f32 1.0, %v2832_v16  ;;  %v2794_v14 = vmul.f32 %v4934_v3, %v2786_v34  ;;  %v2683_v3 = vsel %vm2675_vm10, -1.0, %v3996_v13  ;;  %v3249_v13 = vld [vmem:[%s5109_s10] ss:$0 sm:$0xff] }
 0xb91   :  { %v2862_v40 = vmul.f32 %v2854_v63, %v2654_v60  ;;  %v2849_v12 = vmul.f32 %v2841_v35, %v2681_v8  ;;  %v2835_v47 = vmul.f32 %v3962_v7, %v2795_v38  ;;  %v2659_v50 = vmul.f32 0.5, %v4912_v59 }
 0xb92   :  { %v2848_v23 = vmul.f32 %v2840_v33, %v2680_v62  ;;  %v2834_v15 = vmul.f32 %v3964_v31, %v2794_v14 }
 0xb93   :  { %3567 = vmatprep.mubr.msk.f32.mxu0 %vm2883_vm5, %v2862_v40  ;;  %v2857_v48 = vadd.f32 1.0, %v2849_v12  ;;  %v2843_v56 = vsub.f32 1.0, %v2835_v47 }
 0xb94   :  { %3568 = vmatmul.mubr.msk.f32.gmra.mrb[28].mxu0 %vm2883_vm5, %v2863_v28  ;;  %v2856_v36 = vadd.f32 1.0, %v2848_v23  ;;  %v2842_v6 = vsub.f32 1.0, %v2834_v15 }
 0xb95   :  { %v2851_v43 = vmul.f32 %v2843_v56, %v2683_v3  ;;  %v2865_v21 = vmul.f32 %v2857_v48, %v2657_v29 }
 0xb96   :  { %v2864_v1 = vmul.f32 %v2856_v36, %v2656_v41  ;;  %v2850_v20 = vmul.f32 %v2842_v6, %v2682_v24 }
 0xb97   :  { %v2859_v17 = vadd.f32 1.0, %v2851_v43 }
 0xb98   :  { %3570 = vmatprep.mubr.msk.f32.mxu0 %vm2883_vm5, %v2864_v1  ;;  %v2858_v11 = vadd.f32 1.0, %v2850_v20 }
 0xb99   :  { %3571 = vmatmul.mubr.msk.f32.gmra.mrb[30].mxu0 %vm2883_vm5, %v2865_v21  ;;  %v2867_v39 = vmul.f32 %v2859_v17, %v2659_v50 }
 0xb9a   :  { %v2866_v18 = vmul.f32 %v2858_v11, %v2658_v26 }
 0xb9c   :  { %3573 = vmatprep.mubr.msk.f32.mxu0 %vm2883_vm5, %v2866_v18 }
 0xb9d   :  { %3574 = vmatmul.mubr.msk.f32.gmra.mrb[32].mxu0 %vm2883_vm5, %v2867_v39 }
 0xc20   :  { %v3566_v27 = vpop.f32.mrb[26].mxu0 }
 0xc21   :  { %v2980_v61 = vadd.f32 %v3566_v27, %v3249_v13  ;;  %v2974_v25 = vpop.f32.mrb[27].mxu0 }
 0xc22   :  { %v2975_v54 = vadd.f32 %v3249_v13, %v2974_v25 }
 0xc23   :  { %v3018_v4 = vsel %vm72_vm0, %v2980_v61, 0.0 }
 0xc24   :  { %3019 = vadd.xlane.f32.xlu1 %v3018_v4  ;;  %v3015_v37 = vsel %vm72_vm0, %v2975_v54, 0.0 }
 0xc25   :  { %3016 = vadd.xlane.f32.xlu0 %v3015_v37 }
 0xc67   :  { %v3569_v59 = vpop.f32.mrb[28].mxu0 }
 0xc68   :  { %v2990_v2 = vadd.f32 %v3569_v59, %v3249_v13  ;;  %v2984_v32 = vpop.f32.mrb[29].mxu0 }
 0xc69   :  { %v2985_v51 = vadd.f32 %v3249_v13, %v2984_v32 }
 0xc6a   :  { %v3024_v0 = vsel %vm72_vm0, %v2990_v2, 0.0 }
 0xc6b   :  { %3025 = vadd.xlane.f32.xlu1 %v3024_v0  ;;  %v3021_v30 = vsel %vm72_vm0, %v2985_v51, 0.0 }
 0xc6c   :  { %3022 = vadd.xlane.f32.xlu0 %v3021_v30  ;;  %v3572_v57 = vpop.f32.mrb[30].mxu0 }
 0xc6d   :  { %v3000_v22 = vadd.f32 %v3572_v57, %v3249_v13  ;;  %v2994_v49 = vpop.f32.mrb[31].mxu0 }
 0xc6e   :  { %v2995_v53 = vadd.f32 %v3249_v13, %v2994_v49 }
 0xc6f   :  { %v3030_v45 = vsel %vm72_vm0, %v3000_v22, 0.0 }
 0xc70   :  { %3031 = vadd.xlane.f32.xlu1 %v3030_v45  ;;  %v3027_v60 = vsel %vm72_vm0, %v2995_v53, 0.0  ;;  %v3575_v63 = vpop.f32.mrb[32].mxu0 }
 0xc71   :  { %3028 = vadd.xlane.f32.xlu0 %v3027_v60  ;;  %v3010_v35 = vadd.f32 %v3575_v63, %v3249_v13  ;;  %v3004_v10 = vpop.f32.mrb[33].mxu0  ;;  %v5032_v63 = vld [vmem:[%s5111_s12] ss:$0 sm:$0xff] }
 0xc72   :  { %v3005_v8 = vadd.f32 %v3249_v13, %v3004_v10 }
 0xc73   :  { %v3036_v16 = vsel %vm72_vm0, %v3010_v35, 0.0 }
 0xc74   :  { %3037 = vadd.xlane.f32.xlu1 %v3036_v16  ;;  %v3033_v19 = vsel %vm72_vm0, %v3005_v8, 0.0 }
 0xc75   :  { %3034 = vadd.xlane.f32.xlu0 %v3033_v19 }
 0xcb1   :  { %v3020_v40 = vpop.xlane.xlu1 %3019 }
 0xcb2   :  { %v3040_v12 = vmul.f32 0.03125, %v3020_v40  ;;  %v3017_v34 = vpop.xlane.xlu0 %3016 }
 0xcb3   :  { %v3039_v28 = vmul.f32 0.03125, %v3017_v34 }
 0xcb4   :  { %v3048_v33 = vsub.f32 %v2980_v61, %v3040_v12 }
 0xcb5   :  { %v3047_v38 = vsub.f32 %v2975_v54, %v3039_v28 }
 0xcb6   :  { %v3056_v7 = vmul.f32 %v3048_v33, %v3048_v33 }
 0xcb7   :  { %v3055_v62 = vmul.f32 %v3047_v38, %v3047_v38 }
 0xcb8   :  { %v3066_v14 = vsel %vm72_vm0, %v3056_v7, 0.0 }
 0xcb9   :  { %3067 = vadd.xlane.f32.xlu1 %v3066_v14  ;;  %v3063_v31 = vsel %vm72_vm0, %v3055_v62, 0.0 }
 0xcba   :  { %3064 = vadd.xlane.f32.xlu0 %v3063_v31 }
 0xcf8   :  { %v3026_v23 = vpop.xlane.xlu1 %3025 }
 0xcf9   :  { %v3042_v47 = vmul.f32 0.03125, %v3026_v23  ;;  %v3023_v48 = vpop.xlane.xlu0 %3022 }
 0xcfa   :  { %v3041_v15 = vmul.f32 0.03125, %v3023_v48 }
 0xcfb   :  { %v4994_v41 = vsub.f32 %v2990_v2, %v3042_v47 }
 0xcfc   :  { %v4996_v36 = vsub.f32 %v2985_v51, %v3041_v15 }
 0xcfd   :  { %v3058_v56 = vmul.f32 %v4994_v41, %v4994_v41  ;;  %v3032_v3 = vpop.xlane.xlu1 %3031 }
 0xcfe   :  { %v3057_v29 = vmul.f32 %v4996_v36, %v4996_v36  ;;  %v3044_v1 = vmul.f32 0.03125, %v3032_v3  ;;  %v3029_v43 = vpop.xlane.xlu0 %3028 }
 0xcff   :  { %v3072_v6 = vsel %vm72_vm0, %v3058_v56, 0.0  ;;  %v3043_v21 = vmul.f32 0.03125, %v3029_v43 }
 0xd00   :  { %3073 = vadd.xlane.f32.xlu1 %v3072_v6  ;;  %v3069_v24 = vsel %vm72_vm0, %v3057_v29, 0.0  ;;  %v5004_v20 = vsub.f32 %v3000_v22, %v3044_v1 }
 0xd01   :  { %3070 = vadd.xlane.f32.xlu0 %v3069_v24  ;;  %v5006_v17 = vsub.f32 %v2995_v53, %v3043_v21  ;;  %v3038_v26 = vpop.xlane.xlu1 %3037  ;;  %v5027_v53 = vld [vmem:[%s5110_s11] ss:$0 sm:$0xff] }
 0xd02   :  { %v3060_v11 = vmul.f32 %v5004_v20, %v5004_v20  ;;  %v3046_v50 = vmul.f32 0.03125, %v3038_v26  ;;  %v3035_v18 = vpop.xlane.xlu0 %3034 }
 0xd03   :  { %v3059_v39 = vmul.f32 %v5006_v17, %v5006_v17  ;;  %v3045_v13 = vmul.f32 0.03125, %v3035_v18 }
 0xd04   :  { %v3078_v27 = vsel %vm72_vm0, %v3060_v11, 0.0  ;;  %v5013_v61 = vsub.f32 %v3010_v35, %v3046_v50 }
 0xd05   :  { %3079 = vadd.xlane.f32.xlu1 %v3078_v27  ;;  %v3075_v25 = vsel %vm72_vm0, %v3059_v39, 0.0  ;;  %v5016_v54 = vsub.f32 %v3005_v8, %v3045_v13 }
 0xd06   :  { %3076 = vadd.xlane.f32.xlu0 %v3075_v25  ;;  %v3062_v4 = vmul.f32 %v5013_v61, %v5013_v61 }
 0xd07   :  { %v3061_v37 = vmul.f32 %v5016_v54, %v5016_v54 }
 0xd08   :  { %v3084_v59 = vsel %vm72_vm0, %v3062_v4, 0.0 }
 0xd09   :  { %3085 = vadd.xlane.f32.xlu1 %v3084_v59  ;;  %v3081_v2 = vsel %vm72_vm0, %v3061_v37, 0.0 }
 0xd0a   :  { %3082 = vadd.xlane.f32.xlu0 %v3081_v2 }
 0xd46   :  { %v3068_v32 = vpop.xlane.xlu1 %3067 }
 0xd47   :  { %v3088_v51 = vmul.f32 0.03125, %v3068_v32  ;;  %v3065_v0 = vpop.xlane.xlu0 %3064 }
 0xd48   :  { %v3087_v30 = vmul.f32 0.03125, %v3065_v0 }
 0xd49   :  { %v3096_v57 = vadd.f32 1e-05, %v3088_v51 }
 0xd4a   :  { %v3095_v22 = vadd.f32 1e-05, %v3087_v30 }
 0xd4b   :  { %3965 = vrsqrt.f32 %v3096_v57 }
 0xd4c   :  { %3967 = vrsqrt.f32 %v3095_v22 }
 0xd55   :  { %v3966_v49 = vpop.eup %3965 }
 0xd56   :  { %v3968_v45 = vpop.eup %3967  ;;  %v3112_v60 = vmul.f32 %v3966_v49, %v3048_v33 }
 0xd57   :  { %v3111_v35 = vmul.f32 %v3968_v45, %v3047_v38 }
 0xd58   :  { %v3126_v10 = vmul.f32 %v5027_v53, %v3112_v60 }
 0xd59   :  { %v3125_v8 = vmul.f32 %v5027_v53, %v3111_v35 }
 0xd5a   :  { %v3140_v16 = vadd.f32 %v5032_v63, %v3126_v10 }
 0xd5b   :  { %v3139_v19 = vadd.f32 %v5032_v63, %v3125_v8 }
 0xd5c   :  { %v3148_v40 = vadd.f32 %v3140_v16, %v4782_v55 }
 0xd5d   :  { %v3147_v12 = vadd.f32 %v3139_v19, %v4777_v42 }
 0xd5e   :  { %3156 = vst.msk [vmem:[%s5112_s16 + $0x8] sm:$0xff] %vm72_vm0, %v3148_v40 }
 0xd5f   :  { %3155 = vst.msk [vmem:[%s5112_s16] sm:$0xff] %vm72_vm0, %v3147_v12 }
 0xd8d   :  { %v3074_v34 = vpop.xlane.xlu1 %3073 }
 0xd8e   :  { %v3090_v28 = vmul.f32 0.03125, %v3074_v34  ;;  %v3071_v33 = vpop.xlane.xlu0 %3070 }
 0xd8f   :  { %v3089_v38 = vmul.f32 0.03125, %v3071_v33 }
 0xd90   :  { %v3098_v7 = vadd.f32 1e-05, %v3090_v28 }
 0xd91   :  { %v3097_v62 = vadd.f32 1e-05, %v3089_v38 }
 0xd92   :  { %3969 = vrsqrt.f32 %v3098_v7  ;;  %v3080_v55 = vpop.xlane.xlu1 %3079 }
 0xd93   :  { %3971 = vrsqrt.f32 %v3097_v62  ;;  %v3092_v42 = vmul.f32 0.03125, %v3080_v55  ;;  %v3077_v14 = vpop.xlane.xlu0 %3076 }
 0xd94   :  { %v3091_v31 = vmul.f32 0.03125, %v3077_v14 }
 0xd95   :  { %v3100_v23 = vadd.f32 1e-05, %v3092_v42 }
 0xd96   :  { %v3099_v47 = vadd.f32 1e-05, %v3091_v31  ;;  %v3086_v48 = vpop.xlane.xlu1 %3085 }
 0xd97   :  { %3973 = vrsqrt.f32 %v3100_v23  ;;  %v3094_v15 = vmul.f32 0.03125, %v3086_v48  ;;  %v3083_v56 = vpop.xlane.xlu0 %3082 }
 0xd98   :  { %3975 = vrsqrt.f32 %v3099_v47  ;;  %v3093_v29 = vmul.f32 0.03125, %v3083_v56 }
 0xd99   :  { %v3102_v6 = vadd.f32 1e-05, %v3094_v15 }
 0xd9a   :  { %v3101_v24 = vadd.f32 1e-05, %v3093_v29 }
 0xd9b   :  { %3977 = vrsqrt.f32 %v3102_v6 }
 0xd9c   :  { %v3970_v3 = vpop.eup %3969  ;;  %3979 = vrsqrt.f32 %v3101_v24 }
 0xd9d   :  { %v3972_v1 = vpop.eup %3971  ;;  %v3114_v43 = vmul.f32 %v3970_v3, %v4994_v41 }
 0xd9e   :  { %v3113_v21 = vmul.f32 %v3972_v1, %v4996_v36 }
 0xd9f   :  { %v3128_v26 = vmul.f32 %v5027_v53, %v3114_v43 }
 0xda0   :  { %v3127_v11 = vmul.f32 %v5027_v53, %v3113_v21 }
 0xda1   :  { %v3142_v50 = vadd.f32 %v5032_v63, %v3128_v26  ;;  %v3974_v39 = vpop.eup %3973 }
 0xda2   :  { %v3141_v18 = vadd.f32 %v5032_v63, %v3127_v11  ;;  %v3976_v27 = vpop.eup %3975  ;;  %v3116_v41 = vmul.f32 %v3974_v39, %v5004_v20 }
 0xda3   :  { %v3150_v13 = vadd.f32 %v3142_v50, %v4805_v44  ;;  %v3115_v36 = vmul.f32 %v3976_v27, %v5006_v17 }
 0xda4   :  { %v3149_v25 = vadd.f32 %v3141_v18, %v4799_v58  ;;  %v3130_v4 = vmul.f32 %v5027_v53, %v3116_v41 }
 0xda5   :  { %3158 = vst.msk [vmem:[%s5112_s16 + $0x18] sm:$0xff] %vm72_vm0, %v3150_v13  ;;  %v3129_v44 = vmul.f32 %v5027_v53, %v3115_v36  ;;  %v3978_v37 = vpop.eup %3977 }
 0xda6   :  { %3157 = vst.msk [vmem:[%s5112_s16 + $0x10] sm:$0xff] %vm72_vm0, %v3149_v25  ;;  %v3144_v58 = vadd.f32 %v5032_v63, %v3130_v4  ;;  %v3980_v20 = vpop.eup %3979  ;;  %v3118_v2 = vmul.f32 %v3978_v37, %v5013_v61 }
 0xda7   :  { %v3143_v59 = vadd.f32 %v5032_v63, %v3129_v44  ;;  %v3117_v17 = vmul.f32 %v3980_v20, %v5016_v54 }
 0xda8   :  { %v3152_v32 = vadd.f32 %v3144_v58, %v4826_v52  ;;  %v3132_v0 = vmul.f32 %v5027_v53, %v3118_v2 }
 0xda9   :  { %v3151_v51 = vadd.f32 %v3143_v59, %v4820_v9  ;;  %v3131_v30 = vmul.f32 %v5027_v53, %v3117_v17 }
 0xdaa   :  { %3160 = vst.msk [vmem:[%s5112_s16 + $0x28] sm:$0xff] %vm72_vm0, %v3152_v32  ;;  %v3146_v52 = vadd.f32 %v5032_v63, %v3132_v0 }
 0xdab   :  { %3159 = vst.msk [vmem:[%s5112_s16 + $0x20] sm:$0xff] %vm72_vm0, %v3151_v51  ;;  %v3145_v61 = vadd.f32 %v5032_v63, %v3131_v30 }
 0xdac   :  { %v3154_v9 = vadd.f32 %v3146_v52, %v4842_v46 }
 0xdad   :  { %v3153_v54 = vadd.f32 %v3145_v61, %v4837_v5 }
 0xdae   :  { %3162 = vst.msk [vmem:[%s5112_s16 + $0x38] sm:$0xff] %vm72_vm0, %v3154_v9 }
 0xdaf   :  { %3161 = vst.msk [vmem:[%s5112_s16 + $0x30] sm:$0xff] %vm72_vm0, %v3153_v54 }

// kernel: swinv2_forward.13
= control target key start
LH: loop header
LB: loop body
LE: loop exit
PB: predicated region body
PF: predicated region fallthrough
CT: control target
= control target key end

     0   :  { %vm18_vm0 = vcmask 523264   ;;  %s118_s0 = inlined_call_operand.vmem [shape: f32[16,64], index: 0, kind: input, shape index: {}]   ;;  %s119_s1 = inlined_call_operand.vmem [shape: f32[1,64], index: 1, kind: input, shape index: {}]   ;;  %s120_s2 = inlined_call_operand.vmem [shape: f32[1,64], index: 2, kind: input, shape index: {}]   ;;  %s121_s3 = inlined_call_operand.vmem [shape: f32[16,64], index: 3, kind: output, shape index: {}]  }
   0x1   :  { %v14_v0 = vld [vmem:[%s118_s0] sm:$0xff]  ;;  %v15_v1 = vld [vmem:[%s118_s0 + $0x8] sm:$0xff] }
   0x2   :  { %v19_v2 = vsel %vm18_vm0, %v14_v0, 0.0  ;;  %v22_v3 = vsel %vm18_vm0, %v15_v1, 0.0  ;;  %v68_v21 = vld [vmem:[%s119_s1] ss:$0 sm:$0xff] }
   0x3   :  { %20 = vadd.xlane.f32.xlu0 %v19_v2  ;;  %v69_v23 = vld [vmem:[%s120_s2] ss:$0 sm:$0xff] }
   0x7   :  { %23 = vadd.xlane.f32.xlu0 %v22_v3 }
  0x90   :  { %v21_v4 = vpop.xlane.xlu0 %20 }
  0x91   :  { %v26_v5 = vmul.f32 0.015625, %v21_v4 }
  0x93   :  { %v28_v6 = vsub.f32 %v14_v0, %v26_v5 }
  0x94   :  { %v24_v7 = vpop.xlane.xlu0 %23 }
  0x95   :  { %v27_v8 = vmul.f32 0.015625, %v24_v7  ;;  %v30_v9 = vmul.f32 %v28_v6, %v28_v6 }
  0x97   :  { %v29_v10 = vsub.f32 %v15_v1, %v27_v8  ;;  %v32_v11 = vsel %vm18_vm0, %v30_v9, 0.0 }
  0x98   :  { %33 = vadd.xlane.f32.xlu1 %v32_v11 }
  0x99   :  { %v31_v12 = vmul.f32 %v29_v10, %v29_v10 }
  0x9b   :  { %v35_v13 = vsel %vm18_vm0, %v31_v12, 0.0 }
  0x9c   :  { %36 = vadd.xlane.f32.xlu1 %v35_v13 }
 0x125   :  { %v34_v14 = vpop.xlane.xlu1 %33 }
 0x126   :  { %v38_v15 = vmul.f32 0.015625, %v34_v14 }
 0x128   :  { %v40_v16 = vadd.f32 1e-05, %v38_v15 }
 0x129   :  { %v37_v17 = vpop.xlane.xlu1 %36 }
 0x12a   :  { %70 = vrsqrt.f32 %v40_v16  ;;  %v39_v18 = vmul.f32 0.015625, %v37_v17 }
 0x12c   :  { %v41_v19 = vadd.f32 1e-05, %v39_v18 }
 0x12e   :  { %72 = vrsqrt.f32 %v41_v19 }
 0x134   :  { %v71_v20 = vpop.eup %70 }
 0x135   :  { %v44_v22 = vmul.f32 %v71_v20, %v28_v6 }
 0x137   :  { %v52_v24 = vmul.f32 %v68_v21, %v44_v22 }
 0x138   :  { %v73_v25 = vpop.eup %72 }
 0x139   :  { %v60_v26 = vadd.f32 %v69_v23, %v52_v24  ;;  %v45_v27 = vmul.f32 %v73_v25, %v29_v10 }
 0x13b   :  { %62 = vst.msk [vmem:[%s121_s3] sm:$0xff] %vm18_vm0, %v60_v26  ;;  %v53_v28 = vmul.f32 %v68_v21, %v45_v27 }
 0x13d   :  { %v61_v29 = vadd.f32 %v69_v23, %v53_v28 }
 0x13f   :  { %63 = vst.msk [vmem:[%s121_s3 + $0x8] sm:$0xff] %vm18_vm0, %v61_v29 }

// kernel: swinv2_forward.11
= control target key start
LH: loop header
LB: loop body
LE: loop exit
PB: predicated region body
PF: predicated region fallthrough
CT: control target
= control target key end

     0   :  { %v2171_v3 = vmov 0.0   ;;  %vm83_vm0 = vcmask 523264   ;;  %v73_v27 = vlaneseq  ;;  %vm171_vm1 = vcmask 130048   ;;  %s2175_s19 = smov 48   ;;  %s2176_s20 = smov 32   ;;  %s2710_s1 = inlined_call_operand.vmem [shape: f32[64,192], index: 1, kind: input, shape index: {}]   ;;  %s2711_s0 = inlined_call_operand.vmem [shape: f32[16,64], index: 0, kind: input, shape index: {}]   ;;  %s2712_s2 = inlined_call_operand.vmem [shape: f32[1,192], index: 2, kind: input, shape index: {}]   ;;  %s2713_s15 = inlined_call_operand.vmem [shape: f32[4,1,1], index: 15, kind: input, shape index: {}]   ;;  %s2714_s13 = inlined_call_operand.vmem [shape: f32[4,16,16], index: 13, kind: input, shape index: {}]   ;;  %s2715_s14 = inlined_call_operand.vmem [shape: f32[1,16,16], index: 14, kind: input, shape index: {}]   ;;  %s2716_s3 = inlined_call_operand.vmem [shape: f32[64,64], index: 3, kind: input, shape index: {}]   ;;  %s2717_s4 = inlined_call_operand.vmem [shape: f32[1,64], index: 4, kind: input, shape index: {}]   ;;  %s2718_s7 = inlined_call_operand.vmem [shape: f32[64,128], index: 7, kind: input, shape index: {}]   ;;  %s2719_s5 = inlined_call_operand.vmem [shape: f32[1,64], index: 5, kind: input, shape index: {}]   ;;  %s2720_s6 = inlined_call_operand.vmem [shape: f32[1,64], index: 6, kind: input, shape index: {}]   ;;  %s2721_s9 = inlined_call_operand.vmem [shape: f32[128,64], index: 9, kind: input, shape index: {}]   ;;  %s2722_s8 = inlined_call_operand.vmem [shape: f32[1,128], index: 8, kind: input, shape index: {}]   ;;  %s2723_s10 = inlined_call_operand.vmem [shape: f32[1,64], index: 10, kind: input, shape index: {}]   ;;  %s2724_s11 = inlined_call_operand.vmem [shape: f32[1,64], index: 11, kind: input, shape index: {}]   ;;  %s2725_s12 = inlined_call_operand.vmem [shape: f32[1,64], index: 12, kind: input, shape index: {}]   ;;  %s2726_s16 = inlined_call_operand.vmem [shape: f32[16,64], index: 16, kind: output, shape index: {}]  }
   0x1   :  { %2728 = sst [smem:[#allocation2_spill]] %s2710_s1  ;;  %154 = vmatprep.mubr.f32.mxu0 %v2171_v3  ;;  %v53_v25 = vld [vmem:[%s2711_s0] sm:$0xff]  ;;  %v54_v26 = vld [vmem:[%s2711_s0 + $0x8] sm:$0xff]  ;;  %s2172_s1 = smov 64   ;;  %v2174_v52 = vmov 0   ;;  %vm2377_vm2 = vmpackc.low %vm171_vm1, %vm171_vm1  ;;  %vm1224_vm3 = vcmask 261120  }
   0x2   :  { %s2729_s23 = sld [smem:[#allocation2_spill]]  ;;  %v74_v28 = vshrl.u32 %v73_v27, 7  ;;  %v71_v30 = vld [vmem:[%s2712_s2] sm:$0x3]  ;;  %s2173_s2 = smov 112   ;;  %2057 = vset.pattern.permute.xlu1 %v2174_v52  ;;  %2068 = vset.pattern.permute.xlu0 %v2174_v52  ;;  %vm1227_vm4 = vcmask 392192  }
   0x3   :  { %s2177_s21 = smov 96   ;;  %s2179_s17 = smov 80  }
   0x4   :  { %v75_v29 = vsub.s32 0, %v74_v28  ;;  %v79_v32 = vsub.s32 1, %v74_v28 }
   0x6   :  { %v76_v31 = vrot.slane %v71_v30, %v75_v29  ;;  %v80_v36 = vrot.slane %v71_v30, %v79_v32 }
   0x8   :  { %v56_v0 = vld [vmem:[%s2729_s23 + $0x8] sm:$0xff]  ;;  %v58_v1 = vld [vmem:[%s2729_s23 + $0x18] sm:$0xff]  ;;  %v55_v2 = vld [vmem:[%s2729_s23] sm:$0xff] }
   0x9   :  { %v1922_v4 = vpack.c.bf16 %v58_v1, %v56_v0  ;;  %v57_v5 = vld [vmem:[%s2729_s23 + $0x10] sm:$0xff]  ;;  %v60_v6 = vld [vmem:[%s2729_s23 + $0x28] sm:$0xff]  ;;  %v62_v7 = vld [vmem:[%s2729_s23 + $0x38] sm:$0xff] }
   0xa   :  { %v1924_v8 = vpack.c.bf16 %v57_v5, %v55_v2  ;;  %v1926_v9 = vpack.c.bf16 %v62_v7, %v60_v6  ;;  %v59_v10 = vld [vmem:[%s2729_s23 + $0x20] sm:$0xff]  ;;  %v61_v11 = vld [vmem:[%s2729_s23 + $0x30] sm:$0xff]  ;;  %v64_v12 = vld [vmem:[%s2729_s23 + $0x48] sm:$0xff] }
   0xb   :  { %1923 = vmatprep.subr.bf16.mxu0 %v1922_v4  ;;  %v66_v13 = vld [vmem:[%s2729_s23 + $0x58] sm:$0xff]  ;;  %v1928_v14 = vpack.c.bf16 %v61_v11, %v59_v10  ;;  %v63_v16 = vld [vmem:[%s2729_s23 + $0x40] sm:$0xff]  ;;  %v65_v17 = vld [vmem:[%s2729_s23 + $0x50] sm:$0xff] }
   0xc   :  { %1925 = vmatpush1.bf16.msra.mxu0 %v1924_v8  ;;  %v1930_v15 = vpack.c.bf16 %v66_v13, %v64_v12  ;;  %v68_v18 = vld [vmem:[%s2729_s23 + $0x68] sm:$0xff]  ;;  %v70_v19 = vld [vmem:[%s2729_s23 + $0x78] sm:$0xff]  ;;  %v1932_v20 = vpack.c.bf16 %v65_v17, %v63_v16  ;;  %v67_v22 = vld [vmem:[%s2729_s23 + $0x60] sm:$0xff] }
   0xd   :  { %1927 = vmatprep.subr.bf16.mxu0 %v1926_v9  ;;  %v1934_v21 = vpack.c.bf16 %v70_v19, %v68_v18  ;;  %v69_v23 = vld [vmem:[%s2729_s23 + $0x70] sm:$0xff]  ;;  %v1679_v2 = vld [vmem:[%s2713_s15] ss:$0 sm:$0xff]  ;;  %v308_v17 = vld [vmem:[%s2714_s13 + $0x8] sm:$0xff] }
   0xe   :  { %v1936_v24 = vpack.c.bf16 %v69_v23, %v67_v22  ;;  %v2398_v22 = vld [vmem:[%s2715_s14 + $0x8] sm:$0xff]  ;;  %v1708_v8 = vld [vmem:[%s2714_s13 + $0x30] sm:$0xff] }
  0x10   :  { %1929 = vmatpush1.bf16.msra.mxu0 %v1928_v14 }
  0x11   :  { %1931 = vmatprep.subr.bf16.mxu0 %v1930_v15 }
  0x14   :  { %1933 = vmatpush1.bf16.msra.mxu0 %v1932_v20  ;;  %v307_v20 = vld [vmem:[%s2714_s13] sm:$0xff] }
  0x15   :  { %1935 = vmatprep.subr.bf16.mxu0 %v1934_v21 }
  0x18   :  { %1937 = vmatpush1.bf16.msra.mxu0 %v1936_v24  ;;  %v2403_v24 = vld [vmem:[%s2715_s14] sm:$0xff] }
  0x1b   :  { %1673 = vmatmul.mubr.msk.f32.vlgmr.msra.gmra.mrb[0].mxu0 %vm83_vm0, %v53_v25 }
  0x1c   :  { %160 = vmatprep.mubr.f32.mxu0 %v2171_v3 }
  0x1f   :  { %1674 = vmatmul.mubr.msk.f32.gmra.mrb[2].mxu0 %vm83_vm0, %v54_v26 }
  0xee   :  { %v156_v33 = vpop.f32.mrb[0].mxu0 }
  0xef   :  { %v2325_v34 = vadd.f32 %v156_v33, %v76_v31  ;;  %v158_v35 = vpop.f32.mrb[1].mxu0 }
  0xf0   :  { %v159_v41 = vadd.f32 %v158_v35, %v80_v36 }
  0xf1   :  { %v2329_v37 = vmul.f32 %v2325_v34, %v2325_v34 }
  0xf2   :  { %v162_v38 = vpop.f32.mrb[2].mxu0 }
  0xf3   :  { %v2331_v39 = vadd.f32 %v162_v38, %v76_v31  ;;  %v164_v40 = vpop.f32.mrb[3].mxu0  ;;  %186 = vrot.lane.b32.xlu0 %v2329_v37, %s2172_s1  ;;  %v172_v46 = vsel %vm171_vm1, %v2329_v37, 0.0 }
  0xf4   :  { %v165_v42 = vadd.f32 %v164_v40, %v80_v36 }
  0xf5   :  { %v2337_v43 = vmul.f32 %v2331_v39, %v2331_v39 }
  0xf6   :  { %v2339_v44 = vpack.c.bf16 %v165_v42, %v159_v41  ;;  %v2341_v45 = vpack.i.bf16 %v165_v42, %v159_v41 }
  0xf7   :  { %188 = vrot.lane.b32.xlu0 %v2337_v43, %s2172_s1  ;;  %v175_v51 = vsel %vm171_vm1, %v2337_v43, 0.0 }
 0x116   :  { %173 = vadd.xlane.f32.xlu0 %v172_v46 }
 0x12c   :  { %416 = vrot.lane.b32.xlu0 %v2329_v37, %s2173_s2 }
 0x165   :  { %v187_v47 = vpop.permute.xlu0 %186 }
 0x166   :  { %v192_v48 = vsel %vm171_vm1, %v187_v47, 0.0 }
 0x167   :  { %193 = vadd.xlane.f32.xlu1 %v192_v48 }
 0x169   :  { %v189_v49 = vpop.permute.xlu0 %188 }
 0x16a   :  { %v195_v50 = vsel %vm171_vm1, %v189_v49, 0.0 }
 0x16b   :  { %196 = vadd.xlane.f32.xlu1 %v195_v50 }
 0x16f   :  { %176 = vadd.xlane.f32.xlu1 %v175_v51 }
 0x1a3   :  { %v174_v53 = vpop.xlane.xlu0 %173 }
 0x1a4   :  { %v178_v54 = vmax.f32 %v174_v53, 1e-24 }
 0x1a6   :  { %2089 = vrsqrt.f32 %v178_v54 }
 0x1a7   :  { %v417_v30 = vpop.permute.xlu0 %416 }
 0x1a8   :  { %v422_v33 = vsel %vm171_vm1, %v417_v30, 0.0 }
 0x1b0   :  { %v2090_v55 = vpop.eup %2089 }
 0x1b1   :  { %v182_v56 = vmul.f32 %v2090_v55, %v2325_v34 }
 0x1b3   :  { %1797 = vmatprep.mubr.msk.f32.mxu1 %vm171_vm1, %v182_v56 }
 0x1f4   :  { %v194_v57 = vpop.xlane.xlu1 %193 }
 0x1f5   :  { %v198_v58 = vmax.f32 %v194_v57, 1e-24 }
 0x1f7   :  { %2091 = vrsqrt.f32 %v198_v58 }
 0x1f8   :  { %v197_v59 = vpop.xlane.xlu1 %196 }
 0x1f9   :  { %v199_v60 = vmax.f32 %v197_v59, 1e-24 }
 0x1fb   :  { %2093 = vrsqrt.f32 %v199_v60 }
 0x1fc   :  { %v177_v3 = vpop.xlane.xlu1 %176 }
 0x1fd   :  { %v179_v4 = vmax.f32 %v177_v3, 1e-24 }
 0x1ff   :  { %2095 = vrsqrt.f32 %v179_v4 }
 0x201   :  { %v2092_v61 = vpop.eup %2091 }
 0x202   :  { %v202_v63 = vmul.f32 %v2092_v61, %v2325_v34 }
 0x205   :  { %v2094_v62 = vpop.eup %2093 }
 0x206   :  { %v203_v0 = vmul.f32 %v2094_v62, %v2331_v39 }
 0x208   :  { %v2052_v1 = vpack.i.bf16 %v203_v0, %v202_v63 }
 0x209   :  { %v2096_v10 = vpop.eup %2095 }
 0x20a   :  { %2053 = vrot.lane.b32.xlu1 %v2052_v1, %s2172_s1  ;;  %v183_v11 = vmul.f32 %v2096_v10, %v2331_v39  ;;  %s2178_s1 = smov 16  }
 0x20e   :  { %302 = vperm.xlu1 %2057, %v1679_v2  }
 0x212   :  { %434 = vrot.lane.b32.xlu1 %v2329_v37, %s2175_s19 }
 0x216   :  { %436 = vrot.lane.b32.xlu1 %v2337_v43, %s2175_s19 }
 0x21a   :  { %696 = vrot.lane.b32.xlu1 %v2329_v37, %s2176_s20 }
 0x21e   :  { %698 = vrot.lane.b32.xlu1 %v2337_v43, %s2176_s20 }
 0x222   :  { %418 = vrot.lane.b32.xlu1 %v2337_v43, %s2173_s2 }
 0x226   :  { %678 = vrot.lane.b32.xlu1 %v2329_v37, %s2177_s21 }
 0x22a   :  { %680 = vrot.lane.b32.xlu1 %v2337_v43, %s2177_s21 }
 0x27c   :  { %v2054_v5 = vpop.permute.xlu1 %2053 }
 0x27d   :  { %v2056_v6 = vunpack.i.h.bf16 %v2054_v5  ;;  %v2055_v7 = vunpack.i.l.bf16 %v2054_v5 }
 0x27f   :  { %v1938_v9 = vpack.c.bf16 %v2056_v6, %v2055_v7 }
 0x281   :  { %1940 = vmatprep.subr.msk.bf16.mxu1 %vm2377_vm2, %v1938_v9 }
 0x282   :  { %1943 = vmatpush3.bf16.xpose.msk.msra.mxu1 %vm2377_vm2, %v1938_v9 }
 0x283   :  { %1945 = vmatprep.subr.bf16.mxu1 %v2339_v44 }
 0x289   :  { %1798 = vmatmul.mubr.msk.f32.vlgmr.msra.gmra.mrb[0].mxu1 %vm171_vm1, %v183_v11 }
 0x28a   :  { %1947 = vmatpush3.bf16.msra.mxu1 %v2339_v44 }
 0x28d   :  { %v303_v12 = vpop.permute.xlu1 %302 }
 0x291   :  { %v435_v13 = vpop.permute.xlu1 %434 }
 0x292   :  { %v440_v35 = vsel %vm171_vm1, %v435_v13, 0.0 }
 0x295   :  { %v437_v14 = vpop.permute.xlu1 %436 }
 0x296   :  { %v443_v40 = vsel %vm171_vm1, %v437_v14, 0.0 }
 0x299   :  { %v697_v15 = vpop.permute.xlu1 %696 }
 0x29a   :  { %v702_v42 = vsel %vm171_vm1, %v697_v15, 0.0 }
 0x29d   :  { %v699_v25 = vpop.permute.xlu1 %698 }
 0x29e   :  { %v705_v36 = vsel %vm171_vm1, %v699_v25, 0.0 }
 0x2a1   :  { %v419_v32 = vpop.permute.xlu1 %418 }
 0x2a2   :  { %v425_v44 = vsel %vm171_vm1, %v419_v32, 0.0 }
 0x2a5   :  { %v679_v38 = vpop.permute.xlu1 %678 }
 0x2a6   :  { %v684_v41 = vsel %vm171_vm1, %v679_v38, 0.0 }
 0x2a9   :  { %v681_v46 = vpop.permute.xlu1 %680 }
 0x2aa   :  { %v687_v47 = vsel %vm171_vm1, %v681_v46, 0.0 }
 0x35c   :  { %v1799_v16 = vpop.f32.mrb[0].mxu1 }
 0x35d   :  { %v306_v18 = vmul.f32 %v1799_v16, %v303_v12  ;;  %v286_v19 = vpop.f32.mrb[1].mxu1 }
 0x35e   :  { %v305_v21 = vmul.f32 %v303_v12, %v286_v19 }
 0x35f   :  { %v310_v23 = vadd.f32 %v308_v17, %v306_v18  ;;  %v1687_v17 = vld [vmem:[%s2713_s15 + $0x1] ss:$0 sm:$0xff] }
 0x360   :  { %v309_v26 = vadd.f32 %v307_v20, %v305_v21 }
 0x361   :  { %v312_v27 = vadd.f32 %v310_v23, %v2398_v22 }
 0x362   :  { %v2407_v28 = vadd.f32 %v309_v26, %v2403_v24 }
 0x363   :  { %v316_v29 = vsel %vm171_vm1, %v312_v27, -inf }
 0x364   :  { %317 = vmax.xlane.f32.xlu1 %v316_v29  ;;  %v313_v31 = vsel %vm171_vm1, %v2407_v28, -inf }
 0x365   :  { %314 = vmax.xlane.f32.xlu0 %v313_v31 }
 0x368   :  { %423 = vadd.xlane.f32.xlu1 %v422_v33 }
 0x369   :  { %441 = vadd.xlane.f32.xlu0 %v440_v35 }
 0x36c   :  { %706 = vadd.xlane.f32.xlu1 %v705_v36 }
 0x36d   :  { %444 = vadd.xlane.f32.xlu0 %v443_v40 }
 0x370   :  { %685 = vadd.xlane.f32.xlu1 %v684_v41 }
 0x371   :  { %703 = vadd.xlane.f32.xlu0 %v702_v42 }
 0x375   :  { %426 = vadd.xlane.f32.xlu0 %v425_v44 }
 0x379   :  { %688 = vadd.xlane.f32.xlu0 %v687_v47 }
 0x3f1   :  { %v318_v48 = vpop.xlane.xlu1 %317 }
 0x3f2   :  { %v320_v49 = vsub.f32 %v312_v27, %v318_v48  ;;  %v315_v50 = vpop.xlane.xlu0 %314 }
 0x3f3   :  { %v319_v18 = vsub.f32 %v2407_v28, %v315_v50 }
 0x3f4   :  { %v323_v51 = vmul.f32 1.442695, %v320_v49 }
 0x3f5   :  { %v424_v52 = vpop.xlane.xlu1 %423  ;;  %v321_v19 = vmul.f32 1.442695, %v319_v18 }
 0x3f6   :  { %2097 = vpow2.f32 %v323_v51  ;;  %v442_v53 = vpop.xlane.xlu0 %441  ;;  %v428_v0 = vmax.f32 %v424_v52, 1e-24 }
 0x3f7   :  { %v446_v54 = vmax.f32 %v442_v53, 1e-24 }
 0x3f9   :  { %v707_v55 = vpop.xlane.xlu1 %706  ;;  %2099 = vrsqrt.f32 %v446_v54 }
 0x3fa   :  { %v445_v56 = vpop.xlane.xlu0 %444  ;;  %v709_v57 = vmax.f32 %v707_v55, 1e-24 }
 0x3fb   :  { %v447_v58 = vmax.f32 %v445_v56, 1e-24 }
 0x3fd   :  { %2101 = vrsqrt.f32 %v447_v58  ;;  %v686_v1 = vpop.xlane.xlu1 %685  ;;  %v1689_v58 = vld [vmem:[%s2714_s13 + $0x18] sm:$0xff] }
 0x3fe   :  { %v704_v59 = vpop.xlane.xlu0 %703  ;;  %2103 = vrsqrt.f32 %v709_v57  ;;  %v690_v6 = vmax.f32 %v686_v1, 1e-24 }
 0x3ff   :  { %v708_v60 = vmax.f32 %v704_v59, 1e-24 }
 0x400   :  { %v2420_v61 = vpop.eup %2097 }
 0x401   :  { %2105 = vrsqrt.f32 %v708_v60  ;;  %v328_v62 = vsel %vm171_vm1, %v2420_v61, 0.0 }
 0x402   :  { %329 = vadd.xlane.f32.xlu0 %v328_v62  ;;  %2107 = vrsqrt.f32 %v428_v0  ;;  %v427_v20 = vpop.xlane.xlu0 %426 }
 0x403   :  { %v2100_v63 = vpop.eup %2099  ;;  %2109 = vrsqrt.f32 %v690_v6  ;;  %v429_v23 = vmax.f32 %v427_v20, 1e-24  ;;  %v1699_v6 = vld [vmem:[%s2714_s13 + $0x28] sm:$0xff] }
 0x404   :  { %v450_v3 = vmul.f32 %v2100_v63, %v2325_v34  ;;  %2111 = vpow2.f32 %v321_v19 }
 0x405   :  { %2113 = vrsqrt.f32 %v429_v23 }
 0x406   :  { %v689_v25 = vpop.xlane.xlu0 %688 }
 0x407   :  { %v2102_v2 = vpop.eup %2101  ;;  %v691_v27 = vmax.f32 %v689_v25, 1e-24 }
 0x408   :  { %v451_v4 = vmul.f32 %v2102_v2, %v2331_v39  ;;  %v2104_v5 = vpop.eup %2103 }
 0x409   :  { %v713_v11 = vmul.f32 %v2104_v5, %v2331_v39  ;;  %2115 = vrsqrt.f32 %v691_v27 }
 0x40a   :  { %v2058_v7 = vpack.i.bf16 %v451_v4, %v450_v3 }
 0x40b   :  { %v2106_v9 = vpop.eup %2105 }
 0x40c   :  { %2059 = vrot.lane.b32.xlu1 %v2058_v7, %s2175_s19  ;;  %v712_v10 = vmul.f32 %v2106_v9, %v2325_v34  ;;  %v2108_v13 = vpop.eup %2107 }
 0x40d   :  { %v432_v14 = vmul.f32 %v2108_v13, %v2325_v34  ;;  %v2110_v15 = vpop.eup %2109 }
 0x40e   :  { %v2063_v12 = vpack.i.bf16 %v713_v11, %v712_v10  ;;  %v694_v16 = vmul.f32 %v2110_v15, %v2325_v34  ;;  %v2112_v21 = vpop.eup %2111  ;;  %v1698_v11 = vld [vmem:[%s2714_s13 + $0x20] sm:$0xff] }
 0x40f   :  { %v325_v26 = vsel %vm171_vm1, %v2112_v21, 0.0  ;;  %v2114_v28 = vpop.eup %2113 }
 0x410   :  { %2064 = vrot.lane.b32.xlu1 %v2063_v12, %s2176_s20  ;;  %v433_v29 = vmul.f32 %v2114_v28, %v2331_v39 }
 0x413   :  { %v2116_v30 = vpop.eup %2115 }
 0x414   :  { %v695_v31 = vmul.f32 %v2116_v30, %v2331_v39 }
 0x418   :  { %454 = vrot.lane.b32.xlu0 %v432_v14, %s2173_s2 }
 0x41c   :  { %716 = vrot.lane.b32.xlu0 %v694_v16, %s2177_s21 }
 0x420   :  { %555 = vperm.xlu0 %2068, %v1687_v17  }
 0x424   :  { %958 = vrot.lane.b32.xlu0 %v2337_v43, %s2178_s1 }
 0x428   :  { %940 = vrot.lane.b32.xlu0 %v2337_v43, %s2179_s17  ;;  %v1697_v43 = vld [vmem:[%s2713_s15 + $0x2] ss:$0 sm:$0xff] }
 0x434   :  { %326 = vadd.xlane.f32.xlu1 %v325_v26 }
 0x445   :  { %456 = vrot.lane.b32.xlu1 %v433_v29, %s2173_s2 }
 0x449   :  { %718 = vrot.lane.b32.xlu1 %v695_v31, %s2177_s21 }
 0x44d   :  { %817 = vperm.xlu1 %2057, %v1697_v43  }
 0x451   :  { %956 = vrot.lane.b32.xlu1 %v2329_v37, %s2178_s1 }
 0x455   :  { %938 = vrot.lane.b32.xlu1 %v2329_v37, %s2179_s17 }
 0x47e   :  { %v2060_v32 = vpop.permute.xlu1 %2059 }
 0x47f   :  { %v2062_v33 = vunpack.i.h.bf16 %v2060_v32  ;;  %v2061_v35 = vunpack.i.l.bf16 %v2060_v32 }
 0x481   :  { %v1948_v36 = vpack.c.bf16 %v2062_v33, %v2061_v35 }
 0x482   :  { %v2065_v38 = vpop.permute.xlu1 %2064 }
 0x483   :  { %1950 = vmatprep.subr.msk.bf16.mxu1 %vm2377_vm2, %v1948_v36  ;;  %v2067_v46 = vunpack.i.h.bf16 %v2065_v38  ;;  %v2066_v47 = vunpack.i.l.bf16 %v2065_v38 }
 0x485   :  { %v1958_v37 = vpack.c.bf16 %v2067_v46, %v2066_v47 }
 0x48f   :  { %v330_v40 = vpop.xlane.xlu0 %329 }
 0x490   :  { %2117 = vrcp.f32 %v330_v40 }
 0x493   :  { %v455_v50 = vpop.permute.xlu0 %454 }
 0x497   :  { %v717_v52 = vpop.permute.xlu0 %716 }
 0x49a   :  { %v2118_v42 = vpop.eup %2117 }
 0x49b   :  { %v334_v49 = vmul.f32 %v2118_v42, %v2420_v61  ;;  %v1688_v61 = vld [vmem:[%s2714_s13 + $0x10] sm:$0xff] }
 0x49f   :  { %v556_v56 = vpop.permute.xlu0 %555 }
 0x4a3   :  { %v959_v16 = vpop.permute.xlu0 %958 }
 0x4a7   :  { %v941_v23 = vpop.permute.xlu0 %940 }
 0x4a8   :  { %v947_v27 = vsel %vm171_vm1, %v941_v23, 0.0 }
 0x4c1   :  { %v327_v41 = vpop.xlane.xlu1 %326 }
 0x4c2   :  { %2119 = vrcp.f32 %v327_v41 }
 0x4c5   :  { %v457_v51 = vpop.permute.xlu1 %456 }
 0x4c9   :  { %v719_v53 = vpop.permute.xlu1 %718 }
 0x4cc   :  { %v2120_v44 = vpop.eup %2119 }
 0x4cd   :  { %v333_v48 = vmul.f32 %v2120_v44, %v2112_v21  ;;  %v818_v4 = vpop.permute.xlu1 %817  ;;  %v965_v21 = vsel %vm171_vm1, %v959_v16, 0.0 }
 0x4cf   :  { %1804 = vmatprep.mubr.msk.f32.mxu1 %vm171_vm1, %v333_v48 }
 0x4d0   :  { %1805 = vmatmul.mubr.msk.f32.vlgmr.msra.gmra.mrb[2].mxu1 %vm171_vm1, %v334_v49 }
 0x4d1   :  { %1953 = vmatpush3.bf16.xpose.msk.msra.mxu1 %vm2377_vm2, %v1948_v36  ;;  %1811 = vmatprep.mubr.msk.f32.mxu1 %vm171_vm1, %v455_v50  ;;  %v957_v18 = vpop.permute.xlu1 %956 }
 0x4d2   :  { %1960 = vmatprep.subr.msk.bf16.mxu1 %vm2377_vm2, %v1958_v37  ;;  %v962_v25 = vsel %vm171_vm1, %v957_v18, 0.0 }
 0x4d5   :  { %v939_v26 = vpop.permute.xlu1 %938 }
 0x4d6   :  { %v944_v28 = vsel %vm171_vm1, %v939_v26, 0.0 }
 0x4d8   :  { %1812 = vmatmul.mubr.msk.f32.vlgmr.msra.gmra.mrb[4].mxu1 %vm171_vm1, %v457_v51 }
 0x4d9   :  { %1963 = vmatpush3.bf16.xpose.msk.msra.mxu1 %vm2377_vm2, %v1958_v37  ;;  %1825 = vmatprep.mubr.msk.f32.mxu1 %vm171_vm1, %v717_v52 }
 0x4e0   :  { %1826 = vmatmul.mubr.msk.f32.vlgmr.msra.gmra.mrb[6].mxu1 %vm171_vm1, %v719_v53 }
 0x5a3   :  { %v2469_v54 = vpop.f32.mrb[2].mxu1 }
 0x5a4   :  { %v2471_v55 = vpop.f32.mrb[3].mxu1 }
 0x5ab   :  { %v1813_v57 = vpop.f32.mrb[4].mxu1 }
 0x5ac   :  { %v559_v59 = vmul.f32 %v1813_v57, %v556_v56  ;;  %v538_v60 = vpop.f32.mrb[5].mxu1 }
 0x5ad   :  { %v558_v62 = vmul.f32 %v556_v56, %v538_v60 }
 0x5ae   :  { %v564_v63 = vadd.f32 %v1689_v58, %v559_v59 }
 0x5af   :  { %v563_v0 = vadd.f32 %v1688_v61, %v558_v62 }
 0x5b0   :  { %v566_v1 = vadd.f32 %v564_v63, %v2398_v22 }
 0x5b1   :  { %v565_v2 = vadd.f32 %v563_v0, %v2403_v24 }
 0x5b2   :  { %v570_v3 = vsel %vm171_vm1, %v566_v1, -inf }
 0x5b3   :  { %v1827_v5 = vpop.f32.mrb[6].mxu1  ;;  %571 = vmax.xlane.f32.xlu0 %v570_v3  ;;  %v567_v7 = vsel %vm171_vm1, %v565_v2, -inf }
 0x5b4   :  { %v821_v9 = vmul.f32 %v1827_v5, %v818_v4  ;;  %v800_v10 = vpop.f32.mrb[7].mxu1  ;;  %568 = vmax.xlane.f32.xlu1 %v567_v7  ;;  %v1707_v7 = vld [vmem:[%s2713_s15 + $0x3] ss:$0 sm:$0xff] }
 0x5b5   :  { %v820_v12 = vmul.f32 %v818_v4, %v800_v10 }
 0x5b6   :  { %v826_v13 = vadd.f32 %v1699_v6, %v821_v9 }
 0x5b7   :  { %v825_v14 = vadd.f32 %v1698_v11, %v820_v12 }
 0x5b8   :  { %v828_v15 = vadd.f32 %v826_v13, %v2398_v22 }
 0x5b9   :  { %v827_v17 = vadd.f32 %v825_v14, %v2403_v24 }
 0x5ba   :  { %v832_v19 = vsel %vm171_vm1, %v828_v15, -inf }
 0x5bb   :  { %833 = vmax.xlane.f32.xlu1 %v832_v19  ;;  %v829_v20 = vsel %vm171_vm1, %v827_v17, -inf }
 0x5bc   :  { %830 = vmax.xlane.f32.xlu0 %v829_v20 }
 0x5bf   :  { %966 = vadd.xlane.f32.xlu1 %v965_v21 }
 0x5c0   :  { %963 = vadd.xlane.f32.xlu0 %v962_v25 }
 0x5c3   :  { %948 = vadd.xlane.f32.xlu1 %v947_v27 }
 0x5c4   :  { %945 = vadd.xlane.f32.xlu0 %v944_v28 }
 0x640   :  { %v572_v29 = vpop.xlane.xlu0 %571 }
 0x641   :  { %v574_v30 = vsub.f32 %v566_v1, %v572_v29  ;;  %v569_v31 = vpop.xlane.xlu1 %568 }
 0x642   :  { %v573_v43 = vsub.f32 %v565_v2, %v569_v31 }
 0x643   :  { %v577_v32 = vmul.f32 1.442695, %v574_v30 }
 0x644   :  { %v575_v33 = vmul.f32 1.442695, %v573_v43 }
 0x645   :  { %2121 = vpow2.f32 %v577_v32 }
 0x646   :  { %2123 = vpow2.f32 %v575_v33 }
 0x648   :  { %v834_v35 = vpop.xlane.xlu1 %833 }
 0x649   :  { %v836_v36 = vsub.f32 %v828_v15, %v834_v35  ;;  %v831_v38 = vpop.xlane.xlu0 %830 }
 0x64a   :  { %v835_v40 = vsub.f32 %v827_v17, %v831_v38 }
 0x64b   :  { %v839_v41 = vmul.f32 1.442695, %v836_v36 }
 0x64c   :  { %v837_v42 = vmul.f32 1.442695, %v835_v40  ;;  %v967_v49 = vpop.xlane.xlu1 %966 }
 0x64d   :  { %2125 = vpow2.f32 %v839_v41  ;;  %v964_v37 = vpop.xlane.xlu0 %963  ;;  %v969_v50 = vmax.f32 %v967_v49, 1e-24 }
 0x64e   :  { %2127 = vpow2.f32 %v837_v42  ;;  %v968_v52 = vmax.f32 %v964_v37, 1e-24 }
 0x64f   :  { %v2497_v44 = vpop.eup %2121  ;;  %2129 = vrsqrt.f32 %v969_v50 }
 0x650   :  { %v2124_v46 = vpop.eup %2123  ;;  %v582_v47 = vsel %vm171_vm1, %v2497_v44, 0.0  ;;  %2131 = vrsqrt.f32 %v968_v52  ;;  %v949_v58 = vpop.xlane.xlu1 %948 }
 0x651   :  { %583 = vadd.xlane.f32.xlu1 %v582_v47  ;;  %v579_v48 = vsel %vm171_vm1, %v2124_v46, 0.0  ;;  %v946_v59 = vpop.xlane.xlu0 %945  ;;  %v951_v60 = vmax.f32 %v949_v58, 1e-24 }
 0x652   :  { %580 = vadd.xlane.f32.xlu0 %v579_v48  ;;  %v950_v61 = vmax.f32 %v946_v59, 1e-24 }
 0x653   :  { %2133 = vrsqrt.f32 %v951_v60 }
 0x654   :  { %2135 = vrsqrt.f32 %v950_v61 }
 0x657   :  { %v2502_v51 = vpop.eup %2125 }
 0x658   :  { %v2128_v53 = vpop.eup %2127  ;;  %v844_v56 = vsel %vm171_vm1, %v2502_v51, 0.0 }
 0x659   :  { %845 = vadd.xlane.f32.xlu1 %v844_v56  ;;  %v841_v57 = vsel %vm171_vm1, %v2128_v53, 0.0  ;;  %v2130_v62 = vpop.eup %2129 }
 0x65a   :  { %842 = vadd.xlane.f32.xlu0 %v841_v57  ;;  %v2132_v63 = vpop.eup %2131  ;;  %v973_v1 = vmul.f32 %v2130_v62, %v2331_v39 }
 0x65b   :  { %v972_v0 = vmul.f32 %v2132_v63, %v2325_v34 }
 0x65d   :  { %v2079_v2 = vpack.i.bf16 %v973_v1, %v972_v0  ;;  %v2134_v3 = vpop.eup %2133 }
 0x65e   :  { %v2136_v4 = vpop.eup %2135  ;;  %v955_v5 = vmul.f32 %v2134_v3, %v2331_v39 }
 0x65f   :  { %v954_v6 = vmul.f32 %v2136_v4, %v2325_v34 }
 0x66a   :  { %2075 = vrot.lane.b32.xlu1 %v2341_v45, %s2177_s21 }
 0x66e   :  { %2080 = vrot.lane.b32.xlu1 %v2079_v2, %s2178_s1 }
 0x670   :  { %2070 = vrot.lane.b32.xlu0 %v2341_v45, %s2173_s2 }
 0x672   :  { %978 = vrot.lane.b32.xlu1 %v955_v5, %s2179_s17 }
 0x674   :  { %976 = vrot.lane.b32.xlu0 %v954_v6, %s2179_s17 }
 0x678   :  { %1077 = vperm.xlu0 %2068, %v1707_v7  }
 0x6de   :  { %v584_v10 = vpop.xlane.xlu1 %583 }
 0x6df   :  { %v581_v9 = vpop.xlane.xlu0 %580 }
 0x6e0   :  { %2137 = vrcp.f32 %v581_v9 }
 0x6e1   :  { %2139 = vrcp.f32 %v584_v10 }
 0x6e6   :  { %v846_v11 = vpop.xlane.xlu1 %845 }
 0x6e7   :  { %v843_v12 = vpop.xlane.xlu0 %842 }
 0x6e8   :  { %2141 = vrcp.f32 %v843_v12  ;;  %v1232_v12 = vld [vmem:[%s2716_s3 + $0x10] sm:$0xff] }
 0x6e9   :  { %2143 = vrcp.f32 %v846_v11  ;;  %v1231_v11 = vld [vmem:[%s2716_s3 + $0x8] sm:$0xff] }
 0x6ea   :  { %v2138_v39 = vpop.eup %2137  ;;  %v2076_v13 = vpop.permute.xlu1 %2075 }
 0x6eb   :  { %v2071_v14 = vpop.permute.xlu0 %2070  ;;  %v587_v15 = vmul.f32 %v2138_v39, %v2124_v46  ;;  %v2078_v34 = vunpack.i.h.bf16 %v2076_v13  ;;  %v2077_v16 = vunpack.i.l.bf16 %v2076_v13  ;;  %v2140_v21 = vpop.eup %2139  ;;  %v1233_v13 = vld [vmem:[%s2716_s3 + $0x18] sm:$0xff] }
 0x6ec   :  { %v2073_v17 = vunpack.i.h.bf16 %v2071_v14  ;;  %v2072_v18 = vunpack.i.l.bf16 %v2071_v14  ;;  %v588_v28 = vmul.f32 %v2140_v21, %v2497_v44  ;;  %v1709_v44 = vld [vmem:[%s2714_s13 + $0x38] sm:$0xff]  ;;  %v1982_v14 = vpack.c.bf16 %v1233_v13, %v1232_v12 }
 0x6ed   :  { %1818 = vmatprep.mubr.msk.f32.mxu0 %vm171_vm1, %v587_v15  ;;  %v1964_v23 = vpack.c.bf16 %v2078_v34, %v2077_v16  ;;  %v1234_v15 = vld [vmem:[%s2716_s3 + $0x20] sm:$0xff]  ;;  %v1235_v34 = vld [vmem:[%s2716_s3 + $0x28] sm:$0xff] }
 0x6ee   :  { %v1954_v19 = vpack.c.bf16 %v2073_v17, %v2072_v18  ;;  %v2081_v20 = vpop.permute.xlu1 %2080  ;;  %v1986_v16 = vpack.c.bf16 %v1235_v34, %v1234_v15  ;;  %v1236_v17 = vld [vmem:[%s2716_s3 + $0x30] sm:$0xff]  ;;  %v1237_v18 = vld [vmem:[%s2716_s3 + $0x38] sm:$0xff]  ;;  %v2169_v15 = vld [vmem:[%s2711_s0] sm:$0xff] }
 0x6ef   :  { %v2083_v25 = vunpack.i.h.bf16 %v2081_v20  ;;  %v2082_v26 = vunpack.i.l.bf16 %v2081_v20  ;;  %v977_v32 = vpop.permute.xlu0 %976 }
 0x6f0   :  { %1955 = vmatprep.subr.bf16.mxu0 %v1954_v19 }
 0x6f1   :  { %1957 = vmatpush3.bf16.msra.mxu0 %v1954_v19  ;;  %v1968_v31 = vpack.c.bf16 %v2083_v25, %v2082_v26  ;;  %v1990_v19 = vpack.c.bf16 %v1237_v18, %v1236_v17  ;;  %v2170_v17 = vld [vmem:[%s2711_s0 + $0x8] sm:$0xff] }
 0x6f2   :  { %v2142_v27 = vpop.eup %2141  ;;  %1965 = vmatprep.subr.bf16.mxu0 %v1964_v23  ;;  %v979_v33 = vpop.permute.xlu1 %978 }
 0x6f3   :  { %v2144_v29 = vpop.eup %2143  ;;  %v849_v30 = vmul.f32 %v2142_v27, %v2128_v53 }
 0x6f4   :  { %1819 = vmatmul.mubr.msk.f32.vlgmr.msra.gmra.mrb[4].mxu0 %vm171_vm1, %v588_v28  ;;  %v850_v43 = vmul.f32 %v2144_v29, %v2502_v51 }
 0x6f5   :  { %1967 = vmatpush3.bf16.msra.mxu0 %v1964_v23  ;;  %1832 = vmatprep.mubr.msk.f32.mxu0 %vm171_vm1, %v849_v30 }
 0x6f6   :  { %1970 = vmatprep.subr.msk.bf16.mxu0 %vm2377_vm2, %v1968_v31 }
 0x6f7   :  { %v1078_v41 = vpop.permute.xlu0 %1077 }
 0x6f8   :  { %1833 = vmatmul.mubr.msk.f32.vlgmr.msra.gmra.mrb[6].mxu0 %vm171_vm1, %v850_v43 }
 0x6f9   :  { %1839 = vmatprep.mubr.msk.f32.mxu0 %vm171_vm1, %v977_v32 }
 0x6fe   :  { %1973 = vmatpush3.bf16.xpose.msk.msra.mxu0 %vm2377_vm2, %v1968_v31 }
 0x705   :  { %1840 = vmatmul.mubr.msk.f32.vlgmr.msra.gmra.mrb[8].mxu0 %vm171_vm1, %v979_v33 }
 0x7c7   :  { %v1820_v35 = vpop.f32.mrb[4].mxu0 }
 0x7c8   :  { %v669_v36 = vpop.f32.mrb[5].mxu0 }
 0x7cb   :  { %v1834_v38 = vpop.f32.mrb[6].mxu0 }
 0x7cc   :  { %v929_v40 = vpop.f32.mrb[7].mxu0 }
 0x7d8   :  { %v1841_v42 = vpop.f32.mrb[8].mxu0 }
 0x7d9   :  { %v1081_v46 = vmul.f32 %v1841_v42, %v1078_v41  ;;  %v1060_v47 = vpop.f32.mrb[9].mxu0 }
 0x7da   :  { %v1080_v48 = vmul.f32 %v1078_v41, %v1060_v47 }
 0x7db   :  { %v1086_v49 = vadd.f32 %v1709_v44, %v1081_v46 }
 0x7dc   :  { %v1085_v37 = vadd.f32 %v1708_v8, %v1080_v48 }
 0x7dd   :  { %v1088_v50 = vadd.f32 %v1086_v49, %v2398_v22 }
 0x7de   :  { %v1087_v51 = vadd.f32 %v1085_v37, %v2403_v24 }
 0x7df   :  { %v1092_v52 = vsel %vm171_vm1, %v1088_v50, -inf }
 0x7e0   :  { %1093 = vmax.xlane.f32.xlu0 %v1092_v52  ;;  %v1089_v53 = vsel %vm171_vm1, %v1087_v51, -inf }
 0x7e1   :  { %1090 = vmax.xlane.f32.xlu1 %v1089_v53  ;;  %v1373_v53 = vld [vmem:[%s2718_s7] sm:$0xff] }
 0x86d   :  { %v1094_v56 = vpop.xlane.xlu0 %1093 }
 0x86e   :  { %v1096_v57 = vsub.f32 %v1088_v50, %v1094_v56  ;;  %v1091_v58 = vpop.xlane.xlu1 %1090  ;;  %v1374_v56 = vld [vmem:[%s2718_s7 + $0x8] sm:$0xff] }
 0x86f   :  { %v1095_v59 = vsub.f32 %v1087_v51, %v1091_v58  ;;  %v1375_v58 = vld [vmem:[%s2718_s7 + $0x10] sm:$0xff] }
 0x870   :  { %v1099_v60 = vmul.f32 1.442695, %v1096_v57  ;;  %v1994_v57 = vpack.c.bf16 %v1374_v56, %v1373_v53 }
 0x871   :  { %v1097_v61 = vmul.f32 1.442695, %v1095_v59  ;;  %v1376_v59 = vld [vmem:[%s2718_s7 + $0x18] sm:$0xff] }
 0x872   :  { %2145 = vpow2.f32 %v1099_v60  ;;  %v1998_v60 = vpack.c.bf16 %v1376_v59, %v1375_v58 }
 0x873   :  { %2147 = vpow2.f32 %v1097_v61  ;;  %v1377_v61 = vld [vmem:[%s2718_s7 + $0x20] sm:$0xff] }
 0x87c   :  { %v2146_v62 = vpop.eup %2145 }
 0x87d   :  { %v2148_v63 = vpop.eup %2147  ;;  %v1104_v22 = vsel %vm171_vm1, %v2146_v62, 0.0 }
 0x87e   :  { %1105 = vadd.xlane.f32.xlu1 %v1104_v22  ;;  %v1101_v24 = vsel %vm171_vm1, %v2148_v63, 0.0  ;;  %v1379_v22 = vld [vmem:[%s2718_s7 + $0x30] sm:$0xff] }
 0x87f   :  { %1102 = vadd.xlane.f32.xlu0 %v1101_v24  ;;  %v1380_v24 = vld [vmem:[%s2718_s7 + $0x38] sm:$0xff] }
 0x88f   :  { %1200 = vrot.lane.b32.xlu1 %v669_v36, %s2178_s1  ;;  %v1712_v36 = vld [vmem:[%s2717_s4] ss:$0 sm:$0xff] }
 0x893   :  { %1202 = vrot.lane.b32.xlu1 %v1820_v35, %s2178_s1 }
 0x895   :  { %2085 = vrot.lane.b32.xlu0 %v2341_v45, %s2179_s17  ;;  %v1230_v45 = vld [vmem:[%s2716_s3] sm:$0xff] }
 0x896   :  { %v1978_v39 = vpack.c.bf16 %v1231_v11, %v1230_v45  ;;  %v1716_v45 = vld [vmem:[%s2720_s6] ss:$0 sm:$0xff] }
 0x897   :  { %1210 = vrot.lane.b32.xlu1 %v1834_v38, %s2176_s20 }
 0x898   :  { %1979 = vmatprep.subr.bf16.mxu0 %v1978_v39 }
 0x899   :  { %1208 = vrot.lane.b32.xlu0 %v929_v40, %s2176_s20  ;;  %1981 = vmatpush3.bf16.msra.mxu0 %v1978_v39 }
 0x89a   :  { %1983 = vmatprep.subr.bf16.mxu0 %v1982_v14 }
 0x89d   :  { %1985 = vmatpush3.bf16.msra.mxu0 %v1982_v14 }
 0x89e   :  { %1987 = vmatprep.subr.bf16.mxu0 %v1986_v16 }
 0x8a1   :  { %1989 = vmatpush3.bf16.msra.mxu0 %v1986_v16 }
 0x8a2   :  { %1991 = vmatprep.subr.bf16.mxu0 %v1990_v19 }
 0x8a5   :  { %1993 = vmatpush3.bf16.msra.mxu0 %v1990_v19  ;;  %v1523_v19 = vld [vmem:[%s2721_s9] sm:$0xff] }
 0x8a6   :  { %1995 = vmatprep.subr.bf16.mxu0 %v1994_v57 }
 0x90b   :  { %v1106_v0 = vpop.xlane.xlu1 %1105 }
 0x90c   :  { %2149 = vrcp.f32 %v1106_v0  ;;  %v1103_v1 = vpop.xlane.xlu0 %1102  ;;  %v2006_v0 = vpack.c.bf16 %v1380_v24, %v1379_v22 }
 0x90d   :  { %2151 = vrcp.f32 %v1103_v1 }
 0x90f   :  { %v1201_v23 = vpop.permute.xlu1 %1200 }
 0x910   :  { %v2086_v2 = vpop.permute.xlu0 %2085  ;;  %v1222_v28 = vsel %vm171_vm1, %v2471_v55, %v1201_v23  ;;  %v1525_v23 = vld [vmem:[%s2721_s9 + $0x10] sm:$0xff] }
 0x911   :  { %v2088_v3 = vunpack.i.h.bf16 %v2086_v2  ;;  %v2087_v4 = vunpack.i.l.bf16 %v2086_v2 }
 0x913   :  { %v1974_v5 = vpack.c.bf16 %v2088_v3, %v2087_v4  ;;  %v1203_v25 = vpop.permute.xlu1 %1202 }
 0x914   :  { %v1209_v27 = vpop.permute.xlu0 %1208  ;;  %v1223_v30 = vsel %vm171_vm1, %v2469_v54, %v1203_v25  ;;  %v1526_v25 = vld [vmem:[%s2721_s9 + $0x18] sm:$0xff] }
 0x915   :  { %1975 = vmatprep.subr.bf16.mxu1 %v1974_v5  ;;  %v1225_v31 = vsel %vm1224_vm3, %v1222_v28, %v1209_v27  ;;  %v1527_v27 = vld [vmem:[%s2721_s9 + $0x20] sm:$0xff]  ;;  %v1528_v28 = vld [vmem:[%s2721_s9 + $0x28] sm:$0xff] }
 0x916   :  { %v2150_v6 = vpop.eup %2149  ;;  %1977 = vmatpush3.bf16.msra.mxu1 %v1974_v5 }
 0x917   :  { %v2152_v7 = vpop.eup %2151  ;;  %v1110_v10 = vmul.f32 %v2150_v6, %v2146_v62  ;;  %v1211_v26 = vpop.permute.xlu1 %1210  ;;  %v1378_v62 = vld [vmem:[%s2718_s7 + $0x28] sm:$0xff] }
 0x918   :  { %v1109_v9 = vmul.f32 %v2152_v7, %v2148_v63  ;;  %v1226_v32 = vsel %vm1224_vm3, %v1223_v30, %v1211_v26  ;;  %v2002_v63 = vpack.c.bf16 %v1378_v62, %v1377_v61  ;;  %v2014_v26 = vpack.c.bf16 %v1526_v25, %v1525_v23  ;;  %v1529_v30 = vld [vmem:[%s2721_s9 + $0x30] sm:$0xff] }
 0x91a   :  { %1846 = vmatprep.mubr.msk.f32.mxu1 %vm171_vm1, %v1109_v9  ;;  %v1715_v9 = vld [vmem:[%s2719_s5] ss:$0 sm:$0xff] }
 0x91b   :  { %1847 = vmatmul.mubr.msk.f32.vlgmr.msra.gmra.mrb[8].mxu1 %vm171_vm1, %v1110_v10 }
 0x9ee   :  { %v1848_v20 = vpop.f32.mrb[8].mxu1 }
 0x9ef   :  { %1218 = vrot.lane.b32.xlu1 %v1848_v20, %s2175_s19  ;;  %v1189_v21 = vpop.f32.mrb[9].mxu1  ;;  %v1524_v20 = vld [vmem:[%s2721_s9 + $0x8] sm:$0xff] }
 0x9f0   :  { %1216 = vrot.lane.b32.xlu0 %v1189_v21, %s2175_s19  ;;  %v2010_v21 = vpack.c.bf16 %v1524_v20, %v1523_v19 }
 0x9f2   :  { %2011 = vmatprep.subr.bf16.mxu1 %v2010_v21 }
 0x9f3   :  { %2013 = vmatpush3.bf16.msra.mxu1 %v2010_v21 }
 0x9f4   :  { %2015 = vmatprep.subr.bf16.mxu1 %v2014_v26 }
 0x9f7   :  { %2017 = vmatpush3.bf16.msra.mxu1 %v2014_v26 }
 0xa61   :  { %v1219_v29 = vpop.permute.xlu1 %1218 }
 0xa62   :  { %v1217_v43 = vpop.permute.xlu0 %1216  ;;  %v1229_v35 = vsel %vm1227_vm4, %v1226_v32, %v1219_v29  ;;  %v2018_v29 = vpack.c.bf16 %v1528_v28, %v1527_v27  ;;  %v1531_v32 = vld [vmem:[%s2721_s9 + $0x40] sm:$0xff]  ;;  %v2180_v27 = vmov 1.0  }
 0xa63   :  { %v1228_v33 = vsel %vm1227_vm4, %v1225_v31, %v1217_v43  ;;  %v1530_v31 = vld [vmem:[%s2721_s9 + $0x38] sm:$0xff] }
 0xa64   :  { %1865 = vmatprep.mubr.msk.f32.mxu0 %vm83_vm0, %v1228_v33  ;;  %2019 = vmatprep.subr.bf16.mxu1 %v2018_v29  ;;  %v2022_v43 = vpack.c.bf16 %v1530_v31, %v1529_v30  ;;  %v1532_v33 = vld [vmem:[%s2721_s9 + $0x48] sm:$0xff] }
 0xa65   :  { %1866 = vmatmul.mubr.msk.f32.vlgmr.msra.gmra.mrb[10].mxu0 %vm83_vm0, %v1229_v35  ;;  %2021 = vmatpush3.bf16.msra.mxu1 %v2018_v29  ;;  %v2026_v35 = vpack.c.bf16 %v1532_v33, %v1531_v32 }
 0xa66   :  { %1997 = vmatpush3.bf16.msra.mxu0 %v1994_v57  ;;  %2023 = vmatprep.subr.bf16.mxu1 %v2022_v43 }
 0xa67   :  { %1999 = vmatprep.subr.bf16.mxu0 %v1998_v60 }
 0xa69   :  { %2025 = vmatpush3.bf16.msra.mxu1 %v2022_v43 }
 0xa6a   :  { %2001 = vmatpush3.bf16.msra.mxu0 %v1998_v60  ;;  %2027 = vmatprep.subr.bf16.mxu1 %v2026_v35 }
 0xa6b   :  { %2003 = vmatprep.subr.bf16.mxu0 %v2002_v63 }
 0xa6d   :  { %2029 = vmatpush3.bf16.msra.mxu1 %v2026_v35 }
 0xa6e   :  { %2005 = vmatpush3.bf16.msra.mxu0 %v2002_v63 }
 0xa6f   :  { %2007 = vmatprep.subr.bf16.mxu0 %v2006_v0 }
 0xa72   :  { %2009 = vmatpush3.bf16.msra.mxu0 %v2006_v0 }
 0xb38   :  { %v1867_v38 = vpop.f32.mrb[10].mxu0 }
 0xb39   :  { %v1323_v40 = vadd.f32 %v1867_v38, %v1712_v36  ;;  %v1317_v55 = vpop.f32.mrb[11].mxu0  ;;  %v1534_v38 = vld [vmem:[%s2721_s9 + $0x58] sm:$0xff] }
 0xb3a   :  { %v1318_v41 = vadd.f32 %v1712_v36, %v1317_v55  ;;  %v1533_v36 = vld [vmem:[%s2721_s9 + $0x50] sm:$0xff]  ;;  %v1535_v55 = vld [vmem:[%s2721_s9 + $0x60] sm:$0xff] }
 0xb3b   :  { %v1331_v42 = vsel %vm83_vm0, %v1323_v40, 0.0 }
 0xb3c   :  { %1332 = vadd.xlane.f32.xlu1 %v1331_v42  ;;  %v1328_v54 = vsel %vm83_vm0, %v1318_v41, 0.0 }
 0xb3d   :  { %1329 = vadd.xlane.f32.xlu0 %v1328_v54  ;;  %v1537_v54 = vld [vmem:[%s2721_s9 + $0x70] sm:$0xff] }
 0xbc9   :  { %v1333_v44 = vpop.xlane.xlu1 %1332 }
 0xbca   :  { %v1336_v46 = vmul.f32 0.015625, %v1333_v44  ;;  %v1330_v47 = vpop.xlane.xlu0 %1329  ;;  %v1538_v44 = vld [vmem:[%s2721_s9 + $0x78] sm:$0xff] }
 0xbcb   :  { %v1335_v8 = vmul.f32 0.015625, %v1330_v47  ;;  %v1717_v47 = vld [vmem:[%s2722_s8] ss:$0 sm:$0xff] }
 0xbcc   :  { %v1338_v48 = vsub.f32 %v1323_v40, %v1336_v46  ;;  %v2030_v40 = vpack.c.bf16 %v1534_v38, %v1533_v36  ;;  %v2038_v46 = vpack.c.bf16 %v1538_v44, %v1537_v54 }
 0xbcd   :  { %v1337_v49 = vsub.f32 %v1318_v41, %v1335_v8  ;;  %v1536_v41 = vld [vmem:[%s2721_s9 + $0x68] sm:$0xff] }
 0xbce   :  { %v1340_v51 = vmul.f32 %v1338_v48, %v1338_v48  ;;  %2031 = vmatprep.subr.bf16.mxu1 %v2030_v40  ;;  %v2034_v42 = vpack.c.bf16 %v1536_v41, %v1535_v55  ;;  %v1720_v55 = vld [vmem:[%s2723_s10] ss:$0 sm:$0xff] }
 0xbcf   :  { %v1339_v37 = vmul.f32 %v1337_v49, %v1337_v49  ;;  %2033 = vmatpush3.bf16.msra.mxu1 %v2030_v40 }
 0xbd0   :  { %v1344_v52 = vsel %vm83_vm0, %v1340_v51, 0.0  ;;  %2035 = vmatprep.subr.bf16.mxu1 %v2034_v42 }
 0xbd1   :  { %v1341_v50 = vsel %vm83_vm0, %v1339_v37, 0.0 }
 0xbd2   :  { %1342 = vadd.xlane.f32.xlu0 %v1341_v50 }
 0xbd3   :  { %2037 = vmatpush3.bf16.msra.mxu1 %v2034_v42 }
 0xbd4   :  { %2039 = vmatprep.subr.bf16.mxu1 %v2038_v46 }
 0xbd6   :  { %1345 = vadd.xlane.f32.xlu0 %v1344_v52 }
 0xbd7   :  { %2041 = vmatpush3.bf16.msra.mxu1 %v2038_v46 }
 0xc5f   :  { %v1343_v1 = vpop.xlane.xlu0 %1342 }
 0xc60   :  { %v1347_v2 = vmul.f32 0.015625, %v1343_v1 }
 0xc62   :  { %v1349_v3 = vadd.f32 1e-05, %v1347_v2 }
 0xc63   :  { %v1346_v4 = vpop.xlane.xlu0 %1345 }
 0xc64   :  { %2153 = vrsqrt.f32 %v1349_v3  ;;  %v1348_v5 = vmul.f32 0.015625, %v1346_v4 }
 0xc66   :  { %v1350_v6 = vadd.f32 1e-05, %v1348_v5 }
 0xc68   :  { %2155 = vrsqrt.f32 %v1350_v6 }
 0xc6e   :  { %v2154_v7 = vpop.eup %2153 }
 0xc6f   :  { %v1353_v10 = vmul.f32 %v2154_v7, %v1337_v49 }
 0xc71   :  { %v1361_v11 = vmul.f32 %v1715_v9, %v1353_v10 }
 0xc72   :  { %v2156_v12 = vpop.eup %2155 }
 0xc73   :  { %v1354_v39 = vmul.f32 %v2156_v12, %v1338_v48  ;;  %v1369_v13 = vadd.f32 %v1716_v45, %v1361_v11 }
 0xc75   :  { %v1362_v14 = vmul.f32 %v1715_v9, %v1354_v39  ;;  %v2625_v34 = vadd.f32 %v2169_v15, %v1369_v13 }
 0xc77   :  { %v1370_v16 = vadd.f32 %v1716_v45, %v1362_v14  ;;  %1884 = vmatprep.mubr.msk.f32.mxu0 %vm83_vm0, %v2625_v34 }
 0xc79   :  { %v2632_v18 = vadd.f32 %v2170_v17, %v1370_v16 }
 0xc7b   :  { %1885 = vmatmul.mubr.msk.f32.vlgmr.msra.gmra.mrb[12].mxu0 %vm83_vm0, %v2632_v18 }
 0xd4e   :  { %v1886_v8 = vpop.f32.mrb[12].mxu0 }
 0xd4f   :  { %v1466_v48 = vadd.f32 %v1886_v8, %v1717_v47  ;;  %v1460_v49 = vpop.f32.mrb[13].mxu0 }
 0xd50   :  { %v1461_v37 = vadd.f32 %v1717_v47, %v1460_v49 }
 0xd51   :  { %v1472_v50 = vmul.f32 0.70710677, %v1466_v48  ;;  %v1470_v36 = vmul.f32 0.5, %v1466_v48 }
 0xd52   :  { %v1471_v51 = vmul.f32 0.70710677, %v1461_v37  ;;  %v1469_v33 = vmul.f32 0.5, %v1461_v37 }
 0xd53   :  { %v1478_v52 = vand.u32 2147483647, %v1472_v50  ;;  %vm1474_vm5 = vcmp.lt.f32.partialorder %v1472_v50, 0.0 }
 0xd54   :  { %v1477_v53 = vand.u32 2147483647, %v1471_v51  ;;  %vm1473_vm6 = vcmp.lt.f32.partialorder %v1471_v51, 0.0  ;;  %v1476_v28 = vsel %vm1474_vm5, -1.0, %v2180_v27 }
 0xd55   :  { %v1480_v56 = vmul.f32 0.3275911, %v1478_v52  ;;  %v1506_v60 = vsub.f32 0.0, %v1478_v52  ;;  %v1475_v31 = vsel %vm1473_vm6, -1.0, %v2180_v27 }
 0xd56   :  { %v1479_v57 = vmul.f32 0.3275911, %v1477_v53  ;;  %v1505_v61 = vsub.f32 0.0, %v1477_v53 }
 0xd57   :  { %v1482_v58 = vadd.f32 1.0, %v1480_v56  ;;  %v1508_v63 = vmul.f32 %v1506_v60, %v1478_v52 }
 0xd58   :  { %v1481_v59 = vadd.f32 1.0, %v1479_v57  ;;  %v1507_v0 = vmul.f32 %v1505_v61, %v1477_v53 }
 0xd59   :  { %2157 = vrcp.f32 %v1482_v58  ;;  %v1511_v3 = vmul.f32 1.442695, %v1508_v63 }
 0xd5a   :  { %2159 = vrcp.f32 %v1481_v59  ;;  %v1509_v6 = vmul.f32 1.442695, %v1507_v0 }
 0xd5b   :  { %2161 = vpow2.f32 %v1511_v3 }
 0xd5c   :  { %2163 = vpow2.f32 %v1509_v6 }
 0xd63   :  { %v2158_v62 = vpop.eup %2157 }
 0xd64   :  { %v2160_v22 = vpop.eup %2159  ;;  %v1488_v24 = vmul.f32 1.0614054, %v2158_v62 }
 0xd65   :  { %v1487_v1 = vmul.f32 1.0614054, %v2160_v22  ;;  %v2162_v19 = vpop.eup %2161 }
 0xd66   :  { %v1490_v2 = vadd.f32 -1.4531521, %v1488_v24  ;;  %v2164_v21 = vpop.eup %2163  ;;  %v1721_v24 = vld [vmem:[%s2724_s11] ss:$0 sm:$0xff] }
 0xd67   :  { %v1489_v4 = vadd.f32 -1.4531521, %v1487_v1 }
 0xd68   :  { %v1492_v5 = vmul.f32 %v2158_v62, %v1490_v2  ;;  %v1722_v2 = vld [vmem:[%s2725_s12] ss:$0 sm:$0xff] }
 0xd69   :  { %v1491_v7 = vmul.f32 %v2160_v22, %v1489_v4 }
 0xd6a   :  { %v1494_v9 = vadd.f32 1.4214138, %v1492_v5 }
 0xd6b   :  { %v1493_v10 = vadd.f32 1.4214138, %v1491_v7 }
 0xd6c   :  { %v1496_v45 = vmul.f32 %v2158_v62, %v1494_v9 }
 0xd6d   :  { %v1495_v11 = vmul.f32 %v2160_v22, %v1493_v10 }
 0xd6e   :  { %v1498_v12 = vadd.f32 -0.28449672, %v1496_v45 }
 0xd6f   :  { %v1497_v39 = vadd.f32 -0.28449672, %v1495_v11 }
 0xd70   :  { %v1500_v13 = vmul.f32 %v2158_v62, %v1498_v12 }
 0xd71   :  { %v1499_v14 = vmul.f32 %v2160_v22, %v1497_v39 }
 0xd72   :  { %v1502_v15 = vadd.f32 0.2548296, %v1500_v13 }
 0xd73   :  { %v1501_v16 = vadd.f32 0.2548296, %v1499_v14 }
 0xd74   :  { %v1504_v17 = vmul.f32 %v2158_v62, %v1502_v15 }
 0xd75   :  { %v1503_v20 = vmul.f32 %v2160_v22, %v1501_v16 }
 0xd76   :  { %v1514_v23 = vmul.f32 %v2162_v19, %v1504_v17 }
 0xd77   :  { %v1513_v25 = vmul.f32 %v2164_v21, %v1503_v20 }
 0xd78   :  { %v1516_v26 = vsub.f32 1.0, %v1514_v23 }
 0xd79   :  { %v1515_v29 = vsub.f32 1.0, %v1513_v25 }
 0xd7a   :  { %v1518_v30 = vmul.f32 %v1516_v26, %v1476_v28 }
 0xd7b   :  { %v1517_v43 = vmul.f32 %v1515_v29, %v1475_v31 }
 0xd7c   :  { %v1520_v32 = vadd.f32 1.0, %v1518_v30 }
 0xd7d   :  { %v1519_v35 = vadd.f32 1.0, %v1517_v43 }
 0xd7e   :  { %v1522_v40 = vmul.f32 %v1520_v32, %v1470_v36 }
 0xd7f   :  { %v1521_v38 = vmul.f32 %v1519_v35, %v1469_v33 }
 0xd81   :  { %1919 = vmatprep.mubr.f32.mxu1 %v1521_v38 }
 0xd82   :  { %1920 = vmatmul.mubr.f32.vlgmr.msra.gmra.mrb[10].mxu1 %v1522_v40 }
 0xe55   :  { %v1921_v41 = vpop.f32.mrb[10].mxu1 }
 0xe56   :  { %v1618_v42 = vadd.f32 %v1921_v41, %v1720_v55  ;;  %v1612_v54 = vpop.f32.mrb[11].mxu1 }
 0xe57   :  { %v1613_v44 = vadd.f32 %v1720_v55, %v1612_v54 }
 0xe58   :  { %v1626_v46 = vsel %vm83_vm0, %v1618_v42, 0.0 }
 0xe59   :  { %1627 = vadd.xlane.f32.xlu0 %v1626_v46  ;;  %v1623_v47 = vsel %vm83_vm0, %v1613_v44, 0.0 }
 0xe5a   :  { %1624 = vadd.xlane.f32.xlu1 %v1623_v47 }
 0xee6   :  { %v1628_v8 = vpop.xlane.xlu0 %1627 }
 0xee7   :  { %v1630_v48 = vmul.f32 0.015625, %v1628_v8  ;;  %v1625_v49 = vpop.xlane.xlu1 %1624 }
 0xee8   :  { %v1629_v37 = vmul.f32 0.015625, %v1625_v49 }
 0xee9   :  { %v1632_v50 = vsub.f32 %v1618_v42, %v1630_v48 }
 0xeea   :  { %v1631_v51 = vsub.f32 %v1613_v44, %v1629_v37 }
 0xeeb   :  { %v1634_v52 = vmul.f32 %v1632_v50, %v1632_v50 }
 0xeec   :  { %v1633_v53 = vmul.f32 %v1631_v51, %v1631_v51 }
 0xeed   :  { %v1638_v56 = vsel %vm83_vm0, %v1634_v52, 0.0 }
 0xeee   :  { %1639 = vadd.xlane.f32.xlu0 %v1638_v56  ;;  %v1635_v57 = vsel %vm83_vm0, %v1633_v53, 0.0 }
 0xeef   :  { %1636 = vadd.xlane.f32.xlu1 %v1635_v57 }
 0xf7b   :  { %v1640_v58 = vpop.xlane.xlu0 %1639 }
 0xf7c   :  { %v1642_v59 = vmul.f32 0.015625, %v1640_v58  ;;  %v1637_v60 = vpop.xlane.xlu1 %1636 }
 0xf7d   :  { %v1641_v61 = vmul.f32 0.015625, %v1637_v60 }
 0xf7e   :  { %v1644_v62 = vadd.f32 1e-05, %v1642_v59 }
 0xf7f   :  { %v1643_v63 = vadd.f32 1e-05, %v1641_v61 }
 0xf80   :  { %2165 = vrsqrt.f32 %v1644_v62 }
 0xf81   :  { %2167 = vrsqrt.f32 %v1643_v63 }
 0xf8a   :  { %v2166_v22 = vpop.eup %2165 }
 0xf8b   :  { %v2168_v0 = vpop.eup %2167  ;;  %v1648_v1 = vmul.f32 %v2166_v22, %v1632_v50 }
 0xf8c   :  { %v1647_v3 = vmul.f32 %v2168_v0, %v1631_v51 }
 0xf8d   :  { %v1656_v4 = vmul.f32 %v1721_v24, %v1648_v1 }
 0xf8e   :  { %v1655_v5 = vmul.f32 %v1721_v24, %v1647_v3 }
 0xf8f   :  { %v1664_v6 = vadd.f32 %v1722_v2, %v1656_v4 }
 0xf90   :  { %v1663_v7 = vadd.f32 %v1722_v2, %v1655_v5 }
 0xf91   :  { %v1666_v9 = vadd.f32 %v1664_v6, %v2632_v18 }
 0xf92   :  { %v1665_v10 = vadd.f32 %v1663_v7, %v2625_v34 }
 0xf93   :  { %1668 = vst.msk [vmem:[%s2726_s16 + $0x8] sm:$0xff] %vm83_vm0, %v1666_v9 }
 0xf94   :  { %1667 = vst.msk [vmem:[%s2726_s16] sm:$0xff] %vm83_vm0, %v1665_v10 }

</bundles_post_ra>
